<compile_context>
chip_gen: v7x
topology: tpu7x:2x2x1
jax: 0.10.0
libtpu: 0.0.40
codegen_flags: <defaults>
</compile_context>

<pallas_src>
import functools
import math

import jax
import jax.numpy as jnp
from jax.experimental import pallas as pl
from jax.experimental.pallas import tpu as pltpu


# --------------------------------------------------------------------------
# helpers
# --------------------------------------------------------------------------
def _round_up(x, m):
    return ((x + m - 1) // m) * m


def _pick_tile(dim, max_tile, granule):
    """(tile, padded_dim): largest multiple of `granule` <= max_tile dividing padded dim."""
    padded = _round_up(dim, granule)
    t = min(_round_up(max_tile, granule), padded)
    while padded % t:
        t -= granule
    return t, padded


def _pad_to(x, shape):
    pads = [(0, t - s) for s, t in zip(x.shape, shape)]
    if all(p[1] == 0 for p in pads):
        return x
    return jnp.pad(x, pads)


# --------------------------------------------------------------------------
# Pallas kernels
# --------------------------------------------------------------------------
def _make_matmul_kernel(act, stats):
    """o = act(x @ w + b); optionally also emit per-column sum / sum-of-squares
    of the (pre-activation) result tile at the last K step."""

    def kernel(x_ref, w_ref, b_ref, *rest):
        if stats:
            o_ref, sum_ref, sq_ref, acc_ref = rest
        else:
            o_ref, acc_ref = rest

        @pl.when(pl.program_id(2) == 0)
        def _init():
            acc_ref[...] = jnp.zeros_like(acc_ref)

        acc_ref[...] += jnp.dot(x_ref[...], w_ref[...],
                                preferred_element_type=jnp.float32)

        @pl.when(pl.program_id(2) == pl.num_programs(2) - 1)
        def _fin():
            y = acc_ref[...] + b_ref[...]
            if stats:   # BN stats are taken on the pre-activation conv output
                sum_ref[...] = jnp.sum(y, axis=0, keepdims=True).reshape(sum_ref.shape)
                sq_ref[...] = jnp.sum(y * y, axis=0, keepdims=True).reshape(sq_ref.shape)
            if act == "leaky":
                y = jnp.where(y > 0, y, 0.2 * y)
            elif act == "sigmoid":
                y = jax.nn.sigmoid(y)
            o_ref[...] = y

    return kernel


def _scale_shift_act_kernel(x_ref, s_ref, h_ref, o_ref, *, act):
    """o = act(x * scale + shift), per-channel scale/shift (f32 math)."""
    y = x_ref[...] * s_ref[...] + h_ref[...]
    if act == "leaky":
        y = jnp.where(y > 0, y, 0.2 * y)
    elif act == "sigmoid":
        y = jax.nn.sigmoid(y)
    o_ref[...] = y


# --------------------------------------------------------------------------
# Pallas-call wrappers
# --------------------------------------------------------------------------
def pallas_matmul_fused(x, w, b=None, *, act="none", stats=False,
                        tm_max=256, tn_max=256, tk_max=512):
    """y = act(x @ w + b).

    x: (M, K), w: (K, N), b: (N,) or None.  Operands are fed to the MXU in
    bf16; accumulation and the epilogue are f32.  Returns (out_padded, stats)
    where out_padded has the tile-rounded shape (Mp, Np) (caller slices) and
    stats is (col_sum[:N], col_sq[:N]) when requested, else None.
    """
    assert not (stats and act != "none")
    M, K = x.shape
    K2, N = w.shape
    assert K2 == K

    x = x.astype(jnp.bfloat16)
    w = w.astype(jnp.bfloat16)
    bias = (jnp.zeros((N,), jnp.float32) if b is None
            else b.astype(jnp.float32)).reshape(1, N)

    tm, Mp = _pick_tile(M, tm_max, 16)     # 16: bf16 sublane granularity
    tn, Np = _pick_tile(N, tn_max, 128)
    tk, Kp = _pick_tile(K, tk_max, 128)

    xp = _pad_to(x, (Mp, Kp))
    wp = _pad_to(w, (Kp, Np))
    bp = _pad_to(bias, (1, Np))

    grid = (Mp // tm, Np // tn, Kp // tk)
    gm = grid[0]

    out_shapes = [jax.ShapeDtypeStruct((Mp, Np), jnp.float32)]
    out_specs = [pl.BlockSpec((tm, tn), lambda i, j, k: (i, j))]
    if stats:
        out_shapes += [jax.ShapeDtypeStruct((gm, 1, Np), jnp.float32),
                       jax.ShapeDtypeStruct((gm, 1, Np), jnp.float32)]
        out_specs += [pl.BlockSpec((1, 1, tn), lambda i, j, k: (i, 0, j)),
                      pl.BlockSpec((1, 1, tn), lambda i, j, k: (i, 0, j))]

    res = pl.pallas_call(
        _make_matmul_kernel(act=act, stats=stats),
        out_shape=tuple(out_shapes),
        grid_spec=pltpu.PrefetchScalarGridSpec(
            num_scalar_prefetch=0,
            grid=grid,
            in_specs=[
                pl.BlockSpec((tm, tk), lambda i, j, k: (i, k)),
                pl.BlockSpec((tk, tn), lambda i, j, k: (k, j)),
                pl.BlockSpec((1, tn), lambda i, j, k: (0, j)),
            ],
            out_specs=out_specs,
            scratch_shapes=[pltpu.VMEM((tm, tn), jnp.float32)],
        ),
        compiler_params=pltpu.CompilerParams(
            dimension_semantics=("parallel", "parallel", "arbitrary")),
    )(xp, wp, bp)

    if not stats:
        return res[0], None

    out, s3, q3 = res
    col_sum = jnp.sum(s3[:, 0, :], axis=0)[:N]
    col_sq = jnp.sum(q3[:, 0, :], axis=0)[:N]
    pad_rows = Mp - M
    if pad_rows:
        # padded (zero) input rows evaluate to exactly `bias` pre-activation;
        # remove their contribution from the batch statistics.
        bvec = bias[0]
        col_sum = col_sum - pad_rows * bvec
        col_sq = col_sq - pad_rows * bvec * bvec
    return out, (col_sum, col_sq)


def pallas_scale_shift_act(x, scale, shift, act):
    """y = act(x * scale + shift); x is (M, C) with M % 8 == 0, C % 128 == 0."""
    M, C = x.shape
    assert M % 8 == 0 and C % 128 == 0
    tr = math.gcd(M, 256)
    sp = scale.reshape(1, C).astype(jnp.float32)
    hp = shift.reshape(1, C).astype(jnp.float32)
    kernel = functools.partial(_scale_shift_act_kernel, act=act)
    return pl.pallas_call(
        kernel,
        out_shape=jax.ShapeDtypeStruct((M, C), jnp.float32),
        grid_spec=pltpu.PrefetchScalarGridSpec(
            num_scalar_prefetch=0,
            grid=(M // tr,),
            in_specs=[
                pl.BlockSpec((tr, C), lambda i: (i, 0)),
                pl.BlockSpec((1, C), lambda i: (0, 0)),
                pl.BlockSpec((1, C), lambda i: (0, 0)),
            ],
            out_specs=pl.BlockSpec((tr, C), lambda i: (i, 0)),
        ),
        compiler_params=pltpu.CompilerParams(dimension_semantics=("parallel",)),
    )(x.astype(jnp.float32), sp, hp)


# --------------------------------------------------------------------------
# Conv-as-matmul glue (im2col) and model forward
# --------------------------------------------------------------------------
def _extract_patches(x, ksize, stride, pad):
    """x: (N, H, W, C) -> (N*OH*OW, ksize*ksize*C), patch order (kh, kw, c)."""
    # Further optimization possible: move the kh/kw expansion into the matmul
    # grid (extra "arbitrary" axis) to avoid materializing the im2col tensor.
    N, H, W, C = x.shape
    xp = jnp.pad(x, ((0, 0), (pad, pad), (pad, pad), (0, 0))) if pad else x
    OH = (H + 2 * pad - ksize) // stride + 1
    OW = (W + 2 * pad - ksize) // stride + 1
    cols = []
    for kh in range(ksize):
        for kw in range(ksize):
            cols.append(xp[:, kh:kh + stride * OH:stride,
                           kw:kw + stride * OW:stride, :])
    patches = jnp.stack(cols, axis=3)               # (N, OH, OW, k*k, C)
    return patches.reshape(N * OH * OW, ksize * ksize * C), OH, OW


def _conv_matmul(x_nhwc, w_mat, b, *, ksize, stride, pad, act="none", stats=False):
    patches, OH, OW = _extract_patches(x_nhwc.astype(jnp.bfloat16), ksize, stride, pad)
    out, st = pallas_matmul_fused(patches, w_mat, b, act=act, stats=stats)
    return out, st, (x_nhwc.shape[0], OH, OW, w_mat.shape[1])


def _bn_lrelu(y_padded, col_stats, rows, gamma, beta, eps=1e-5):
    """Training-mode BatchNorm (batch stats, biased var) + LeakyReLU(0.2)."""
    col_sum, col_sq = col_stats
    mean = col_sum / rows
    var = jnp.maximum(col_sq / rows - mean * mean, 0.0)
    scale = gamma / jnp.sqrt(var + eps)
    shift = beta - mean * scale
    return pallas_scale_shift_act(y_padded, scale, shift, "leaky")


def init_params(num_classes, key):
    ks = jax.random.split(key, 8)
    n = lambda k, s: 0.02 * jax.random.normal(k, s, jnp.float32)
    return {
        "conv1_w": n(ks[0], (128, 3, 4, 4)),
        "conv2_w": n(ks[1], (256, 128, 4, 4)),
        "bn2_g": jnp.ones((256,), jnp.float32), "bn2_b": jnp.zeros((256,), jnp.float32),
        "conv3_w": n(ks[2], (512, 256, 4, 4)),
        "bn3_g": jnp.ones((512,), jnp.float32), "bn3_b": jnp.zeros((512,), jnp.float32),
        "conv4_w": n(ks[3], (1024, 512, 4, 4)),
        "bn4_g": jnp.ones((1024,), jnp.float32), "bn4_b": jnp.zeros((1024,), jnp.float32),
        "disc_w": n(ks[4], (1, 1024, 4, 4)), "disc_b": jnp.zeros((1,), jnp.float32),
        "bot_w": n(ks[5], (512, 1024, 4, 4)), "bot_b": jnp.zeros((512,), jnp.float32),
        "bnb_g": jnp.ones((512,), jnp.float32), "bnb_b": jnp.zeros((512,), jnp.float32),
        "cls_w": n(ks[6], (num_classes, 512)), "cls_b": jnp.zeros((num_classes,), jnp.float32),
    }


def prepare_params(params):
    """One-time layout change: OIHW conv weights -> (KH*KW*Cin, Cout) bf16 matrices."""
    def conv_mat(w_oihw):
        Cout, Cin, KH, KW = w_oihw.shape
        return (jnp.transpose(w_oihw, (2, 3, 1, 0))
                .reshape(KH * KW * Cin, Cout).astype(jnp.bfloat16))
    return {
        "w1": conv_mat(params["conv1_w"]),
        "w2": conv_mat(params["conv2_w"]),
        "w3": conv_mat(params["conv3_w"]),
        "w4": conv_mat(params["conv4_w"]),
        "wd": conv_mat(params["disc_w"]), "bd": params["disc_b"],
        "wb": conv_mat(params["bot_w"]), "bb": params["bot_b"],
        "wc": params["cls_w"].T.astype(jnp.bfloat16), "bc": params["cls_b"],
        "bn2_g": params["bn2_g"], "bn2_b": params["bn2_b"],
        "bn3_g": params["bn3_g"], "bn3_b": params["bn3_b"],
        "bn4_g": params["bn4_g"], "bn4_b": params["bn4_b"],
        "bnb_g": params["bnb_g"], "bnb_b": params["bnb_b"],
    }


def discriminator_forward(p, x_nchw):
    """Mirrors Discriminator.forward.  x_nchw: (N, 3, 64, 64) float32."""
    B = x_nchw.shape[0]
    x = jnp.transpose(x_nchw, (0, 2, 3, 1)).astype(jnp.float32)       # NHWC

    # conv_layers ----------------------------------------------------------
    y, _, shp = _conv_matmul(x, p["w1"], None, ksize=4, stride=2, pad=1, act="leaky")
    M = shp[0] * shp[1] * shp[2]
    x = y[:M, :shp[3]].reshape(shp)                                    # (B,32,32,128)

    y, st, shp = _conv_matmul(x, p["w2"], None, ksize=4, stride=2, pad=1, stats=True)
    M = shp[0] * shp[1] * shp[2]
    x = _bn_lrelu(y, st, M, p["bn2_g"], p["bn2_b"])[:M, :shp[3]].reshape(shp)   # (B,16,16,256)

    y, st, shp = _conv_matmul(x, p["w3"], None, ksize=4, stride=2, pad=1, stats=True)
    M = shp[0] * shp[1] * shp[2]
    x = _bn_lrelu(y, st, M, p["bn3_g"], p["bn3_b"])[:M, :shp[3]].reshape(shp)   # (B,8,8,512)

    y, st, shp = _conv_matmul(x, p["w4"], None, ksize=4, stride=2, pad=1, stats=True)
    M = shp[0] * shp[1] * shp[2]
    features = _bn_lrelu(y, st, M, p["bn4_g"], p["bn4_b"])[:M, :shp[3]].reshape(shp)  # (B,4,4,1024)

    # shared im2col for the two 4x4 "valid" convs on features (k4, s1, p0)
    feat_patches, _, _ = _extract_patches(features.astype(jnp.bfloat16), 4, 1, 0)  # (B, 16384)

    # discriminator_layer: Conv(1024->1, k4, s1) + Sigmoid, .view(-1) -------
    d, _ = pallas_matmul_fused(feat_patches, p["wd"], p["bd"], act="sigmoid")
    discrim_output = d[:B, :1].reshape(-1)                              # (B,)

    # bottleneck: Conv(1024->512, k4, s1) + BN + LeakyReLU, .squeeze() -------
    bt, st = pallas_matmul_fused(feat_patches, p["wb"], p["bb"], act="none", stats=True)
    flatten = _bn_lrelu(bt, st, B, p["bnb_g"], p["bnb_b"])[:B, :512]    # (B, 512)

    # classifier_layer: Linear(512 -> num_classes) + Sigmoid ----------------
    nc = p["bc"].shape[0]
    logits, _ = pallas_matmul_fused(flatten, p["wc"], p["bc"], act="sigmoid")
    aux_output = logits[:B, :nc]                                        # (B, nc)

    return discrim_output, aux_output


# --------------------------------------------------------------------------
if __name__ == "__main__":
    NUM_CLASSES = 10
    BATCH = 2
    key = jax.random.PRNGKey(0)
    k_params, k_input = jax.random.split(key)

    params = init_params(NUM_CLASSES, k_params)
    prepped = prepare_params(params)
    # Module architecture requires 64x64 spatial input (ends at 4x4 -> 1x1).
    x = jax.random.normal(k_input, (BATCH, 3, 64, 64), jnp.float32)

    fwd = jax.jit(discriminator_forward)
    discrim_out, aux_out = fwd(prepped, x)
    jax.block_until_ready((discrim_out, aux_out))

    assert discrim_out.shape == (BATCH,)
    assert aux_out.shape == (BATCH, NUM_CLASSES)
    assert bool(jnp.all(jnp.isfinite(discrim_out))) and bool(jnp.all(jnp.isfinite(aux_out)))
    print("KERNEL_OK")
</pallas_src>

<mosaic_0001>
module attributes {stable_mosaic.version = 11 : i64} {
  func.func @kernel(%arg0: i32, %arg1: i32, %arg2: i32, %arg3: memref<256x128xbf16, #tpu.memory_space<vmem>>, %arg4: memref<128x128xbf16, #tpu.memory_space<vmem>>, %arg5: memref<1x128xf32, #tpu.memory_space<vmem>>, %arg6: memref<256x128xf32, #tpu.memory_space<vmem>>, %arg7: memref<256x128xf32, #tpu.memory_space<vmem>>) attributes {dimension_semantics = [#tpu.dimension_semantics<parallel>, #tpu.dimension_semantics<parallel>, #tpu.dimension_semantics<arbitrary>], iteration_bounds = array<i64: 8, 1, 1>, scalar_prefetch = 0 : i64, scratch_operands = 1 : i64, tpu.core_type = #tpu.core_type<tc>, window_params = [{transform_indices = @transform_0, window_bounds = array<i64: 256, 128>}, {transform_indices = @transform_1, window_bounds = array<i64: 128, 128>}, {transform_indices = @transform_2, window_bounds = array<i64: 1, 128>}, {transform_indices = @transform_3, window_bounds = array<i64: 256, 128>}]} {
    %c0_i32 = arith.constant 0 : i32
    %0 = arith.cmpi eq, %arg2, %c0_i32 : i32
    %1 = arith.extui %0 : i1 to i32
    %c0_i32_0 = arith.constant 0 : i32
    %2 = arith.cmpi ne, %1, %c0_i32_0 : i32
    scf.if %2 {
      %cst_10 = arith.constant 0.000000e+00 : f32
      %12 = vector.broadcast %cst_10 : f32 to vector<256x128xf32>
      %c0_11 = arith.constant 0 : index
      %c0_12 = arith.constant 0 : index
      %13 = vector.load %arg7[%c0_11, %c0_12] : memref<256x128xf32, #tpu.memory_space<vmem>>, vector<256x128xf32>
      tpu.vector_store %arg7[%c0_11, %c0_12], %12 {strides = array<i32>} : memref<256x128xf32, #tpu.memory_space<vmem>>, vector<256x128xf32>,
    } else {
    }
    %c0 = arith.constant 0 : index
    %c0_1 = arith.constant 0 : index
    %3 = vector.load %arg7[%c0, %c0_1] : memref<256x128xf32, #tpu.memory_space<vmem>>, vector<256x128xf32>
    %c0_2 = arith.constant 0 : index
    %c0_3 = arith.constant 0 : index
    %4 = vector.load %arg3[%c0_2, %c0_3] : memref<256x128xbf16, #tpu.memory_space<vmem>>, vector<256x128xbf16>
    %c0_4 = arith.constant 0 : index
    %c0_5 = arith.constant 0 : index
    %5 = vector.load %arg4[%c0_4, %c0_5] : memref<128x128xbf16, #tpu.memory_space<vmem>>, vector<128x128xbf16>
    %cst = arith.constant dense<0.000000e+00> : vector<256x128xf32>
    %6 = tpu.matmul %4, %5, %cst {dimension_numbers = #tpu.dot_dimension_numbers<[1], [0], [0], [1], [0, 0, 1, 1], [], []>} : vector<256x128xbf16>, vector<128x128xbf16>, vector<256x128xf32> -> vector<256x128xf32>
    %7 = arith.addf %3, %6 : vector<256x128xf32>
    %c0_6 = arith.constant 0 : index
    %c0_7 = arith.constant 0 : index
    %8 = vector.load %arg7[%c0_6, %c0_7] : memref<256x128xf32, #tpu.memory_space<vmem>>, vector<256x128xf32>
    tpu.vector_store %arg7[%c0_6, %c0_7], %7 {strides = array<i32>} : memref<256x128xf32, #tpu.memory_space<vmem>>, vector<256x128xf32>,
    %c0_i32_8 = arith.constant 0 : i32
    %9 = arith.cmpi eq, %arg2, %c0_i32_8 : i32
    %10 = arith.extui %9 : i1 to i32
    %c0_i32_9 = arith.constant 0 : i32
    %11 = arith.cmpi ne, %10, %c0_i32_9 : i32
    scf.if %11 {
      %c0_10 = arith.constant 0 : index
      %c0_11 = arith.constant 0 : index
      %12 = vector.load %arg7[%c0_10, %c0_11] : memref<256x128xf32, #tpu.memory_space<vmem>>, vector<256x128xf32>
      %c0_12 = arith.constant 0 : index
      %c0_13 = arith.constant 0 : index
      %13 = vector.load %arg5[%c0_12, %c0_13] : memref<1x128xf32, #tpu.memory_space<vmem>>, vector<1x128xf32>
      %14 = vector.broadcast %13 : vector<1x128xf32> to vector<256x128xf32>
      %15 = arith.addf %12, %14 : vector<256x128xf32>
      %cst_14 = arith.constant 0.000000e+00 : f32
      %16 = vector.broadcast %cst_14 : f32 to vector<256x128xf32>
      %17 = arith.cmpf ogt, %15, %16 : vector<256x128xf32>
      %cst_15 = arith.constant 2.000000e-01 : f32
      %18 = vector.broadcast %cst_15 : f32 to vector<256x128xf32>
      %19 = arith.mulf %18, %15 : vector<256x128xf32>
      %20 = arith.select %17, %15, %19 : vector<256x128xi1>, vector<256x128xf32>
      %c0_16 = arith.constant 0 : index
      %c0_17 = arith.constant 0 : index
      %21 = vector.load %arg6[%c0_16, %c0_17] : memref<256x128xf32, #tpu.memory_space<vmem>>, vector<256x128xf32>
      tpu.vector_store %arg6[%c0_16, %c0_17], %20 {strides = array<i32>} : memref<256x128xf32, #tpu.memory_space<vmem>>, vector<256x128xf32>,
    } else {
    }
    return
  }
  func.func @transform_0(%arg0: i32, %arg1: i32, %arg2: i32) -> (i32, i32) {
    %c0_i32 = arith.constant 0 : i32
    return %arg0, %arg2 : i32, i32
  }
  func.func @transform_1(%arg0: i32, %arg1: i32, %arg2: i32) -> (i32, i32) {
    %c0_i32 = arith.constant 0 : i32
    return %arg2, %arg1 : i32, i32
  }
  func.func @transform_2(%arg0: i32, %arg1: i32, %arg2: i32) -> (i32, i32) {
    %c0_i32 = arith.constant 0 : i32
    %c0_i32_0 = arith.constant 0 : i32
    return %c0_i32, %arg1 : i32, i32
  }
  func.func @transform_3(%arg0: i32, %arg1: i32, %arg2: i32) -> (i32, i32) {
    %c0_i32 = arith.constant 0 : i32
    return %arg0, %arg1 : i32, i32
  }
}

module attributes {stable_mosaic.version = 11 : i64} {
  func.func @kernel(%arg0: i32, %arg1: i32, %arg2: i32, %arg3: memref<256x512xbf16, #tpu.memory_space<vmem>>, %arg4: memref<512x256xbf16, #tpu.memory_space<vmem>>, %arg5: memref<1x256xf32, #tpu.memory_space<vmem>>, %arg6: memref<256x256xf32, #tpu.memory_space<vmem>>, %arg7: memref<1x1x256xf32, #tpu.memory_space<vmem>>, %arg8: memref<1x1x256xf32, #tpu.memory_space<vmem>>, %arg9: memref<256x256xf32, #tpu.memory_space<vmem>>) attributes {dimension_semantics = [#tpu.dimension_semantics<parallel>, #tpu.dimension_semantics<parallel>, #tpu.dimension_semantics<arbitrary>], iteration_bounds = array<i64: 2, 1, 4>, scalar_prefetch = 0 : i64, scratch_operands = 1 : i64, tpu.core_type = #tpu.core_type<tc>, window_params = [{transform_indices = @transform_0, window_bounds = array<i64: 256, 512>}, {transform_indices = @transform_1, window_bounds = array<i64: 512, 256>}, {transform_indices = @transform_2, window_bounds = array<i64: 1, 256>}, {transform_indices = @transform_3, window_bounds = array<i64: 256, 256>}, {transform_indices = @transform_4, window_bounds = array<i64: 1, 1, 256>}, {transform_indices = @transform_5, window_bounds = array<i64: 1, 1, 256>}]} {
    %c0_i32 = arith.constant 0 : i32
    %0 = arith.cmpi eq, %arg2, %c0_i32 : i32
    %1 = arith.extui %0 : i1 to i32
    %c0_i32_0 = arith.constant 0 : i32
    %2 = arith.cmpi ne, %1, %c0_i32_0 : i32
    scf.if %2 {
      %cst_9 = arith.constant 0.000000e+00 : f32
      %12 = vector.broadcast %cst_9 : f32 to vector<256x256xf32>
      %c0_10 = arith.constant 0 : index
      %c0_11 = arith.constant 0 : index
      %13 = vector.load %arg9[%c0_10, %c0_11] : memref<256x256xf32, #tpu.memory_space<vmem>>, vector<256x256xf32>
      tpu.vector_store %arg9[%c0_10, %c0_11], %12 {strides = array<i32>} : memref<256x256xf32, #tpu.memory_space<vmem>>, vector<256x256xf32>,
    } else {
    }
    %c0 = arith.constant 0 : index
    %c0_1 = arith.constant 0 : index
    %3 = vector.load %arg9[%c0, %c0_1] : memref<256x256xf32, #tpu.memory_space<vmem>>, vector<256x256xf32>
    %c0_2 = arith.constant 0 : index
    %c0_3 = arith.constant 0 : index
    %4 = vector.load %arg3[%c0_2, %c0_3] : memref<256x512xbf16, #tpu.memory_space<vmem>>, vector<256x512xbf16>
    %c0_4 = arith.constant 0 : index
    %c0_5 = arith.constant 0 : index
    %5 = vector.load %arg4[%c0_4, %c0_5] : memref<512x256xbf16, #tpu.memory_space<vmem>>, vector<512x256xbf16>
    %cst = arith.constant dense<0.000000e+00> : vector<256x256xf32>
    %6 = tpu.matmul %4, %5, %cst {dimension_numbers = #tpu.dot_dimension_numbers<[1], [0], [0], [1], [0, 0, 1, 1], [], []>} : vector<256x512xbf16>, vector<512x256xbf16>, vector<256x256xf32> -> vector<256x256xf32>
    %7 = arith.addf %3, %6 : vector<256x256xf32>
    %c0_6 = arith.constant 0 : index
    %c0_7 = arith.constant 0 : index
    %8 = vector.load %arg9[%c0_6, %c0_7] : memref<256x256xf32, #tpu.memory_space<vmem>>, vector<256x256xf32>
    tpu.vector_store %arg9[%c0_6, %c0_7], %7 {strides = array<i32>} : memref<256x256xf32, #tpu.memory_space<vmem>>, vector<256x256xf32>,
    %c3_i32 = arith.constant 3 : i32
    %9 = arith.cmpi eq, %arg2, %c3_i32 : i32
    %10 = arith.extui %9 : i1 to i32
    %c0_i32_8 = arith.constant 0 : i32
    %11 = arith.cmpi ne, %10, %c0_i32_8 : i32
    scf.if %11 {
      %c0_9 = arith.constant 0 : index
      %c0_10 = arith.constant 0 : index
      %12 = vector.load %arg9[%c0_9, %c0_10] : memref<256x256xf32, #tpu.memory_space<vmem>>, vector<256x256xf32>
      %c0_11 = arith.constant 0 : index
      %c0_12 = arith.constant 0 : index
      %13 = vector.load %arg5[%c0_11, %c0_12] : memref<1x256xf32, #tpu.memory_space<vmem>>, vector<1x256xf32>
      %14 = vector.broadcast %13 : vector<1x256xf32> to vector<256x256xf32>
      %15 = arith.addf %12, %14 : vector<256x256xf32>
      %cst_13 = arith.constant dense<0.000000e+00> : vector<256xf32>
      %16 = vector.multi_reduction <add>, %15, %cst_13 [0] : vector<256x256xf32> to vector<256xf32>
      %17 = vector.shape_cast %16 : vector<256xf32> to vector<1x256xf32>
      %18 = vector.shape_cast %17 : vector<1x256xf32> to vector<1x1x256xf32>
      %c0_14 = arith.constant 0 : index
      %c0_15 = arith.constant 0 : index
      %c0_16 = arith.constant 0 : index
      %19 = vector.load %arg7[%c0_14, %c0_15, %c0_16] : memref<1x1x256xf32, #tpu.memory_space<vmem>>, vector<1x1x256xf32>
      tpu.vector_store %arg7[%c0_14, %c0_15, %c0_16], %18 {strides = array<i32>} : memref<1x1x256xf32, #tpu.memory_space<vmem>>, vector<1x1x256xf32>,
      %20 = arith.mulf %15, %15 : vector<256x256xf32>
      %cst_17 = arith.constant dense<0.000000e+00> : vector<256xf32>
      %21 = vector.multi_reduction <add>, %20, %cst_17 [0] : vector<256x256xf32> to vector<256xf32>
      %22 = vector.shape_cast %21 : vector<256xf32> to vector<1x256xf32>
      %23 = vector.shape_cast %22 : vector<1x256xf32> to vector<1x1x256xf32>
      %c0_18 = arith.constant 0 : index
      %c0_19 = arith.constant 0 : index
      %c0_20 = arith.constant 0 : index
      %24 = vector.load %arg8[%c0_18, %c0_19, %c0_20] : memref<1x1x256xf32, #tpu.memory_space<vmem>>, vector<1x1x256xf32>
      tpu.vector_store %arg8[%c0_18, %c0_19, %c0_20], %23 {strides = array<i32>} : memref<1x1x256xf32, #tpu.memory_space<vmem>>, vector<1x1x256xf32>,
      %c0_21 = arith.constant 0 : index
      %c0_22 = arith.constant 0 : index
      %25 = vector.load %arg6[%c0_21, %c0_22] : memref<256x256xf32, #tpu.memory_space<vmem>>, vector<256x256xf32>
      tpu.vector_store %arg6[%c0_21, %c0_22], %15 {strides = array<i32>} : memref<256x256xf32, #tpu.memory_space<vmem>>, vector<256x256xf32>,
    } else {
    }
    return
  }
  func.func @transform_0(%arg0: i32, %arg1: i32, %arg2: i32) -> (i32, i32) {
    %c0_i32 = arith.constant 0 : i32
    return %arg0, %arg2 : i32, i32
  }
  func.func @transform_1(%arg0: i32, %arg1: i32, %arg2: i32) -> (i32, i32) {
    %c0_i32 = arith.constant 0 : i32
    return %arg2, %arg1 : i32, i32
  }
  func.func @transform_2(%arg0: i32, %arg1: i32, %arg2: i32) -> (i32, i32) {
    %c0_i32 = arith.constant 0 : i32
    %c0_i32_0 = arith.constant 0 : i32
    return %c0_i32, %arg1 : i32, i32
  }
  func.func @transform_3(%arg0: i32, %arg1: i32, %arg2: i32) -> (i32, i32) {
    %c0_i32 = arith.constant 0 : i32
    return %arg0, %arg1 : i32, i32
  }
  func.func @transform_4(%arg0: i32, %arg1: i32, %arg2: i32) -> (i32, i32, i32) {
    %c0_i32 = arith.constant 0 : i32
    %c0_i32_0 = arith.constant 0 : i32
    return %arg0, %c0_i32, %arg1 : i32, i32, i32
  }
  func.func @transform_5(%arg0: i32, %arg1: i32, %arg2: i32) -> (i32, i32, i32) {
    %c0_i32 = arith.constant 0 : i32
    %c0_i32_0 = arith.constant 0 : i32
    return %arg0, %c0_i32, %arg1 : i32, i32, i32
  }
}

module attributes {stable_mosaic.version = 11 : i64} {
  func.func @_scale_shift_act_kernel(%arg0: i32, %arg1: memref<256x256xf32, #tpu.memory_space<vmem>>, %arg2: memref<1x256xf32, #tpu.memory_space<vmem>>, %arg3: memref<1x256xf32, #tpu.memory_space<vmem>>, %arg4: memref<256x256xf32, #tpu.memory_space<vmem>>) attributes {dimension_semantics = [#tpu.dimension_semantics<parallel>], iteration_bounds = array<i64: 2>, scalar_prefetch = 0 : i64, scratch_operands = 0 : i64, tpu.core_type = #tpu.core_type<tc>, window_params = [{transform_indices = @transform_0, window_bounds = array<i64: 256, 256>}, {pipeline_mode = #tpu.pipeline_mode<synchronous>, transform_indices = @transform_1, window_bounds = array<i64: 1, 256>}, {pipeline_mode = #tpu.pipeline_mode<synchronous>, transform_indices = @transform_2, window_bounds = array<i64: 1, 256>}, {transform_indices = @transform_3, window_bounds = array<i64: 256, 256>}]} {
    %c0 = arith.constant 0 : index
    %c0_0 = arith.constant 0 : index
    %0 = vector.load %arg1[%c0, %c0_0] : memref<256x256xf32, #tpu.memory_space<vmem>>, vector<256x256xf32>
    %c0_1 = arith.constant 0 : index
    %c0_2 = arith.constant 0 : index
    %1 = vector.load %arg2[%c0_1, %c0_2] : memref<1x256xf32, #tpu.memory_space<vmem>>, vector<1x256xf32>
    %2 = vector.broadcast %1 : vector<1x256xf32> to vector<256x256xf32>
    %3 = arith.mulf %0, %2 : vector<256x256xf32>
    %c0_3 = arith.constant 0 : index
    %c0_4 = arith.constant 0 : index
    %4 = vector.load %arg3[%c0_3, %c0_4] : memref<1x256xf32, #tpu.memory_space<vmem>>, vector<1x256xf32>
    %5 = vector.broadcast %4 : vector<1x256xf32> to vector<256x256xf32>
    %6 = arith.addf %3, %5 : vector<256x256xf32>
    %cst = arith.constant 0.000000e+00 : f32
    %7 = vector.broadcast %cst : f32 to vector<256x256xf32>
    %8 = arith.cmpf ogt, %6, %7 : vector<256x256xf32>
    %cst_5 = arith.constant 2.000000e-01 : f32
    %9 = vector.broadcast %cst_5 : f32 to vector<256x256xf32>
    %10 = arith.mulf %9, %6 : vector<256x256xf32>
    %11 = arith.select %8, %6, %10 : vector<256x256xi1>, vector<256x256xf32>
    %c0_6 = arith.constant 0 : index
    %c0_7 = arith.constant 0 : index
    %12 = vector.load %arg4[%c0_6, %c0_7] : memref<256x256xf32, #tpu.memory_space<vmem>>, vector<256x256xf32>
    tpu.vector_store %arg4[%c0_6, %c0_7], %11 {strides = array<i32>} : memref<256x256xf32, #tpu.memory_space<vmem>>, vector<256x256xf32>,
    return
  }
  func.func @transform_0(%arg0: i32) -> (i32, i32) {
    %c0_i32 = arith.constant 0 : i32
    %c0_i32_0 = arith.constant 0 : i32
    return %arg0, %c0_i32 : i32, i32
  }
  func.func @transform_1(%arg0: i32) -> (i32, i32) {
    %c0_i32 = arith.constant 0 : i32
    %c0_i32_0 = arith.constant 0 : i32
    %c0_i32_1 = arith.constant 0 : i32
    return %c0_i32, %c0_i32_0 : i32, i32
  }
  func.func @transform_2(%arg0: i32) -> (i32, i32) {
    %c0_i32 = arith.constant 0 : i32
    %c0_i32_0 = arith.constant 0 : i32
    %c0_i32_1 = arith.constant 0 : i32
    return %c0_i32, %c0_i32_0 : i32, i32
  }
  func.func @transform_3(%arg0: i32) -> (i32, i32) {
    %c0_i32 = arith.constant 0 : i32
    %c0_i32_0 = arith.constant 0 : i32
    return %arg0, %c0_i32 : i32, i32
  }
}

module attributes {stable_mosaic.version = 11 : i64} {
  func.func @_scale_shift_act_kernel(%arg0: i32, %arg1: memref<128x512xf32, #tpu.memory_space<vmem>>, %arg2: memref<1x512xf32, #tpu.memory_space<vmem>>, %arg3: memref<1x512xf32, #tpu.memory_space<vmem>>, %arg4: memref<128x512xf32, #tpu.memory_space<vmem>>) attributes {dimension_semantics = [#tpu.dimension_semantics<parallel>], iteration_bounds = array<i64: 1>, scalar_prefetch = 0 : i64, scratch_operands = 0 : i64, tpu.core_type = #tpu.core_type<tc>, window_params = [{transform_indices = @transform_0, window_bounds = array<i64: 128, 512>}, {pipeline_mode = #tpu.pipeline_mode<synchronous>, transform_indices = @transform_1, window_bounds = array<i64: 1, 512>}, {pipeline_mode = #tpu.pipeline_mode<synchronous>, transform_indices = @transform_2, window_bounds = array<i64: 1, 512>}, {transform_indices = @transform_3, window_bounds = array<i64: 128, 512>}]} {
    %c0 = arith.constant 0 : index
    %c0_0 = arith.constant 0 : index
    %0 = vector.load %arg1[%c0, %c0_0] : memref<128x512xf32, #tpu.memory_space<vmem>>, vector<128x512xf32>
    %c0_1 = arith.constant 0 : index
    %c0_2 = arith.constant 0 : index
    %1 = vector.load %arg2[%c0_1, %c0_2] : memref<1x512xf32, #tpu.memory_space<vmem>>, vector<1x512xf32>
    %2 = vector.broadcast %1 : vector<1x512xf32> to vector<128x512xf32>
    %3 = arith.mulf %0, %2 : vector<128x512xf32>
    %c0_3 = arith.constant 0 : index
    %c0_4 = arith.constant 0 : index
    %4 = vector.load %arg3[%c0_3, %c0_4] : memref<1x512xf32, #tpu.memory_space<vmem>>, vector<1x512xf32>
    %5 = vector.broadcast %4 : vector<1x512xf32> to vector<128x512xf32>
    %6 = arith.addf %3, %5 : vector<128x512xf32>
    %cst = arith.constant 0.000000e+00 : f32
    %7 = vector.broadcast %cst : f32 to vector<128x512xf32>
    %8 = arith.cmpf ogt, %6, %7 : vector<128x512xf32>
    %cst_5 = arith.constant 2.000000e-01 : f32
    %9 = vector.broadcast %cst_5 : f32 to vector<128x512xf32>
    %10 = arith.mulf %9, %6 : vector<128x512xf32>
    %11 = arith.select %8, %6, %10 : vector<128x512xi1>, vector<128x512xf32>
    %c0_6 = arith.constant 0 : index
    %c0_7 = arith.constant 0 : index
    %12 = vector.load %arg4[%c0_6, %c0_7] : memref<128x512xf32, #tpu.memory_space<vmem>>, vector<128x512xf32>
    tpu.vector_store %arg4[%c0_6, %c0_7], %11 {strides = array<i32>} : memref<128x512xf32, #tpu.memory_space<vmem>>, vector<128x512xf32>,
    return
  }
  func.func @transform_0(%arg0: i32) -> (i32, i32) {
    %c0_i32 = arith.constant 0 : i32
    %c0_i32_0 = arith.constant 0 : i32
    return %arg0, %c0_i32 : i32, i32
  }
  func.func @transform_1(%arg0: i32) -> (i32, i32) {
    %c0_i32 = arith.constant 0 : i32
    %c0_i32_0 = arith.constant 0 : i32
    %c0_i32_1 = arith.constant 0 : i32
    return %c0_i32, %c0_i32_0 : i32, i32
  }
  func.func @transform_2(%arg0: i32) -> (i32, i32) {
    %c0_i32 = arith.constant 0 : i32
    %c0_i32_0 = arith.constant 0 : i32
    %c0_i32_1 = arith.constant 0 : i32
    return %c0_i32, %c0_i32_0 : i32, i32
  }
  func.func @transform_3(%arg0: i32) -> (i32, i32) {
    %c0_i32 = arith.constant 0 : i32
    %c0_i32_0 = arith.constant 0 : i32
    return %arg0, %c0_i32 : i32, i32
  }
}

module attributes {stable_mosaic.version = 11 : i64} {
  func.func @kernel(%arg0: i32, %arg1: i32, %arg2: i32, %arg3: memref<128x512xbf16, #tpu.memory_space<vmem>>, %arg4: memref<512x256xbf16, #tpu.memory_space<vmem>>, %arg5: memref<1x256xf32, #tpu.memory_space<vmem>>, %arg6: memref<128x256xf32, #tpu.memory_space<vmem>>, %arg7: memref<1x1x256xf32, #tpu.memory_space<vmem>>, %arg8: memref<1x1x256xf32, #tpu.memory_space<vmem>>, %arg9: memref<128x256xf32, #tpu.memory_space<vmem>>) attributes {dimension_semantics = [#tpu.dimension_semantics<parallel>, #tpu.dimension_semantics<parallel>, #tpu.dimension_semantics<arbitrary>], iteration_bounds = array<i64: 1, 2, 8>, scalar_prefetch = 0 : i64, scratch_operands = 1 : i64, tpu.core_type = #tpu.core_type<tc>, window_params = [{transform_indices = @transform_0, window_bounds = array<i64: 128, 512>}, {transform_indices = @transform_1, window_bounds = array<i64: 512, 256>}, {transform_indices = @transform_2, window_bounds = array<i64: 1, 256>}, {transform_indices = @transform_3, window_bounds = array<i64: 128, 256>}, {transform_indices = @transform_4, window_bounds = array<i64: 1, 1, 256>}, {transform_indices = @transform_5, window_bounds = array<i64: 1, 1, 256>}]} {
    %c0_i32 = arith.constant 0 : i32
    %0 = arith.cmpi eq, %arg2, %c0_i32 : i32
    %1 = arith.extui %0 : i1 to i32
    %c0_i32_0 = arith.constant 0 : i32
    %2 = arith.cmpi ne, %1, %c0_i32_0 : i32
    scf.if %2 {
      %cst_9 = arith.constant 0.000000e+00 : f32
      %12 = vector.broadcast %cst_9 : f32 to vector<128x256xf32>
      %c0_10 = arith.constant 0 : index
      %c0_11 = arith.constant 0 : index
      %13 = vector.load %arg9[%c0_10, %c0_11] : memref<128x256xf32, #tpu.memory_space<vmem>>, vector<128x256xf32>
      tpu.vector_store %arg9[%c0_10, %c0_11], %12 {strides = array<i32>} : memref<128x256xf32, #tpu.memory_space<vmem>>, vector<128x256xf32>,
    } else {
    }
    %c0 = arith.constant 0 : index
    %c0_1 = arith.constant 0 : index
    %3 = vector.load %arg9[%c0, %c0_1] : memref<128x256xf32, #tpu.memory_space<vmem>>, vector<128x256xf32>
    %c0_2 = arith.constant 0 : index
    %c0_3 = arith.constant 0 : index
    %4 = vector.load %arg3[%c0_2, %c0_3] : memref<128x512xbf16, #tpu.memory_space<vmem>>, vector<128x512xbf16>
    %c0_4 = arith.constant 0 : index
    %c0_5 = arith.constant 0 : index
    %5 = vector.load %arg4[%c0_4, %c0_5] : memref<512x256xbf16, #tpu.memory_space<vmem>>, vector<512x256xbf16>
    %cst = arith.constant dense<0.000000e+00> : vector<128x256xf32>
    %6 = tpu.matmul %4, %5, %cst {dimension_numbers = #tpu.dot_dimension_numbers<[1], [0], [0], [1], [0, 0, 1, 1], [], []>} : vector<128x512xbf16>, vector<512x256xbf16>, vector<128x256xf32> -> vector<128x256xf32>
    %7 = arith.addf %3, %6 : vector<128x256xf32>
    %c0_6 = arith.constant 0 : index
    %c0_7 = arith.constant 0 : index
    %8 = vector.load %arg9[%c0_6, %c0_7] : memref<128x256xf32, #tpu.memory_space<vmem>>, vector<128x256xf32>
    tpu.vector_store %arg9[%c0_6, %c0_7], %7 {strides = array<i32>} : memref<128x256xf32, #tpu.memory_space<vmem>>, vector<128x256xf32>,
    %c7_i32 = arith.constant 7 : i32
    %9 = arith.cmpi eq, %arg2, %c7_i32 : i32
    %10 = arith.extui %9 : i1 to i32
    %c0_i32_8 = arith.constant 0 : i32
    %11 = arith.cmpi ne, %10, %c0_i32_8 : i32
    scf.if %11 {
      %c0_9 = arith.constant 0 : index
      %c0_10 = arith.constant 0 : index
      %12 = vector.load %arg9[%c0_9, %c0_10] : memref<128x256xf32, #tpu.memory_space<vmem>>, vector<128x256xf32>
      %c0_11 = arith.constant 0 : index
      %c0_12 = arith.constant 0 : index
      %13 = vector.load %arg5[%c0_11, %c0_12] : memref<1x256xf32, #tpu.memory_space<vmem>>, vector<1x256xf32>
      %14 = vector.broadcast %13 : vector<1x256xf32> to vector<128x256xf32>
      %15 = arith.addf %12, %14 : vector<128x256xf32>
      %cst_13 = arith.constant dense<0.000000e+00> : vector<256xf32>
      %16 = vector.multi_reduction <add>, %15, %cst_13 [0] : vector<128x256xf32> to vector<256xf32>
      %17 = vector.shape_cast %16 : vector<256xf32> to vector<1x256xf32>
      %18 = vector.shape_cast %17 : vector<1x256xf32> to vector<1x1x256xf32>
      %c0_14 = arith.constant 0 : index
      %c0_15 = arith.constant 0 : index
      %c0_16 = arith.constant 0 : index
      %19 = vector.load %arg7[%c0_14, %c0_15, %c0_16] : memref<1x1x256xf32, #tpu.memory_space<vmem>>, vector<1x1x256xf32>
      tpu.vector_store %arg7[%c0_14, %c0_15, %c0_16], %18 {strides = array<i32>} : memref<1x1x256xf32, #tpu.memory_space<vmem>>, vector<1x1x256xf32>,
      %20 = arith.mulf %15, %15 : vector<128x256xf32>
      %cst_17 = arith.constant dense<0.000000e+00> : vector<256xf32>
      %21 = vector.multi_reduction <add>, %20, %cst_17 [0] : vector<128x256xf32> to vector<256xf32>
      %22 = vector.shape_cast %21 : vector<256xf32> to vector<1x256xf32>
      %23 = vector.shape_cast %22 : vector<1x256xf32> to vector<1x1x256xf32>
      %c0_18 = arith.constant 0 : index
      %c0_19 = arith.constant 0 : index
      %c0_20 = arith.constant 0 : index
      %24 = vector.load %arg8[%c0_18, %c0_19, %c0_20] : memref<1x1x256xf32, #tpu.memory_space<vmem>>, vector<1x1x256xf32>
      tpu.vector_store %arg8[%c0_18, %c0_19, %c0_20], %23 {strides = array<i32>} : memref<1x1x256xf32, #tpu.memory_space<vmem>>, vector<1x1x256xf32>,
      %c0_21 = arith.constant 0 : index
      %c0_22 = arith.constant 0 : index
      %25 = vector.load %arg6[%c0_21, %c0_22] : memref<128x256xf32, #tpu.memory_space<vmem>>, vector<128x256xf32>
      tpu.vector_store %arg6[%c0_21, %c0_22], %15 {strides = array<i32>} : memref<128x256xf32, #tpu.memory_space<vmem>>, vector<128x256xf32>,
    } else {
    }
    return
  }
  func.func @transform_0(%arg0: i32, %arg1: i32, %arg2: i32) -> (i32, i32) {
    %c0_i32 = arith.constant 0 : i32
    return %arg0, %arg2 : i32, i32
  }
  func.func @transform_1(%arg0: i32, %arg1: i32, %arg2: i32) -> (i32, i32) {
    %c0_i32 = arith.constant 0 : i32
    return %arg2, %arg1 : i32, i32
  }
  func.func @transform_2(%arg0: i32, %arg1: i32, %arg2: i32) -> (i32, i32) {
    %c0_i32 = arith.constant 0 : i32
    %c0_i32_0 = arith.constant 0 : i32
    return %c0_i32, %arg1 : i32, i32
  }
  func.func @transform_3(%arg0: i32, %arg1: i32, %arg2: i32) -> (i32, i32) {
    %c0_i32 = arith.constant 0 : i32
    return %arg0, %arg1 : i32, i32
  }
  func.func @transform_4(%arg0: i32, %arg1: i32, %arg2: i32) -> (i32, i32, i32) {
    %c0_i32 = arith.constant 0 : i32
    %c0_i32_0 = arith.constant 0 : i32
    return %arg0, %c0_i32, %arg1 : i32, i32, i32
  }
  func.func @transform_5(%arg0: i32, %arg1: i32, %arg2: i32) -> (i32, i32, i32) {
    %c0_i32 = arith.constant 0 : i32
    %c0_i32_0 = arith.constant 0 : i32
    return %arg0, %c0_i32, %arg1 : i32, i32, i32
  }
}

module attributes {stable_mosaic.version = 11 : i64} {
  func.func @kernel(%arg0: i32, %arg1: i32, %arg2: i32, %arg3: memref<32x512xbf16, #tpu.memory_space<vmem>>, %arg4: memref<512x256xbf16, #tpu.memory_space<vmem>>, %arg5: memref<1x256xf32, #tpu.memory_space<vmem>>, %arg6: memref<32x256xf32, #tpu.memory_space<vmem>>, %arg7: memref<1x1x256xf32, #tpu.memory_space<vmem>>, %arg8: memref<1x1x256xf32, #tpu.memory_space<vmem>>, %arg9: memref<32x256xf32, #tpu.memory_space<vmem>>) attributes {dimension_semantics = [#tpu.dimension_semantics<parallel>, #tpu.dimension_semantics<parallel>, #tpu.dimension_semantics<arbitrary>], iteration_bounds = array<i64: 1, 4, 16>, scalar_prefetch = 0 : i64, scratch_operands = 1 : i64, tpu.core_type = #tpu.core_type<tc>, window_params = [{transform_indices = @transform_0, window_bounds = array<i64: 32, 512>}, {transform_indices = @transform_1, window_bounds = array<i64: 512, 256>}, {transform_indices = @transform_2, window_bounds = array<i64: 1, 256>}, {transform_indices = @transform_3, window_bounds = array<i64: 32, 256>}, {transform_indices = @transform_4, window_bounds = array<i64: 1, 1, 256>}, {transform_indices = @transform_5, window_bounds = array<i64: 1, 1, 256>}]} {
    %c0_i32 = arith.constant 0 : i32
    %0 = arith.cmpi eq, %arg2, %c0_i32 : i32
    %1 = arith.extui %0 : i1 to i32
    %c0_i32_0 = arith.constant 0 : i32
    %2 = arith.cmpi ne, %1, %c0_i32_0 : i32
    scf.if %2 {
      %cst_9 = arith.constant 0.000000e+00 : f32
      %12 = vector.broadcast %cst_9 : f32 to vector<32x256xf32>
      %c0_10 = arith.constant 0 : index
      %c0_11 = arith.constant 0 : index
      %13 = vector.load %arg9[%c0_10, %c0_11] : memref<32x256xf32, #tpu.memory_space<vmem>>, vector<32x256xf32>
      tpu.vector_store %arg9[%c0_10, %c0_11], %12 {strides = array<i32>} : memref<32x256xf32, #tpu.memory_space<vmem>>, vector<32x256xf32>,
    } else {
    }
    %c0 = arith.constant 0 : index
    %c0_1 = arith.constant 0 : index
    %3 = vector.load %arg9[%c0, %c0_1] : memref<32x256xf32, #tpu.memory_space<vmem>>, vector<32x256xf32>
    %c0_2 = arith.constant 0 : index
    %c0_3 = arith.constant 0 : index
    %4 = vector.load %arg3[%c0_2, %c0_3] : memref<32x512xbf16, #tpu.memory_space<vmem>>, vector<32x512xbf16>
    %c0_4 = arith.constant 0 : index
    %c0_5 = arith.constant 0 : index
    %5 = vector.load %arg4[%c0_4, %c0_5] : memref<512x256xbf16, #tpu.memory_space<vmem>>, vector<512x256xbf16>
    %cst = arith.constant dense<0.000000e+00> : vector<32x256xf32>
    %6 = tpu.matmul %4, %5, %cst {dimension_numbers = #tpu.dot_dimension_numbers<[1], [0], [0], [1], [0, 0, 1, 1], [], []>} : vector<32x512xbf16>, vector<512x256xbf16>, vector<32x256xf32> -> vector<32x256xf32>
    %7 = arith.addf %3, %6 : vector<32x256xf32>
    %c0_6 = arith.constant 0 : index
    %c0_7 = arith.constant 0 : index
    %8 = vector.load %arg9[%c0_6, %c0_7] : memref<32x256xf32, #tpu.memory_space<vmem>>, vector<32x256xf32>
    tpu.vector_store %arg9[%c0_6, %c0_7], %7 {strides = array<i32>} : memref<32x256xf32, #tpu.memory_space<vmem>>, vector<32x256xf32>,
    %c15_i32 = arith.constant 15 : i32
    %9 = arith.cmpi eq, %arg2, %c15_i32 : i32
    %10 = arith.extui %9 : i1 to i32
    %c0_i32_8 = arith.constant 0 : i32
    %11 = arith.cmpi ne, %10, %c0_i32_8 : i32
    scf.if %11 {
      %c0_9 = arith.constant 0 : index
      %c0_10 = arith.constant 0 : index
      %12 = vector.load %arg9[%c0_9, %c0_10] : memref<32x256xf32, #tpu.memory_space<vmem>>, vector<32x256xf32>
      %c0_11 = arith.constant 0 : index
      %c0_12 = arith.constant 0 : index
      %13 = vector.load %arg5[%c0_11, %c0_12] : memref<1x256xf32, #tpu.memory_space<vmem>>, vector<1x256xf32>
      %14 = vector.broadcast %13 : vector<1x256xf32> to vector<32x256xf32>
      %15 = arith.addf %12, %14 : vector<32x256xf32>
      %cst_13 = arith.constant dense<0.000000e+00> : vector<256xf32>
      %16 = vector.multi_reduction <add>, %15, %cst_13 [0] : vector<32x256xf32> to vector<256xf32>
      %17 = vector.shape_cast %16 : vector<256xf32> to vector<1x256xf32>
      %18 = vector.shape_cast %17 : vector<1x256xf32> to vector<1x1x256xf32>
      %c0_14 = arith.constant 0 : index
      %c0_15 = arith.constant 0 : index
      %c0_16 = arith.constant 0 : index
      %19 = vector.load %arg7[%c0_14, %c0_15, %c0_16] : memref<1x1x256xf32, #tpu.memory_space<vmem>>, vector<1x1x256xf32>
      tpu.vector_store %arg7[%c0_14, %c0_15, %c0_16], %18 {strides = array<i32>} : memref<1x1x256xf32, #tpu.memory_space<vmem>>, vector<1x1x256xf32>,
      %20 = arith.mulf %15, %15 : vector<32x256xf32>
      %cst_17 = arith.constant dense<0.000000e+00> : vector<256xf32>
      %21 = vector.multi_reduction <add>, %20, %cst_17 [0] : vector<32x256xf32> to vector<256xf32>
      %22 = vector.shape_cast %21 : vector<256xf32> to vector<1x256xf32>
      %23 = vector.shape_cast %22 : vector<1x256xf32> to vector<1x1x256xf32>
      %c0_18 = arith.constant 0 : index
      %c0_19 = arith.constant 0 : index
      %c0_20 = arith.constant 0 : index
      %24 = vector.load %arg8[%c0_18, %c0_19, %c0_20] : memref<1x1x256xf32, #tpu.memory_space<vmem>>, vector<1x1x256xf32>
      tpu.vector_store %arg8[%c0_18, %c0_19, %c0_20], %23 {strides = array<i32>} : memref<1x1x256xf32, #tpu.memory_space<vmem>>, vector<1x1x256xf32>,
      %c0_21 = arith.constant 0 : index
      %c0_22 = arith.constant 0 : index
      %25 = vector.load %arg6[%c0_21, %c0_22] : memref<32x256xf32, #tpu.memory_space<vmem>>, vector<32x256xf32>
      tpu.vector_store %arg6[%c0_21, %c0_22], %15 {strides = array<i32>} : memref<32x256xf32, #tpu.memory_space<vmem>>, vector<32x256xf32>,
    } else {
    }
    return
  }
  func.func @transform_0(%arg0: i32, %arg1: i32, %arg2: i32) -> (i32, i32) {
    %c0_i32 = arith.constant 0 : i32
    return %arg0, %arg2 : i32, i32
  }
  func.func @transform_1(%arg0: i32, %arg1: i32, %arg2: i32) -> (i32, i32) {
    %c0_i32 = arith.constant 0 : i32
    return %arg2, %arg1 : i32, i32
  }
  func.func @transform_2(%arg0: i32, %arg1: i32, %arg2: i32) -> (i32, i32) {
    %c0_i32 = arith.constant 0 : i32
    %c0_i32_0 = arith.constant 0 : i32
    return %c0_i32, %arg1 : i32, i32
  }
  func.func @transform_3(%arg0: i32, %arg1: i32, %arg2: i32) -> (i32, i32) {
    %c0_i32 = arith.constant 0 : i32
    return %arg0, %arg1 : i32, i32
  }
  func.func @transform_4(%arg0: i32, %arg1: i32, %arg2: i32) -> (i32, i32, i32) {
    %c0_i32 = arith.constant 0 : i32
    %c0_i32_0 = arith.constant 0 : i32
    return %arg0, %c0_i32, %arg1 : i32, i32, i32
  }
  func.func @transform_5(%arg0: i32, %arg1: i32, %arg2: i32) -> (i32, i32, i32) {
    %c0_i32 = arith.constant 0 : i32
    %c0_i32_0 = arith.constant 0 : i32
    return %arg0, %c0_i32, %arg1 : i32, i32, i32
  }
}

module attributes {stable_mosaic.version = 11 : i64} {
  func.func @_scale_shift_act_kernel(%arg0: i32, %arg1: memref<32x1024xf32, #tpu.memory_space<vmem>>, %arg2: memref<1x1024xf32, #tpu.memory_space<vmem>>, %arg3: memref<1x1024xf32, #tpu.memory_space<vmem>>, %arg4: memref<32x1024xf32, #tpu.memory_space<vmem>>) attributes {dimension_semantics = [#tpu.dimension_semantics<parallel>], iteration_bounds = array<i64: 1>, scalar_prefetch = 0 : i64, scratch_operands = 0 : i64, tpu.core_type = #tpu.core_type<tc>, window_params = [{transform_indices = @transform_0, window_bounds = array<i64: 32, 1024>}, {pipeline_mode = #tpu.pipeline_mode<synchronous>, transform_indices = @transform_1, window_bounds = array<i64: 1, 1024>}, {pipeline_mode = #tpu.pipeline_mode<synchronous>, transform_indices = @transform_2, window_bounds = array<i64: 1, 1024>}, {transform_indices = @transform_3, window_bounds = array<i64: 32, 1024>}]} {
    %c0 = arith.constant 0 : index
    %c0_0 = arith.constant 0 : index
    %0 = vector.load %arg1[%c0, %c0_0] : memref<32x1024xf32, #tpu.memory_space<vmem>>, vector<32x1024xf32>
    %c0_1 = arith.constant 0 : index
    %c0_2 = arith.constant 0 : index
    %1 = vector.load %arg2[%c0_1, %c0_2] : memref<1x1024xf32, #tpu.memory_space<vmem>>, vector<1x1024xf32>
    %2 = vector.broadcast %1 : vector<1x1024xf32> to vector<32x1024xf32>
    %3 = arith.mulf %0, %2 : vector<32x1024xf32>
    %c0_3 = arith.constant 0 : index
    %c0_4 = arith.constant 0 : index
    %4 = vector.load %arg3[%c0_3, %c0_4] : memref<1x1024xf32, #tpu.memory_space<vmem>>, vector<1x1024xf32>
    %5 = vector.broadcast %4 : vector<1x1024xf32> to vector<32x1024xf32>
    %6 = arith.addf %3, %5 : vector<32x1024xf32>
    %cst = arith.constant 0.000000e+00 : f32
    %7 = vector.broadcast %cst : f32 to vector<32x1024xf32>
    %8 = arith.cmpf ogt, %6, %7 : vector<32x1024xf32>
    %cst_5 = arith.constant 2.000000e-01 : f32
    %9 = vector.broadcast %cst_5 : f32 to vector<32x1024xf32>
    %10 = arith.mulf %9, %6 : vector<32x1024xf32>
    %11 = arith.select %8, %6, %10 : vector<32x1024xi1>, vector<32x1024xf32>
    %c0_6 = arith.constant 0 : index
    %c0_7 = arith.constant 0 : index
    %12 = vector.load %arg4[%c0_6, %c0_7] : memref<32x1024xf32, #tpu.memory_space<vmem>>, vector<32x1024xf32>
    tpu.vector_store %arg4[%c0_6, %c0_7], %11 {strides = array<i32>} : memref<32x1024xf32, #tpu.memory_space<vmem>>, vector<32x1024xf32>,
    return
  }
  func.func @transform_0(%arg0: i32) -> (i32, i32) {
    %c0_i32 = arith.constant 0 : i32
    %c0_i32_0 = arith.constant 0 : i32
    return %arg0, %c0_i32 : i32, i32
  }
  func.func @transform_1(%arg0: i32) -> (i32, i32) {
    %c0_i32 = arith.constant 0 : i32
    %c0_i32_0 = arith.constant 0 : i32
    %c0_i32_1 = arith.constant 0 : i32
    return %c0_i32, %c0_i32_0 : i32, i32
  }
  func.func @transform_2(%arg0: i32) -> (i32, i32) {
    %c0_i32 = arith.constant 0 : i32
    %c0_i32_0 = arith.constant 0 : i32
    %c0_i32_1 = arith.constant 0 : i32
    return %c0_i32, %c0_i32_0 : i32, i32
  }
  func.func @transform_3(%arg0: i32) -> (i32, i32) {
    %c0_i32 = arith.constant 0 : i32
    %c0_i32_0 = arith.constant 0 : i32
    return %arg0, %c0_i32 : i32, i32
  }
}

module attributes {stable_mosaic.version = 11 : i64} {
  func.func @kernel(%arg0: i32, %arg1: i32, %arg2: i32, %arg3: memref<16x512xbf16, #tpu.memory_space<vmem>>, %arg4: memref<512x128xbf16, #tpu.memory_space<vmem>>, %arg5: memref<1x128xf32, #tpu.memory_space<vmem>>, %arg6: memref<16x128xf32, #tpu.memory_space<vmem>>, %arg7: memref<16x128xf32, #tpu.memory_space<vmem>>) attributes {dimension_semantics = [#tpu.dimension_semantics<parallel>, #tpu.dimension_semantics<parallel>, #tpu.dimension_semantics<arbitrary>], iteration_bounds = array<i64: 1, 1, 32>, scalar_prefetch = 0 : i64, scratch_operands = 1 : i64, tpu.core_type = #tpu.core_type<tc>, window_params = [{transform_indices = @transform_0, window_bounds = array<i64: 16, 512>}, {transform_indices = @transform_1, window_bounds = array<i64: 512, 128>}, {transform_indices = @transform_2, window_bounds = array<i64: 1, 128>}, {transform_indices = @transform_3, window_bounds = array<i64: 16, 128>}]} {
    %c0_i32 = arith.constant 0 : i32
    %0 = arith.cmpi eq, %arg2, %c0_i32 : i32
    %1 = arith.extui %0 : i1 to i32
    %c0_i32_0 = arith.constant 0 : i32
    %2 = arith.cmpi ne, %1, %c0_i32_0 : i32
    scf.if %2 {
      %cst_9 = arith.constant 0.000000e+00 : f32
      %12 = vector.broadcast %cst_9 : f32 to vector<16x128xf32>
      %c0_10 = arith.constant 0 : index
      %c0_11 = arith.constant 0 : index
      %13 = vector.load %arg7[%c0_10, %c0_11] : memref<16x128xf32, #tpu.memory_space<vmem>>, vector<16x128xf32>
      tpu.vector_store %arg7[%c0_10, %c0_11], %12 {strides = array<i32>} : memref<16x128xf32, #tpu.memory_space<vmem>>, vector<16x128xf32>,
    } else {
    }
    %c0 = arith.constant 0 : index
    %c0_1 = arith.constant 0 : index
    %3 = vector.load %arg7[%c0, %c0_1] : memref<16x128xf32, #tpu.memory_space<vmem>>, vector<16x128xf32>
    %c0_2 = arith.constant 0 : index
    %c0_3 = arith.constant 0 : index
    %4 = vector.load %arg3[%c0_2, %c0_3] : memref<16x512xbf16, #tpu.memory_space<vmem>>, vector<16x512xbf16>
    %c0_4 = arith.constant 0 : index
    %c0_5 = arith.constant 0 : index
    %5 = vector.load %arg4[%c0_4, %c0_5] : memref<512x128xbf16, #tpu.memory_space<vmem>>, vector<512x128xbf16>
    %cst = arith.constant dense<0.000000e+00> : vector<16x128xf32>
    %6 = tpu.matmul %4, %5, %cst {dimension_numbers = #tpu.dot_dimension_numbers<[1], [0], [0], [1], [0, 0, 1, 1], [], []>} : vector<16x512xbf16>, vector<512x128xbf16>, vector<16x128xf32> -> vector<16x128xf32>
    %7 = arith.addf %3, %6 : vector<16x128xf32>
    %c0_6 = arith.constant 0 : index
    %c0_7 = arith.constant 0 : index
    %8 = vector.load %arg7[%c0_6, %c0_7] : memref<16x128xf32, #tpu.memory_space<vmem>>, vector<16x128xf32>
    tpu.vector_store %arg7[%c0_6, %c0_7], %7 {strides = array<i32>} : memref<16x128xf32, #tpu.memory_space<vmem>>, vector<16x128xf32>,
    %c31_i32 = arith.constant 31 : i32
    %9 = arith.cmpi eq, %arg2, %c31_i32 : i32
    %10 = arith.extui %9 : i1 to i32
    %c0_i32_8 = arith.constant 0 : i32
    %11 = arith.cmpi ne, %10, %c0_i32_8 : i32
    scf.if %11 {
      %c0_9 = arith.constant 0 : index
      %c0_10 = arith.constant 0 : index
      %12 = vector.load %arg7[%c0_9, %c0_10] : memref<16x128xf32, #tpu.memory_space<vmem>>, vector<16x128xf32>
      %c0_11 = arith.constant 0 : index
      %c0_12 = arith.constant 0 : index
      %13 = vector.load %arg5[%c0_11, %c0_12] : memref<1x128xf32, #tpu.memory_space<vmem>>, vector<1x128xf32>
      %14 = vector.broadcast %13 : vector<1x128xf32> to vector<16x128xf32>
      %15 = arith.addf %12, %14 : vector<16x128xf32>
      %16 = arith.negf %15 : vector<16x128xf32>
      %17 = math.exp %16 : vector<16x128xf32>
      %cst_13 = arith.constant 1.000000e+00 : f32
      %18 = vector.broadcast %cst_13 : f32 to vector<16x128xf32>
      %19 = arith.addf %18, %17 : vector<16x128xf32>
      %20 = arith.divf %18, %19 : vector<16x128xf32>
      %c0_14 = arith.constant 0 : index
      %c0_15 = arith.constant 0 : index
      %21 = vector.load %arg6[%c0_14, %c0_15] : memref<16x128xf32, #tpu.memory_space<vmem>>, vector<16x128xf32>
      tpu.vector_store %arg6[%c0_14, %c0_15], %20 {strides = array<i32>} : memref<16x128xf32, #tpu.memory_space<vmem>>, vector<16x128xf32>,
    } else {
    }
    return
  }
  func.func @transform_0(%arg0: i32, %arg1: i32, %arg2: i32) -> (i32, i32) {
    %c0_i32 = arith.constant 0 : i32
    return %arg0, %arg2 : i32, i32
  }
  func.func @transform_1(%arg0: i32, %arg1: i32, %arg2: i32) -> (i32, i32) {
    %c0_i32 = arith.constant 0 : i32
    return %arg2, %arg1 : i32, i32
  }
  func.func @transform_2(%arg0: i32, %arg1: i32, %arg2: i32) -> (i32, i32) {
    %c0_i32 = arith.constant 0 : i32
    %c0_i32_0 = arith.constant 0 : i32
    return %c0_i32, %arg1 : i32, i32
  }
  func.func @transform_3(%arg0: i32, %arg1: i32, %arg2: i32) -> (i32, i32) {
    %c0_i32 = arith.constant 0 : i32
    return %arg0, %arg1 : i32, i32
  }
}

module attributes {stable_mosaic.version = 11 : i64} {
  func.func @kernel(%arg0: i32, %arg1: i32, %arg2: i32, %arg3: memref<16x512xbf16, #tpu.memory_space<vmem>>, %arg4: memref<512x256xbf16, #tpu.memory_space<vmem>>, %arg5: memref<1x256xf32, #tpu.memory_space<vmem>>, %arg6: memref<16x256xf32, #tpu.memory_space<vmem>>, %arg7: memref<1x1x256xf32, #tpu.memory_space<vmem>>, %arg8: memref<1x1x256xf32, #tpu.memory_space<vmem>>, %arg9: memref<16x256xf32, #tpu.memory_space<vmem>>) attributes {dimension_semantics = [#tpu.dimension_semantics<parallel>, #tpu.dimension_semantics<parallel>, #tpu.dimension_semantics<arbitrary>], iteration_bounds = array<i64: 1, 2, 32>, scalar_prefetch = 0 : i64, scratch_operands = 1 : i64, tpu.core_type = #tpu.core_type<tc>, window_params = [{transform_indices = @transform_0, window_bounds = array<i64: 16, 512>}, {transform_indices = @transform_1, window_bounds = array<i64: 512, 256>}, {transform_indices = @transform_2, window_bounds = array<i64: 1, 256>}, {transform_indices = @transform_3, window_bounds = array<i64: 16, 256>}, {transform_indices = @transform_4, window_bounds = array<i64: 1, 1, 256>}, {transform_indices = @transform_5, window_bounds = array<i64: 1, 1, 256>}]} {
    %c0_i32 = arith.constant 0 : i32
    %0 = arith.cmpi eq, %arg2, %c0_i32 : i32
    %1 = arith.extui %0 : i1 to i32
    %c0_i32_0 = arith.constant 0 : i32
    %2 = arith.cmpi ne, %1, %c0_i32_0 : i32
    scf.if %2 {
      %cst_9 = arith.constant 0.000000e+00 : f32
      %12 = vector.broadcast %cst_9 : f32 to vector<16x256xf32>
      %c0_10 = arith.constant 0 : index
      %c0_11 = arith.constant 0 : index
      %13 = vector.load %arg9[%c0_10, %c0_11] : memref<16x256xf32, #tpu.memory_space<vmem>>, vector<16x256xf32>
      tpu.vector_store %arg9[%c0_10, %c0_11], %12 {strides = array<i32>} : memref<16x256xf32, #tpu.memory_space<vmem>>, vector<16x256xf32>,
    } else {
    }
    %c0 = arith.constant 0 : index
    %c0_1 = arith.constant 0 : index
    %3 = vector.load %arg9[%c0, %c0_1] : memref<16x256xf32, #tpu.memory_space<vmem>>, vector<16x256xf32>
    %c0_2 = arith.constant 0 : index
    %c0_3 = arith.constant 0 : index
    %4 = vector.load %arg3[%c0_2, %c0_3] : memref<16x512xbf16, #tpu.memory_space<vmem>>, vector<16x512xbf16>
    %c0_4 = arith.constant 0 : index
    %c0_5 = arith.constant 0 : index
    %5 = vector.load %arg4[%c0_4, %c0_5] : memref<512x256xbf16, #tpu.memory_space<vmem>>, vector<512x256xbf16>
    %cst = arith.constant dense<0.000000e+00> : vector<16x256xf32>
    %6 = tpu.matmul %4, %5, %cst {dimension_numbers = #tpu.dot_dimension_numbers<[1], [0], [0], [1], [0, 0, 1, 1], [], []>} : vector<16x512xbf16>, vector<512x256xbf16>, vector<16x256xf32> -> vector<16x256xf32>
    %7 = arith.addf %3, %6 : vector<16x256xf32>
    %c0_6 = arith.constant 0 : index
    %c0_7 = arith.constant 0 : index
    %8 = vector.load %arg9[%c0_6, %c0_7] : memref<16x256xf32, #tpu.memory_space<vmem>>, vector<16x256xf32>
    tpu.vector_store %arg9[%c0_6, %c0_7], %7 {strides = array<i32>} : memref<16x256xf32, #tpu.memory_space<vmem>>, vector<16x256xf32>,
    %c31_i32 = arith.constant 31 : i32
    %9 = arith.cmpi eq, %arg2, %c31_i32 : i32
    %10 = arith.extui %9 : i1 to i32
    %c0_i32_8 = arith.constant 0 : i32
    %11 = arith.cmpi ne, %10, %c0_i32_8 : i32
    scf.if %11 {
      %c0_9 = arith.constant 0 : index
      %c0_10 = arith.constant 0 : index
      %12 = vector.load %arg9[%c0_9, %c0_10] : memref<16x256xf32, #tpu.memory_space<vmem>>, vector<16x256xf32>
      %c0_11 = arith.constant 0 : index
      %c0_12 = arith.constant 0 : index
      %13 = vector.load %arg5[%c0_11, %c0_12] : memref<1x256xf32, #tpu.memory_space<vmem>>, vector<1x256xf32>
      %14 = vector.broadcast %13 : vector<1x256xf32> to vector<16x256xf32>
      %15 = arith.addf %12, %14 : vector<16x256xf32>
      %cst_13 = arith.constant dense<0.000000e+00> : vector<256xf32>
      %16 = vector.multi_reduction <add>, %15, %cst_13 [0] : vector<16x256xf32> to vector<256xf32>
      %17 = vector.shape_cast %16 : vector<256xf32> to vector<1x256xf32>
      %18 = vector.shape_cast %17 : vector<1x256xf32> to vector<1x1x256xf32>
      %c0_14 = arith.constant 0 : index
      %c0_15 = arith.constant 0 : index
      %c0_16 = arith.constant 0 : index
      %19 = vector.load %arg7[%c0_14, %c0_15, %c0_16] : memref<1x1x256xf32, #tpu.memory_space<vmem>>, vector<1x1x256xf32>
      tpu.vector_store %arg7[%c0_14, %c0_15, %c0_16], %18 {strides = array<i32>} : memref<1x1x256xf32, #tpu.memory_space<vmem>>, vector<1x1x256xf32>,
      %20 = arith.mulf %15, %15 : vector<16x256xf32>
      %cst_17 = arith.constant dense<0.000000e+00> : vector<256xf32>
      %21 = vector.multi_reduction <add>, %20, %cst_17 [0] : vector<16x256xf32> to vector<256xf32>
      %22 = vector.shape_cast %21 : vector<256xf32> to vector<1x256xf32>
      %23 = vector.shape_cast %22 : vector<1x256xf32> to vector<1x1x256xf32>
      %c0_18 = arith.constant 0 : index
      %c0_19 = arith.constant 0 : index
      %c0_20 = arith.constant 0 : index
      %24 = vector.load %arg8[%c0_18, %c0_19, %c0_20] : memref<1x1x256xf32, #tpu.memory_space<vmem>>, vector<1x1x256xf32>
      tpu.vector_store %arg8[%c0_18, %c0_19, %c0_20], %23 {strides = array<i32>} : memref<1x1x256xf32, #tpu.memory_space<vmem>>, vector<1x1x256xf32>,
      %c0_21 = arith.constant 0 : index
      %c0_22 = arith.constant 0 : index
      %25 = vector.load %arg6[%c0_21, %c0_22] : memref<16x256xf32, #tpu.memory_space<vmem>>, vector<16x256xf32>
      tpu.vector_store %arg6[%c0_21, %c0_22], %15 {strides = array<i32>} : memref<16x256xf32, #tpu.memory_space<vmem>>, vector<16x256xf32>,
    } else {
    }
    return
  }
  func.func @transform_0(%arg0: i32, %arg1: i32, %arg2: i32) -> (i32, i32) {
    %c0_i32 = arith.constant 0 : i32
    return %arg0, %arg2 : i32, i32
  }
  func.func @transform_1(%arg0: i32, %arg1: i32, %arg2: i32) -> (i32, i32) {
    %c0_i32 = arith.constant 0 : i32
    return %arg2, %arg1 : i32, i32
  }
  func.func @transform_2(%arg0: i32, %arg1: i32, %arg2: i32) -> (i32, i32) {
    %c0_i32 = arith.constant 0 : i32
    %c0_i32_0 = arith.constant 0 : i32
    return %c0_i32, %arg1 : i32, i32
  }
  func.func @transform_3(%arg0: i32, %arg1: i32, %arg2: i32) -> (i32, i32) {
    %c0_i32 = arith.constant 0 : i32
    return %arg0, %arg1 : i32, i32
  }
  func.func @transform_4(%arg0: i32, %arg1: i32, %arg2: i32) -> (i32, i32, i32) {
    %c0_i32 = arith.constant 0 : i32
    %c0_i32_0 = arith.constant 0 : i32
    return %arg0, %c0_i32, %arg1 : i32, i32, i32
  }
  func.func @transform_5(%arg0: i32, %arg1: i32, %arg2: i32) -> (i32, i32, i32) {
    %c0_i32 = arith.constant 0 : i32
    %c0_i32_0 = arith.constant 0 : i32
    return %arg0, %c0_i32, %arg1 : i32, i32, i32
  }
}

module attributes {stable_mosaic.version = 11 : i64} {
  func.func @_scale_shift_act_kernel(%arg0: i32, %arg1: memref<16x512xf32, #tpu.memory_space<vmem>>, %arg2: memref<1x512xf32, #tpu.memory_space<vmem>>, %arg3: memref<1x512xf32, #tpu.memory_space<vmem>>, %arg4: memref<16x512xf32, #tpu.memory_space<vmem>>) attributes {dimension_semantics = [#tpu.dimension_semantics<parallel>], iteration_bounds = array<i64: 1>, scalar_prefetch = 0 : i64, scratch_operands = 0 : i64, tpu.core_type = #tpu.core_type<tc>, window_params = [{transform_indices = @transform_0, window_bounds = array<i64: 16, 512>}, {pipeline_mode = #tpu.pipeline_mode<synchronous>, transform_indices = @transform_1, window_bounds = array<i64: 1, 512>}, {pipeline_mode = #tpu.pipeline_mode<synchronous>, transform_indices = @transform_2, window_bounds = array<i64: 1, 512>}, {transform_indices = @transform_3, window_bounds = array<i64: 16, 512>}]} {
    %c0 = arith.constant 0 : index
    %c0_0 = arith.constant 0 : index
    %0 = vector.load %arg1[%c0, %c0_0] : memref<16x512xf32, #tpu.memory_space<vmem>>, vector<16x512xf32>
    %c0_1 = arith.constant 0 : index
    %c0_2 = arith.constant 0 : index
    %1 = vector.load %arg2[%c0_1, %c0_2] : memref<1x512xf32, #tpu.memory_space<vmem>>, vector<1x512xf32>
    %2 = vector.broadcast %1 : vector<1x512xf32> to vector<16x512xf32>
    %3 = arith.mulf %0, %2 : vector<16x512xf32>
    %c0_3 = arith.constant 0 : index
    %c0_4 = arith.constant 0 : index
    %4 = vector.load %arg3[%c0_3, %c0_4] : memref<1x512xf32, #tpu.memory_space<vmem>>, vector<1x512xf32>
    %5 = vector.broadcast %4 : vector<1x512xf32> to vector<16x512xf32>
    %6 = arith.addf %3, %5 : vector<16x512xf32>
    %cst = arith.constant 0.000000e+00 : f32
    %7 = vector.broadcast %cst : f32 to vector<16x512xf32>
    %8 = arith.cmpf ogt, %6, %7 : vector<16x512xf32>
    %cst_5 = arith.constant 2.000000e-01 : f32
    %9 = vector.broadcast %cst_5 : f32 to vector<16x512xf32>
    %10 = arith.mulf %9, %6 : vector<16x512xf32>
    %11 = arith.select %8, %6, %10 : vector<16x512xi1>, vector<16x512xf32>
    %c0_6 = arith.constant 0 : index
    %c0_7 = arith.constant 0 : index
    %12 = vector.load %arg4[%c0_6, %c0_7] : memref<16x512xf32, #tpu.memory_space<vmem>>, vector<16x512xf32>
    tpu.vector_store %arg4[%c0_6, %c0_7], %11 {strides = array<i32>} : memref<16x512xf32, #tpu.memory_space<vmem>>, vector<16x512xf32>,
    return
  }
  func.func @transform_0(%arg0: i32) -> (i32, i32) {
    %c0_i32 = arith.constant 0 : i32
    %c0_i32_0 = arith.constant 0 : i32
    return %arg0, %c0_i32 : i32, i32
  }
  func.func @transform_1(%arg0: i32) -> (i32, i32) {
    %c0_i32 = arith.constant 0 : i32
    %c0_i32_0 = arith.constant 0 : i32
    %c0_i32_1 = arith.constant 0 : i32
    return %c0_i32, %c0_i32_0 : i32, i32
  }
  func.func @transform_2(%arg0: i32) -> (i32, i32) {
    %c0_i32 = arith.constant 0 : i32
    %c0_i32_0 = arith.constant 0 : i32
    %c0_i32_1 = arith.constant 0 : i32
    return %c0_i32, %c0_i32_0 : i32, i32
  }
  func.func @transform_3(%arg0: i32) -> (i32, i32) {
    %c0_i32 = arith.constant 0 : i32
    %c0_i32_0 = arith.constant 0 : i32
    return %arg0, %c0_i32 : i32, i32
  }
}

module attributes {stable_mosaic.version = 11 : i64} {
  func.func @kernel(%arg0: i32, %arg1: i32, %arg2: i32, %arg3: memref<16x512xbf16, #tpu.memory_space<vmem>>, %arg4: memref<512x128xbf16, #tpu.memory_space<vmem>>, %arg5: memref<1x128xf32, #tpu.memory_space<vmem>>, %arg6: memref<16x128xf32, #tpu.memory_space<vmem>>, %arg7: memref<16x128xf32, #tpu.memory_space<vmem>>) attributes {dimension_semantics = [#tpu.dimension_semantics<parallel>, #tpu.dimension_semantics<parallel>, #tpu.dimension_semantics<arbitrary>], iteration_bounds = array<i64: 1, 1, 1>, scalar_prefetch = 0 : i64, scratch_operands = 1 : i64, tpu.core_type = #tpu.core_type<tc>, window_params = [{transform_indices = @transform_0, window_bounds = array<i64: 16, 512>}, {transform_indices = @transform_1, window_bounds = array<i64: 512, 128>}, {transform_indices = @transform_2, window_bounds = array<i64: 1, 128>}, {transform_indices = @transform_3, window_bounds = array<i64: 16, 128>}]} {
    %c0_i32 = arith.constant 0 : i32
    %0 = arith.cmpi eq, %arg2, %c0_i32 : i32
    %1 = arith.extui %0 : i1 to i32
    %c0_i32_0 = arith.constant 0 : i32
    %2 = arith.cmpi ne, %1, %c0_i32_0 : i32
    scf.if %2 {
      %cst_10 = arith.constant 0.000000e+00 : f32
      %12 = vector.broadcast %cst_10 : f32 to vector<16x128xf32>
      %c0_11 = arith.constant 0 : index
      %c0_12 = arith.constant 0 : index
      %13 = vector.load %arg7[%c0_11, %c0_12] : memref<16x128xf32, #tpu.memory_space<vmem>>, vector<16x128xf32>
      tpu.vector_store %arg7[%c0_11, %c0_12], %12 {strides = array<i32>} : memref<16x128xf32, #tpu.memory_space<vmem>>, vector<16x128xf32>,
    } else {
    }
    %c0 = arith.constant 0 : index
    %c0_1 = arith.constant 0 : index
    %3 = vector.load %arg7[%c0, %c0_1] : memref<16x128xf32, #tpu.memory_space<vmem>>, vector<16x128xf32>
    %c0_2 = arith.constant 0 : index
    %c0_3 = arith.constant 0 : index
    %4 = vector.load %arg3[%c0_2, %c0_3] : memref<16x512xbf16, #tpu.memory_space<vmem>>, vector<16x512xbf16>
    %c0_4 = arith.constant 0 : index
    %c0_5 = arith.constant 0 : index
    %5 = vector.load %arg4[%c0_4, %c0_5] : memref<512x128xbf16, #tpu.memory_space<vmem>>, vector<512x128xbf16>
    %cst = arith.constant dense<0.000000e+00> : vector<16x128xf32>
    %6 = tpu.matmul %4, %5, %cst {dimension_numbers = #tpu.dot_dimension_numbers<[1], [0], [0], [1], [0, 0, 1, 1], [], []>} : vector<16x512xbf16>, vector<512x128xbf16>, vector<16x128xf32> -> vector<16x128xf32>
    %7 = arith.addf %3, %6 : vector<16x128xf32>
    %c0_6 = arith.constant 0 : index
    %c0_7 = arith.constant 0 : index
    %8 = vector.load %arg7[%c0_6, %c0_7] : memref<16x128xf32, #tpu.memory_space<vmem>>, vector<16x128xf32>
    tpu.vector_store %arg7[%c0_6, %c0_7], %7 {strides = array<i32>} : memref<16x128xf32, #tpu.memory_space<vmem>>, vector<16x128xf32>,
    %c0_i32_8 = arith.constant 0 : i32
    %9 = arith.cmpi eq, %arg2, %c0_i32_8 : i32
    %10 = arith.extui %9 : i1 to i32
    %c0_i32_9 = arith.constant 0 : i32
    %11 = arith.cmpi ne, %10, %c0_i32_9 : i32
    scf.if %11 {
      %c0_10 = arith.constant 0 : index
      %c0_11 = arith.constant 0 : index
      %12 = vector.load %arg7[%c0_10, %c0_11] : memref<16x128xf32, #tpu.memory_space<vmem>>, vector<16x128xf32>
      %c0_12 = arith.constant 0 : index
      %c0_13 = arith.constant 0 : index
      %13 = vector.load %arg5[%c0_12, %c0_13] : memref<1x128xf32, #tpu.memory_space<vmem>>, vector<1x128xf32>
      %14 = vector.broadcast %13 : vector<1x128xf32> to vector<16x128xf32>
      %15 = arith.addf %12, %14 : vector<16x128xf32>
      %16 = arith.negf %15 : vector<16x128xf32>
      %17 = math.exp %16 : vector<16x128xf32>
      %cst_14 = arith.constant 1.000000e+00 : f32
      %18 = vector.broadcast %cst_14 : f32 to vector<16x128xf32>
      %19 = arith.addf %18, %17 : vector<16x128xf32>
      %20 = arith.divf %18, %19 : vector<16x128xf32>
      %c0_15 = arith.constant 0 : index
      %c0_16 = arith.constant 0 : index
      %21 = vector.load %arg6[%c0_15, %c0_16] : memref<16x128xf32, #tpu.memory_space<vmem>>, vector<16x128xf32>
      tpu.vector_store %arg6[%c0_15, %c0_16], %20 {strides = array<i32>} : memref<16x128xf32, #tpu.memory_space<vmem>>, vector<16x128xf32>,
    } else {
    }
    return
  }
  func.func @transform_0(%arg0: i32, %arg1: i32, %arg2: i32) -> (i32, i32) {
    %c0_i32 = arith.constant 0 : i32
    return %arg0, %arg2 : i32, i32
  }
  func.func @transform_1(%arg0: i32, %arg1: i32, %arg2: i32) -> (i32, i32) {
    %c0_i32 = arith.constant 0 : i32
    return %arg2, %arg1 : i32, i32
  }
  func.func @transform_2(%arg0: i32, %arg1: i32, %arg2: i32) -> (i32, i32) {
    %c0_i32 = arith.constant 0 : i32
    %c0_i32_0 = arith.constant 0 : i32
    return %c0_i32, %arg1 : i32, i32
  }
  func.func @transform_3(%arg0: i32, %arg1: i32, %arg2: i32) -> (i32, i32) {
    %c0_i32 = arith.constant 0 : i32
    return %arg0, %arg1 : i32, i32
  }
}

</mosaic_0001>

<bundles_post_ra>
// kernel: discriminator_forward.11
= control target key start
LH: loop header
LB: loop body
LE: loop exit
PB: predicated region body
PF: predicated region fallthrough
CT: control target
= control target key end

     0   :  { %s1276_s12 = smov 0   ;;  %s1278_s13 = smov 0   ;;  %s1426_s0 = inlined_call_operand.vmem [shape: bf16[2048,128], index: 0, kind: input, shape index: {}]   ;;  %s1427_s1 = inlined_call_operand.vmem [shape: bf16[128,128], index: 1, kind: input, shape index: {}]   ;;  %s1428_s2 = inlined_call_operand.vmem [shape: f32[1,128], index: 2, kind: input, shape index: {}]   ;;  %s1429_s3 = inlined_call_operand.vmem [shape: f32[2048,128], index: 3, kind: output, shape index: {}]  }
   0x1   :  { %s1280_s14 = smov 0  }
   0x2 LB: > { %s32_s15 = sadd.s32 1, %s1250_s13  ;;  %p1064_p0 = scmp.ge.s32.totalorder %s1254_s14, 1  ;;  %s1254_s14 = sphi %s1280_s14, %s13_s14   ;;  %s1250_s13 = sphi %s1278_s13, %s1431_s13   ;;  %s1246_s12 = sphi %s1276_s12, %s1430_s12  }
   0x3   : > { %p34_p1 = scmp.ge.s32.totalorder %s32_s15, 8  ;;  %p188_p2 = scmp.lt.s32.totalorder %s1254_s14, 9 }
   0x5   : > { %s1433_s15 = smov (%p34_p1, %s32_s15), 0  ;;  %p189_p3 = pnand %p1064_p0, %p188_p2 }
   0x6   : > { %v1208_v0 = vld [vmem:[%s1427_s1] sm:$0xff] (!%p189_p3)   ;;  %s1065_s18 = sshll.u32 (!%p189_p3), %s1246_s12, 5  ;;  %v1209_v1 = vld [vmem:[%s1427_s1 + $0x8] sm:$0xff] (!%p189_p3)   ;;  %v1210_v2 = vld [vmem:[%s1427_s1 + $0x10] sm:$0xff] (!%p189_p3)  }
   0x7   : > { %192 = sbr.rel (%p189_p3) target bundleno = 288 (0x120), region = 32  ;;  %p230_p4 = scmp.lt.s32.totalorder (!%p189_p3), %s1065_s18, 255  ;;  %1120 = vmatprep.subr.bf16.mxu0 (!%p189_p3), %v1208_v0  ;;  %1168 = vmatprep.subr.bf16.mxu1 (!%p189_p3), %v1208_v0  ;;  %v1211_v3 = vld [vmem:[%s1427_s1 + $0x18] sm:$0xff] (!%p189_p3)   ;;  %v1212_v6 = vld [vmem:[%s1427_s1 + $0x20] sm:$0xff] (!%p189_p3)   ;;  %v1213_v7 = vld [vmem:[%s1427_s1 + $0x28] sm:$0xff] (!%p189_p3)  }
   0x8   : > { %1121 = vmatpush3.bf16.msra.mxu0 (!%p189_p3), %v1208_v0  ;;  %1176 = vmatpush3.bf16.msra.mxu1 (!%p189_p3), %v1208_v0  ;;  %v1214_v8 = vld [vmem:[%s1427_s1 + $0x30] sm:$0xff] (!%p189_p3)   ;;  %v1215_v9 = vld [vmem:[%s1427_s1 + $0x38] sm:$0xff] (!%p189_p3)   ;;  %v1345_v24 = vld [vmem:[%s1428_s2] ss:$0 sm:$0xff] (!%p189_p3) }
   0x9   : > { %1122 = vmatprep.subr.bf16.mxu0 (!%p189_p3), %v1209_v1  ;;  %1169 = vmatprep.subr.bf16.mxu1 (!%p189_p3), %v1209_v1 }
   0xc   : > { %1123 = vmatpush3.bf16.msra.mxu0 (!%p189_p3), %v1209_v1  ;;  %1177 = vmatpush3.bf16.msra.mxu1 (!%p189_p3), %v1209_v1 }
   0xd   : > { %1124 = vmatprep.subr.bf16.mxu0 (!%p189_p3), %v1210_v2  ;;  %1170 = vmatprep.subr.bf16.mxu1 (!%p189_p3), %v1210_v2 }
   0xe   : > { %s1435_s18 = smov (!%p230_p4, %s1065_s18), 255 }
   0xf   : > { %s1066_s23 = sshll.u32 %s1435_s18, 2  ;;  %s1068_s12 = sshll.u32 %s1435_s18, 3 }
  0x10   : > { %s1309_s26 = scalar_lea.vmem %s1426_s0, %s1066_s23  ;;  %1125 = vmatpush3.bf16.msra.mxu0 %v1210_v2  ;;  %1178 = vmatpush3.bf16.msra.mxu1 %v1210_v2  ;;  %s1355_s19 = scalar_lea.vmem %s1429_s3, %s1068_s12 }
  0x11   : > { %v1216_v4 = vld [vmem:[%s1309_s26] sm:$0xff]   ;;  %1126 = vmatprep.subr.bf16.mxu0 %v1211_v3  ;;  %1171 = vmatprep.subr.bf16.mxu1 %v1211_v3  ;;  %v1218_v10 = vld [vmem:[%s1309_s26 + $0x8] sm:$0xff]   ;;  %v1220_v12 = vld [vmem:[%s1309_s26 + $0x10] sm:$0xff]  }
  0x12   : > { %v1217_v5 = vld [vmem:[%s1309_s26 + $0x40] sm:$0xff]   ;;  %1136 = vmatprep.mubr.bf16.mxu0 %v1216_v4  ;;  %v1219_v11 = vld [vmem:[%s1309_s26 + $0x48] sm:$0xff]   ;;  %v1221_v13 = vld [vmem:[%s1309_s26 + $0x50] sm:$0xff]  }
  0x13   : > { %1152 = vmatprep.mubr.bf16.mxu1 %v1217_v5  ;;  %v1222_v14 = vld [vmem:[%s1309_s26 + $0x18] sm:$0xff]   ;;  %v1224_v16 = vld [vmem:[%s1309_s26 + $0x20] sm:$0xff]   ;;  %v1226_v18 = vld [vmem:[%s1309_s26 + $0x28] sm:$0xff]  }
  0x14   : > { %1127 = vmatpush3.bf16.msra.mxu0 %v1211_v3  ;;  %1179 = vmatpush3.bf16.msra.mxu1 %v1211_v3  ;;  %v1223_v15 = vld [vmem:[%s1309_s26 + $0x58] sm:$0xff]   ;;  %v1225_v17 = vld [vmem:[%s1309_s26 + $0x60] sm:$0xff]   ;;  %v1227_v19 = vld [vmem:[%s1309_s26 + $0x68] sm:$0xff]  }
  0x15   : > { %1128 = vmatprep.subr.bf16.mxu0 %v1212_v6  ;;  %1172 = vmatprep.subr.bf16.mxu1 %v1212_v6  ;;  %v1228_v20 = vld [vmem:[%s1309_s26 + $0x30] sm:$0xff]   ;;  %v1230_v22 = vld [vmem:[%s1309_s26 + $0x38] sm:$0xff]  }
  0x16   : > { %v1229_v21 = vld [vmem:[%s1309_s26 + $0x70] sm:$0xff]   ;;  %v1231_v23 = vld [vmem:[%s1309_s26 + $0x78] sm:$0xff]  }
  0x18   : > { %1129 = vmatpush3.bf16.msra.mxu0 %v1212_v6  ;;  %1180 = vmatpush3.bf16.msra.mxu1 %v1212_v6 }
  0x19   : > { %1130 = vmatprep.subr.bf16.mxu0 %v1213_v7  ;;  %1173 = vmatprep.subr.bf16.mxu1 %v1213_v7 }
  0x1c   : > { %1131 = vmatpush3.bf16.msra.mxu0 %v1213_v7  ;;  %1181 = vmatpush3.bf16.msra.mxu1 %v1213_v7 }
  0x1d   : > { %1132 = vmatprep.subr.bf16.mxu0 %v1214_v8  ;;  %1174 = vmatprep.subr.bf16.mxu1 %v1214_v8 }
  0x20   : > { %1133 = vmatpush3.bf16.msra.mxu0 %v1214_v8  ;;  %1182 = vmatpush3.bf16.msra.mxu1 %v1214_v8 }
  0x21   : > { %1134 = vmatprep.subr.bf16.mxu0 %v1215_v9  ;;  %1175 = vmatprep.subr.bf16.mxu1 %v1215_v9 }
  0x24   : > { %1135 = vmatpush3.bf16.msra.mxu0 %v1215_v9  ;;  %1183 = vmatpush3.bf16.msra.mxu1 %v1215_v9 }
  0x27   : > { %1137 = vmatmul.mubr.bf16.vlgmr.msra.gmra.mrb[0].mxu0 %v1218_v10  ;;  %1153 = vmatmul.mubr.bf16.vlgmr.msra.gmra.mrb[0].mxu1 %v1219_v11 }
  0x28   : > { %1140 = vmatprep.mubr.bf16.mxu0 %v1220_v12  ;;  %1156 = vmatprep.mubr.bf16.mxu1 %v1221_v13 }
  0x2f   : > { %1141 = vmatmul.mubr.bf16.gmra.mrb[4].mxu0 %v1222_v14  ;;  %1157 = vmatmul.mubr.bf16.gmra.mrb[4].mxu1 %v1223_v15 }
  0x30   : > { %1144 = vmatprep.mubr.bf16.mxu0 %v1224_v16  ;;  %1160 = vmatprep.mubr.bf16.mxu1 %v1225_v17 }
  0x37   : > { %1145 = vmatmul.mubr.bf16.gmra.mrb[8].mxu0 %v1226_v18  ;;  %1161 = vmatmul.mubr.bf16.gmra.mrb[8].mxu1 %v1227_v19 }
  0x38   : > { %1148 = vmatprep.mubr.bf16.mxu0 %v1228_v20  ;;  %1164 = vmatprep.mubr.bf16.mxu1 %v1229_v21 }
  0x3f   : > { %1149 = vmatmul.mubr.bf16.gmra.mrb[12].mxu0 %v1230_v22  ;;  %1165 = vmatmul.mubr.bf16.gmra.mrb[12].mxu1 %v1231_v23 }
  0xfa   : > { %v1138_v25 = vpop.f32.mrb[0].mxu0  ;;  %v1154_v26 = vpop.f32.mrb[0].mxu1 }
  0xfb   : > { %v789_v27 = vadd.f32 %v1138_v25, %v1345_v24  ;;  %v805_v28 = vadd.f32 %v1154_v26, %v1345_v24  ;;  %v554_v29 = vpop.f32.mrb[1].mxu0  ;;  %v618_v30 = vpop.f32.mrb[1].mxu1 }
  0xfc   : > { %v787_v31 = vadd.f32 %v1345_v24, %v554_v29  ;;  %v803_v32 = vadd.f32 %v1345_v24, %v618_v30  ;;  %v1139_v33 = vpop.f32.mrb[2].mxu0  ;;  %v1155_v34 = vpop.f32.mrb[2].mxu1 }
  0xfd   : > { %vm821_vm0 = vcmp.gt.f32.partialorder %v789_v27, 0.0  ;;  %v853_v35 = vmul.f32 0.2, %v789_v27  ;;  %vm837_vm1 = vcmp.gt.f32.partialorder %v805_v28, 0.0  ;;  %v869_v36 = vmul.f32 0.2, %v805_v28 }
  0xfe   : > { %vm819_vm2 = vcmp.gt.f32.partialorder %v787_v31, 0.0  ;;  %v851_v37 = vmul.f32 0.2, %v787_v31  ;;  %vm835_vm3 = vcmp.gt.f32.partialorder %v803_v32, 0.0  ;;  %v867_v38 = vmul.f32 0.2, %v803_v32 }
  0xff   : > { %v885_v39 = vsel %vm821_vm0, %v789_v27, %v853_v35  ;;  %v901_v40 = vsel %vm837_vm1, %v805_v28, %v869_v36  ;;  %v790_v41 = vadd.f32 %v1139_v33, %v1345_v24  ;;  %v806_v42 = vadd.f32 %v1155_v34, %v1345_v24  ;;  %v557_v43 = vpop.f32.mrb[3].mxu0  ;;  %v621_v44 = vpop.f32.mrb[3].mxu1 }
 0x100   : > { %917 = vst [vmem:[%s1355_s19 + $0x10] sm:$0xff] %v885_v39  ;;  %933 = vst [vmem:[%s1355_s19 + $0x90] sm:$0xff] %v901_v40  ;;  %v883_v45 = vsel %vm819_vm2, %v787_v31, %v851_v37  ;;  %v899_v46 = vsel %vm835_vm3, %v803_v32, %v867_v38  ;;  %v788_v47 = vadd.f32 %v1345_v24, %v557_v43 }
 0x101   : > { %v804_v48 = vadd.f32 %v1345_v24, %v621_v44  ;;  %915 = vst [vmem:[%s1355_s19] sm:$0xff] %v883_v45  ;;  %931 = vst [vmem:[%s1355_s19 + $0x80] sm:$0xff] %v899_v46  ;;  %vm822_vm4 = vcmp.gt.f32.partialorder %v790_v41, 0.0  ;;  %v854_v49 = vmul.f32 0.2, %v790_v41  ;;  %vm838_vm5 = vcmp.gt.f32.partialorder %v806_v42, 0.0 }
 0x102   : > { %v870_v50 = vmul.f32 0.2, %v806_v42  ;;  %vm820_vm6 = vcmp.gt.f32.partialorder %v788_v47, 0.0  ;;  %v852_v51 = vmul.f32 0.2, %v788_v47  ;;  %v1142_v55 = vpop.f32.mrb[4].mxu0 }
 0x103   : > { %vm836_vm7 = vcmp.gt.f32.partialorder %v804_v48, 0.0  ;;  %v868_v52 = vmul.f32 0.2, %v804_v48  ;;  %v886_v53 = vsel %vm822_vm4, %v790_v41, %v854_v49  ;;  %v1158_v56 = vpop.f32.mrb[4].mxu1  ;;  %v793_v59 = vadd.f32 %v1142_v55, %v1345_v24  ;;  %v570_v61 = vpop.f32.mrb[5].mxu0 }
 0x104   : > { %v902_v54 = vsel %vm838_vm5, %v806_v42, %v870_v50  ;;  %918 = vst [vmem:[%s1355_s19 + $0x18] sm:$0xff] %v886_v53  ;;  %v884_v57 = vsel %vm820_vm6, %v788_v47, %v852_v51  ;;  %v809_v60 = vadd.f32 %v1158_v56, %v1345_v24  ;;  %v634_v62 = vpop.f32.mrb[5].mxu1  ;;  %v791_v63 = vadd.f32 %v1345_v24, %v570_v61  ;;  %v1143_v1 = vpop.f32.mrb[6].mxu0 }
 0x105   : > { %934 = vst [vmem:[%s1355_s19 + $0x98] sm:$0xff] %v902_v54  ;;  %v900_v58 = vsel %vm836_vm7, %v804_v48, %v868_v52  ;;  %916 = vst [vmem:[%s1355_s19 + $0x8] sm:$0xff] %v884_v57  ;;  %v807_v0 = vadd.f32 %v1345_v24, %v634_v62  ;;  %v1159_v2 = vpop.f32.mrb[6].mxu1  ;;  %vm825_vm8 = vcmp.gt.f32.partialorder %v793_v59, 0.0  ;;  %v857_v3 = vmul.f32 0.2, %v793_v59 }
 0x106   : > { %932 = vst [vmem:[%s1355_s19 + $0x88] sm:$0xff] %v900_v58  ;;  %vm841_vm9 = vcmp.gt.f32.partialorder %v809_v60, 0.0  ;;  %v873_v4 = vmul.f32 0.2, %v809_v60  ;;  %vm823_vm10 = vcmp.gt.f32.partialorder %v791_v63, 0.0  ;;  %v794_v9 = vadd.f32 %v1143_v1, %v1345_v24  ;;  %v573_v11 = vpop.f32.mrb[7].mxu0 }
 0x107   : > { %v855_v5 = vmul.f32 0.2, %v791_v63  ;;  %vm839_vm11 = vcmp.gt.f32.partialorder %v807_v0, 0.0  ;;  %v871_v6 = vmul.f32 0.2, %v807_v0  ;;  %v889_v7 = vsel %vm825_vm8, %v793_v59, %v857_v3  ;;  %v637_v12 = vpop.f32.mrb[7].mxu1 }
 0x108   : > { %v905_v8 = vsel %vm841_vm9, %v809_v60, %v873_v4  ;;  %v810_v10 = vadd.f32 %v1159_v2, %v1345_v24  ;;  %921 = vst [vmem:[%s1355_s19 + $0x30] sm:$0xff] %v889_v7  ;;  %v792_v15 = vadd.f32 %v1345_v24, %v573_v11  ;;  %v808_v16 = vadd.f32 %v1345_v24, %v637_v12 }
 0x109   : > { %937 = vst [vmem:[%s1355_s19 + $0xb0] sm:$0xff] %v905_v8  ;;  %v887_v13 = vsel %vm823_vm10, %v791_v63, %v855_v5  ;;  %v903_v14 = vsel %vm839_vm11, %v807_v0, %v871_v6  ;;  %vm826_vm12 = vcmp.gt.f32.partialorder %v794_v9, 0.0  ;;  %v858_v17 = vmul.f32 0.2, %v794_v9 }
 0x10a   : > { %919 = vst [vmem:[%s1355_s19 + $0x20] sm:$0xff] %v887_v13  ;;  %935 = vst [vmem:[%s1355_s19 + $0xa0] sm:$0xff] %v903_v14  ;;  %vm842_vm13 = vcmp.gt.f32.partialorder %v810_v10, 0.0  ;;  %v874_v18 = vmul.f32 0.2, %v810_v10  ;;  %vm824_vm14 = vcmp.gt.f32.partialorder %v792_v15, 0.0 }
 0x10b   : > { %v856_v19 = vmul.f32 0.2, %v792_v15  ;;  %vm840_vm15 = vcmp.gt.f32.partialorder %v808_v16, 0.0  ;;  %v872_v20 = vmul.f32 0.2, %v808_v16  ;;  %v890_v21 = vsel %vm826_vm12, %v794_v9, %v858_v17  ;;  %v1146_v23 = vpop.f32.mrb[8].mxu0 }
 0x10c   : > { %v906_v22 = vsel %vm842_vm13, %v810_v10, %v874_v18  ;;  %v1162_v25 = vpop.f32.mrb[8].mxu1  ;;  %922 = vst [vmem:[%s1355_s19 + $0x38] sm:$0xff] %v890_v21  ;;  %v797_v28 = vadd.f32 %v1146_v23, %v1345_v24  ;;  %v586_v30 = vpop.f32.mrb[9].mxu0 }
 0x10d   : > { %938 = vst [vmem:[%s1355_s19 + $0xb8] sm:$0xff] %v906_v22  ;;  %v888_v26 = vsel %vm824_vm14, %v792_v15, %v856_v19  ;;  %v904_v27 = vsel %vm840_vm15, %v808_v16, %v872_v20  ;;  %v813_v29 = vadd.f32 %v1162_v25, %v1345_v24  ;;  %v650_v31 = vpop.f32.mrb[9].mxu1  ;;  %v795_v32 = vadd.f32 %v1345_v24, %v586_v30  ;;  %v1147_v34 = vpop.f32.mrb[10].mxu0 }
 0x10e   : > { %920 = vst [vmem:[%s1355_s19 + $0x28] sm:$0xff] %v888_v26  ;;  %936 = vst [vmem:[%s1355_s19 + $0xa8] sm:$0xff] %v904_v27  ;;  %v811_v33 = vadd.f32 %v1345_v24, %v650_v31  ;;  %v1163_v35 = vpop.f32.mrb[10].mxu1  ;;  %vm829_vm0 = vcmp.gt.f32.partialorder %v797_v28, 0.0  ;;  %v861_v36 = vmul.f32 0.2, %v797_v28  ;;  %v798_v42 = vadd.f32 %v1147_v34, %v1345_v24 }
 0x10f   : > { %vm845_vm1 = vcmp.gt.f32.partialorder %v813_v29, 0.0  ;;  %v877_v37 = vmul.f32 0.2, %v813_v29  ;;  %vm827_vm2 = vcmp.gt.f32.partialorder %v795_v32, 0.0  ;;  %v859_v38 = vmul.f32 0.2, %v795_v32 }
 0x110   : > { %vm843_vm3 = vcmp.gt.f32.partialorder %v811_v33, 0.0  ;;  %v875_v39 = vmul.f32 0.2, %v811_v33  ;;  %v893_v40 = vsel %vm829_vm0, %v797_v28, %v861_v36  ;;  %v814_v43 = vadd.f32 %v1163_v35, %v1345_v24  ;;  %v589_v44 = vpop.f32.mrb[11].mxu0  ;;  %v653_v45 = vpop.f32.mrb[11].mxu1 }
 0x111   : > { %v909_v41 = vsel %vm845_vm1, %v813_v29, %v877_v37  ;;  %925 = vst [vmem:[%s1355_s19 + $0x50] sm:$0xff] %v893_v40  ;;  %v891_v46 = vsel %vm827_vm2, %v795_v32, %v859_v38  ;;  %v796_v48 = vadd.f32 %v1345_v24, %v589_v44  ;;  %v812_v49 = vadd.f32 %v1345_v24, %v653_v45 }
 0x112   : > { %941 = vst [vmem:[%s1355_s19 + $0xd0] sm:$0xff] %v909_v41  ;;  %v907_v47 = vsel %vm843_vm3, %v811_v33, %v875_v39  ;;  %v1150_v50 = vpop.f32.mrb[12].mxu0  ;;  %v1166_v51 = vpop.f32.mrb[12].mxu1  ;;  %923 = vst [vmem:[%s1355_s19 + $0x40] sm:$0xff] %v891_v46  ;;  %vm830_vm4 = vcmp.gt.f32.partialorder %v798_v42, 0.0  ;;  %vm846_vm5 = vcmp.gt.f32.partialorder %v814_v43, 0.0 }
 0x113   : > { %939 = vst [vmem:[%s1355_s19 + $0xc0] sm:$0xff] %v907_v47  ;;  %v862_v52 = vmul.f32 0.2, %v798_v42  ;;  %v878_v53 = vmul.f32 0.2, %v814_v43  ;;  %vm828_vm6 = vcmp.gt.f32.partialorder %v796_v48, 0.0  ;;  %v801_v58 = vadd.f32 %v1150_v50, %v1345_v24 }
 0x114   : > { %v860_v54 = vmul.f32 0.2, %v796_v48  ;;  %vm844_vm7 = vcmp.gt.f32.partialorder %v812_v49, 0.0  ;;  %v876_v55 = vmul.f32 0.2, %v812_v49  ;;  %v817_v59 = vadd.f32 %v1166_v51, %v1345_v24  ;;  %v602_v60 = vpop.f32.mrb[13].mxu0 }
 0x115   : > { %v894_v56 = vsel %vm830_vm4, %v798_v42, %v862_v52  ;;  %v910_v57 = vsel %vm846_vm5, %v814_v43, %v878_v53  ;;  %v666_v61 = vpop.f32.mrb[13].mxu1  ;;  %v799_v0 = vadd.f32 %v1345_v24, %v602_v60  ;;  %v1151_v2 = vpop.f32.mrb[14].mxu0  ;;  %vm833_vm8 = vcmp.gt.f32.partialorder %v801_v58, 0.0 }
 0x116   : > { %926 = vst [vmem:[%s1355_s19 + $0x58] sm:$0xff] %v894_v56  ;;  %942 = vst [vmem:[%s1355_s19 + $0xd8] sm:$0xff] %v910_v57  ;;  %v892_v62 = vsel %vm828_vm6, %v796_v48, %v860_v54  ;;  %v908_v63 = vsel %vm844_vm7, %v812_v49, %v876_v55  ;;  %v815_v1 = vadd.f32 %v1345_v24, %v666_v61  ;;  %v1167_v3 = vpop.f32.mrb[14].mxu1  ;;  %v865_v4 = vmul.f32 0.2, %v801_v58  ;;  %v605_v12 = vpop.f32.mrb[15].mxu0 }
 0x117   : > { %924 = vst [vmem:[%s1355_s19 + $0x48] sm:$0xff] %v892_v62  ;;  %940 = vst [vmem:[%s1355_s19 + $0xc8] sm:$0xff] %v908_v63  ;;  %vm849_vm9 = vcmp.gt.f32.partialorder %v817_v59, 0.0  ;;  %v881_v5 = vmul.f32 0.2, %v817_v59  ;;  %vm831_vm10 = vcmp.gt.f32.partialorder %v799_v0, 0.0  ;;  %v802_v10 = vadd.f32 %v1151_v2, %v1345_v24 }
 0x118   : > { %v863_v6 = vmul.f32 0.2, %v799_v0  ;;  %vm847_vm11 = vcmp.gt.f32.partialorder %v815_v1, 0.0  ;;  %v879_v7 = vmul.f32 0.2, %v815_v1  ;;  %v897_v8 = vsel %vm833_vm8, %v801_v58, %v865_v4  ;;  %v669_v13 = vpop.f32.mrb[15].mxu1 }
 0x119   : > { %v913_v9 = vsel %vm849_vm9, %v817_v59, %v881_v5  ;;  %v818_v11 = vadd.f32 %v1167_v3, %v1345_v24  ;;  %929 = vst [vmem:[%s1355_s19 + $0x70] sm:$0xff] %v897_v8  ;;  %v800_v16 = vadd.f32 %v1345_v24, %v605_v12  ;;  %v816_v17 = vadd.f32 %v1345_v24, %v669_v13 }
 0x11a   : > { %945 = vst [vmem:[%s1355_s19 + $0xf0] sm:$0xff] %v913_v9  ;;  %v895_v14 = vsel %vm831_vm10, %v799_v0, %v863_v6  ;;  %v911_v15 = vsel %vm847_vm11, %v815_v1, %v879_v7  ;;  %vm834_vm12 = vcmp.gt.f32.partialorder %v802_v10, 0.0  ;;  %v866_v18 = vmul.f32 0.2, %v802_v10 }
 0x11b   : > { %927 = vst [vmem:[%s1355_s19 + $0x60] sm:$0xff] %v895_v14  ;;  %943 = vst [vmem:[%s1355_s19 + $0xe0] sm:$0xff] %v911_v15  ;;  %vm850_vm13 = vcmp.gt.f32.partialorder %v818_v11, 0.0  ;;  %v882_v19 = vmul.f32 0.2, %v818_v11  ;;  %vm832_vm14 = vcmp.gt.f32.partialorder %v800_v16, 0.0 }
 0x11c   : > { %v864_v20 = vmul.f32 0.2, %v800_v16  ;;  %vm848_vm15 = vcmp.gt.f32.partialorder %v816_v17, 0.0  ;;  %v880_v21 = vmul.f32 0.2, %v816_v17  ;;  %v898_v22 = vsel %vm834_vm12, %v802_v10, %v866_v18 }
 0x11d   : > { %v914_v23 = vsel %vm850_vm13, %v818_v11, %v882_v19  ;;  %930 = vst [vmem:[%s1355_s19 + $0x78] sm:$0xff] %v898_v22 }
 0x11e   : > { %946 = vst [vmem:[%s1355_s19 + $0xf8] sm:$0xff] %v914_v23  ;;  %v896_v25 = vsel %vm832_vm14, %v800_v16, %v864_v20  ;;  %v912_v26 = vsel %vm848_vm15, %v816_v17, %v880_v21 }
 0x11f   : > { %928 = vst [vmem:[%s1355_s19 + $0x68] sm:$0xff] %v896_v25  ;;  %944 = vst [vmem:[%s1355_s19 + $0xe8] sm:$0xff] %v912_v26 }
 0x120 PF: > { %s13_s14 = sadd.s32 1, %s1254_s14   ;;  %s1430_s12 = smov %s1250_s13 }
 0x121   : > { %p10_p5 = scmp.ge.s32.totalorder %s13_s14, 10   ;;  %s1431_s13 = smov %s1433_s15 }
 0x123   :  { %12 = sbr.rel (!%p10_p5) target bundleno = 2 (0x2), region = 76 }

// kernel: discriminator_forward.12
= control target key start
LH: loop header
LB: loop body
LE: loop exit
PB: predicated region body
PF: predicated region fallthrough
CT: control target
= control target key end

     0   :  { %s3164_s18 = smov 0   ;;  %s3166_s19 = smov 0   ;;  %s4136_s0 = inlined_call_operand.vmem [shape: bf16[512,2048], index: 0, kind: input, shape index: {}]   ;;  %s4137_s1 = inlined_call_operand.vmem [shape: bf16[2048,256], index: 1, kind: input, shape index: {}]   ;;  %s4138_s2 = inlined_call_operand.vmem [shape: f32[1,256], index: 2, kind: input, shape index: {}]   ;;  %s4139_s3 = inlined_call_operand.vmem [shape: f32[512,256], index: 3, kind: output, shape index: {0}]   ;;  %s4140_s4 = inlined_call_operand.vmem [shape: f32[2,1,256], index: 4, kind: output, shape index: {1}]   ;;  %s4141_s5 = inlined_call_operand.vmem [shape: f32[2,1,256], index: 5, kind: output, shape index: {2}]  }
   0x1   :  { %s3168_s20 = smov 0   ;;  %s3170_s21 = smov 0  }
   0x2   :  { %s3172_s22 = smov 0   ;;  %s3174_s23 = smov 0  }
   0x3   :  { %s3176_s24 = smov 0  }
   0x4 LB: > { %s28_s25 = sadd.s32 1, %s3122_s22  ;;  %s35_s26 = sadd.s32 1, %s3126_s23  ;;  %s3130_s24 = sphi %s3176_s24, %s16_s24   ;;  %s3126_s23 = sphi %s3174_s23, %s4206_s23   ;;  %s3122_s22 = sphi %s3172_s22, %s4205_s22   ;;  %s3118_s21 = sphi %s3170_s21, %s4204_s21   ;;  %s3114_s20 = sphi %s3168_s20, %s4203_s20   ;;  %s3110_s19 = sphi %s3166_s19, %s4202_s19   ;;  %s3106_s18 = sphi %s3164_s18, %s4201_s18  }
   0x5   : > { %p29_p0 = scmp.ge.s32.totalorder %s28_s25, 4  ;;  %p51_p1 = scmp.ne.s32.totalorder %s3110_s19, %s3106_s18 }
   0x6   : > { %p52_p2 = scmp.eq.s32.totalorder %s3130_s24, 0  ;;  %s44_s30 = sadd.s32 1, %s3110_s19 }
   0x7   : > { %s4208_s25 = smov (%p29_p0, %s28_s25), 0  ;;  %s4210_s26 = smov (!%p29_p0, %s35_s26), %s3126_s23 }
   0x8   : > { %p53_p3 = por %p52_p2, %p51_p1  ;;  %p37_p4 = scmp.ge.s32.totalorder %s4210_s26, 2 }
   0x9   : > { %s40_s27 = ssub.s32 %s3122_s22, %s4208_s25  ;;  %p2611_p6 = scmp.ge.s32.totalorder %s3130_s24, 8 }
   0xa   : > { %s4212_s26 = smov (%p37_p4, %s4210_s26), 0 }
   0xb   : > { %s39_s28 = ssub.s32 %s3126_s23, %s4212_s26  ;;  %223 = sbr.rel (%p2611_p6) target bundleno = 57 (0x39), region = 20 }
   0xc   : > { %s41_s29 = sor.u32 %s40_s27, %s39_s28 }
   0xd   : > { %p42_p5 = scmp.eq.s32.totalorder %s41_s29, 0 }
   0xf   : > { %s3215_s6 = scalar_select %p42_p5, %s3110_s19, %s44_s30  }
  0x12   : > { %226 = sbr.rel (!%p53_p3) target bundleno = 57 (0x39), region = 24  ;;  %s228_s7 = sand.u32 (%p53_p3), 1, %s3110_s19  }
  0x13   : > { %s2614_s8 = sshll.u32 (%p53_p3), %s3122_s22, 2  ;;  %s2612_s9 = sshll.u32 (%p53_p3), %s228_s7, 9 }
  0x14   : > { %s2759_s10 = sshll.u32 (%p53_p3), %s3126_s23, 9  ;;  %s3229_s16 = scalar_lea.vmem (%p53_p3), [#allocation3], %s2612_s9 }
  0x15   : > { %s234_s11 = sadd.s32 (%p53_p3), %s2759_s10, %s2614_s8 }
  0x16   : > { %s2616_s12 = sshll.u32 (%p53_p3), %s234_s11, 2 }
  0x17   : > { %s3224_s15 = scalar_lea.vmem (%p53_p3), %s4136_s0, %s2616_s12 }
  0x18   : > { %v249_v0 = vld [vmem:[%s3224_s15] sm:$0xff] (%p53_p3)  ;;  %v251_v1 = vld [vmem:[%s3224_s15 + $0x8] sm:$0xff] (%p53_p3) }
  0x19   : > { %v253_v2 = vld [vmem:[%s3224_s15 + $0x40] sm:$0xff]  ;;  %250 = vst [vmem:[%s3229_s16] sm:$0xff] %v249_v0  ;;  %252 = vst [vmem:[%s3229_s16 + $0x8] sm:$0xff] %v251_v1  ;;  %v255_v3 = vld [vmem:[%s3224_s15 + $0x48] sm:$0xff] }
  0x1a   : > { %254 = vst [vmem:[%s3229_s16 + $0x10] sm:$0xff] %v253_v2  ;;  %v257_v4 = vld [vmem:[%s3224_s15 + $0x80] sm:$0xff]  ;;  %v259_v5 = vld [vmem:[%s3224_s15 + $0x88] sm:$0xff]  ;;  %256 = vst [vmem:[%s3229_s16 + $0x18] sm:$0xff] %v255_v3 }
  0x1b   : > { %258 = vst [vmem:[%s3229_s16 + $0x20] sm:$0xff] %v257_v4  ;;  %260 = vst [vmem:[%s3229_s16 + $0x28] sm:$0xff] %v259_v5  ;;  %v261_v6 = vld [vmem:[%s3224_s15 + $0xc0] sm:$0xff]  ;;  %v263_v7 = vld [vmem:[%s3224_s15 + $0xc8] sm:$0xff] }
  0x1c   : > { %v265_v8 = vld [vmem:[%s3224_s15 + $0x100] sm:$0xff]  ;;  %262 = vst [vmem:[%s3229_s16 + $0x30] sm:$0xff] %v261_v6  ;;  %264 = vst [vmem:[%s3229_s16 + $0x38] sm:$0xff] %v263_v7  ;;  %v267_v9 = vld [vmem:[%s3224_s15 + $0x108] sm:$0xff] }
  0x1d   : > { %266 = vst [vmem:[%s3229_s16 + $0x40] sm:$0xff] %v265_v8  ;;  %v269_v10 = vld [vmem:[%s3224_s15 + $0x140] sm:$0xff]  ;;  %v271_v11 = vld [vmem:[%s3224_s15 + $0x148] sm:$0xff]  ;;  %268 = vst [vmem:[%s3229_s16 + $0x48] sm:$0xff] %v267_v9 }
  0x1e   : > { %270 = vst [vmem:[%s3229_s16 + $0x50] sm:$0xff] %v269_v10  ;;  %272 = vst [vmem:[%s3229_s16 + $0x58] sm:$0xff] %v271_v11  ;;  %v273_v12 = vld [vmem:[%s3224_s15 + $0x180] sm:$0xff]  ;;  %v275_v13 = vld [vmem:[%s3224_s15 + $0x188] sm:$0xff] }
  0x1f   : > { %v277_v14 = vld [vmem:[%s3224_s15 + $0x1c0] sm:$0xff]  ;;  %274 = vst [vmem:[%s3229_s16 + $0x60] sm:$0xff] %v273_v12  ;;  %276 = vst [vmem:[%s3229_s16 + $0x68] sm:$0xff] %v275_v13  ;;  %v279_v15 = vld [vmem:[%s3224_s15 + $0x1c8] sm:$0xff] }
  0x20   : > { %278 = vst [vmem:[%s3229_s16 + $0x70] sm:$0xff] %v277_v14  ;;  %v281_v16 = vld [vmem:[%s3224_s15 + $0x200] sm:$0xff]  ;;  %v283_v17 = vld [vmem:[%s3224_s15 + $0x208] sm:$0xff]  ;;  %280 = vst [vmem:[%s3229_s16 + $0x78] sm:$0xff] %v279_v15 }
  0x21   : > { %282 = vst [vmem:[%s3229_s16 + $0x80] sm:$0xff] %v281_v16  ;;  %284 = vst [vmem:[%s3229_s16 + $0x88] sm:$0xff] %v283_v17  ;;  %v285_v18 = vld [vmem:[%s3224_s15 + $0x240] sm:$0xff]  ;;  %v287_v19 = vld [vmem:[%s3224_s15 + $0x248] sm:$0xff] }
  0x22   : > { %v289_v20 = vld [vmem:[%s3224_s15 + $0x280] sm:$0xff]  ;;  %286 = vst [vmem:[%s3229_s16 + $0x90] sm:$0xff] %v285_v18  ;;  %288 = vst [vmem:[%s3229_s16 + $0x98] sm:$0xff] %v287_v19  ;;  %v291_v21 = vld [vmem:[%s3224_s15 + $0x288] sm:$0xff] }
  0x23   : > { %290 = vst [vmem:[%s3229_s16 + $0xa0] sm:$0xff] %v289_v20  ;;  %v293_v22 = vld [vmem:[%s3224_s15 + $0x2c0] sm:$0xff]  ;;  %v295_v23 = vld [vmem:[%s3224_s15 + $0x2c8] sm:$0xff]  ;;  %292 = vst [vmem:[%s3229_s16 + $0xa8] sm:$0xff] %v291_v21 }
  0x24   : > { %294 = vst [vmem:[%s3229_s16 + $0xb0] sm:$0xff] %v293_v22  ;;  %296 = vst [vmem:[%s3229_s16 + $0xb8] sm:$0xff] %v295_v23  ;;  %v297_v24 = vld [vmem:[%s3224_s15 + $0x300] sm:$0xff]  ;;  %v299_v25 = vld [vmem:[%s3224_s15 + $0x308] sm:$0xff] }
  0x25   : > { %v301_v26 = vld [vmem:[%s3224_s15 + $0x340] sm:$0xff]  ;;  %298 = vst [vmem:[%s3229_s16 + $0xc0] sm:$0xff] %v297_v24  ;;  %300 = vst [vmem:[%s3229_s16 + $0xc8] sm:$0xff] %v299_v25  ;;  %v303_v27 = vld [vmem:[%s3224_s15 + $0x348] sm:$0xff] }
  0x26   : > { %302 = vst [vmem:[%s3229_s16 + $0xd0] sm:$0xff] %v301_v26  ;;  %v305_v28 = vld [vmem:[%s3224_s15 + $0x380] sm:$0xff]  ;;  %v307_v29 = vld [vmem:[%s3224_s15 + $0x388] sm:$0xff]  ;;  %304 = vst [vmem:[%s3229_s16 + $0xd8] sm:$0xff] %v303_v27 }
  0x27   : > { %306 = vst [vmem:[%s3229_s16 + $0xe0] sm:$0xff] %v305_v28  ;;  %308 = vst [vmem:[%s3229_s16 + $0xe8] sm:$0xff] %v307_v29  ;;  %v309_v30 = vld [vmem:[%s3224_s15 + $0x3c0] sm:$0xff]  ;;  %v311_v31 = vld [vmem:[%s3224_s15 + $0x3c8] sm:$0xff] }
  0x28   : > { %v313_v32 = vld [vmem:[%s3224_s15 + $0x400] sm:$0xff]  ;;  %310 = vst [vmem:[%s3229_s16 + $0xf0] sm:$0xff] %v309_v30  ;;  %312 = vst [vmem:[%s3229_s16 + $0xf8] sm:$0xff] %v311_v31  ;;  %v315_v33 = vld [vmem:[%s3224_s15 + $0x408] sm:$0xff] }
  0x29   : > { %314 = vst [vmem:[%s3229_s16 + $0x100] sm:$0xff] %v313_v32  ;;  %v317_v34 = vld [vmem:[%s3224_s15 + $0x440] sm:$0xff]  ;;  %v319_v35 = vld [vmem:[%s3224_s15 + $0x448] sm:$0xff]  ;;  %316 = vst [vmem:[%s3229_s16 + $0x108] sm:$0xff] %v315_v33 }
  0x2a   : > { %318 = vst [vmem:[%s3229_s16 + $0x110] sm:$0xff] %v317_v34  ;;  %320 = vst [vmem:[%s3229_s16 + $0x118] sm:$0xff] %v319_v35  ;;  %v321_v36 = vld [vmem:[%s3224_s15 + $0x480] sm:$0xff]  ;;  %v323_v37 = vld [vmem:[%s3224_s15 + $0x488] sm:$0xff] }
  0x2b   : > { %v325_v38 = vld [vmem:[%s3224_s15 + $0x4c0] sm:$0xff]  ;;  %322 = vst [vmem:[%s3229_s16 + $0x120] sm:$0xff] %v321_v36  ;;  %324 = vst [vmem:[%s3229_s16 + $0x128] sm:$0xff] %v323_v37  ;;  %v327_v39 = vld [vmem:[%s3224_s15 + $0x4c8] sm:$0xff] }
  0x2c   : > { %326 = vst [vmem:[%s3229_s16 + $0x130] sm:$0xff] %v325_v38  ;;  %v329_v40 = vld [vmem:[%s3224_s15 + $0x500] sm:$0xff]  ;;  %v331_v41 = vld [vmem:[%s3224_s15 + $0x508] sm:$0xff]  ;;  %328 = vst [vmem:[%s3229_s16 + $0x138] sm:$0xff] %v327_v39 }
  0x2d   : > { %330 = vst [vmem:[%s3229_s16 + $0x140] sm:$0xff] %v329_v40  ;;  %332 = vst [vmem:[%s3229_s16 + $0x148] sm:$0xff] %v331_v41  ;;  %v333_v42 = vld [vmem:[%s3224_s15 + $0x540] sm:$0xff]  ;;  %v335_v43 = vld [vmem:[%s3224_s15 + $0x548] sm:$0xff] }
  0x2e   : > { %v337_v44 = vld [vmem:[%s3224_s15 + $0x580] sm:$0xff]  ;;  %334 = vst [vmem:[%s3229_s16 + $0x150] sm:$0xff] %v333_v42  ;;  %336 = vst [vmem:[%s3229_s16 + $0x158] sm:$0xff] %v335_v43  ;;  %v339_v45 = vld [vmem:[%s3224_s15 + $0x588] sm:$0xff] }
  0x2f   : > { %338 = vst [vmem:[%s3229_s16 + $0x160] sm:$0xff] %v337_v44  ;;  %v341_v46 = vld [vmem:[%s3224_s15 + $0x5c0] sm:$0xff]  ;;  %v343_v47 = vld [vmem:[%s3224_s15 + $0x5c8] sm:$0xff]  ;;  %340 = vst [vmem:[%s3229_s16 + $0x168] sm:$0xff] %v339_v45 }
  0x30   : > { %342 = vst [vmem:[%s3229_s16 + $0x170] sm:$0xff] %v341_v46  ;;  %344 = vst [vmem:[%s3229_s16 + $0x178] sm:$0xff] %v343_v47  ;;  %v345_v48 = vld [vmem:[%s3224_s15 + $0x600] sm:$0xff]  ;;  %v347_v49 = vld [vmem:[%s3224_s15 + $0x608] sm:$0xff] }
  0x31   : > { %v349_v50 = vld [vmem:[%s3224_s15 + $0x640] sm:$0xff]  ;;  %346 = vst [vmem:[%s3229_s16 + $0x180] sm:$0xff] %v345_v48  ;;  %348 = vst [vmem:[%s3229_s16 + $0x188] sm:$0xff] %v347_v49  ;;  %v351_v51 = vld [vmem:[%s3224_s15 + $0x648] sm:$0xff] }
  0x32   : > { %350 = vst [vmem:[%s3229_s16 + $0x190] sm:$0xff] %v349_v50  ;;  %v353_v52 = vld [vmem:[%s3224_s15 + $0x680] sm:$0xff]  ;;  %v355_v53 = vld [vmem:[%s3224_s15 + $0x688] sm:$0xff]  ;;  %352 = vst [vmem:[%s3229_s16 + $0x198] sm:$0xff] %v351_v51 }
  0x33   : > { %354 = vst [vmem:[%s3229_s16 + $0x1a0] sm:$0xff] %v353_v52  ;;  %356 = vst [vmem:[%s3229_s16 + $0x1a8] sm:$0xff] %v355_v53  ;;  %v357_v54 = vld [vmem:[%s3224_s15 + $0x6c0] sm:$0xff]  ;;  %v359_v55 = vld [vmem:[%s3224_s15 + $0x6c8] sm:$0xff] }
  0x34   : > { %v361_v56 = vld [vmem:[%s3224_s15 + $0x700] sm:$0xff]  ;;  %358 = vst [vmem:[%s3229_s16 + $0x1b0] sm:$0xff] %v357_v54  ;;  %360 = vst [vmem:[%s3229_s16 + $0x1b8] sm:$0xff] %v359_v55  ;;  %v363_v57 = vld [vmem:[%s3224_s15 + $0x708] sm:$0xff] }
  0x35   : > { %362 = vst [vmem:[%s3229_s16 + $0x1c0] sm:$0xff] %v361_v56  ;;  %v365_v58 = vld [vmem:[%s3224_s15 + $0x740] sm:$0xff]  ;;  %v367_v59 = vld [vmem:[%s3224_s15 + $0x748] sm:$0xff]  ;;  %364 = vst [vmem:[%s3229_s16 + $0x1c8] sm:$0xff] %v363_v57 }
  0x36   : > { %366 = vst [vmem:[%s3229_s16 + $0x1d0] sm:$0xff] %v365_v58  ;;  %368 = vst [vmem:[%s3229_s16 + $0x1d8] sm:$0xff] %v367_v59  ;;  %v369_v60 = vld [vmem:[%s3224_s15 + $0x780] sm:$0xff]  ;;  %v371_v61 = vld [vmem:[%s3224_s15 + $0x788] sm:$0xff] }
  0x37   : > { %v373_v62 = vld [vmem:[%s3224_s15 + $0x7c0] sm:$0xff]  ;;  %370 = vst [vmem:[%s3229_s16 + $0x1e0] sm:$0xff] %v369_v60  ;;  %372 = vst [vmem:[%s3229_s16 + $0x1e8] sm:$0xff] %v371_v61  ;;  %v375_v63 = vld [vmem:[%s3224_s15 + $0x7c8] sm:$0xff] }
  0x38   : > { %374 = vst [vmem:[%s3229_s16 + $0x1f0] sm:$0xff] %v373_v62  ;;  %376 = vst [vmem:[%s3229_s16 + $0x1f8] sm:$0xff] %v375_v63 }
  0x39 PF: > { %p2617_p7 = scmp.ge.s32.totalorder %s3130_s24, 1  ;;  %p396_p8 = scmp.lt.s32.totalorder %s3130_s24, 9 }
  0x3b   : > { %p397_p9 = pnand %p2617_p7, %p396_p8 }
  0x3c   : > { %s403_s17 = sand.u32 (!%p397_p9), 1, %s3106_s18   ;;  %s2619_s27 = sshll.u32 (!%p397_p9), %s3114_s20, 6 }
  0x3d   : > { %400 = sbr.rel (%p397_p9) target bundleno = 648 (0x288), region = 51  ;;  %s2618_s28 = sshll.u32 (!%p397_p9), %s403_s17, 9 }
  0x3e   : > { %p469_p10 = scmp.lt.s32.totalorder (!%p397_p9), %s2619_s27, 255  ;;  %s2622_s29 = sshll.u32 (!%p397_p9), %s3118_s21, 5 }
  0x3f   : > { %p486_p11 = scmp.lt.s32.totalorder (!%p397_p9), %s2622_s29, 63  ;;  %p497_p12 = scmp.lt.s32.totalorder (!%p397_p9), %s3118_s21, 1 }
  0x40   : > { %p2627_p13 = scmp.ne.s32.totalorder (!%p397_p9), %s3114_s20, 0 }
  0x44   : > { %s4214_s27 = smov (!%p469_p10, %s2619_s27), 255  ;;  %s4216_s29 = smov (!%p486_p11, %s2622_s29), 63 }
  0x45   : > { %s2760_s30 = sshll.u32 %s4214_s27, 3  ;;  %s4218_s21 = smov (!%p497_p12, %s3118_s21), 1  ;;  %v3132_v0 = vmov (!%p2627_p13), 0.0  }
  0x46   : > { %s3365_s9 = scalar_lea.vmem %s4137_s1, %s2760_s30  ;;  %s2761_s10 = sshll.u32 %s4216_s29, 4  ;;  %518 = vst [vmem:[#allocation2] sm:$0xff] (!%p2627_p13), %v3132_v0  ;;  %519 = vst [vmem:[#allocation2 + $0x8] sm:$0xff] (!%p2627_p13), %v3132_v0 }
  0x47   : > { %s3371_s18 = scalar_lea.vmem %s4139_s3, %s2761_s10  ;;  %s2625_s13 = sshll.u32 %s4218_s21, 1  ;;  %520 = vst [vmem:[#allocation2 + $0x10] sm:$0xff] (!%p2627_p13), %v3132_v0  ;;  %521 = vst [vmem:[#allocation2 + $0x18] sm:$0xff] (!%p2627_p13), %v3132_v0 }
  0x48   : > { %s3376_s16 = scalar_lea.vmem %s4140_s4, %s2625_s13  ;;  %s3381_s7 = scalar_lea.vmem %s4141_s5, %s2625_s13  ;;  %522 = vst [vmem:[#allocation2 + $0x20] sm:$0xff] (!%p2627_p13), %v3132_v0  ;;  %523 = vst [vmem:[#allocation2 + $0x28] sm:$0xff] (!%p2627_p13), %v3132_v0 }
  0x49   : > { %s3383_s30 = scalar_lea.vmem [#allocation3], %s2618_s28  ;;  %517 = sbr.rel (%p2627_p13) target bundleno = 102 (0x66), region = 59  ;;  %524 = vst [vmem:[#allocation2 + $0x30] sm:$0xff] (!%p2627_p13), %v3132_v0  ;;  %525 = vst [vmem:[#allocation2 + $0x38] sm:$0xff] (!%p2627_p13), %v3132_v0 }
  0x4a   : > { %526 = vst [vmem:[#allocation2 + $0x40] sm:$0xff] (!%p2627_p13), %v3132_v0  ;;  %527 = vst [vmem:[#allocation2 + $0x48] sm:$0xff] (!%p2627_p13), %v3132_v0 }
  0x4b   : > { %528 = vst [vmem:[#allocation2 + $0x50] sm:$0xff] (!%p2627_p13), %v3132_v0  ;;  %529 = vst [vmem:[#allocation2 + $0x58] sm:$0xff] (!%p2627_p13), %v3132_v0 }
  0x4c   : > { %530 = vst [vmem:[#allocation2 + $0x60] sm:$0xff] (!%p2627_p13), %v3132_v0  ;;  %531 = vst [vmem:[#allocation2 + $0x68] sm:$0xff] (!%p2627_p13), %v3132_v0 }
  0x4d   : > { %532 = vst [vmem:[#allocation2 + $0x70] sm:$0xff] (!%p2627_p13), %v3132_v0  ;;  %533 = vst [vmem:[#allocation2 + $0x78] sm:$0xff] (!%p2627_p13), %v3132_v0 }
  0x4e   : > { %534 = vst [vmem:[#allocation2 + $0x80] sm:$0xff] (!%p2627_p13), %v3132_v0  ;;  %535 = vst [vmem:[#allocation2 + $0x88] sm:$0xff] (!%p2627_p13), %v3132_v0 }
  0x4f   : > { %536 = vst [vmem:[#allocation2 + $0x90] sm:$0xff] (!%p2627_p13), %v3132_v0  ;;  %537 = vst [vmem:[#allocation2 + $0x98] sm:$0xff] (!%p2627_p13), %v3132_v0 }
  0x50   : > { %538 = vst [vmem:[#allocation2 + $0xa0] sm:$0xff] %v3132_v0  ;;  %539 = vst [vmem:[#allocation2 + $0xa8] sm:$0xff] %v3132_v0 }
  0x51   : > { %540 = vst [vmem:[#allocation2 + $0xb0] sm:$0xff] %v3132_v0  ;;  %541 = vst [vmem:[#allocation2 + $0xb8] sm:$0xff] %v3132_v0 }
  0x52   : > { %542 = vst [vmem:[#allocation2 + $0xc0] sm:$0xff] %v3132_v0  ;;  %543 = vst [vmem:[#allocation2 + $0xc8] sm:$0xff] %v3132_v0 }
  0x53   : > { %544 = vst [vmem:[#allocation2 + $0xd0] sm:$0xff] %v3132_v0  ;;  %545 = vst [vmem:[#allocation2 + $0xd8] sm:$0xff] %v3132_v0 }
  0x54   : > { %546 = vst [vmem:[#allocation2 + $0xe0] sm:$0xff] %v3132_v0  ;;  %547 = vst [vmem:[#allocation2 + $0xe8] sm:$0xff] %v3132_v0 }
  0x55   : > { %548 = vst [vmem:[#allocation2 + $0xf0] sm:$0xff] %v3132_v0  ;;  %549 = vst [vmem:[#allocation2 + $0xf8] sm:$0xff] %v3132_v0 }
  0x56   : > { %550 = vst [vmem:[#allocation2 + $0x100] sm:$0xff] %v3132_v0  ;;  %551 = vst [vmem:[#allocation2 + $0x108] sm:$0xff] %v3132_v0 }
  0x57   : > { %552 = vst [vmem:[#allocation2 + $0x110] sm:$0xff] %v3132_v0  ;;  %553 = vst [vmem:[#allocation2 + $0x118] sm:$0xff] %v3132_v0 }
  0x58   : > { %554 = vst [vmem:[#allocation2 + $0x120] sm:$0xff] %v3132_v0  ;;  %555 = vst [vmem:[#allocation2 + $0x128] sm:$0xff] %v3132_v0 }
  0x59   : > { %556 = vst [vmem:[#allocation2 + $0x130] sm:$0xff] %v3132_v0  ;;  %557 = vst [vmem:[#allocation2 + $0x138] sm:$0xff] %v3132_v0 }
  0x5a   : > { %558 = vst [vmem:[#allocation2 + $0x140] sm:$0xff] %v3132_v0  ;;  %559 = vst [vmem:[#allocation2 + $0x148] sm:$0xff] %v3132_v0 }
  0x5b   : > { %560 = vst [vmem:[#allocation2 + $0x150] sm:$0xff] %v3132_v0  ;;  %561 = vst [vmem:[#allocation2 + $0x158] sm:$0xff] %v3132_v0 }
  0x5c   : > { %562 = vst [vmem:[#allocation2 + $0x160] sm:$0xff] %v3132_v0  ;;  %563 = vst [vmem:[#allocation2 + $0x168] sm:$0xff] %v3132_v0 }
  0x5d   : > { %564 = vst [vmem:[#allocation2 + $0x170] sm:$0xff] %v3132_v0  ;;  %565 = vst [vmem:[#allocation2 + $0x178] sm:$0xff] %v3132_v0 }
  0x5e   : > { %566 = vst [vmem:[#allocation2 + $0x180] sm:$0xff] %v3132_v0  ;;  %567 = vst [vmem:[#allocation2 + $0x188] sm:$0xff] %v3132_v0 }
  0x5f   : > { %568 = vst [vmem:[#allocation2 + $0x190] sm:$0xff] %v3132_v0  ;;  %569 = vst [vmem:[#allocation2 + $0x198] sm:$0xff] %v3132_v0 }
  0x60   : > { %570 = vst [vmem:[#allocation2 + $0x1a0] sm:$0xff] %v3132_v0  ;;  %571 = vst [vmem:[#allocation2 + $0x1a8] sm:$0xff] %v3132_v0 }
  0x61   : > { %572 = vst [vmem:[#allocation2 + $0x1b0] sm:$0xff] %v3132_v0  ;;  %573 = vst [vmem:[#allocation2 + $0x1b8] sm:$0xff] %v3132_v0 }
  0x62   : > { %574 = vst [vmem:[#allocation2 + $0x1c0] sm:$0xff] %v3132_v0  ;;  %575 = vst [vmem:[#allocation2 + $0x1c8] sm:$0xff] %v3132_v0 }
  0x63   : > { %576 = vst [vmem:[#allocation2 + $0x1d0] sm:$0xff] %v3132_v0  ;;  %577 = vst [vmem:[#allocation2 + $0x1d8] sm:$0xff] %v3132_v0 }
  0x64   : > { %578 = vst [vmem:[#allocation2 + $0x1e0] sm:$0xff] %v3132_v0  ;;  %579 = vst [vmem:[#allocation2 + $0x1e8] sm:$0xff] %v3132_v0 }
  0x65   : > { %580 = vst [vmem:[#allocation2 + $0x1f0] sm:$0xff] %v3132_v0  ;;  %581 = vst [vmem:[#allocation2 + $0x1f8] sm:$0xff] %v3132_v0 }
  0x66 PF: > { %v2884_v1 = vld [vmem:[%s3365_s9 + $0x4] ss:$8 sps:$4 sm:$0xff]   ;;  %v2888_v3 = vld [vmem:[%s3365_s9] ss:$8 sps:$4 sm:$0xff]   ;;  %v2890_v5 = vld [vmem:[%s3365_s9 + $0x14] ss:$8 sps:$4 sm:$0xff]  }
  0x67   : > { %v2886_v2 = vld [vmem:[%s3365_s9 + $0x104] ss:$8 sps:$4 sm:$0xff]   ;;  %1414 = vmatprep.subr.bf16.mxu1 %v2884_v1  ;;  %v2889_v4 = vld [vmem:[%s3365_s9 + $0x100] ss:$8 sps:$4 sm:$0xff]   ;;  %v2892_v6 = vld [vmem:[%s3365_s9 + $0x114] ss:$8 sps:$4 sm:$0xff]  }
  0x68   : > { %1607 = vmatprep.subr.bf16.mxu0 %v2886_v2  ;;  %1415 = vmatpush1.bf16.msra.mxu1 %v2888_v3  ;;  %v2894_v7 = vld [vmem:[%s3365_s9 + $0x10] ss:$8 sps:$4 sm:$0xff]   ;;  %v2896_v9 = vld [vmem:[%s3365_s9 + $0x24] ss:$8 sps:$4 sm:$0xff]   ;;  %v2900_v11 = vld [vmem:[%s3365_s9 + $0x20] ss:$8 sps:$4 sm:$0xff]  }
  0x69   : > { %1608 = vmatpush1.bf16.msra.mxu0 %v2889_v4  ;;  %1416 = vmatprep.subr.bf16.mxu1 %v2890_v5  ;;  %v2895_v8 = vld [vmem:[%s3365_s9 + $0x110] ss:$8 sps:$4 sm:$0xff]   ;;  %v2898_v10 = vld [vmem:[%s3365_s9 + $0x124] ss:$8 sps:$4 sm:$0xff]   ;;  %v2901_v12 = vld [vmem:[%s3365_s9 + $0x120] ss:$8 sps:$4 sm:$0xff]  }
  0x6a   : > { %1609 = vmatprep.subr.bf16.mxu0 %v2892_v6  ;;  %v2902_v13 = vld [vmem:[%s3365_s9 + $0x34] ss:$8 sps:$4 sm:$0xff]   ;;  %v2906_v15 = vld [vmem:[%s3365_s9 + $0x30] ss:$8 sps:$4 sm:$0xff]   ;;  %v2908_v17 = vld [vmem:[%s3365_s9 + $0x44] ss:$8 sps:$4 sm:$0xff]  }
  0x6b   : > { %v2904_v14 = vld [vmem:[%s3365_s9 + $0x134] ss:$8 sps:$4 sm:$0xff]   ;;  %v2907_v16 = vld [vmem:[%s3365_s9 + $0x130] ss:$8 sps:$4 sm:$0xff]   ;;  %v2910_v18 = vld [vmem:[%s3365_s9 + $0x144] ss:$8 sps:$4 sm:$0xff]  }
  0x6c   : > { %1417 = vmatpush1.bf16.msra.mxu1 %v2894_v7  ;;  %v2912_v19 = vld [vmem:[%s3365_s9 + $0x40] ss:$8 sps:$4 sm:$0xff]   ;;  %v2914_v21 = vld [vmem:[%s3365_s9 + $0x54] ss:$8 sps:$4 sm:$0xff]   ;;  %v2918_v23 = vld [vmem:[%s3365_s9 + $0x50] ss:$8 sps:$4 sm:$0xff]  }
  0x6d   : > { %1610 = vmatpush1.bf16.msra.mxu0 %v2895_v8  ;;  %1418 = vmatprep.subr.bf16.mxu1 %v2896_v9  ;;  %v2913_v20 = vld [vmem:[%s3365_s9 + $0x140] ss:$8 sps:$4 sm:$0xff]   ;;  %v2916_v22 = vld [vmem:[%s3365_s9 + $0x154] ss:$8 sps:$4 sm:$0xff]   ;;  %v2919_v24 = vld [vmem:[%s3365_s9 + $0x150] ss:$8 sps:$4 sm:$0xff]  }
  0x6e   : > { %1611 = vmatprep.subr.bf16.mxu0 %v2898_v10  ;;  %v2920_v25 = vld [vmem:[%s3365_s9 + $0x64] ss:$8 sps:$4 sm:$0xff]   ;;  %v2924_v27 = vld [vmem:[%s3365_s9 + $0x60] ss:$8 sps:$4 sm:$0xff]   ;;  %v2926_v29 = vld [vmem:[%s3365_s9 + $0x74] ss:$8 sps:$4 sm:$0xff]  }
  0x6f   : > { %v2922_v26 = vld [vmem:[%s3365_s9 + $0x164] ss:$8 sps:$4 sm:$0xff]   ;;  %v2925_v28 = vld [vmem:[%s3365_s9 + $0x160] ss:$8 sps:$4 sm:$0xff]   ;;  %v2928_v30 = vld [vmem:[%s3365_s9 + $0x174] ss:$8 sps:$4 sm:$0xff]  }
  0x70   : > { %1419 = vmatpush1.bf16.msra.mxu1 %v2900_v11  ;;  %v2930_v31 = vld [vmem:[%s3365_s9 + $0x70] ss:$8 sps:$4 sm:$0xff]   ;;  %v2932_v33 = vld [vmem:[%s3365_s9 + $0x84] ss:$8 sps:$4 sm:$0xff]   ;;  %v2936_v35 = vld [vmem:[%s3365_s9 + $0x80] ss:$8 sps:$4 sm:$0xff]  }
  0x71   : > { %1612 = vmatpush1.bf16.msra.mxu0 %v2901_v12  ;;  %1420 = vmatprep.subr.bf16.mxu1 %v2902_v13  ;;  %v2931_v32 = vld [vmem:[%s3365_s9 + $0x170] ss:$8 sps:$4 sm:$0xff]   ;;  %v2934_v34 = vld [vmem:[%s3365_s9 + $0x184] ss:$8 sps:$4 sm:$0xff]   ;;  %v2937_v36 = vld [vmem:[%s3365_s9 + $0x180] ss:$8 sps:$4 sm:$0xff]  }
  0x72   : > { %1613 = vmatprep.subr.bf16.mxu0 %v2904_v14  ;;  %v2938_v37 = vld [vmem:[%s3365_s9 + $0x94] ss:$8 sps:$4 sm:$0xff]   ;;  %v2942_v39 = vld [vmem:[%s3365_s9 + $0x90] ss:$8 sps:$4 sm:$0xff]   ;;  %v2944_v41 = vld [vmem:[%s3365_s9 + $0xa4] ss:$8 sps:$4 sm:$0xff]  }
  0x73   : > { %v2940_v38 = vld [vmem:[%s3365_s9 + $0x194] ss:$8 sps:$4 sm:$0xff]   ;;  %v2943_v40 = vld [vmem:[%s3365_s9 + $0x190] ss:$8 sps:$4 sm:$0xff]   ;;  %v2946_v42 = vld [vmem:[%s3365_s9 + $0x1a4] ss:$8 sps:$4 sm:$0xff]  }
  0x74   : > { %1421 = vmatpush1.bf16.msra.mxu1 %v2906_v15  ;;  %v2948_v43 = vld [vmem:[%s3365_s9 + $0xa0] ss:$8 sps:$4 sm:$0xff]   ;;  %v2950_v45 = vld [vmem:[%s3365_s9 + $0xb4] ss:$8 sps:$4 sm:$0xff]   ;;  %v2954_v47 = vld [vmem:[%s3365_s9 + $0xb0] ss:$8 sps:$4 sm:$0xff]  }
  0x75   : > { %1614 = vmatpush1.bf16.msra.mxu0 %v2907_v16  ;;  %1422 = vmatprep.subr.bf16.mxu1 %v2908_v17  ;;  %v2949_v44 = vld [vmem:[%s3365_s9 + $0x1a0] ss:$8 sps:$4 sm:$0xff]   ;;  %v2952_v46 = vld [vmem:[%s3365_s9 + $0x1b4] ss:$8 sps:$4 sm:$0xff]   ;;  %v2955_v48 = vld [vmem:[%s3365_s9 + $0x1b0] ss:$8 sps:$4 sm:$0xff]  }
  0x76   : > { %1615 = vmatprep.subr.bf16.mxu0 %v2910_v18  ;;  %v2956_v49 = vld [vmem:[%s3365_s9 + $0xc4] ss:$8 sps:$4 sm:$0xff]   ;;  %v2960_v53 = vld [vmem:[%s3365_s9 + $0xc0] ss:$8 sps:$4 sm:$0xff]   ;;  %v2962_v55 = vld [vmem:[%s3365_s9 + $0xd4] ss:$8 sps:$4 sm:$0xff]  }
  0x77   : > { %v2982_v50 = vld [vmem:[%s3383_s30 + $0x4] ss:$16 sps:$4 sm:$0xff]   ;;  %v2985_v52 = vld [vmem:[%s3383_s30 + $0xc] ss:$16 sps:$4 sm:$0xff]   ;;  %v2961_v54 = vld [vmem:[%s3365_s9 + $0x1c0] ss:$8 sps:$4 sm:$0xff]  }
  0x78   : > { %1423 = vmatpush1.bf16.msra.mxu1 %v2912_v19  ;;  %v2958_v51 = vld [vmem:[%s3365_s9 + $0x1c4] ss:$8 sps:$4 sm:$0xff]   ;;  %1446 = vmatprep.mubr.bf16.mxu1 %v2982_v50  ;;  %v2964_v56 = vld [vmem:[%s3365_s9 + $0x1d4] ss:$8 sps:$4 sm:$0xff]   ;;  %v2966_v57 = vld [vmem:[%s3365_s9 + $0xd0] ss:$8 sps:$4 sm:$0xff]  }
  0x79   : > { %1616 = vmatpush1.bf16.msra.mxu0 %v2913_v20  ;;  %1424 = vmatprep.subr.bf16.mxu1 %v2914_v21  ;;  %v2967_v58 = vld [vmem:[%s3365_s9 + $0x1d0] ss:$8 sps:$4 sm:$0xff]   ;;  %v2968_v59 = vld [vmem:[%s3365_s9 + $0xe4] ss:$8 sps:$4 sm:$0xff]   ;;  %v2972_v61 = vld [vmem:[%s3365_s9 + $0xe0] ss:$8 sps:$4 sm:$0xff]  }
  0x7a   : > { %1617 = vmatprep.subr.bf16.mxu0 %v2916_v22  ;;  %1639 = vmatprep.mubr.bf16.mxu0 %v2985_v52  ;;  %v2970_v60 = vld [vmem:[%s3365_s9 + $0x1e4] ss:$8 sps:$4 sm:$0xff]   ;;  %v2973_v62 = vld [vmem:[%s3365_s9 + $0x1e0] ss:$8 sps:$4 sm:$0xff]   ;;  %v2974_v63 = vld [vmem:[%s3365_s9 + $0xf4] ss:$8 sps:$4 sm:$0xff]  }
  0x7b   : > { %v2976_v0 = vld [vmem:[%s3365_s9 + $0x1f4] ss:$8 sps:$4 sm:$0xff]   ;;  %v2978_v1 = vld [vmem:[%s3365_s9 + $0xf0] ss:$8 sps:$4 sm:$0xff]   ;;  %p2756_p0 = scmp.ne.s32.totalorder %s3114_s20, 3 }
  0x7c   : > { %1425 = vmatpush1.bf16.msra.mxu1 %v2918_v23  ;;  %v2979_v2 = vld [vmem:[%s3365_s9 + $0x1f0] ss:$8 sps:$4 sm:$0xff]   ;;  %v2986_v5 = vld [vmem:[%s3383_s30 + $0x24] ss:$16 sps:$4 sm:$0xff]   ;;  %v2988_v6 = vld [vmem:[%s3383_s30 + $0x2c] ss:$16 sps:$4 sm:$0xff]  }
  0x7d   : > { %1618 = vmatpush1.bf16.msra.mxu0 %v2919_v24  ;;  %1426 = vmatprep.subr.bf16.mxu1 %v2920_v25  ;;  %v2980_v3 = vld [vmem:[%s3383_s30] ss:$16 sps:$4 sm:$0xff]   ;;  %v2983_v4 = vld [vmem:[%s3383_s30 + $0x8] ss:$16 sps:$4 sm:$0xff]   ;;  %v2992_v9 = vld [vmem:[%s3383_s30 + $0x44] ss:$16 sps:$4 sm:$0xff]  }
  0x7e   : > { %1619 = vmatprep.subr.bf16.mxu0 %v2922_v26  ;;  %v2990_v7 = vld [vmem:[%s3383_s30 + $0x20] ss:$16 sps:$4 sm:$0xff]   ;;  %v2991_v8 = vld [vmem:[%s3383_s30 + $0x28] ss:$16 sps:$4 sm:$0xff]   ;;  %v2994_v10 = vld [vmem:[%s3383_s30 + $0x4c] ss:$16 sps:$4 sm:$0xff]  }
  0x7f   : > { %v2996_v11 = vld [vmem:[%s3383_s30 + $0x40] ss:$16 sps:$4 sm:$0xff]   ;;  %v2997_v12 = vld [vmem:[%s3383_s30 + $0x48] ss:$16 sps:$4 sm:$0xff]   ;;  %v2998_v13 = vld [vmem:[%s3383_s30 + $0x64] ss:$16 sps:$4 sm:$0xff]  }
  0x80   : > { %1427 = vmatpush1.bf16.msra.mxu1 %v2924_v27  ;;  %v3000_v14 = vld [vmem:[%s3383_s30 + $0x6c] ss:$16 sps:$4 sm:$0xff]   ;;  %v3002_v15 = vld [vmem:[%s3383_s30 + $0x60] ss:$16 sps:$4 sm:$0xff]   ;;  %v3003_v16 = vld [vmem:[%s3383_s30 + $0x68] ss:$16 sps:$4 sm:$0xff]  }
  0x81   : > { %1620 = vmatpush1.bf16.msra.mxu0 %v2925_v28  ;;  %1428 = vmatprep.subr.bf16.mxu1 %v2926_v29  ;;  %v3004_v17 = vld [vmem:[%s3383_s30 + $0x84] ss:$16 sps:$4 sm:$0xff]   ;;  %v3006_v18 = vld [vmem:[%s3383_s30 + $0x8c] ss:$16 sps:$4 sm:$0xff]   ;;  %v3008_v19 = vld [vmem:[%s3383_s30 + $0x80] ss:$16 sps:$4 sm:$0xff]  }
  0x82   : > { %1621 = vmatprep.subr.bf16.mxu0 %v2928_v30  ;;  %v3009_v20 = vld [vmem:[%s3383_s30 + $0x88] ss:$16 sps:$4 sm:$0xff]   ;;  %v3010_v21 = vld [vmem:[%s3383_s30 + $0xa4] ss:$16 sps:$4 sm:$0xff]   ;;  %v3012_v22 = vld [vmem:[%s3383_s30 + $0xac] ss:$16 sps:$4 sm:$0xff]  }
  0x83   : > { %v3014_v23 = vld [vmem:[%s3383_s30 + $0xa0] ss:$16 sps:$4 sm:$0xff]   ;;  %v3015_v24 = vld [vmem:[%s3383_s30 + $0xa8] ss:$16 sps:$4 sm:$0xff]   ;;  %v3016_v25 = vld [vmem:[%s3383_s30 + $0xc4] ss:$16 sps:$4 sm:$0xff]  }
  0x84   : > { %1429 = vmatpush1.bf16.msra.mxu1 %v2930_v31  ;;  %v3018_v26 = vld [vmem:[%s3383_s30 + $0xcc] ss:$16 sps:$4 sm:$0xff]   ;;  %v3020_v27 = vld [vmem:[%s3383_s30 + $0xc0] ss:$16 sps:$4 sm:$0xff]   ;;  %v3021_v28 = vld [vmem:[%s3383_s30 + $0xc8] ss:$16 sps:$4 sm:$0xff]  }
  0x85   : > { %1622 = vmatpush1.bf16.msra.mxu0 %v2931_v32  ;;  %1430 = vmatprep.subr.bf16.mxu1 %v2932_v33  ;;  %v3022_v29 = vld [vmem:[%s3383_s30 + $0xe4] ss:$16 sps:$4 sm:$0xff]   ;;  %v3024_v30 = vld [vmem:[%s3383_s30 + $0xec] ss:$16 sps:$4 sm:$0xff]   ;;  %v3026_v31 = vld [vmem:[%s3383_s30 + $0xe0] ss:$16 sps:$4 sm:$0xff]  }
  0x86   : > { %1623 = vmatprep.subr.bf16.mxu0 %v2934_v34  ;;  %v3027_v32 = vld [vmem:[%s3383_s30 + $0xe8] ss:$16 sps:$4 sm:$0xff]   ;;  %v3028_v33 = vld [vmem:[%s3383_s30 + $0x104] ss:$16 sps:$4 sm:$0xff]   ;;  %v3030_v34 = vld [vmem:[%s3383_s30 + $0x10c] ss:$16 sps:$4 sm:$0xff]  }
  0x87   : > { %v3054_v50 = vld [vmem:[%s3383_s30 + $0x18c] ss:$16 sps:$4 sm:$0xff]   ;;  %v3057_v52 = vld [vmem:[%s3383_s30 + $0x188] ss:$16 sps:$4 sm:$0xff]  }
  0x88   : > { %1431 = vmatpush1.bf16.msra.mxu1 %v2936_v35  ;;  %v3032_v35 = vld [vmem:[%s3383_s30 + $0x100] ss:$16 sps:$4 sm:$0xff]  }
  0x89   : > { %1624 = vmatpush1.bf16.msra.mxu0 %v2937_v36  ;;  %1432 = vmatprep.subr.bf16.mxu1 %v2938_v37  ;;  %v3033_v36 = vld [vmem:[%s3383_s30 + $0x108] ss:$16 sps:$4 sm:$0xff]   ;;  %v3034_v37 = vld [vmem:[%s3383_s30 + $0x124] ss:$16 sps:$4 sm:$0xff]  }
  0x8a   : > { %1625 = vmatprep.subr.bf16.mxu0 %v2940_v38  ;;  %v3036_v38 = vld [vmem:[%s3383_s30 + $0x12c] ss:$16 sps:$4 sm:$0xff]  }
  0x8c   : > { %1433 = vmatpush1.bf16.msra.mxu1 %v2942_v39  ;;  %v3038_v39 = vld [vmem:[%s3383_s30 + $0x120] ss:$16 sps:$4 sm:$0xff]  }
  0x8d   : > { %1626 = vmatpush1.bf16.msra.mxu0 %v2943_v40  ;;  %1434 = vmatprep.subr.bf16.mxu1 %v2944_v41  ;;  %v3039_v40 = vld [vmem:[%s3383_s30 + $0x128] ss:$16 sps:$4 sm:$0xff]   ;;  %v3040_v41 = vld [vmem:[%s3383_s30 + $0x144] ss:$16 sps:$4 sm:$0xff]  }
  0x8e   : > { %1627 = vmatprep.subr.bf16.mxu0 %v2946_v42  ;;  %v3042_v42 = vld [vmem:[%s3383_s30 + $0x14c] ss:$16 sps:$4 sm:$0xff]  }
  0x90   : > { %1435 = vmatpush1.bf16.msra.mxu1 %v2948_v43  ;;  %v3044_v43 = vld [vmem:[%s3383_s30 + $0x140] ss:$16 sps:$4 sm:$0xff]  }
  0x91   : > { %1628 = vmatpush1.bf16.msra.mxu0 %v2949_v44  ;;  %1436 = vmatprep.subr.bf16.mxu1 %v2950_v45  ;;  %v3045_v44 = vld [vmem:[%s3383_s30 + $0x148] ss:$16 sps:$4 sm:$0xff]   ;;  %v3046_v45 = vld [vmem:[%s3383_s30 + $0x164] ss:$16 sps:$4 sm:$0xff]  }
  0x92   : > { %1629 = vmatprep.subr.bf16.mxu0 %v2952_v46  ;;  %v3048_v46 = vld [vmem:[%s3383_s30 + $0x16c] ss:$16 sps:$4 sm:$0xff]  }
  0x94   : > { %1437 = vmatpush1.bf16.msra.mxu1 %v2954_v47  ;;  %v3050_v47 = vld [vmem:[%s3383_s30 + $0x160] ss:$16 sps:$4 sm:$0xff]  }
  0x95   : > { %1630 = vmatpush1.bf16.msra.mxu0 %v2955_v48  ;;  %1438 = vmatprep.subr.bf16.mxu1 %v2956_v49  ;;  %v3051_v48 = vld [vmem:[%s3383_s30 + $0x168] ss:$16 sps:$4 sm:$0xff]   ;;  %v3052_v49 = vld [vmem:[%s3383_s30 + $0x184] ss:$16 sps:$4 sm:$0xff]  }
  0x96   : > { %1631 = vmatprep.subr.bf16.mxu0 %v2958_v51  ;;  %v3056_v51 = vld [vmem:[%s3383_s30 + $0x180] ss:$16 sps:$4 sm:$0xff]  }
  0x98   : > { %1439 = vmatpush1.bf16.msra.mxu1 %v2960_v53  ;;  %v3058_v53 = vld [vmem:[%s3383_s30 + $0x1a4] ss:$16 sps:$4 sm:$0xff]  }
  0x99   : > { %1632 = vmatpush1.bf16.msra.mxu0 %v2961_v54  ;;  %1440 = vmatprep.subr.bf16.mxu1 %v2962_v55  ;;  %v3060_v54 = vld [vmem:[%s3383_s30 + $0x1ac] ss:$16 sps:$4 sm:$0xff]   ;;  %v3062_v55 = vld [vmem:[%s3383_s30 + $0x1a0] ss:$16 sps:$4 sm:$0xff]  }
  0x9a   : > { %1633 = vmatprep.subr.bf16.mxu0 %v2964_v56  ;;  %v3063_v56 = vld [vmem:[%s3383_s30 + $0x1a8] ss:$16 sps:$4 sm:$0xff]  }
  0x9c   : > { %1441 = vmatpush1.bf16.msra.mxu1 %v2966_v57  ;;  %v3064_v57 = vld [vmem:[%s3383_s30 + $0x1c4] ss:$16 sps:$4 sm:$0xff]  }
  0x9d   : > { %1634 = vmatpush1.bf16.msra.mxu0 %v2967_v58  ;;  %1442 = vmatprep.subr.bf16.mxu1 %v2968_v59  ;;  %v3066_v58 = vld [vmem:[%s3383_s30 + $0x1cc] ss:$16 sps:$4 sm:$0xff]   ;;  %v3068_v59 = vld [vmem:[%s3383_s30 + $0x1c0] ss:$16 sps:$4 sm:$0xff]  }
  0x9e   : > { %1635 = vmatprep.subr.bf16.mxu0 %v2970_v60  ;;  %v3069_v60 = vld [vmem:[%s3383_s30 + $0x1c8] ss:$16 sps:$4 sm:$0xff]  }
  0xa0   : > { %1443 = vmatpush1.bf16.msra.mxu1 %v2972_v61  ;;  %v3070_v61 = vld [vmem:[%s3383_s30 + $0x1e4] ss:$16 sps:$4 sm:$0xff]  }
  0xa1   : > { %1636 = vmatpush1.bf16.msra.mxu0 %v2973_v62  ;;  %1444 = vmatprep.subr.bf16.mxu1 %v2974_v63  ;;  %v3072_v62 = vld [vmem:[%s3383_s30 + $0x1ec] ss:$16 sps:$4 sm:$0xff]   ;;  %v3074_v63 = vld [vmem:[%s3383_s30 + $0x1e0] ss:$16 sps:$4 sm:$0xff]  }
  0xa2   : > { %1637 = vmatprep.subr.bf16.mxu0 %v2976_v0  ;;  %v3075_v0 = vld [vmem:[%s3383_s30 + $0x1e8] ss:$16 sps:$4 sm:$0xff]  }
  0xa4   : > { %1445 = vmatpush1.bf16.msra.mxu1 %v2978_v1 }
  0xa5   : > { %1638 = vmatpush1.bf16.msra.mxu0 %v2979_v2  ;;  %v582_v2 = vld [vmem:[#allocation2] sm:$0xff] }
  0xa7   : > { %1447 = vmatmul.mubr.bf16.vlgmr.msra.gmra.mrb[0].mxu1 %v2980_v3 }
  0xa8   : > { %1640 = vmatmul.mubr.bf16.vlgmr.msra.gmra.mrb[0].mxu0 %v2983_v4  ;;  %1456 = vmatprep.mubr.bf16.mxu1 %v2986_v5 }
  0xa9   : > { %1649 = vmatprep.mubr.bf16.mxu0 %v2988_v6  ;;  %v583_v6 = vld [vmem:[#allocation2 + $0x8] sm:$0xff] }
  0xaf   : > { %1457 = vmatmul.mubr.bf16.gmra.mrb[4].mxu1 %v2990_v7 }
  0xb0   : > { %1650 = vmatmul.mubr.bf16.gmra.mrb[4].mxu0 %v2991_v8  ;;  %1466 = vmatprep.mubr.bf16.mxu1 %v2992_v9 }
  0xb1   : > { %1659 = vmatprep.mubr.bf16.mxu0 %v2994_v10  ;;  %v584_v10 = vld [vmem:[#allocation2 + $0x10] sm:$0xff] }
  0xb7   : > { %1467 = vmatmul.mubr.bf16.gmra.mrb[8].mxu1 %v2996_v11 }
  0xb8   : > { %1660 = vmatmul.mubr.bf16.gmra.mrb[8].mxu0 %v2997_v12  ;;  %1476 = vmatprep.mubr.bf16.mxu1 %v2998_v13 }
  0xb9   : > { %1669 = vmatprep.mubr.bf16.mxu0 %v3000_v14 }
  0xbf   : > { %1477 = vmatmul.mubr.bf16.gmra.mrb[12].mxu1 %v3002_v15  ;;  %v585_v15 = vld [vmem:[#allocation2 + $0x18] sm:$0xff] }
  0xc0   : > { %1670 = vmatmul.mubr.bf16.gmra.mrb[12].mxu0 %v3003_v16  ;;  %1486 = vmatprep.mubr.bf16.mxu1 %v3004_v17 }
  0xc1   : > { %1679 = vmatprep.mubr.bf16.mxu0 %v3006_v18 }
  0xc7   : > { %1487 = vmatmul.mubr.bf16.gmra.mrb[16].mxu1 %v3008_v19 }
  0xc8   : > { %1680 = vmatmul.mubr.bf16.gmra.mrb[16].mxu0 %v3009_v20  ;;  %1496 = vmatprep.mubr.bf16.mxu1 %v3010_v21 }
  0xc9   : > { %1689 = vmatprep.mubr.bf16.mxu0 %v3012_v22  ;;  %v586_v22 = vld [vmem:[#allocation2 + $0x20] sm:$0xff] }
  0xcf   : > { %1497 = vmatmul.mubr.bf16.gmra.mrb[20].mxu1 %v3014_v23 }
  0xd0   : > { %1690 = vmatmul.mubr.bf16.gmra.mrb[20].mxu0 %v3015_v24  ;;  %1506 = vmatprep.mubr.bf16.mxu1 %v3016_v25 }
  0xd1   : > { %1699 = vmatprep.mubr.bf16.mxu0 %v3018_v26  ;;  %v587_v26 = vld [vmem:[#allocation2 + $0x28] sm:$0xff] }
  0xd7   : > { %1507 = vmatmul.mubr.bf16.gmra.mrb[24].mxu1 %v3020_v27 }
  0xd8   : > { %1700 = vmatmul.mubr.bf16.gmra.mrb[24].mxu0 %v3021_v28  ;;  %1516 = vmatprep.mubr.bf16.mxu1 %v3022_v29 }
  0xd9   : > { %1709 = vmatprep.mubr.bf16.mxu0 %v3024_v30  ;;  %v588_v30 = vld [vmem:[#allocation2 + $0x30] sm:$0xff] }
  0xdf   : > { %1517 = vmatmul.mubr.bf16.gmra.mrb[28].mxu1 %v3026_v31 }
  0xe0   : > { %1710 = vmatmul.mubr.bf16.gmra.mrb[28].mxu0 %v3027_v32  ;;  %1526 = vmatprep.mubr.bf16.mxu1 %v3028_v33 }
  0xe1   : > { %1719 = vmatprep.mubr.bf16.mxu0 %v3030_v34 }
  0xe7   : > { %1527 = vmatmul.mubr.bf16.gmra.mrb[32].mxu1 %v3032_v35  ;;  %v589_v35 = vld [vmem:[#allocation2 + $0x38] sm:$0xff] }
  0xe8   : > { %1720 = vmatmul.mubr.bf16.gmra.mrb[32].mxu0 %v3033_v36  ;;  %1536 = vmatprep.mubr.bf16.mxu1 %v3034_v37 }
  0xe9   : > { %1729 = vmatprep.mubr.bf16.mxu0 %v3036_v38 }
  0xef   : > { %1537 = vmatmul.mubr.bf16.gmra.mrb[36].mxu1 %v3038_v39 }
  0xf0   : > { %1730 = vmatmul.mubr.bf16.gmra.mrb[36].mxu0 %v3039_v40  ;;  %1546 = vmatprep.mubr.bf16.mxu1 %v3040_v41 }
  0xf1   : > { %1739 = vmatprep.mubr.bf16.mxu0 %v3042_v42  ;;  %v590_v42 = vld [vmem:[#allocation2 + $0x40] sm:$0xff] }
  0xf7   : > { %1547 = vmatmul.mubr.bf16.gmra.mrb[40].mxu1 %v3044_v43 }
  0xf8   : > { %1740 = vmatmul.mubr.bf16.gmra.mrb[40].mxu0 %v3045_v44  ;;  %1556 = vmatprep.mubr.bf16.mxu1 %v3046_v45 }
  0xf9   : > { %1749 = vmatprep.mubr.bf16.mxu0 %v3048_v46  ;;  %v591_v46 = vld [vmem:[#allocation2 + $0x48] sm:$0xff] }
  0xff   : > { %1557 = vmatmul.mubr.bf16.gmra.mrb[44].mxu1 %v3050_v47 }
 0x100   : > { %1750 = vmatmul.mubr.bf16.gmra.mrb[44].mxu0 %v3051_v48  ;;  %1566 = vmatprep.mubr.bf16.mxu1 %v3052_v49 }
 0x101   : > { %1759 = vmatprep.mubr.bf16.mxu0 %v3054_v50  ;;  %v592_v50 = vld [vmem:[#allocation2 + $0x50] sm:$0xff] }
 0x107   : > { %1567 = vmatmul.mubr.bf16.gmra.mrb[48].mxu1 %v3056_v51 }
 0x108   : > { %1760 = vmatmul.mubr.bf16.gmra.mrb[48].mxu0 %v3057_v52  ;;  %1576 = vmatprep.mubr.bf16.mxu1 %v3058_v53 }
 0x109   : > { %1769 = vmatprep.mubr.bf16.mxu0 %v3060_v54 }
 0x10f   : > { %1577 = vmatmul.mubr.bf16.gmra.mrb[52].mxu1 %v3062_v55  ;;  %v593_v55 = vld [vmem:[#allocation2 + $0x58] sm:$0xff] }
 0x110   : > { %1770 = vmatmul.mubr.bf16.gmra.mrb[52].mxu0 %v3063_v56  ;;  %1586 = vmatprep.mubr.bf16.mxu1 %v3064_v57 }
 0x111   : > { %1779 = vmatprep.mubr.bf16.mxu0 %v3066_v58 }
 0x117   : > { %1587 = vmatmul.mubr.bf16.gmra.mrb[56].mxu1 %v3068_v59 }
 0x118   : > { %1780 = vmatmul.mubr.bf16.gmra.mrb[56].mxu0 %v3069_v60  ;;  %1596 = vmatprep.mubr.bf16.mxu1 %v3070_v61 }
 0x119   : > { %1789 = vmatprep.mubr.bf16.mxu0 %v3072_v62  ;;  %v594_v62 = vld [vmem:[#allocation2 + $0x60] sm:$0xff] }
 0x11f   : > { %1597 = vmatmul.mubr.bf16.gmra.mrb[60].mxu1 %v3074_v63 }
 0x120   : > { %1790 = vmatmul.mubr.bf16.gmra.mrb[60].mxu0 %v3075_v0 }
 0x17a   : > { %v1448_v1 = vpop.f32.mrb[0].mxu1 }
 0x17b   : > { %v1641_v3 = vpop.f32.mrb[0].mxu0  ;;  %v1450_v5 = vpop.f32.mrb[1].mxu1 }
 0x17c   : > { %v1642_v4 = vadd.f32 %v1641_v3, %v1448_v1  ;;  %v1643_v7 = vpop.f32.mrb[1].mxu0  ;;  %v1452_v9 = vpop.f32.mrb[2].mxu1 }
 0x17d   : > { %v1644_v8 = vadd.f32 %v1643_v7, %v1450_v5  ;;  %v1645_v11 = vpop.f32.mrb[2].mxu0  ;;  %v1454_v14 = vpop.f32.mrb[3].mxu1 }
 0x17e   : > { %v1800_v12 = vadd.f32 %v1642_v4, %v582_v2  ;;  %v1646_v13 = vadd.f32 %v1645_v11, %v1452_v9  ;;  %v1647_v16 = vpop.f32.mrb[3].mxu0  ;;  %v595_v2 = vld [vmem:[#allocation2 + $0x68] sm:$0xff]  ;;  %v597_v11 = vld [vmem:[#allocation2 + $0x78] sm:$0xff] }
 0x17f   : > { %v1801_v17 = vadd.f32 %v1644_v8, %v583_v6  ;;  %v1648_v18 = vadd.f32 %v1647_v16, %v1454_v14  ;;  %v596_v6 = vld [vmem:[#allocation2 + $0x70] sm:$0xff] }
 0x180   : > { %1864 = vst [vmem:[#allocation2] sm:$0xff] %v1800_v12  ;;  %v1802_v19 = vadd.f32 %v1646_v13, %v584_v10 }
 0x181   : > { %1865 = vst [vmem:[#allocation2 + $0x8] sm:$0xff] %v1801_v17  ;;  %v1803_v20 = vadd.f32 %v1648_v18, %v585_v15  ;;  %v598_v18 = vld [vmem:[#allocation2 + $0x80] sm:$0xff] }
 0x182   : > { %1866 = vst [vmem:[#allocation2 + $0x10] sm:$0xff] %v1802_v19  ;;  %v1458_v21 = vpop.f32.mrb[4].mxu1 }
 0x183   : > { %1867 = vst [vmem:[#allocation2 + $0x18] sm:$0xff] %v1803_v20  ;;  %v1651_v23 = vpop.f32.mrb[4].mxu0  ;;  %v1460_v25 = vpop.f32.mrb[5].mxu1 }
 0x184   : > { %v1652_v24 = vadd.f32 %v1651_v23, %v1458_v21  ;;  %v1653_v27 = vpop.f32.mrb[5].mxu0  ;;  %v1462_v29 = vpop.f32.mrb[6].mxu1 }
 0x185   : > { %v1654_v28 = vadd.f32 %v1653_v27, %v1460_v25  ;;  %v1655_v31 = vpop.f32.mrb[6].mxu0  ;;  %v1464_v34 = vpop.f32.mrb[7].mxu1 }
 0x186   : > { %v1804_v32 = vadd.f32 %v1652_v24, %v586_v22  ;;  %v1656_v33 = vadd.f32 %v1655_v31, %v1462_v29  ;;  %v1657_v36 = vpop.f32.mrb[7].mxu0  ;;  %v599_v22 = vld [vmem:[#allocation2 + $0x88] sm:$0xff]  ;;  %v601_v31 = vld [vmem:[#allocation2 + $0x98] sm:$0xff] }
 0x187   : > { %v1805_v37 = vadd.f32 %v1654_v28, %v587_v26  ;;  %v1658_v38 = vadd.f32 %v1657_v36, %v1464_v34  ;;  %v600_v26 = vld [vmem:[#allocation2 + $0x90] sm:$0xff] }
 0x188   : > { %1868 = vst [vmem:[#allocation2 + $0x20] sm:$0xff] %v1804_v32  ;;  %v1806_v39 = vadd.f32 %v1656_v33, %v588_v30 }
 0x189   : > { %1869 = vst [vmem:[#allocation2 + $0x28] sm:$0xff] %v1805_v37  ;;  %v1807_v40 = vadd.f32 %v1658_v38, %v589_v35  ;;  %v602_v38 = vld [vmem:[#allocation2 + $0xa0] sm:$0xff] }
 0x18a   : > { %1870 = vst [vmem:[#allocation2 + $0x30] sm:$0xff] %v1806_v39  ;;  %v1468_v41 = vpop.f32.mrb[8].mxu1 }
 0x18b   : > { %1871 = vst [vmem:[#allocation2 + $0x38] sm:$0xff] %v1807_v40  ;;  %v1661_v43 = vpop.f32.mrb[8].mxu0  ;;  %v1470_v45 = vpop.f32.mrb[9].mxu1 }
 0x18c   : > { %v1662_v44 = vadd.f32 %v1661_v43, %v1468_v41  ;;  %v1663_v47 = vpop.f32.mrb[9].mxu0  ;;  %v1472_v49 = vpop.f32.mrb[10].mxu1 }
 0x18d   : > { %v1664_v48 = vadd.f32 %v1663_v47, %v1470_v45  ;;  %v1665_v51 = vpop.f32.mrb[10].mxu0  ;;  %v1474_v54 = vpop.f32.mrb[11].mxu1 }
 0x18e   : > { %v1808_v52 = vadd.f32 %v1662_v44, %v590_v42  ;;  %v1666_v53 = vadd.f32 %v1665_v51, %v1472_v49  ;;  %v1667_v56 = vpop.f32.mrb[11].mxu0  ;;  %v603_v42 = vld [vmem:[#allocation2 + $0xa8] sm:$0xff]  ;;  %v605_v51 = vld [vmem:[#allocation2 + $0xb8] sm:$0xff] }
 0x18f   : > { %v1809_v57 = vadd.f32 %v1664_v48, %v591_v46  ;;  %v1668_v58 = vadd.f32 %v1667_v56, %v1474_v54  ;;  %v604_v46 = vld [vmem:[#allocation2 + $0xb0] sm:$0xff] }
 0x190   : > { %1872 = vst [vmem:[#allocation2 + $0x40] sm:$0xff] %v1808_v52  ;;  %v1810_v59 = vadd.f32 %v1666_v53, %v592_v50 }
 0x191   : > { %1873 = vst [vmem:[#allocation2 + $0x48] sm:$0xff] %v1809_v57  ;;  %v1811_v60 = vadd.f32 %v1668_v58, %v593_v55  ;;  %v606_v58 = vld [vmem:[#allocation2 + $0xc0] sm:$0xff] }
 0x192   : > { %1874 = vst [vmem:[#allocation2 + $0x50] sm:$0xff] %v1810_v59  ;;  %v1478_v61 = vpop.f32.mrb[12].mxu1 }
 0x193   : > { %1875 = vst [vmem:[#allocation2 + $0x58] sm:$0xff] %v1811_v60  ;;  %v1671_v63 = vpop.f32.mrb[12].mxu0  ;;  %v1480_v1 = vpop.f32.mrb[13].mxu1 }
 0x194   : > { %v1672_v0 = vadd.f32 %v1671_v63, %v1478_v61  ;;  %v1673_v3 = vpop.f32.mrb[13].mxu0  ;;  %v1482_v5 = vpop.f32.mrb[14].mxu1 }
 0x195   : > { %v1674_v4 = vadd.f32 %v1673_v3, %v1480_v1  ;;  %v1675_v7 = vpop.f32.mrb[14].mxu0  ;;  %v1484_v10 = vpop.f32.mrb[15].mxu1 }
 0x196   : > { %v1812_v8 = vadd.f32 %v1672_v0, %v594_v62  ;;  %v1676_v9 = vadd.f32 %v1675_v7, %v1482_v5  ;;  %v1677_v12 = vpop.f32.mrb[15].mxu0  ;;  %v607_v62 = vld [vmem:[#allocation2 + $0xc8] sm:$0xff]  ;;  %v609_v7 = vld [vmem:[#allocation2 + $0xd8] sm:$0xff] }
 0x197   : > { %v1813_v13 = vadd.f32 %v1674_v4, %v595_v2  ;;  %v1678_v14 = vadd.f32 %v1677_v12, %v1484_v10  ;;  %v608_v2 = vld [vmem:[#allocation2 + $0xd0] sm:$0xff] }
 0x198   : > { %1876 = vst [vmem:[#allocation2 + $0x60] sm:$0xff] %v1812_v8  ;;  %v1814_v15 = vadd.f32 %v1676_v9, %v596_v6 }
 0x199   : > { %1877 = vst [vmem:[#allocation2 + $0x68] sm:$0xff] %v1813_v13  ;;  %v1815_v16 = vadd.f32 %v1678_v14, %v597_v11  ;;  %v610_v14 = vld [vmem:[#allocation2 + $0xe0] sm:$0xff] }
 0x19a   : > { %1878 = vst [vmem:[#allocation2 + $0x70] sm:$0xff] %v1814_v15  ;;  %v1488_v17 = vpop.f32.mrb[16].mxu1 }
 0x19b   : > { %1879 = vst [vmem:[#allocation2 + $0x78] sm:$0xff] %v1815_v16  ;;  %v1681_v19 = vpop.f32.mrb[16].mxu0  ;;  %v1490_v21 = vpop.f32.mrb[17].mxu1 }
 0x19c   : > { %v1682_v20 = vadd.f32 %v1681_v19, %v1488_v17  ;;  %v1683_v23 = vpop.f32.mrb[17].mxu0  ;;  %v1492_v25 = vpop.f32.mrb[18].mxu1 }
 0x19d   : > { %v1684_v24 = vadd.f32 %v1683_v23, %v1490_v21  ;;  %v1685_v27 = vpop.f32.mrb[18].mxu0  ;;  %v1494_v30 = vpop.f32.mrb[19].mxu1 }
 0x19e   : > { %v1816_v28 = vadd.f32 %v1682_v20, %v598_v18  ;;  %v1686_v29 = vadd.f32 %v1685_v27, %v1492_v25  ;;  %v1687_v32 = vpop.f32.mrb[19].mxu0  ;;  %v611_v18 = vld [vmem:[#allocation2 + $0xe8] sm:$0xff]  ;;  %v613_v27 = vld [vmem:[#allocation2 + $0xf8] sm:$0xff] }
 0x19f   : > { %v1817_v33 = vadd.f32 %v1684_v24, %v599_v22  ;;  %v1688_v34 = vadd.f32 %v1687_v32, %v1494_v30  ;;  %v612_v22 = vld [vmem:[#allocation2 + $0xf0] sm:$0xff] }
 0x1a0   : > { %1880 = vst [vmem:[#allocation2 + $0x80] sm:$0xff] %v1816_v28  ;;  %v1818_v35 = vadd.f32 %v1686_v29, %v600_v26 }
 0x1a1   : > { %1881 = vst [vmem:[#allocation2 + $0x88] sm:$0xff] %v1817_v33  ;;  %v1819_v36 = vadd.f32 %v1688_v34, %v601_v31  ;;  %v614_v34 = vld [vmem:[#allocation2 + $0x100] sm:$0xff] }
 0x1a2   : > { %1882 = vst [vmem:[#allocation2 + $0x90] sm:$0xff] %v1818_v35  ;;  %v1498_v37 = vpop.f32.mrb[20].mxu1 }
 0x1a3   : > { %1883 = vst [vmem:[#allocation2 + $0x98] sm:$0xff] %v1819_v36  ;;  %v1691_v39 = vpop.f32.mrb[20].mxu0  ;;  %v1500_v41 = vpop.f32.mrb[21].mxu1 }
 0x1a4   : > { %v1692_v40 = vadd.f32 %v1691_v39, %v1498_v37  ;;  %v1693_v43 = vpop.f32.mrb[21].mxu0  ;;  %v1502_v45 = vpop.f32.mrb[22].mxu1 }
 0x1a5   : > { %v1694_v44 = vadd.f32 %v1693_v43, %v1500_v41  ;;  %v1695_v47 = vpop.f32.mrb[22].mxu0  ;;  %v1504_v50 = vpop.f32.mrb[23].mxu1 }
 0x1a6   : > { %v1820_v48 = vadd.f32 %v1692_v40, %v602_v38  ;;  %v1696_v49 = vadd.f32 %v1695_v47, %v1502_v45  ;;  %v1697_v52 = vpop.f32.mrb[23].mxu0  ;;  %v615_v38 = vld [vmem:[#allocation2 + $0x108] sm:$0xff]  ;;  %v617_v47 = vld [vmem:[#allocation2 + $0x118] sm:$0xff] }
 0x1a7   : > { %v1821_v53 = vadd.f32 %v1694_v44, %v603_v42  ;;  %v1698_v54 = vadd.f32 %v1697_v52, %v1504_v50  ;;  %v616_v42 = vld [vmem:[#allocation2 + $0x110] sm:$0xff] }
 0x1a8   : > { %1884 = vst [vmem:[#allocation2 + $0xa0] sm:$0xff] %v1820_v48  ;;  %v1822_v55 = vadd.f32 %v1696_v49, %v604_v46 }
 0x1a9   : > { %1885 = vst [vmem:[#allocation2 + $0xa8] sm:$0xff] %v1821_v53  ;;  %v1823_v56 = vadd.f32 %v1698_v54, %v605_v51  ;;  %v618_v54 = vld [vmem:[#allocation2 + $0x120] sm:$0xff] }
 0x1aa   : > { %1886 = vst [vmem:[#allocation2 + $0xb0] sm:$0xff] %v1822_v55  ;;  %v1508_v57 = vpop.f32.mrb[24].mxu1 }
 0x1ab   : > { %1887 = vst [vmem:[#allocation2 + $0xb8] sm:$0xff] %v1823_v56  ;;  %v1701_v59 = vpop.f32.mrb[24].mxu0  ;;  %v1510_v61 = vpop.f32.mrb[25].mxu1 }
 0x1ac   : > { %v1702_v60 = vadd.f32 %v1701_v59, %v1508_v57  ;;  %v1703_v63 = vpop.f32.mrb[25].mxu0  ;;  %v1512_v1 = vpop.f32.mrb[26].mxu1 }
 0x1ad   : > { %v1704_v0 = vadd.f32 %v1703_v63, %v1510_v61  ;;  %v1705_v3 = vpop.f32.mrb[26].mxu0  ;;  %v1514_v6 = vpop.f32.mrb[27].mxu1 }
 0x1ae   : > { %v1824_v4 = vadd.f32 %v1702_v60, %v606_v58  ;;  %v1706_v5 = vadd.f32 %v1705_v3, %v1512_v1  ;;  %v1707_v8 = vpop.f32.mrb[27].mxu0  ;;  %v619_v58 = vld [vmem:[#allocation2 + $0x128] sm:$0xff]  ;;  %v621_v3 = vld [vmem:[#allocation2 + $0x138] sm:$0xff] }
 0x1af   : > { %v1825_v9 = vadd.f32 %v1704_v0, %v607_v62  ;;  %v1708_v10 = vadd.f32 %v1707_v8, %v1514_v6  ;;  %v620_v62 = vld [vmem:[#allocation2 + $0x130] sm:$0xff] }
 0x1b0   : > { %1888 = vst [vmem:[#allocation2 + $0xc0] sm:$0xff] %v1824_v4  ;;  %v1826_v11 = vadd.f32 %v1706_v5, %v608_v2 }
 0x1b1   : > { %1889 = vst [vmem:[#allocation2 + $0xc8] sm:$0xff] %v1825_v9  ;;  %v1827_v12 = vadd.f32 %v1708_v10, %v609_v7  ;;  %v622_v10 = vld [vmem:[#allocation2 + $0x140] sm:$0xff] }
 0x1b2   : > { %1890 = vst [vmem:[#allocation2 + $0xd0] sm:$0xff] %v1826_v11  ;;  %v1518_v13 = vpop.f32.mrb[28].mxu1 }
 0x1b3   : > { %1891 = vst [vmem:[#allocation2 + $0xd8] sm:$0xff] %v1827_v12  ;;  %v1711_v15 = vpop.f32.mrb[28].mxu0  ;;  %v1520_v17 = vpop.f32.mrb[29].mxu1 }
 0x1b4   : > { %v1712_v16 = vadd.f32 %v1711_v15, %v1518_v13  ;;  %v1713_v19 = vpop.f32.mrb[29].mxu0  ;;  %v1522_v21 = vpop.f32.mrb[30].mxu1 }
 0x1b5   : > { %v1714_v20 = vadd.f32 %v1713_v19, %v1520_v17  ;;  %v1715_v23 = vpop.f32.mrb[30].mxu0  ;;  %v1524_v26 = vpop.f32.mrb[31].mxu1 }
 0x1b6   : > { %v1828_v24 = vadd.f32 %v1712_v16, %v610_v14  ;;  %v1716_v25 = vadd.f32 %v1715_v23, %v1522_v21  ;;  %v1717_v28 = vpop.f32.mrb[31].mxu0  ;;  %v623_v14 = vld [vmem:[#allocation2 + $0x148] sm:$0xff]  ;;  %v625_v23 = vld [vmem:[#allocation2 + $0x158] sm:$0xff] }
 0x1b7   : > { %v1829_v29 = vadd.f32 %v1714_v20, %v611_v18  ;;  %v1718_v30 = vadd.f32 %v1717_v28, %v1524_v26  ;;  %v624_v18 = vld [vmem:[#allocation2 + $0x150] sm:$0xff] }
 0x1b8   : > { %1892 = vst [vmem:[#allocation2 + $0xe0] sm:$0xff] %v1828_v24  ;;  %v1830_v31 = vadd.f32 %v1716_v25, %v612_v22 }
 0x1b9   : > { %1893 = vst [vmem:[#allocation2 + $0xe8] sm:$0xff] %v1829_v29  ;;  %v1831_v32 = vadd.f32 %v1718_v30, %v613_v27  ;;  %v626_v30 = vld [vmem:[#allocation2 + $0x160] sm:$0xff] }
 0x1ba   : > { %1894 = vst [vmem:[#allocation2 + $0xf0] sm:$0xff] %v1830_v31  ;;  %v1528_v33 = vpop.f32.mrb[32].mxu1 }
 0x1bb   : > { %1895 = vst [vmem:[#allocation2 + $0xf8] sm:$0xff] %v1831_v32  ;;  %v1721_v35 = vpop.f32.mrb[32].mxu0  ;;  %v1530_v37 = vpop.f32.mrb[33].mxu1 }
 0x1bc   : > { %v1722_v36 = vadd.f32 %v1721_v35, %v1528_v33  ;;  %v1723_v39 = vpop.f32.mrb[33].mxu0  ;;  %v1532_v41 = vpop.f32.mrb[34].mxu1 }
 0x1bd   : > { %v1724_v40 = vadd.f32 %v1723_v39, %v1530_v37  ;;  %v1725_v43 = vpop.f32.mrb[34].mxu0  ;;  %v1534_v46 = vpop.f32.mrb[35].mxu1 }
 0x1be   : > { %v1832_v44 = vadd.f32 %v1722_v36, %v614_v34  ;;  %v1726_v45 = vadd.f32 %v1725_v43, %v1532_v41  ;;  %v1727_v48 = vpop.f32.mrb[35].mxu0  ;;  %v627_v34 = vld [vmem:[#allocation2 + $0x168] sm:$0xff]  ;;  %v629_v43 = vld [vmem:[#allocation2 + $0x178] sm:$0xff] }
 0x1bf   : > { %v1833_v49 = vadd.f32 %v1724_v40, %v615_v38  ;;  %v1728_v50 = vadd.f32 %v1727_v48, %v1534_v46  ;;  %v628_v38 = vld [vmem:[#allocation2 + $0x170] sm:$0xff] }
 0x1c0   : > { %1896 = vst [vmem:[#allocation2 + $0x100] sm:$0xff] %v1832_v44  ;;  %v1834_v51 = vadd.f32 %v1726_v45, %v616_v42 }
 0x1c1   : > { %1897 = vst [vmem:[#allocation2 + $0x108] sm:$0xff] %v1833_v49  ;;  %v1835_v52 = vadd.f32 %v1728_v50, %v617_v47  ;;  %v630_v50 = vld [vmem:[#allocation2 + $0x180] sm:$0xff] }
 0x1c2   : > { %1898 = vst [vmem:[#allocation2 + $0x110] sm:$0xff] %v1834_v51  ;;  %v1538_v53 = vpop.f32.mrb[36].mxu1 }
 0x1c3   : > { %1899 = vst [vmem:[#allocation2 + $0x118] sm:$0xff] %v1835_v52  ;;  %v1731_v55 = vpop.f32.mrb[36].mxu0  ;;  %v1540_v57 = vpop.f32.mrb[37].mxu1 }
 0x1c4   : > { %v1732_v56 = vadd.f32 %v1731_v55, %v1538_v53  ;;  %v1733_v59 = vpop.f32.mrb[37].mxu0  ;;  %v1542_v61 = vpop.f32.mrb[38].mxu1 }
 0x1c5   : > { %v1734_v60 = vadd.f32 %v1733_v59, %v1540_v57  ;;  %v1735_v63 = vpop.f32.mrb[38].mxu0  ;;  %v1544_v2 = vpop.f32.mrb[39].mxu1 }
 0x1c6   : > { %v1836_v0 = vadd.f32 %v1732_v56, %v618_v54  ;;  %v1736_v1 = vadd.f32 %v1735_v63, %v1542_v61  ;;  %v1737_v4 = vpop.f32.mrb[39].mxu0  ;;  %v631_v54 = vld [vmem:[#allocation2 + $0x188] sm:$0xff]  ;;  %v633_v63 = vld [vmem:[#allocation2 + $0x198] sm:$0xff] }
 0x1c7   : > { %v1837_v5 = vadd.f32 %v1734_v60, %v619_v58  ;;  %v1738_v6 = vadd.f32 %v1737_v4, %v1544_v2  ;;  %v632_v58 = vld [vmem:[#allocation2 + $0x190] sm:$0xff] }
 0x1c8   : > { %1900 = vst [vmem:[#allocation2 + $0x120] sm:$0xff] %v1836_v0  ;;  %v1838_v7 = vadd.f32 %v1736_v1, %v620_v62 }
 0x1c9   : > { %1901 = vst [vmem:[#allocation2 + $0x128] sm:$0xff] %v1837_v5  ;;  %v1839_v8 = vadd.f32 %v1738_v6, %v621_v3  ;;  %v634_v6 = vld [vmem:[#allocation2 + $0x1a0] sm:$0xff] }
 0x1ca   : > { %1902 = vst [vmem:[#allocation2 + $0x130] sm:$0xff] %v1838_v7  ;;  %v1548_v9 = vpop.f32.mrb[40].mxu1 }
 0x1cb   : > { %1903 = vst [vmem:[#allocation2 + $0x138] sm:$0xff] %v1839_v8  ;;  %v1741_v11 = vpop.f32.mrb[40].mxu0  ;;  %v1550_v13 = vpop.f32.mrb[41].mxu1 }
 0x1cc   : > { %v1742_v12 = vadd.f32 %v1741_v11, %v1548_v9  ;;  %v1743_v15 = vpop.f32.mrb[41].mxu0  ;;  %v1552_v17 = vpop.f32.mrb[42].mxu1 }
 0x1cd   : > { %v1744_v16 = vadd.f32 %v1743_v15, %v1550_v13  ;;  %v1745_v19 = vpop.f32.mrb[42].mxu0  ;;  %v1554_v22 = vpop.f32.mrb[43].mxu1 }
 0x1ce   : > { %v1840_v20 = vadd.f32 %v1742_v12, %v622_v10  ;;  %v1746_v21 = vadd.f32 %v1745_v19, %v1552_v17  ;;  %v1747_v24 = vpop.f32.mrb[43].mxu0  ;;  %v635_v10 = vld [vmem:[#allocation2 + $0x1a8] sm:$0xff]  ;;  %v637_v19 = vld [vmem:[#allocation2 + $0x1b8] sm:$0xff] }
 0x1cf   : > { %v1841_v25 = vadd.f32 %v1744_v16, %v623_v14  ;;  %v1748_v26 = vadd.f32 %v1747_v24, %v1554_v22  ;;  %v636_v14 = vld [vmem:[#allocation2 + $0x1b0] sm:$0xff] }
 0x1d0   : > { %1904 = vst [vmem:[#allocation2 + $0x140] sm:$0xff] %v1840_v20  ;;  %v1842_v27 = vadd.f32 %v1746_v21, %v624_v18 }
 0x1d1   : > { %1905 = vst [vmem:[#allocation2 + $0x148] sm:$0xff] %v1841_v25  ;;  %v1843_v28 = vadd.f32 %v1748_v26, %v625_v23  ;;  %v638_v26 = vld [vmem:[#allocation2 + $0x1c0] sm:$0xff] }
 0x1d2   : > { %1906 = vst [vmem:[#allocation2 + $0x150] sm:$0xff] %v1842_v27  ;;  %v1558_v29 = vpop.f32.mrb[44].mxu1 }
 0x1d3   : > { %1907 = vst [vmem:[#allocation2 + $0x158] sm:$0xff] %v1843_v28  ;;  %v1751_v31 = vpop.f32.mrb[44].mxu0  ;;  %v1560_v33 = vpop.f32.mrb[45].mxu1 }
 0x1d4   : > { %v1752_v32 = vadd.f32 %v1751_v31, %v1558_v29  ;;  %v1753_v35 = vpop.f32.mrb[45].mxu0  ;;  %v1562_v37 = vpop.f32.mrb[46].mxu1 }
 0x1d5   : > { %v1754_v36 = vadd.f32 %v1753_v35, %v1560_v33  ;;  %v1755_v39 = vpop.f32.mrb[46].mxu0  ;;  %v1564_v42 = vpop.f32.mrb[47].mxu1 }
 0x1d6   : > { %v1844_v40 = vadd.f32 %v1752_v32, %v626_v30  ;;  %v1756_v41 = vadd.f32 %v1755_v39, %v1562_v37  ;;  %v1757_v44 = vpop.f32.mrb[47].mxu0  ;;  %v639_v30 = vld [vmem:[#allocation2 + $0x1c8] sm:$0xff]  ;;  %v641_v39 = vld [vmem:[#allocation2 + $0x1d8] sm:$0xff] }
 0x1d7   : > { %v1845_v45 = vadd.f32 %v1754_v36, %v627_v34  ;;  %v1758_v46 = vadd.f32 %v1757_v44, %v1564_v42  ;;  %v640_v34 = vld [vmem:[#allocation2 + $0x1d0] sm:$0xff] }
 0x1d8   : > { %1908 = vst [vmem:[#allocation2 + $0x160] sm:$0xff] %v1844_v40  ;;  %v1846_v47 = vadd.f32 %v1756_v41, %v628_v38 }
 0x1d9   : > { %1909 = vst [vmem:[#allocation2 + $0x168] sm:$0xff] %v1845_v45  ;;  %v1847_v48 = vadd.f32 %v1758_v46, %v629_v43  ;;  %v642_v46 = vld [vmem:[#allocation2 + $0x1e0] sm:$0xff] }
 0x1da   : > { %1910 = vst [vmem:[#allocation2 + $0x170] sm:$0xff] %v1846_v47  ;;  %v1568_v49 = vpop.f32.mrb[48].mxu1 }
 0x1db   : > { %1911 = vst [vmem:[#allocation2 + $0x178] sm:$0xff] %v1847_v48  ;;  %v1761_v51 = vpop.f32.mrb[48].mxu0  ;;  %v1570_v53 = vpop.f32.mrb[49].mxu1 }
 0x1dc   : > { %v1762_v52 = vadd.f32 %v1761_v51, %v1568_v49  ;;  %v1763_v55 = vpop.f32.mrb[49].mxu0  ;;  %v1572_v57 = vpop.f32.mrb[50].mxu1 }
 0x1dd   : > { %v1764_v56 = vadd.f32 %v1763_v55, %v1570_v53  ;;  %v1765_v59 = vpop.f32.mrb[50].mxu0  ;;  %v1574_v62 = vpop.f32.mrb[51].mxu1 }
 0x1de   : > { %v1848_v60 = vadd.f32 %v1762_v52, %v630_v50  ;;  %v1766_v61 = vadd.f32 %v1765_v59, %v1572_v57  ;;  %v1767_v0 = vpop.f32.mrb[51].mxu0  ;;  %v643_v50 = vld [vmem:[#allocation2 + $0x1e8] sm:$0xff]  ;;  %v645_v59 = vld [vmem:[#allocation2 + $0x1f8] sm:$0xff] }
 0x1df   : > { %v1849_v1 = vadd.f32 %v1764_v56, %v631_v54  ;;  %v1768_v2 = vadd.f32 %v1767_v0, %v1574_v62  ;;  %v644_v54 = vld [vmem:[#allocation2 + $0x1f0] sm:$0xff] }
 0x1e0   : > { %1912 = vst [vmem:[#allocation2 + $0x180] sm:$0xff] %v1848_v60  ;;  %v1850_v3 = vadd.f32 %v1766_v61, %v632_v58 }
 0x1e1   : > { %1913 = vst [vmem:[#allocation2 + $0x188] sm:$0xff] %v1849_v1  ;;  %v1851_v4 = vadd.f32 %v1768_v2, %v633_v63 }
 0x1e2   : > { %1914 = vst [vmem:[#allocation2 + $0x190] sm:$0xff] %v1850_v3  ;;  %v1578_v5 = vpop.f32.mrb[52].mxu1 }
 0x1e3   : > { %1915 = vst [vmem:[#allocation2 + $0x198] sm:$0xff] %v1851_v4  ;;  %v1771_v7 = vpop.f32.mrb[52].mxu0  ;;  %v1580_v9 = vpop.f32.mrb[53].mxu1 }
 0x1e4   : > { %v1772_v8 = vadd.f32 %v1771_v7, %v1578_v5  ;;  %v1773_v11 = vpop.f32.mrb[53].mxu0  ;;  %v1582_v13 = vpop.f32.mrb[54].mxu1 }
 0x1e5   : > { %v1774_v12 = vadd.f32 %v1773_v11, %v1580_v9  ;;  %v1775_v15 = vpop.f32.mrb[54].mxu0  ;;  %v1584_v18 = vpop.f32.mrb[55].mxu1 }
 0x1e6   : > { %v1852_v16 = vadd.f32 %v1772_v8, %v634_v6  ;;  %v1776_v17 = vadd.f32 %v1775_v15, %v1582_v13  ;;  %v1777_v20 = vpop.f32.mrb[55].mxu0 }
 0x1e7   : > { %v1853_v21 = vadd.f32 %v1774_v12, %v635_v10  ;;  %v1778_v22 = vadd.f32 %v1777_v20, %v1584_v18 }
 0x1e8   : > { %1916 = vst [vmem:[#allocation2 + $0x1a0] sm:$0xff] %v1852_v16  ;;  %v1854_v23 = vadd.f32 %v1776_v17, %v636_v14 }
 0x1e9   : > { %1917 = vst [vmem:[#allocation2 + $0x1a8] sm:$0xff] %v1853_v21  ;;  %v1855_v24 = vadd.f32 %v1778_v22, %v637_v19 }
 0x1ea   : > { %1918 = vst [vmem:[#allocation2 + $0x1b0] sm:$0xff] %v1854_v23  ;;  %v1588_v25 = vpop.f32.mrb[56].mxu1 }
 0x1eb   : > { %1919 = vst [vmem:[#allocation2 + $0x1b8] sm:$0xff] %v1855_v24  ;;  %v1781_v27 = vpop.f32.mrb[56].mxu0  ;;  %v1590_v29 = vpop.f32.mrb[57].mxu1 }
 0x1ec   : > { %v1782_v28 = vadd.f32 %v1781_v27, %v1588_v25  ;;  %v1783_v31 = vpop.f32.mrb[57].mxu0  ;;  %v1592_v33 = vpop.f32.mrb[58].mxu1 }
 0x1ed   : > { %v1784_v32 = vadd.f32 %v1783_v31, %v1590_v29  ;;  %v1785_v35 = vpop.f32.mrb[58].mxu0  ;;  %v1594_v38 = vpop.f32.mrb[59].mxu1 }
 0x1ee   : > { %v1856_v36 = vadd.f32 %v1782_v28, %v638_v26  ;;  %v1786_v37 = vadd.f32 %v1785_v35, %v1592_v33  ;;  %v1787_v40 = vpop.f32.mrb[59].mxu0 }
 0x1ef   : > { %v1857_v41 = vadd.f32 %v1784_v32, %v639_v30  ;;  %v1788_v42 = vadd.f32 %v1787_v40, %v1594_v38 }
 0x1f0   : > { %1920 = vst [vmem:[#allocation2 + $0x1c0] sm:$0xff] %v1856_v36  ;;  %v1858_v43 = vadd.f32 %v1786_v37, %v640_v34 }
 0x1f1   : > { %1921 = vst [vmem:[#allocation2 + $0x1c8] sm:$0xff] %v1857_v41  ;;  %v1859_v44 = vadd.f32 %v1788_v42, %v641_v39 }
 0x1f2   : > { %1922 = vst [vmem:[#allocation2 + $0x1d0] sm:$0xff] %v1858_v43  ;;  %v1598_v45 = vpop.f32.mrb[60].mxu1 }
 0x1f3   : > { %1923 = vst [vmem:[#allocation2 + $0x1d8] sm:$0xff] %v1859_v44  ;;  %v1791_v47 = vpop.f32.mrb[60].mxu0  ;;  %v1600_v49 = vpop.f32.mrb[61].mxu1 }
 0x1f4   : > { %v1792_v48 = vadd.f32 %v1791_v47, %v1598_v45  ;;  %v1793_v51 = vpop.f32.mrb[61].mxu0  ;;  %v1602_v53 = vpop.f32.mrb[62].mxu1 }
 0x1f5   : > { %v1794_v52 = vadd.f32 %v1793_v51, %v1600_v49  ;;  %v1795_v55 = vpop.f32.mrb[62].mxu0  ;;  %v1604_v58 = vpop.f32.mrb[63].mxu1  ;;  %1931 = sbr.rel (%p2756_p0) target bundleno = 648 (0x288), region = 63 }
 0x1f6   : > { %v1860_v56 = vadd.f32 %v1792_v48, %v642_v46  ;;  %v1796_v57 = vadd.f32 %v1795_v55, %v1602_v53  ;;  %v1797_v60 = vpop.f32.mrb[63].mxu0 }
 0x1f7   : > { %v1861_v61 = vadd.f32 %v1794_v52, %v643_v50  ;;  %v1798_v62 = vadd.f32 %v1797_v60, %v1604_v58 }
 0x1f8   : > { %1924 = vst [vmem:[#allocation2 + $0x1e0] sm:$0xff] %v1860_v56  ;;  %v1862_v63 = vadd.f32 %v1796_v57, %v644_v54 }
 0x1f9   : > { %1925 = vst [vmem:[#allocation2 + $0x1e8] sm:$0xff] %v1861_v61  ;;  %v1863_v0 = vadd.f32 %v1798_v62, %v645_v59 }
 0x1fa   : > { %1926 = vst [vmem:[#allocation2 + $0x1f0] sm:$0xff] %v1862_v63 }
 0x1fb   : > { %1927 = vst [vmem:[#allocation2 + $0x1f8] sm:$0xff] %v1863_v0 }
 0x1fc   : > { %v4142_v1 = vlaneseq  ;;  %v1932_v5 = vld [vmem:[#allocation2] sm:$0xff]  ;;  %v1933_v6 = vld [vmem:[#allocation2 + $0x8] sm:$0xff]  ;;  %v1934_v7 = vld [vmem:[#allocation2 + $0x10] sm:$0xff] }
 0x1fd   : > { %v1935_v8 = vld [vmem:[#allocation2 + $0x18] sm:$0xff]  ;;  %v1936_v9 = vld [vmem:[#allocation2 + $0x20] sm:$0xff]  ;;  %v1937_v10 = vld [vmem:[#allocation2 + $0x28] sm:$0xff] }
 0x1fe   : > { %v3580_v2 = vshrl.u32 %v4142_v1, 7  ;;  %v1938_v11 = vld [vmem:[#allocation2 + $0x30] sm:$0xff]  ;;  %v1939_v12 = vld [vmem:[#allocation2 + $0x38] sm:$0xff]  ;;  %v1940_v13 = vld [vmem:[#allocation2 + $0x40] sm:$0xff] }
 0x1ff   : > { %v1941_v14 = vld [vmem:[#allocation2 + $0x48] sm:$0xff]  ;;  %v1942_v15 = vld [vmem:[#allocation2 + $0x50] sm:$0xff]  ;;  %v1943_v16 = vld [vmem:[#allocation2 + $0x58] sm:$0xff] }
 0x200   : > { %4170 = vst [vmem:[#allocation4_spill] sm:$0xff] %v3580_v2  ;;  %v2000_v3 = vsub.s32 0, %v3580_v2  ;;  %v2004_v4 = vsub.s32 1, %v3580_v2  ;;  %v1996_v17 = vld [vmem:[%s4138_s2] sm:$0x3]  ;;  %v1945_v19 = vld [vmem:[#allocation2 + $0x68] sm:$0xff] }
 0x201   : > { %v1944_v18 = vld [vmem:[#allocation2 + $0x60] sm:$0xff]  ;;  %v1946_v20 = vld [vmem:[#allocation2 + $0x70] sm:$0xff]  ;;  %v1947_v21 = vld [vmem:[#allocation2 + $0x78] sm:$0xff] }
 0x202   : > { %v3587_v22 = vrot.slane %v1996_v17, %v2000_v3  ;;  %v3589_v23 = vrot.slane %v1996_v17, %v2004_v4  ;;  %v1948_v24 = vld [vmem:[#allocation2 + $0x80] sm:$0xff]  ;;  %v1949_v25 = vld [vmem:[#allocation2 + $0x88] sm:$0xff]  ;;  %v1950_v26 = vld [vmem:[#allocation2 + $0x90] sm:$0xff] }
 0x203   : > { %v1951_v27 = vld [vmem:[#allocation2 + $0x98] sm:$0xff]  ;;  %v1952_v28 = vld [vmem:[#allocation2 + $0xa0] sm:$0xff]  ;;  %v1953_v29 = vld [vmem:[#allocation2 + $0xa8] sm:$0xff] }
 0x204   : > { %v1954_v30 = vld [vmem:[#allocation2 + $0xb0] sm:$0xff]  ;;  %v1955_v31 = vld [vmem:[#allocation2 + $0xb8] sm:$0xff]  ;;  %v3592_v32 = vadd.f32 %v3587_v22, %v1932_v5  ;;  %v3595_v33 = vadd.f32 %v3589_v23, %v1933_v6  ;;  %v3598_v34 = vadd.f32 %v3587_v22, %v1934_v7  ;;  %v3601_v35 = vadd.f32 %v3589_v23, %v1935_v8  ;;  %v1956_v36 = vld [vmem:[#allocation2 + $0xc0] sm:$0xff] }
 0x205   : > { %v1957_v37 = vld [vmem:[#allocation2 + $0xc8] sm:$0xff]  ;;  %v1958_v38 = vld [vmem:[#allocation2 + $0xd0] sm:$0xff]  ;;  %v1959_v39 = vld [vmem:[#allocation2 + $0xd8] sm:$0xff]  ;;  %v3604_v40 = vadd.f32 %v3587_v22, %v1936_v9  ;;  %v3607_v41 = vadd.f32 %v3589_v23, %v1937_v10  ;;  %v3610_v42 = vadd.f32 %v3587_v22, %v1938_v11  ;;  %v3613_v43 = vadd.f32 %v3589_v23, %v1939_v12 }
 0x206   : > { %v1960_v44 = vld [vmem:[#allocation2 + $0xe0] sm:$0xff]  ;;  %v1961_v45 = vld [vmem:[#allocation2 + $0xe8] sm:$0xff]  ;;  %v1962_v46 = vld [vmem:[#allocation2 + $0xf0] sm:$0xff]  ;;  %v3616_v48 = vadd.f32 %v3587_v22, %v1940_v13  ;;  %v3619_v49 = vadd.f32 %v3589_v23, %v1941_v14  ;;  %v3622_v50 = vadd.f32 %v3587_v22, %v1942_v15  ;;  %v3625_v51 = vadd.f32 %v3589_v23, %v1943_v16  ;;  %2326 = vst [vmem:[%s3371_s18] sm:$0xff] %v3592_v32 }
 0x207   : > { %v1963_v47 = vld [vmem:[#allocation2 + $0xf8] sm:$0xff]  ;;  %2327 = vst [vmem:[%s3371_s18 + $0x8] sm:$0xff] %v3595_v33  ;;  %2328 = vst [vmem:[%s3371_s18 + $0x10] sm:$0xff] %v3598_v34  ;;  %v1964_v52 = vld [vmem:[#allocation2 + $0x100] sm:$0xff]  ;;  %v3636_v56 = vadd.f32 %v3587_v22, %v1944_v18  ;;  %v3639_v57 = vadd.f32 %v3589_v23, %v1945_v19  ;;  %v3642_v58 = vadd.f32 %v3587_v22, %v1946_v20 }
 0x208   : > { %2329 = vst [vmem:[%s3371_s18 + $0x18] sm:$0xff] %v3601_v35  ;;  %v1965_v53 = vld [vmem:[#allocation2 + $0x108] sm:$0xff]  ;;  %v1966_v54 = vld [vmem:[#allocation2 + $0x110] sm:$0xff]  ;;  %v1967_v55 = vld [vmem:[#allocation2 + $0x118] sm:$0xff]  ;;  %v3645_v59 = vadd.f32 %v3589_v23, %v1947_v21  ;;  %v3656_v0 = vadd.f32 %v3587_v22, %v1948_v24  ;;  %v3659_v3 = vadd.f32 %v3589_v23, %v1949_v25  ;;  %v3662_v4 = vadd.f32 %v3587_v22, %v1950_v26 }
 0x209   : > { %2330 = vst [vmem:[%s3371_s18 + $0x20] sm:$0xff] %v3604_v40  ;;  %2331 = vst [vmem:[%s3371_s18 + $0x28] sm:$0xff] %v3607_v41  ;;  %v1968_v60 = vld [vmem:[#allocation2 + $0x120] sm:$0xff]  ;;  %v1969_v61 = vld [vmem:[#allocation2 + $0x128] sm:$0xff]  ;;  %v3665_v5 = vadd.f32 %v3589_v23, %v1951_v27  ;;  %v3676_v9 = vadd.f32 %v3587_v22, %v1952_v28  ;;  %v3679_v10 = vadd.f32 %v3589_v23, %v1953_v29 }
 0x20a   : > { %2332 = vst [vmem:[%s3371_s18 + $0x30] sm:$0xff] %v3610_v42  ;;  %2333 = vst [vmem:[%s3371_s18 + $0x38] sm:$0xff] %v3613_v43  ;;  %v1970_v62 = vld [vmem:[#allocation2 + $0x130] sm:$0xff]  ;;  %v1971_v63 = vld [vmem:[#allocation2 + $0x138] sm:$0xff]  ;;  %v3682_v11 = vadd.f32 %v3587_v22, %v1954_v30  ;;  %v3685_v12 = vadd.f32 %v3589_v23, %v1955_v31  ;;  %v3696_v16 = vadd.f32 %v3587_v22, %v1956_v36 }
 0x20b   : > { %2334 = vst [vmem:[%s3371_s18 + $0x40] sm:$0xff] %v3616_v48  ;;  %2335 = vst [vmem:[%s3371_s18 + $0x48] sm:$0xff] %v3619_v49  ;;  %v1972_v6 = vld [vmem:[#allocation2 + $0x140] sm:$0xff]  ;;  %v1973_v7 = vld [vmem:[#allocation2 + $0x148] sm:$0xff]  ;;  %v3699_v17 = vadd.f32 %v3589_v23, %v1957_v37  ;;  %v3702_v18 = vadd.f32 %v3587_v22, %v1958_v38  ;;  %v3705_v19 = vadd.f32 %v3589_v23, %v1959_v39 }
 0x20c   : > { %2336 = vst [vmem:[%s3371_s18 + $0x50] sm:$0xff] %v3622_v50  ;;  %2337 = vst [vmem:[%s3371_s18 + $0x58] sm:$0xff] %v3625_v51  ;;  %v1974_v8 = vld [vmem:[#allocation2 + $0x150] sm:$0xff]  ;;  %v1975_v13 = vld [vmem:[#allocation2 + $0x158] sm:$0xff]  ;;  %v3716_v25 = vadd.f32 %v3587_v22, %v1960_v44  ;;  %v3719_v26 = vadd.f32 %v3589_v23, %v1961_v45  ;;  %v3722_v27 = vadd.f32 %v3587_v22, %v1962_v46 }
 0x20d   : > { %2338 = vst [vmem:[%s3371_s18 + $0x60] sm:$0xff] %v3636_v56  ;;  %2339 = vst [vmem:[%s3371_s18 + $0x68] sm:$0xff] %v3639_v57  ;;  %v1976_v14 = vld [vmem:[#allocation2 + $0x160] sm:$0xff]  ;;  %v1977_v15 = vld [vmem:[#allocation2 + $0x168] sm:$0xff]  ;;  %v3725_v28 = vadd.f32 %v3589_v23, %v1963_v47  ;;  %v3736_v36 = vadd.f32 %v3587_v22, %v1964_v52  ;;  %v3739_v37 = vadd.f32 %v3589_v23, %v1965_v53 }
 0x20e   : > { %2340 = vst [vmem:[%s3371_s18 + $0x70] sm:$0xff] %v3642_v58  ;;  %2341 = vst [vmem:[%s3371_s18 + $0x78] sm:$0xff] %v3645_v59  ;;  %v1978_v20 = vld [vmem:[#allocation2 + $0x170] sm:$0xff]  ;;  %v1979_v21 = vld [vmem:[#allocation2 + $0x178] sm:$0xff]  ;;  %v3742_v38 = vadd.f32 %v3587_v22, %v1966_v54  ;;  %v3745_v39 = vadd.f32 %v3589_v23, %v1967_v55  ;;  %v3756_v47 = vadd.f32 %v3587_v22, %v1968_v60 }
 0x20f   : > { %2342 = vst [vmem:[%s3371_s18 + $0x80] sm:$0xff] %v3656_v0  ;;  %2343 = vst [vmem:[%s3371_s18 + $0x88] sm:$0xff] %v3659_v3  ;;  %v1980_v24 = vld [vmem:[#allocation2 + $0x180] sm:$0xff]  ;;  %v1981_v29 = vld [vmem:[#allocation2 + $0x188] sm:$0xff]  ;;  %v3759_v52 = vadd.f32 %v3589_v23, %v1969_v61  ;;  %v3762_v53 = vadd.f32 %v3587_v22, %v1970_v62  ;;  %v3765_v54 = vadd.f32 %v3589_v23, %v1971_v63 }
 0x210   : > { %2344 = vst [vmem:[%s3371_s18 + $0x90] sm:$0xff] %v3662_v4  ;;  %2345 = vst [vmem:[%s3371_s18 + $0x98] sm:$0xff] %v3665_v5  ;;  %v1982_v30 = vld [vmem:[#allocation2 + $0x190] sm:$0xff]  ;;  %v1983_v31 = vld [vmem:[#allocation2 + $0x198] sm:$0xff]  ;;  %v3776_v1 = vadd.f32 %v3587_v22, %v1972_v6  ;;  %v3779_v62 = vadd.f32 %v3589_v23, %v1973_v7  ;;  %v3782_v63 = vadd.f32 %v3587_v22, %v1974_v8 }
 0x211   : > { %4171 = vst [vmem:[#allocation5_spill] sm:$0xff] %v3722_v27  ;;  %4172 = vst [vmem:[#allocation6_spill] sm:$0xff] %v3725_v28  ;;  %v1984_v44 = vld [vmem:[#allocation2 + $0x1a0] sm:$0xff]  ;;  %v1985_v45 = vld [vmem:[#allocation2 + $0x1a8] sm:$0xff]  ;;  %v3785_v2 = vadd.f32 %v3589_v23, %v1975_v13  ;;  %v3799_v8 = vadd.f32 %v3589_v23, %v1977_v15  ;;  %v3802_v13 = vadd.f32 %v3587_v22, %v1978_v20 }
 0x212   : > { %2346 = vst [vmem:[%s3371_s18 + $0xa0] sm:$0xff] %v3676_v9  ;;  %2347 = vst [vmem:[%s3371_s18 + $0xa8] sm:$0xff] %v3679_v10  ;;  %v1986_v46 = vld [vmem:[#allocation2 + $0x1b0] sm:$0xff]  ;;  %v1987_v55 = vld [vmem:[#allocation2 + $0x1b8] sm:$0xff]  ;;  %v3816_v20 = vadd.f32 %v3587_v22, %v1980_v24  ;;  %v3836_v24 = vadd.f32 %v3587_v22, %v1984_v44 }
 0x213   : > { %2348 = vst [vmem:[%s3371_s18 + $0xb0] sm:$0xff] %v3682_v11  ;;  %2349 = vst [vmem:[%s3371_s18 + $0xb8] sm:$0xff] %v3685_v12  ;;  %v1988_v60 = vld [vmem:[#allocation2 + $0x1c0] sm:$0xff]  ;;  %v1989_v61 = vld [vmem:[#allocation2 + $0x1c8] sm:$0xff] }
 0x214   : > { %4173 = vst [vmem:[#allocation7_spill] sm:$0xff] %v3742_v38  ;;  %4174 = vst [vmem:[#allocation8_spill] sm:$0xff] %v3745_v39  ;;  %v1990_v6 = vld [vmem:[#allocation2 + $0x1d0] sm:$0xff]  ;;  %v1992_v7 = vld [vmem:[#allocation2 + $0x1e0] sm:$0xff]  ;;  %v3856_v44 = vadd.f32 %v3587_v22, %v1988_v60 }
 0x215   : > { %2350 = vst [vmem:[%s3371_s18 + $0xc0] sm:$0xff] %v3696_v16  ;;  %2351 = vst [vmem:[%s3371_s18 + $0xc8] sm:$0xff] %v3699_v17  ;;  %v1994_v15 = vld [vmem:[#allocation2 + $0x1f0] sm:$0xff]  ;;  %v3876_v60 = vadd.f32 %v3587_v22, %v1992_v7  ;;  %v2072_v7 = vadd.f32 %v3598_v34, %v3592_v32 }
 0x216   : > { %2352 = vst [vmem:[%s3371_s18 + $0xd0] sm:$0xff] %v3702_v18  ;;  %2353 = vst [vmem:[%s3371_s18 + $0xd8] sm:$0xff] %v3705_v19 }
 0x217   : > { %4175 = vst [vmem:[#allocation9_spill] sm:$0xff] %v3756_v47  ;;  %4176 = vst [vmem:[#allocation10_spill] sm:$0xff] %v3762_v53 }
 0x218   : > { %2354 = vst [vmem:[%s3371_s18 + $0xe0] sm:$0xff] %v3716_v25  ;;  %2355 = vst [vmem:[%s3371_s18 + $0xe8] sm:$0xff] %v3719_v26 }
 0x219   : > { %2356 = vst [vmem:[%s3371_s18 + $0xf0] sm:$0xff] %v3722_v27  ;;  %2357 = vst [vmem:[%s3371_s18 + $0xf8] sm:$0xff] %v3725_v28  ;;  %v1991_v28 = vld [vmem:[#allocation2 + $0x1d8] sm:$0xff]  ;;  %v3796_v27 = vadd.f32 %v3587_v22, %v1976_v14  ;;  %v1993_v14 = vld [vmem:[#allocation2 + $0x1e8] sm:$0xff] }
 0x21a   : > { %2358 = vst [vmem:[%s3371_s18 + $0x100] sm:$0xff] %v3736_v36  ;;  %2359 = vst [vmem:[%s3371_s18 + $0x108] sm:$0xff] %v3739_v37 }
 0x21b   : > { %2360 = vst [vmem:[%s3371_s18 + $0x110] sm:$0xff] %v3742_v38  ;;  %2361 = vst [vmem:[%s3371_s18 + $0x118] sm:$0xff] %v3745_v39  ;;  %v3805_v38 = vadd.f32 %v3589_v23, %v1979_v21  ;;  %v1995_v39 = vld [vmem:[#allocation2 + $0x1f8] sm:$0xff]  ;;  %v3819_v21 = vadd.f32 %v3589_v23, %v1981_v29  ;;  %v3839_v29 = vadd.f32 %v3589_v23, %v1985_v45 }
 0x21c   : > { %2362 = vst [vmem:[%s3371_s18 + $0x120] sm:$0xff] %v3756_v47  ;;  %2363 = vst [vmem:[%s3371_s18 + $0x128] sm:$0xff] %v3759_v52  ;;  %v3822_v47 = vadd.f32 %v3587_v22, %v1982_v30  ;;  %v3842_v30 = vadd.f32 %v3587_v22, %v1986_v46  ;;  %v3859_v45 = vadd.f32 %v3589_v23, %v1989_v61 }
 0x21d   : > { %2364 = vst [vmem:[%s3371_s18 + $0x130] sm:$0xff] %v3762_v53  ;;  %2365 = vst [vmem:[%s3371_s18 + $0x138] sm:$0xff] %v3765_v54  ;;  %v3825_v53 = vadd.f32 %v3589_v23, %v1983_v31  ;;  %v3845_v31 = vadd.f32 %v3589_v23, %v1987_v55  ;;  %v3862_v46 = vadd.f32 %v3587_v22, %v1990_v6 }
 0x21e   : > { %2366 = vst [vmem:[%s3371_s18 + $0x140] sm:$0xff] %v3776_v1  ;;  %2367 = vst [vmem:[%s3371_s18 + $0x148] sm:$0xff] %v3779_v62  ;;  %v3865_v55 = vadd.f32 %v3589_v23, %v1991_v28  ;;  %v3879_v28 = vadd.f32 %v3589_v23, %v1993_v14  ;;  %v3882_v61 = vadd.f32 %v3587_v22, %v1994_v15 }
 0x21f   : > { %2368 = vst [vmem:[%s3371_s18 + $0x150] sm:$0xff] %v3782_v63  ;;  %2369 = vst [vmem:[%s3371_s18 + $0x158] sm:$0xff] %v3785_v2  ;;  %v3885_v6 = vadd.f32 %v3589_v23, %v1995_v39  ;;  %v2109_v14 = vadd.f32 %v3601_v35, %v3595_v33  ;;  %v2073_v22 = vadd.f32 %v2072_v7, %v3604_v40 }
 0x220   : > { %2370 = vst [vmem:[%s3371_s18 + $0x160] sm:$0xff] %v3796_v27  ;;  %2371 = vst [vmem:[%s3371_s18 + $0x168] sm:$0xff] %v3799_v8 }
 0x221   : > { %2372 = vst [vmem:[%s3371_s18 + $0x170] sm:$0xff] %v3802_v13  ;;  %2373 = vst [vmem:[%s3371_s18 + $0x178] sm:$0xff] %v3805_v38  ;;  %v2110_v23 = vadd.f32 %v2109_v14, %v3607_v41  ;;  %v2074_v39 = vadd.f32 %v2073_v22, %v3610_v42 }
 0x222   : > { %4177 = vst [vmem:[#allocation11_spill] sm:$0xff] %v3859_v45  ;;  %4178 = vst [vmem:[#allocation12_spill] sm:$0xff] %v3862_v46 }
 0x223   : > { %4179 = vst [vmem:[#allocation13_spill] sm:$0xff] %v3865_v55  ;;  %2374 = vst [vmem:[%s3371_s18 + $0x180] sm:$0xff] %v3816_v20  ;;  %v2111_v15 = vadd.f32 %v2110_v23, %v3613_v43 }
 0x224   : > { %2375 = vst [vmem:[%s3371_s18 + $0x188] sm:$0xff] %v3819_v21  ;;  %2376 = vst [vmem:[%s3371_s18 + $0x190] sm:$0xff] %v3822_v47 }
 0x225   : > { %2377 = vst [vmem:[%s3371_s18 + $0x198] sm:$0xff] %v3825_v53  ;;  %4180 = vst [vmem:[#allocation14_spill] sm:$0xff] %v3876_v60 }
 0x226   : > { %4181 = vst [vmem:[#allocation15_spill] sm:$0xff] %v3879_v28  ;;  %4182 = vst [vmem:[#allocation16_spill] sm:$0xff] %v3882_v61 }
 0x227   : > { %4183 = vst [vmem:[#allocation17_spill] sm:$0xff] %v3885_v6  ;;  %2378 = vst [vmem:[%s3371_s18 + $0x1a0] sm:$0xff] %v3836_v24 }
 0x228   : > { %2379 = vst [vmem:[%s3371_s18 + $0x1a8] sm:$0xff] %v3839_v29  ;;  %2380 = vst [vmem:[%s3371_s18 + $0x1b0] sm:$0xff] %v3842_v30 }
 0x229   : > { %2381 = vst [vmem:[%s3371_s18 + $0x1b8] sm:$0xff] %v3845_v31  ;;  %2382 = vst [vmem:[%s3371_s18 + $0x1c0] sm:$0xff] %v3856_v44 }
 0x22a   : > { %2383 = vst [vmem:[%s3371_s18 + $0x1c8] sm:$0xff] %v3859_v45  ;;  %2384 = vst [vmem:[%s3371_s18 + $0x1d0] sm:$0xff] %v3862_v46  ;;  %v2075_v46 = vadd.f32 %v2074_v39, %v3616_v48 }
 0x22b   : > { %2385 = vst [vmem:[%s3371_s18 + $0x1d8] sm:$0xff] %v3865_v55  ;;  %2386 = vst [vmem:[%s3371_s18 + $0x1e0] sm:$0xff] %v3876_v60  ;;  %v2112_v55 = vadd.f32 %v2111_v15, %v3619_v49 }
 0x22c   : > { %2387 = vst [vmem:[%s3371_s18 + $0x1e8] sm:$0xff] %v3879_v28  ;;  %2388 = vst [vmem:[%s3371_s18 + $0x1f0] sm:$0xff] %v3882_v61  ;;  %v2076_v60 = vadd.f32 %v2075_v46, %v3622_v50  ;;  %v2169_v46 = vmul.f32 %v3592_v32, %v3592_v32 }
 0x22d   : > { %2389 = vst [vmem:[%s3371_s18 + $0x1f8] sm:$0xff] %v3885_v6  ;;  %v2113_v28 = vadd.f32 %v2112_v55, %v3625_v51  ;;  %v2170_v55 = vmul.f32 %v3595_v33, %v3595_v33 }
 0x22e   : > { %v2077_v61 = vadd.f32 %v2076_v60, %v3636_v56  ;;  %v2171_v60 = vmul.f32 %v3598_v34, %v3598_v34  ;;  %v2175_v34 = vmul.f32 %v3610_v42, %v3610_v42 }
 0x22f   : > { %v2114_v6 = vadd.f32 %v2113_v28, %v3639_v57  ;;  %v2172_v28 = vmul.f32 %v3601_v35, %v3601_v35  ;;  %v2176_v35 = vmul.f32 %v3613_v43, %v3613_v43  ;;  %v2179_v43 = vmul.f32 %v3622_v50, %v3622_v50  ;;  %v4185_v50 = vld [vmem:[#allocation6_spill] sm:$0xff] }
 0x230   : > { %v2078_v7 = vadd.f32 %v2077_v61, %v3642_v58 }
 0x231   : > { %v2115_v14 = vadd.f32 %v2114_v6, %v3645_v59 }
 0x232   : > { %v2079_v22 = vadd.f32 %v2078_v7, %v3656_v0  ;;  %v2173_v7 = vmul.f32 %v3604_v40, %v3604_v40  ;;  %v2177_v40 = vmul.f32 %v3616_v48, %v3616_v48 }
 0x233   : > { %v2116_v23 = vadd.f32 %v2115_v14, %v3659_v3  ;;  %v2174_v14 = vmul.f32 %v3607_v41, %v3607_v41  ;;  %v2178_v41 = vmul.f32 %v3619_v49, %v3619_v49  ;;  %v2181_v49 = vmul.f32 %v3636_v56, %v3636_v56 }
 0x234   : > { %v2080_v39 = vadd.f32 %v2079_v22, %v3662_v4  ;;  %v2233_v22 = vadd.f32 %v2171_v60, %v2169_v46  ;;  %v2180_v46 = vmul.f32 %v3625_v51, %v3625_v51  ;;  %v2183_v51 = vmul.f32 %v3642_v58, %v3642_v58  ;;  %v4187_v58 = vld [vmem:[#allocation8_spill] sm:$0xff] }
 0x235   : > { %v2117_v15 = vadd.f32 %v2116_v23, %v3665_v5  ;;  %v2270_v23 = vadd.f32 %v2172_v28, %v2170_v55 }
 0x236   : > { %v2081_v61 = vadd.f32 %v2080_v39, %v3676_v9 }
 0x237   : > { %v2118_v6 = vadd.f32 %v2117_v15, %v3679_v10 }
 0x238   : > { %v2082_v32 = vadd.f32 %v2081_v61, %v3682_v11  ;;  %v2234_v61 = vadd.f32 %v2233_v22, %v2173_v7  ;;  %v2182_v7 = vmul.f32 %v3639_v57, %v3639_v57  ;;  %v2185_v57 = vmul.f32 %v3656_v0, %v3656_v0 }
 0x239   : > { %v2119_v33 = vadd.f32 %v2118_v6, %v3685_v12  ;;  %v2271_v6 = vadd.f32 %v2270_v23, %v2174_v14 }
 0x23a   : > { %v2083_v39 = vadd.f32 %v2082_v32, %v3696_v16  ;;  %v2235_v55 = vadd.f32 %v2234_v61, %v2175_v34  ;;  %v4186_v61 = vld [vmem:[#allocation7_spill] sm:$0xff] }
 0x23b   : > { %v2120_v15 = vadd.f32 %v2119_v33, %v3699_v17  ;;  %v2272_v60 = vadd.f32 %v2271_v6, %v2176_v35  ;;  %v4184_v33 = vld [vmem:[#allocation5_spill] sm:$0xff] }
 0x23c   : > { %v2084_v45 = vadd.f32 %v2083_v39, %v3702_v18  ;;  %v2236_v14 = vadd.f32 %v2235_v55, %v2177_v40 }
 0x23d   : > { %v2121_v42 = vadd.f32 %v2120_v15, %v3705_v19  ;;  %v2273_v32 = vadd.f32 %v2272_v60, %v2178_v41  ;;  %v2186_v15 = vmul.f32 %v3659_v3, %v3659_v3  ;;  %v4188_v60 = vld [vmem:[#allocation9_spill] sm:$0xff]  ;;  %v2189_v3 = vmul.f32 %v3676_v9, %v3676_v9 }
 0x23e   : > { %v2085_v28 = vadd.f32 %v2084_v45, %v3716_v25  ;;  %v2184_v45 = vmul.f32 %v3645_v59, %v3645_v59  ;;  %v2237_v34 = vadd.f32 %v2236_v14, %v2179_v43  ;;  %v2187_v59 = vmul.f32 %v3662_v4, %v3662_v4  ;;  %v4189_v14 = vld [vmem:[#allocation10_spill] sm:$0xff] }
 0x23f   : > { %v2122_v48 = vadd.f32 %v2121_v42, %v3719_v26  ;;  %v2274_v35 = vadd.f32 %v2273_v32, %v2180_v46  ;;  %v2188_v43 = vmul.f32 %v3665_v5, %v3665_v5  ;;  %v2191_v5 = vmul.f32 %v3682_v11, %v3682_v11 }
 0x240   : > { %v2086_v22 = vadd.f32 %v2085_v28, %v4184_v33  ;;  %v2238_v40 = vadd.f32 %v2237_v34, %v2181_v49  ;;  %v2194_v34 = vmul.f32 %v3699_v17, %v3699_v17  ;;  %v2197_v17 = vmul.f32 %v3716_v25, %v3716_v25 }
 0x241   : > { %v2123_v23 = vadd.f32 %v2122_v48, %v4185_v50  ;;  %v2275_v41 = vadd.f32 %v2274_v35, %v2182_v7  ;;  %v2190_v48 = vmul.f32 %v3679_v10, %v3679_v10  ;;  %v2193_v10 = vmul.f32 %v3696_v16, %v3696_v16 }
 0x242   : > { %v2087_v39 = vadd.f32 %v2086_v22, %v3736_v36  ;;  %v2239_v46 = vadd.f32 %v2238_v40, %v2183_v51  ;;  %v2192_v22 = vmul.f32 %v3685_v12, %v3685_v12  ;;  %v2195_v12 = vmul.f32 %v3702_v18, %v3702_v18 }
 0x243   : > { %v2124_v56 = vadd.f32 %v2123_v23, %v3739_v37  ;;  %v2276_v55 = vadd.f32 %v2275_v41, %v2184_v45 }
 0x244   : > { %v2088_v6 = vadd.f32 %v2087_v39, %v4186_v61  ;;  %v2240_v49 = vadd.f32 %v2239_v46, %v2185_v57  ;;  %v2196_v57 = vmul.f32 %v3705_v19, %v3705_v19  ;;  %v2199_v19 = vmul.f32 %v4184_v33, %v4184_v33 }
 0x245   : > { %v2125_v42 = vadd.f32 %v2124_v56, %v4187_v58  ;;  %v2277_v7 = vadd.f32 %v2276_v55, %v2186_v15  ;;  %v2200_v46 = vmul.f32 %v4185_v50, %v4185_v50  ;;  %v2203_v50 = vmul.f32 %v4186_v61, %v4186_v61 }
 0x246   : > { %v2089_v28 = vadd.f32 %v2088_v6, %v4188_v60  ;;  %v2241_v23 = vadd.f32 %v2240_v49, %v2187_v59  ;;  %v2198_v6 = vmul.f32 %v3719_v26, %v3719_v26  ;;  %v2201_v26 = vmul.f32 %v3736_v36, %v3736_v36 }
 0x247   : > { %v2126_v0 = vadd.f32 %v2125_v42, %v3759_v52  ;;  %v2278_v51 = vadd.f32 %v2277_v7, %v2188_v43 }
 0x248   : > { %v2090_v32 = vadd.f32 %v2089_v28, %v4189_v14  ;;  %v2242_v35 = vadd.f32 %v2241_v23, %v2189_v3  ;;  %v2202_v3 = vmul.f32 %v3739_v37, %v3739_v37  ;;  %v2205_v37 = vmul.f32 %v4188_v60, %v4188_v60  ;;  %v4190_v60 = vld [vmem:[#allocation11_spill] sm:$0xff] }
 0x249   : > { %v2127_v4 = vadd.f32 %v2126_v0, %v3765_v54  ;;  %v2279_v39 = vadd.f32 %v2278_v51, %v2190_v48  ;;  %v2206_v23 = vmul.f32 %v3759_v52, %v3759_v52  ;;  %v2209_v52 = vmul.f32 %v3776_v1, %v3776_v1 }
 0x24a   : > { %v2091_v45 = vadd.f32 %v2090_v32, %v3776_v1  ;;  %v2243_v15 = vadd.f32 %v2242_v35, %v2191_v5  ;;  %v2204_v32 = vmul.f32 %v4187_v58, %v4187_v58  ;;  %v2207_v58 = vmul.f32 %v4189_v14, %v4189_v14  ;;  %v4192_v14 = vld [vmem:[#allocation13_spill] sm:$0xff]  ;;  %v4194_v1 = vld [vmem:[#allocation15_spill] sm:$0xff] }
 0x24b   : > { %v2128_v9 = vadd.f32 %v2127_v4, %v3779_v62  ;;  %v2280_v40 = vadd.f32 %v2279_v39, %v2192_v22 }
 0x24c   : > { %v2092_v56 = vadd.f32 %v2091_v45, %v3782_v63  ;;  %v2244_v42 = vadd.f32 %v2243_v15, %v2193_v10  ;;  %v2208_v10 = vmul.f32 %v3765_v54, %v3765_v54  ;;  %v4191_v15 = vld [vmem:[#allocation12_spill] sm:$0xff]  ;;  %v2211_v54 = vmul.f32 %v3782_v63, %v3782_v63  ;;  %v4196_v63 = vld [vmem:[#allocation17_spill] sm:$0xff] }
 0x24d   : > { %v2129_v11 = vadd.f32 %v2128_v9, %v3785_v2  ;;  %v2281_v59 = vadd.f32 %v2280_v40, %v2194_v34 }
 0x24e   : > { %v2093_v41 = vadd.f32 %v2092_v56, %v3796_v27  ;;  %v2245_v55 = vadd.f32 %v2244_v42, %v2195_v12  ;;  %v4193_v42 = vld [vmem:[#allocation14_spill] sm:$0xff] }
 0x24f   : > { %v2130_v16 = vadd.f32 %v2129_v11, %v3799_v8  ;;  %v2282_v28 = vadd.f32 %v2281_v59, %v2196_v57  ;;  %v2210_v11 = vmul.f32 %v3779_v62, %v3779_v62  ;;  %v2213_v62 = vmul.f32 %v3796_v27, %v3796_v27 }
 0x250   : > { %v2094_v43 = vadd.f32 %v2093_v41, %v3802_v13  ;;  %v2246_v48 = vadd.f32 %v2245_v55, %v2197_v17  ;;  %v4195_v55 = vld [vmem:[#allocation16_spill] sm:$0xff]  ;;  %v2217_v27 = vmul.f32 %v3816_v20, %v3816_v20 }
 0x251   : > { %v2131_v18 = vadd.f32 %v2130_v16, %v3805_v38  ;;  %v2283_v49 = vadd.f32 %v2282_v28, %v2198_v6  ;;  %v2212_v16 = vmul.f32 %v3785_v2, %v3785_v2  ;;  %v2215_v2 = vmul.f32 %v3802_v13, %v3802_v13 }
 0x252   : > { %v2095_v0 = vadd.f32 %v2094_v43, %v3816_v20  ;;  %v2247_v4 = vadd.f32 %v2246_v48, %v2199_v19  ;;  %v2219_v13 = vmul.f32 %v3822_v47, %v3822_v47  ;;  %v2221_v20 = vmul.f32 %v3836_v24, %v3836_v24 }
 0x253   : > { %v2132_v25 = vadd.f32 %v2131_v18, %v3819_v21  ;;  %v2284_v5 = vadd.f32 %v2283_v49, %v2200_v46  ;;  %v2214_v18 = vmul.f32 %v3799_v8, %v3799_v8  ;;  %v2218_v8 = vmul.f32 %v3819_v21, %v3819_v21 }
 0x254   : > { %v2096_v7 = vadd.f32 %v2095_v0, %v3822_v47  ;;  %v2248_v51 = vadd.f32 %v2247_v4, %v2201_v26  ;;  %v3133_v4 = vmov 1966171168   ;;  %v2222_v21 = vmul.f32 %v3839_v29, %v3839_v29 }
 0x255   : > { %v2133_v33 = vadd.f32 %v2132_v25, %v3825_v53  ;;  %v2285_v45 = vadd.f32 %v2284_v5, %v2202_v3  ;;  %v2216_v25 = vmul.f32 %v3805_v38, %v3805_v38  ;;  %v2150_v5 = vunpack.c.l.s4 %v3133_v4 }
 0x256   : > { %v2097_v22 = vadd.f32 %v2096_v7, %v3836_v24  ;;  %v2249_v34 = vadd.f32 %v2248_v51, %v2203_v50  ;;  %v2220_v38 = vmul.f32 %v3825_v53, %v3825_v53  ;;  %v2223_v47 = vmul.f32 %v3842_v30, %v3842_v30 }
 0x257   : > { %v2134_v36 = vadd.f32 %v2133_v33, %v3839_v29  ;;  %v2286_v35 = vadd.f32 %v2285_v45, %v2204_v32  ;;  %v2224_v53 = vmul.f32 %v3845_v31, %v3845_v31  ;;  %v2225_v24 = vmul.f32 %v3856_v44, %v3856_v44 }
 0x258   : > { %v2098_v9 = vadd.f32 %v2097_v22, %v3842_v30  ;;  %v2250_v12 = vadd.f32 %v2249_v34, %v2205_v37  ;;  %v2226_v29 = vmul.f32 %v4190_v60, %v4190_v60  ;;  %v2227_v30 = vmul.f32 %v4191_v15, %v4191_v15 }
 0x259   : > { %v2135_v61 = vadd.f32 %v2134_v36, %v3845_v31  ;;  %v2287_v57 = vadd.f32 %v2286_v35, %v2206_v23  ;;  %v2228_v31 = vmul.f32 %v4192_v14, %v4192_v14 }
 0x25a   : > { %v2099_v39 = vadd.f32 %v2098_v9, %v3856_v44  ;;  %v2251_v17 = vadd.f32 %v2250_v12, %v2207_v58  ;;  %v2151_v58 = vunpack.c.0.s8 %v2150_v5  ;;  %v2229_v44 = vmul.f32 %v4193_v42, %v4193_v42 }
 0x25b   : > { %v2136_v56 = vadd.f32 %v2135_v61, %v4190_v60  ;;  %v2288_v6 = vadd.f32 %v2287_v57, %v2208_v10  ;;  %v4197_v57 = vld [vmem:[#allocation4_spill] sm:$0xff]  ;;  %v2230_v60 = vmul.f32 %v4194_v1, %v4194_v1 }
 0x25c   : > { %v2100_v40 = vadd.f32 %v2099_v39, %v4191_v15  ;;  %v2252_v19 = vadd.f32 %v2251_v17, %v2209_v52  ;;  %v2231_v15 = vmul.f32 %v4195_v55, %v4195_v55 }
 0x25d   : > { %v2137_v41 = vadd.f32 %v2136_v56, %v4192_v14  ;;  %v2289_v46 = vadd.f32 %v2288_v6, %v2210_v11  ;;  %v2232_v14 = vmul.f32 %v4196_v63, %v4196_v63 }
 0x25e   : > { %v2101_v59 = vadd.f32 %v2100_v40, %v4193_v42  ;;  %v2253_v26 = vadd.f32 %v2252_v19, %v2211_v54  ;;  %v2154_v40 = vsub.s32 %v2151_v58, %v4197_v57 }
 0x25f   : > { %v2138_v43 = vadd.f32 %v2137_v41, %v4194_v1  ;;  %v2290_v3 = vadd.f32 %v2289_v46, %v2212_v16 }
 0x260   : > { %v2102_v28 = vadd.f32 %v2101_v59, %v4195_v55  ;;  %v2254_v7 = vadd.f32 %v2253_v26, %v2213_v62 }
 0x261   : > { %v2139_v0 = vadd.f32 %v2138_v43, %v4196_v63  ;;  %v2291_v33 = vadd.f32 %v2290_v3, %v2214_v18  ;;  %v4198_v43 = vlaneseq }
 0x262   : > { %v2103_v48 = vrot.slane %v2102_v28, 4  ;;  %v2255_v22 = vadd.f32 %v2254_v7, %v2215_v2 }
 0x263   : > { %v2140_v49 = vrot.slane %v2139_v0, 4  ;;  %v2292_v36 = vadd.f32 %v2291_v33, %v2216_v25  ;;  %vm4101_vm0 = vcmp.lt.s32.totalorder %v4198_v43, 256 }
 0x264   : > { %v2104_v50 = vadd.f32 %v2103_v48, %v2102_v28  ;;  %v2256_v51 = vadd.f32 %v2255_v22, %v2217_v27 }
 0x265   : > { %v2141_v32 = vadd.f32 %v2140_v49, %v2139_v0  ;;  %v2293_v45 = vadd.f32 %v2292_v36, %v2218_v8 }
 0x266   : > { %v2105_v37 = vrot.slane %v2104_v50, 2  ;;  %v2257_v10 = vadd.f32 %v2256_v51, %v2219_v13 }
 0x267   : > { %v2142_v23 = vrot.slane %v2141_v32, 2  ;;  %v2294_v34 = vadd.f32 %v2293_v45, %v2220_v38 }
 0x268   : > { %v2106_v9 = vadd.f32 %v2105_v37, %v2104_v50  ;;  %v2258_v56 = vadd.f32 %v2257_v10, %v2221_v20 }
 0x269   : > { %v2143_v61 = vadd.f32 %v2142_v23, %v2141_v32  ;;  %v2295_v52 = vadd.f32 %v2294_v34, %v2222_v21 }
 0x26a   : > { %v2107_v35 = vrot.slane %v2106_v9, 1  ;;  %v2259_v41 = vadd.f32 %v2258_v56, %v2223_v47 }
 0x26b   : > { %v2144_v39 = vrot.slane %v2143_v61, 1  ;;  %v2296_v54 = vadd.f32 %v2295_v52, %v2224_v53 }
 0x26c   : > { %v2108_v11 = vadd.f32 %v2107_v35, %v2106_v9  ;;  %v2260_v17 = vadd.f32 %v2259_v41, %v2225_v24 }
 0x26d   : > { %v2145_v12 = vadd.f32 %v2144_v39, %v2143_v61  ;;  %v2297_v6 = vadd.f32 %v2296_v54, %v2226_v29 }
 0x26e   : > { %v2261_v18 = vadd.f32 %v2260_v17, %v2227_v30 }
 0x26f   : > { %v2148_v16 = vcombine.low %v2108_v11, %v2145_v12  ;;  %v2298_v19 = vadd.f32 %v2297_v6, %v2228_v31 }
 0x270   : > { %v2262_v46 = vadd.f32 %v2261_v18, %v2229_v44 }
 0x271   : > { %v2155_v59 = vrot.slane %v2148_v16, %v2154_v40  ;;  %v2299_v28 = vadd.f32 %v2298_v19, %v2230_v60 }
 0x272   : > { %v2263_v1 = vadd.f32 %v2262_v46, %v2231_v15 }
 0x273   : > { %v2162_v42 = vrot.slane %v2155_v59, %v2154_v40  ;;  %v2300_v0 = vadd.f32 %v2299_v28, %v2232_v14 }
 0x274   : > { %v2264_v2 = vrot.slane %v2263_v1, 4 }
 0x275   : > { %2168 = vst.msk [vmem:[%s3376_s16] sm:$0x3] %vm4101_vm0, %v2162_v42  ;;  %v2301_v25 = vrot.slane %v2300_v0, 4 }
 0x276   : > { %v2265_v26 = vadd.f32 %v2264_v2, %v2263_v1 }
 0x277   : > { %v2302_v3 = vadd.f32 %v2301_v25, %v2300_v0 }
 0x278   : > { %v2266_v48 = vrot.slane %v2265_v26, 2 }
 0x279   : > { %v2303_v55 = vrot.slane %v2302_v3, 2 }
 0x27a   : > { %v2267_v49 = vadd.f32 %v2266_v48, %v2265_v26 }
 0x27b   : > { %v2304_v27 = vadd.f32 %v2303_v55, %v2302_v3 }
 0x27c   : > { %v2268_v63 = vrot.slane %v2267_v49, 1 }
 0x27d   : > { %v2305_v8 = vrot.slane %v2304_v27, 1 }
 0x27e   : > { %v2269_v7 = vadd.f32 %v2268_v63, %v2267_v49 }
 0x27f   : > { %v2306_v33 = vadd.f32 %v2305_v8, %v2304_v27 }
 0x281   : > { %v2309_v50 = vcombine.low %v2269_v7, %v2306_v33 }
 0x283   : > { %v2316_v32 = vrot.slane %v2309_v50, %v2154_v40 }
 0x285   : > { %v2323_v4 = vrot.slane %v2316_v32, %v2154_v40 }
 0x287   : > { %2325 = vst.msk [vmem:[%s3381_s7] sm:$0x3] %vm4101_vm0, %v2323_v4 }
 0x288 PF: > { %s16_s24 = sadd.s32 1, %s3130_s24   ;;  %s4201_s18 = smov %s3110_s19 }
 0x289   : > { %p13_p1 = scmp.ge.s32.totalorder %s16_s24, 10   ;;  %s4202_s19 = smov %s3215_s6 }
 0x28a   : > { %s4203_s20 = smov %s3122_s22  ;;  %s4204_s21 = smov %s3126_s23 }
 0x28b   : > { %s4205_s22 = smov %s4208_s25  ;;  %s4206_s23 = smov %s4212_s26 }
 0x28c   :  { %15 = sbr.rel (!%p13_p1) target bundleno = 4 (0x4), region = 128 }

// kernel: discriminator_forward.13
= control target key start
LH: loop header
LB: loop body
LE: loop exit
PB: predicated region body
PF: predicated region fallthrough
CT: control target
= control target key end

     0   :  { %s760_s12 = smov 0   ;;  %s1058_s0 = inlined_call_operand.vmem [shape: f32[512,256], index: 0, kind: input, shape index: {}]   ;;  %s1059_s1 = inlined_call_operand.vmem [shape: f32[1,256], index: 1, kind: input, shape index: {}]   ;;  %s1060_s2 = inlined_call_operand.vmem [shape: f32[1,256], index: 2, kind: input, shape index: {}]   ;;  %s1061_s3 = inlined_call_operand.vmem [shape: f32[512,256], index: 3, kind: output, shape index: {}]  }
   0x1 LB: > { %s709_s13 = sadd.s32 4294967295, %s738_s12   ;;  %p713_p0 = scmp.ge.s32.totalorder %s738_s12, 1  ;;  %s738_s12 = sphi %s760_s12, %s13_s12  }
   0x2   : > { %p139_p1 = scmp.lt.s32.totalorder %s738_s12, 3 }
   0x4   : > { %p140_p2 = pnand %p713_p0, %p139_p1 }
   0x5   : > { %s714_s14 = sshll.u32 (!%p140_p2), %s709_s13, 5  ;;  %v245_v0 = vlaneseq (!%p140_p2)  ;;  %v243_v2 = vld [vmem:[%s1059_s1] sm:$0x3] (!%p140_p2) }
   0x6   : > { %143 = sbr.rel (%p140_p2) target bundleno = 102 (0x66), region = 32  ;;  %p166_p3 = scmp.lt.s32.totalorder (!%p140_p2), %s714_s14, 63  ;;  %v319_v3 = vld [vmem:[%s1060_s2] sm:$0x3] (!%p140_p2) }
   0x7   : > { %v246_v1 = vshrl.u32 (!%p140_p2), %v245_v0, 7 }
   0x9   : > { %v247_v4 = vsub.s32 (!%p140_p2), 0, %v246_v1  ;;  %v251_v5 = vsub.s32 (!%p140_p2), 1, %v246_v1 }
   0xb   : > { %v784_v6 = vrot.slane (!%p140_p2), %v243_v2, %v247_v4  ;;  %v786_v7 = vrot.slane (!%p140_p2), %v319_v3, %v247_v4  ;;  %v788_v8 = vrot.slane (!%p140_p2), %v243_v2, %v251_v5  ;;  %v790_v9 = vrot.slane (!%p140_p2), %v319_v3, %v251_v5 }
   0xd   : > { %s1063_s14 = smov (!%p166_p3, %s714_s14), 63 }
   0xe   : > { %s722_s19 = sshll.u32 %s1063_s14, 4 }
   0xf   : > { %s782_s22 = scalar_lea.vmem %s1058_s0, %s722_s19  ;;  %s820_s25 = scalar_lea.vmem %s1061_s3, %s722_s19 }
  0x10   : > { %v179_v10 = vld [vmem:[%s782_s22] sm:$0xff]  ;;  %v180_v11 = vld [vmem:[%s782_s22 + $0x8] sm:$0xff]  ;;  %v181_v12 = vld [vmem:[%s782_s22 + $0x10] sm:$0xff] }
  0x11   : > { %v255_v13 = vmul.f32 %v784_v6, %v179_v10  ;;  %v256_v14 = vmul.f32 %v788_v8, %v180_v11  ;;  %v257_v15 = vmul.f32 %v784_v6, %v181_v12  ;;  %v182_v16 = vld [vmem:[%s782_s22 + $0x18] sm:$0xff]  ;;  %v183_v17 = vld [vmem:[%s782_s22 + $0x20] sm:$0xff]  ;;  %v184_v18 = vld [vmem:[%s782_s22 + $0x28] sm:$0xff] }
  0x12   : > { %v258_v19 = vmul.f32 %v788_v8, %v182_v16  ;;  %v259_v20 = vmul.f32 %v784_v6, %v183_v17  ;;  %v260_v21 = vmul.f32 %v788_v8, %v184_v18  ;;  %v185_v22 = vld [vmem:[%s782_s22 + $0x30] sm:$0xff]  ;;  %v186_v23 = vld [vmem:[%s782_s22 + $0x38] sm:$0xff]  ;;  %v187_v32 = vld [vmem:[%s782_s22 + $0x40] sm:$0xff] }
  0x13   : > { %v331_v24 = vadd.f32 %v786_v7, %v255_v13  ;;  %v332_v25 = vadd.f32 %v790_v9, %v256_v14  ;;  %v333_v26 = vadd.f32 %v786_v7, %v257_v15  ;;  %v261_v27 = vmul.f32 %v784_v6, %v185_v22  ;;  %v188_v40 = vld [vmem:[%s782_s22 + $0x48] sm:$0xff]  ;;  %v189_v41 = vld [vmem:[%s782_s22 + $0x50] sm:$0xff]  ;;  %v190_v42 = vld [vmem:[%s782_s22 + $0x58] sm:$0xff] }
  0x14   : > { %v334_v28 = vadd.f32 %v790_v9, %v258_v19  ;;  %v335_v29 = vadd.f32 %v786_v7, %v259_v20  ;;  %v336_v30 = vadd.f32 %v790_v9, %v260_v21  ;;  %v262_v31 = vmul.f32 %v788_v8, %v186_v23  ;;  %v191_v54 = vld [vmem:[%s782_s22 + $0x60] sm:$0xff]  ;;  %v192_v55 = vld [vmem:[%s782_s22 + $0x68] sm:$0xff]  ;;  %v193_v2 = vld [vmem:[%s782_s22 + $0x70] sm:$0xff] }
  0x15   : > { %vm395_vm0 = vcmp.gt.f32.partialorder %v331_v24, 0.0  ;;  %v459_v33 = vmul.f32 0.2, %v331_v24  ;;  %vm396_vm1 = vcmp.gt.f32.partialorder %v332_v25, 0.0  ;;  %v460_v34 = vmul.f32 0.2, %v332_v25 }
  0x16   : > { %vm397_vm2 = vcmp.gt.f32.partialorder %v333_v26, 0.0  ;;  %v461_v35 = vmul.f32 0.2, %v333_v26  ;;  %vm398_vm3 = vcmp.gt.f32.partialorder %v334_v28, 0.0  ;;  %v462_v36 = vmul.f32 0.2, %v334_v28 }
  0x17   : > { %v523_v37 = vsel %vm395_vm0, %v331_v24, %v459_v33  ;;  %v524_v38 = vsel %vm396_vm1, %v332_v25, %v460_v34  ;;  %vm399_vm4 = vcmp.gt.f32.partialorder %v335_v29, 0.0  ;;  %v463_v39 = vmul.f32 0.2, %v335_v29  ;;  %v194_v3 = vld [vmem:[%s782_s22 + $0x78] sm:$0xff]  ;;  %v195_v16 = vld [vmem:[%s782_s22 + $0x80] sm:$0xff]  ;;  %v196_v17 = vld [vmem:[%s782_s22 + $0x88] sm:$0xff] }
  0x18   : > { %587 = vst [vmem:[%s820_s25] sm:$0xff] %v523_v37  ;;  %588 = vst [vmem:[%s820_s25 + $0x8] sm:$0xff] %v524_v38  ;;  %v525_v43 = vsel %vm397_vm2, %v333_v26, %v461_v35  ;;  %v526_v44 = vsel %vm398_vm3, %v334_v28, %v462_v36  ;;  %vm400_vm5 = vcmp.gt.f32.partialorder %v336_v30, 0.0  ;;  %v464_v45 = vmul.f32 0.2, %v336_v30  ;;  %v197_v22 = vld [vmem:[%s782_s22 + $0x90] sm:$0xff]  ;;  %v198_v23 = vld [vmem:[%s782_s22 + $0x98] sm:$0xff] }
  0x19   : > { %589 = vst [vmem:[%s820_s25 + $0x10] sm:$0xff] %v525_v43  ;;  %590 = vst [vmem:[%s820_s25 + $0x18] sm:$0xff] %v526_v44  ;;  %v527_v46 = vsel %vm399_vm4, %v335_v29, %v463_v39  ;;  %v337_v47 = vadd.f32 %v786_v7, %v261_v27  ;;  %v338_v48 = vadd.f32 %v790_v9, %v262_v31  ;;  %v199_v34 = vld [vmem:[%s782_s22 + $0xa0] sm:$0xff]  ;;  %v200_v35 = vld [vmem:[%s782_s22 + $0xa8] sm:$0xff] }
  0x1a   : > { %v263_v49 = vmul.f32 %v784_v6, %v187_v32  ;;  %591 = vst [vmem:[%s820_s25 + $0x20] sm:$0xff] %v527_v46  ;;  %v528_v50 = vsel %vm400_vm5, %v336_v30, %v464_v45  ;;  %v264_v51 = vmul.f32 %v788_v8, %v188_v40  ;;  %v265_v52 = vmul.f32 %v784_v6, %v189_v41  ;;  %v201_v46 = vld [vmem:[%s782_s22 + $0xb0] sm:$0xff] }
  0x1b   : > { %v266_v53 = vmul.f32 %v788_v8, %v190_v42  ;;  %592 = vst [vmem:[%s820_s25 + $0x28] sm:$0xff] %v528_v50  ;;  %vm401_vm6 = vcmp.gt.f32.partialorder %v337_v47, 0.0  ;;  %v465_v56 = vmul.f32 0.2, %v337_v47  ;;  %vm402_vm7 = vcmp.gt.f32.partialorder %v338_v48, 0.0 }
  0x1c   : > { %v466_v57 = vmul.f32 0.2, %v338_v48  ;;  %v339_v58 = vadd.f32 %v786_v7, %v263_v49  ;;  %v340_v59 = vadd.f32 %v790_v9, %v264_v51  ;;  %v341_v60 = vadd.f32 %v786_v7, %v265_v52 }
  0x1d   : > { %v342_v61 = vadd.f32 %v790_v9, %v266_v53  ;;  %v529_v62 = vsel %vm401_vm6, %v337_v47, %v465_v56  ;;  %v267_v0 = vmul.f32 %v784_v6, %v191_v54  ;;  %v268_v1 = vmul.f32 %v788_v8, %v192_v55  ;;  %v202_v47 = vld [vmem:[%s782_s22 + $0xb8] sm:$0xff]  ;;  %v203_v56 = vld [vmem:[%s782_s22 + $0xc0] sm:$0xff] }
  0x1e   : > { %v530_v63 = vsel %vm402_vm7, %v338_v48, %v466_v57  ;;  %593 = vst [vmem:[%s820_s25 + $0x30] sm:$0xff] %v529_v62  ;;  %vm403_vm8 = vcmp.gt.f32.partialorder %v339_v58, 0.0  ;;  %v467_v4 = vmul.f32 0.2, %v339_v58  ;;  %vm404_vm9 = vcmp.gt.f32.partialorder %v340_v59, 0.0  ;;  %v204_v57 = vld [vmem:[%s782_s22 + $0xc8] sm:$0xff] }
  0x1f   : > { %594 = vst [vmem:[%s820_s25 + $0x38] sm:$0xff] %v530_v63  ;;  %v468_v5 = vmul.f32 0.2, %v340_v59  ;;  %vm405_vm10 = vcmp.gt.f32.partialorder %v341_v60, 0.0  ;;  %v469_v10 = vmul.f32 0.2, %v341_v60  ;;  %v343_v14 = vadd.f32 %v786_v7, %v267_v0 }
  0x20   : > { %vm406_vm11 = vcmp.gt.f32.partialorder %v342_v61, 0.0  ;;  %v470_v11 = vmul.f32 0.2, %v342_v61  ;;  %v531_v12 = vsel %vm403_vm8, %v339_v58, %v467_v4  ;;  %v344_v15 = vadd.f32 %v790_v9, %v268_v1  ;;  %v205_v62 = vld [vmem:[%s782_s22 + $0xd0] sm:$0xff]  ;;  %v206_v63 = vld [vmem:[%s782_s22 + $0xd8] sm:$0xff] }
  0x21   : > { %v532_v13 = vsel %vm404_vm9, %v340_v59, %v468_v5  ;;  %595 = vst [vmem:[%s820_s25 + $0x40] sm:$0xff] %v531_v12  ;;  %v533_v18 = vsel %vm405_vm10, %v341_v60, %v469_v10  ;;  %v269_v20 = vmul.f32 %v784_v6, %v193_v2  ;;  %v270_v21 = vmul.f32 %v788_v8, %v194_v3 }
  0x22   : > { %596 = vst [vmem:[%s820_s25 + $0x48] sm:$0xff] %v532_v13  ;;  %v534_v19 = vsel %vm406_vm11, %v342_v61, %v470_v11  ;;  %597 = vst [vmem:[%s820_s25 + $0x50] sm:$0xff] %v533_v18  ;;  %vm407_vm12 = vcmp.gt.f32.partialorder %v343_v14, 0.0  ;;  %v471_v24 = vmul.f32 0.2, %v343_v14  ;;  %vm408_vm13 = vcmp.gt.f32.partialorder %v344_v15, 0.0 }
  0x23   : > { %598 = vst [vmem:[%s820_s25 + $0x58] sm:$0xff] %v534_v19  ;;  %v472_v25 = vmul.f32 0.2, %v344_v15  ;;  %v345_v26 = vadd.f32 %v786_v7, %v269_v20  ;;  %v346_v27 = vadd.f32 %v790_v9, %v270_v21  ;;  %v271_v28 = vmul.f32 %v784_v6, %v195_v16 }
  0x24   : > { %v272_v29 = vmul.f32 %v788_v8, %v196_v17  ;;  %v535_v30 = vsel %vm407_vm12, %v343_v14, %v471_v24  ;;  %v273_v32 = vmul.f32 %v784_v6, %v197_v22  ;;  %v274_v33 = vmul.f32 %v788_v8, %v198_v23  ;;  %v207_v14 = vld [vmem:[%s782_s22 + $0xe0] sm:$0xff] }
  0x25   : > { %v536_v31 = vsel %vm408_vm13, %v344_v15, %v472_v25  ;;  %599 = vst [vmem:[%s820_s25 + $0x60] sm:$0xff] %v535_v30  ;;  %vm409_vm14 = vcmp.gt.f32.partialorder %v345_v26, 0.0  ;;  %v473_v36 = vmul.f32 0.2, %v345_v26  ;;  %vm410_vm15 = vcmp.gt.f32.partialorder %v346_v27, 0.0  ;;  %v208_v15 = vld [vmem:[%s782_s22 + $0xe8] sm:$0xff] }
  0x26   : > { %600 = vst [vmem:[%s820_s25 + $0x68] sm:$0xff] %v536_v31  ;;  %v474_v37 = vmul.f32 0.2, %v346_v27  ;;  %v347_v38 = vadd.f32 %v786_v7, %v271_v28  ;;  %v348_v39 = vadd.f32 %v790_v9, %v272_v29  ;;  %v349_v40 = vadd.f32 %v786_v7, %v273_v32 }
  0x27   : > { %v350_v41 = vadd.f32 %v790_v9, %v274_v33  ;;  %v537_v42 = vsel %vm409_vm14, %v345_v26, %v473_v36  ;;  %v275_v44 = vmul.f32 %v784_v6, %v199_v34  ;;  %v276_v45 = vmul.f32 %v788_v8, %v200_v35  ;;  %v209_v26 = vld [vmem:[%s782_s22 + $0xf0] sm:$0xff]  ;;  %v211_v36 = vld [vmem:[%s782_s22 + $0x100] sm:$0xff] }
  0x28   : > { %v538_v43 = vsel %vm410_vm15, %v346_v27, %v474_v37  ;;  %601 = vst [vmem:[%s820_s25 + $0x70] sm:$0xff] %v537_v42  ;;  %vm411_vm0 = vcmp.gt.f32.partialorder %v347_v38, 0.0  ;;  %v475_v48 = vmul.f32 0.2, %v347_v38  ;;  %vm412_vm1 = vcmp.gt.f32.partialorder %v348_v39, 0.0  ;;  %v210_v27 = vld [vmem:[%s782_s22 + $0xf8] sm:$0xff] }
  0x29   : > { %602 = vst [vmem:[%s820_s25 + $0x78] sm:$0xff] %v538_v43  ;;  %v476_v49 = vmul.f32 0.2, %v348_v39  ;;  %vm413_vm2 = vcmp.gt.f32.partialorder %v349_v40, 0.0  ;;  %v477_v50 = vmul.f32 0.2, %v349_v40  ;;  %v351_v54 = vadd.f32 %v786_v7, %v275_v44 }
  0x2a   : > { %vm414_vm3 = vcmp.gt.f32.partialorder %v350_v41, 0.0  ;;  %v478_v51 = vmul.f32 0.2, %v350_v41  ;;  %v539_v52 = vsel %vm411_vm0, %v347_v38, %v475_v48  ;;  %v352_v55 = vadd.f32 %v790_v9, %v276_v45  ;;  %v212_v37 = vld [vmem:[%s782_s22 + $0x108] sm:$0xff]  ;;  %v213_v42 = vld [vmem:[%s782_s22 + $0x110] sm:$0xff]  ;;  %v214_v43 = vld [vmem:[%s782_s22 + $0x118] sm:$0xff] }
  0x2b   : > { %v540_v53 = vsel %vm412_vm1, %v348_v39, %v476_v49  ;;  %603 = vst [vmem:[%s820_s25 + $0x80] sm:$0xff] %v539_v52  ;;  %v541_v58 = vsel %vm413_vm2, %v349_v40, %v477_v50  ;;  %v277_v60 = vmul.f32 %v784_v6, %v201_v46  ;;  %v278_v61 = vmul.f32 %v788_v8, %v202_v47 }
  0x2c   : > { %604 = vst [vmem:[%s820_s25 + $0x88] sm:$0xff] %v540_v53  ;;  %v542_v59 = vsel %vm414_vm3, %v350_v41, %v478_v51  ;;  %605 = vst [vmem:[%s820_s25 + $0x90] sm:$0xff] %v541_v58  ;;  %vm415_vm4 = vcmp.gt.f32.partialorder %v351_v54, 0.0  ;;  %v479_v0 = vmul.f32 0.2, %v351_v54  ;;  %vm416_vm5 = vcmp.gt.f32.partialorder %v352_v55, 0.0 }
  0x2d   : > { %606 = vst [vmem:[%s820_s25 + $0x98] sm:$0xff] %v542_v59  ;;  %v480_v1 = vmul.f32 0.2, %v352_v55  ;;  %v353_v2 = vadd.f32 %v786_v7, %v277_v60  ;;  %v354_v3 = vadd.f32 %v790_v9, %v278_v61  ;;  %v279_v4 = vmul.f32 %v784_v6, %v203_v56 }
  0x2e   : > { %v280_v5 = vmul.f32 %v788_v8, %v204_v57  ;;  %v543_v10 = vsel %vm415_vm4, %v351_v54, %v479_v0  ;;  %v281_v12 = vmul.f32 %v784_v6, %v205_v62  ;;  %v282_v13 = vmul.f32 %v788_v8, %v206_v63  ;;  %v215_v54 = vld [vmem:[%s782_s22 + $0x120] sm:$0xff] }
  0x2f   : > { %v544_v11 = vsel %vm416_vm5, %v352_v55, %v480_v1  ;;  %607 = vst [vmem:[%s820_s25 + $0xa0] sm:$0xff] %v543_v10  ;;  %vm417_vm6 = vcmp.gt.f32.partialorder %v353_v2, 0.0  ;;  %v481_v16 = vmul.f32 0.2, %v353_v2  ;;  %vm418_vm7 = vcmp.gt.f32.partialorder %v354_v3, 0.0  ;;  %v216_v55 = vld [vmem:[%s782_s22 + $0x128] sm:$0xff] }
  0x30   : > { %608 = vst [vmem:[%s820_s25 + $0xa8] sm:$0xff] %v544_v11  ;;  %v482_v17 = vmul.f32 0.2, %v354_v3  ;;  %v355_v18 = vadd.f32 %v786_v7, %v279_v4  ;;  %v356_v19 = vadd.f32 %v790_v9, %v280_v5  ;;  %v357_v20 = vadd.f32 %v786_v7, %v281_v12 }
  0x31   : > { %v358_v21 = vadd.f32 %v790_v9, %v282_v13  ;;  %v545_v22 = vsel %vm417_vm6, %v353_v2, %v481_v16  ;;  %v283_v24 = vmul.f32 %v784_v6, %v207_v14  ;;  %v284_v25 = vmul.f32 %v788_v8, %v208_v15  ;;  %v217_v2 = vld [vmem:[%s782_s22 + $0x130] sm:$0xff]  ;;  %v219_v16 = vld [vmem:[%s782_s22 + $0x140] sm:$0xff] }
  0x32   : > { %v546_v23 = vsel %vm418_vm7, %v354_v3, %v482_v17  ;;  %609 = vst [vmem:[%s820_s25 + $0xb0] sm:$0xff] %v545_v22  ;;  %vm419_vm8 = vcmp.gt.f32.partialorder %v355_v18, 0.0  ;;  %v483_v28 = vmul.f32 0.2, %v355_v18  ;;  %vm420_vm9 = vcmp.gt.f32.partialorder %v356_v19, 0.0  ;;  %v218_v3 = vld [vmem:[%s782_s22 + $0x138] sm:$0xff] }
  0x33   : > { %610 = vst [vmem:[%s820_s25 + $0xb8] sm:$0xff] %v546_v23  ;;  %v484_v29 = vmul.f32 0.2, %v356_v19  ;;  %vm421_vm10 = vcmp.gt.f32.partialorder %v357_v20, 0.0  ;;  %v485_v30 = vmul.f32 0.2, %v357_v20  ;;  %v359_v34 = vadd.f32 %v786_v7, %v283_v24 }
  0x34   : > { %vm422_vm11 = vcmp.gt.f32.partialorder %v358_v21, 0.0  ;;  %v486_v31 = vmul.f32 0.2, %v358_v21  ;;  %v547_v32 = vsel %vm419_vm8, %v355_v18, %v483_v28  ;;  %v360_v35 = vadd.f32 %v790_v9, %v284_v25  ;;  %v220_v17 = vld [vmem:[%s782_s22 + $0x148] sm:$0xff]  ;;  %v221_v22 = vld [vmem:[%s782_s22 + $0x150] sm:$0xff]  ;;  %v222_v23 = vld [vmem:[%s782_s22 + $0x158] sm:$0xff] }
  0x35   : > { %v548_v33 = vsel %vm420_vm9, %v356_v19, %v484_v29  ;;  %611 = vst [vmem:[%s820_s25 + $0xc0] sm:$0xff] %v547_v32  ;;  %v549_v38 = vsel %vm421_vm10, %v357_v20, %v485_v30  ;;  %v285_v40 = vmul.f32 %v784_v6, %v209_v26  ;;  %v286_v41 = vmul.f32 %v788_v8, %v210_v27 }
  0x36   : > { %612 = vst [vmem:[%s820_s25 + $0xc8] sm:$0xff] %v548_v33  ;;  %v550_v39 = vsel %vm422_vm11, %v358_v21, %v486_v31  ;;  %613 = vst [vmem:[%s820_s25 + $0xd0] sm:$0xff] %v549_v38  ;;  %vm423_vm12 = vcmp.gt.f32.partialorder %v359_v34, 0.0  ;;  %v487_v44 = vmul.f32 0.2, %v359_v34  ;;  %vm424_vm13 = vcmp.gt.f32.partialorder %v360_v35, 0.0 }
  0x37   : > { %614 = vst [vmem:[%s820_s25 + $0xd8] sm:$0xff] %v550_v39  ;;  %v488_v45 = vmul.f32 0.2, %v360_v35  ;;  %v361_v46 = vadd.f32 %v786_v7, %v285_v40  ;;  %v362_v47 = vadd.f32 %v790_v9, %v286_v41  ;;  %v287_v48 = vmul.f32 %v784_v6, %v211_v36 }
  0x38   : > { %v288_v49 = vmul.f32 %v788_v8, %v212_v37  ;;  %v551_v50 = vsel %vm423_vm12, %v359_v34, %v487_v44  ;;  %v289_v52 = vmul.f32 %v784_v6, %v213_v42  ;;  %v290_v53 = vmul.f32 %v788_v8, %v214_v43  ;;  %v223_v34 = vld [vmem:[%s782_s22 + $0x160] sm:$0xff] }
  0x39   : > { %v552_v51 = vsel %vm424_vm13, %v360_v35, %v488_v45  ;;  %615 = vst [vmem:[%s820_s25 + $0xe0] sm:$0xff] %v551_v50  ;;  %vm425_vm14 = vcmp.gt.f32.partialorder %v361_v46, 0.0  ;;  %v489_v56 = vmul.f32 0.2, %v361_v46  ;;  %vm426_vm15 = vcmp.gt.f32.partialorder %v362_v47, 0.0  ;;  %v224_v35 = vld [vmem:[%s782_s22 + $0x168] sm:$0xff] }
  0x3a   : > { %616 = vst [vmem:[%s820_s25 + $0xe8] sm:$0xff] %v552_v51  ;;  %v490_v57 = vmul.f32 0.2, %v362_v47  ;;  %v363_v58 = vadd.f32 %v786_v7, %v287_v48  ;;  %v364_v59 = vadd.f32 %v790_v9, %v288_v49  ;;  %v365_v60 = vadd.f32 %v786_v7, %v289_v52 }
  0x3b   : > { %v366_v61 = vadd.f32 %v790_v9, %v290_v53  ;;  %v553_v62 = vsel %vm425_vm14, %v361_v46, %v489_v56  ;;  %v291_v0 = vmul.f32 %v784_v6, %v215_v54  ;;  %v292_v1 = vmul.f32 %v788_v8, %v216_v55  ;;  %v225_v46 = vld [vmem:[%s782_s22 + $0x170] sm:$0xff]  ;;  %v227_v56 = vld [vmem:[%s782_s22 + $0x180] sm:$0xff] }
  0x3c   : > { %v554_v63 = vsel %vm426_vm15, %v362_v47, %v490_v57  ;;  %617 = vst [vmem:[%s820_s25 + $0xf0] sm:$0xff] %v553_v62  ;;  %vm427_vm0 = vcmp.gt.f32.partialorder %v363_v58, 0.0  ;;  %v491_v4 = vmul.f32 0.2, %v363_v58  ;;  %vm428_vm1 = vcmp.gt.f32.partialorder %v364_v59, 0.0  ;;  %v226_v47 = vld [vmem:[%s782_s22 + $0x178] sm:$0xff] }
  0x3d   : > { %618 = vst [vmem:[%s820_s25 + $0xf8] sm:$0xff] %v554_v63  ;;  %v492_v5 = vmul.f32 0.2, %v364_v59  ;;  %vm429_vm2 = vcmp.gt.f32.partialorder %v365_v60, 0.0  ;;  %v493_v10 = vmul.f32 0.2, %v365_v60  ;;  %v367_v14 = vadd.f32 %v786_v7, %v291_v0 }
  0x3e   : > { %vm430_vm3 = vcmp.gt.f32.partialorder %v366_v61, 0.0  ;;  %v494_v11 = vmul.f32 0.2, %v366_v61  ;;  %v555_v12 = vsel %vm427_vm0, %v363_v58, %v491_v4  ;;  %v368_v15 = vadd.f32 %v790_v9, %v292_v1  ;;  %v228_v57 = vld [vmem:[%s782_s22 + $0x188] sm:$0xff]  ;;  %v229_v62 = vld [vmem:[%s782_s22 + $0x190] sm:$0xff]  ;;  %v230_v63 = vld [vmem:[%s782_s22 + $0x198] sm:$0xff] }
  0x3f   : > { %v556_v13 = vsel %vm428_vm1, %v364_v59, %v492_v5  ;;  %619 = vst [vmem:[%s820_s25 + $0x100] sm:$0xff] %v555_v12  ;;  %v557_v18 = vsel %vm429_vm2, %v365_v60, %v493_v10  ;;  %v293_v20 = vmul.f32 %v784_v6, %v217_v2  ;;  %v294_v21 = vmul.f32 %v788_v8, %v218_v3 }
  0x40   : > { %620 = vst [vmem:[%s820_s25 + $0x108] sm:$0xff] %v556_v13  ;;  %v558_v19 = vsel %vm430_vm3, %v366_v61, %v494_v11  ;;  %621 = vst [vmem:[%s820_s25 + $0x110] sm:$0xff] %v557_v18  ;;  %vm431_vm4 = vcmp.gt.f32.partialorder %v367_v14, 0.0  ;;  %v495_v24 = vmul.f32 0.2, %v367_v14  ;;  %vm432_vm5 = vcmp.gt.f32.partialorder %v368_v15, 0.0 }
  0x41   : > { %622 = vst [vmem:[%s820_s25 + $0x118] sm:$0xff] %v558_v19  ;;  %v496_v25 = vmul.f32 0.2, %v368_v15  ;;  %v369_v26 = vadd.f32 %v786_v7, %v293_v20  ;;  %v370_v27 = vadd.f32 %v790_v9, %v294_v21  ;;  %v295_v28 = vmul.f32 %v784_v6, %v219_v16 }
  0x42   : > { %v296_v29 = vmul.f32 %v788_v8, %v220_v17  ;;  %v559_v30 = vsel %vm431_vm4, %v367_v14, %v495_v24  ;;  %v297_v32 = vmul.f32 %v784_v6, %v221_v22  ;;  %v298_v33 = vmul.f32 %v788_v8, %v222_v23  ;;  %v231_v14 = vld [vmem:[%s782_s22 + $0x1a0] sm:$0xff] }
  0x43   : > { %v560_v31 = vsel %vm432_vm5, %v368_v15, %v496_v25  ;;  %623 = vst [vmem:[%s820_s25 + $0x120] sm:$0xff] %v559_v30  ;;  %vm433_vm6 = vcmp.gt.f32.partialorder %v369_v26, 0.0  ;;  %v497_v36 = vmul.f32 0.2, %v369_v26  ;;  %vm434_vm7 = vcmp.gt.f32.partialorder %v370_v27, 0.0  ;;  %v232_v15 = vld [vmem:[%s782_s22 + $0x1a8] sm:$0xff] }
  0x44   : > { %624 = vst [vmem:[%s820_s25 + $0x128] sm:$0xff] %v560_v31  ;;  %v498_v37 = vmul.f32 0.2, %v370_v27  ;;  %v371_v38 = vadd.f32 %v786_v7, %v295_v28  ;;  %v372_v39 = vadd.f32 %v790_v9, %v296_v29  ;;  %v373_v40 = vadd.f32 %v786_v7, %v297_v32 }
  0x45   : > { %v374_v41 = vadd.f32 %v790_v9, %v298_v33  ;;  %v561_v42 = vsel %vm433_vm6, %v369_v26, %v497_v36  ;;  %v299_v44 = vmul.f32 %v784_v6, %v223_v34  ;;  %v300_v45 = vmul.f32 %v788_v8, %v224_v35  ;;  %v233_v26 = vld [vmem:[%s782_s22 + $0x1b0] sm:$0xff]  ;;  %v235_v36 = vld [vmem:[%s782_s22 + $0x1c0] sm:$0xff] }
  0x46   : > { %v562_v43 = vsel %vm434_vm7, %v370_v27, %v498_v37  ;;  %625 = vst [vmem:[%s820_s25 + $0x130] sm:$0xff] %v561_v42  ;;  %vm435_vm8 = vcmp.gt.f32.partialorder %v371_v38, 0.0  ;;  %v499_v48 = vmul.f32 0.2, %v371_v38  ;;  %vm436_vm9 = vcmp.gt.f32.partialorder %v372_v39, 0.0  ;;  %v234_v27 = vld [vmem:[%s782_s22 + $0x1b8] sm:$0xff] }
  0x47   : > { %626 = vst [vmem:[%s820_s25 + $0x138] sm:$0xff] %v562_v43  ;;  %v500_v49 = vmul.f32 0.2, %v372_v39  ;;  %vm437_vm10 = vcmp.gt.f32.partialorder %v373_v40, 0.0  ;;  %v501_v50 = vmul.f32 0.2, %v373_v40  ;;  %v375_v54 = vadd.f32 %v786_v7, %v299_v44 }
  0x48   : > { %vm438_vm11 = vcmp.gt.f32.partialorder %v374_v41, 0.0  ;;  %v502_v51 = vmul.f32 0.2, %v374_v41  ;;  %v563_v52 = vsel %vm435_vm8, %v371_v38, %v499_v48  ;;  %v376_v55 = vadd.f32 %v790_v9, %v300_v45  ;;  %v236_v37 = vld [vmem:[%s782_s22 + $0x1c8] sm:$0xff]  ;;  %v237_v42 = vld [vmem:[%s782_s22 + $0x1d0] sm:$0xff]  ;;  %v238_v43 = vld [vmem:[%s782_s22 + $0x1d8] sm:$0xff] }
  0x49   : > { %v564_v53 = vsel %vm436_vm9, %v372_v39, %v500_v49  ;;  %627 = vst [vmem:[%s820_s25 + $0x140] sm:$0xff] %v563_v52  ;;  %v565_v58 = vsel %vm437_vm10, %v373_v40, %v501_v50  ;;  %v301_v60 = vmul.f32 %v784_v6, %v225_v46  ;;  %v302_v61 = vmul.f32 %v788_v8, %v226_v47 }
  0x4a   : > { %628 = vst [vmem:[%s820_s25 + $0x148] sm:$0xff] %v564_v53  ;;  %v566_v59 = vsel %vm438_vm11, %v374_v41, %v502_v51  ;;  %629 = vst [vmem:[%s820_s25 + $0x150] sm:$0xff] %v565_v58  ;;  %vm439_vm12 = vcmp.gt.f32.partialorder %v375_v54, 0.0  ;;  %v503_v0 = vmul.f32 0.2, %v375_v54  ;;  %vm440_vm13 = vcmp.gt.f32.partialorder %v376_v55, 0.0 }
  0x4b   : > { %630 = vst [vmem:[%s820_s25 + $0x158] sm:$0xff] %v566_v59  ;;  %v504_v1 = vmul.f32 0.2, %v376_v55  ;;  %v377_v2 = vadd.f32 %v786_v7, %v301_v60  ;;  %v378_v3 = vadd.f32 %v790_v9, %v302_v61  ;;  %v303_v4 = vmul.f32 %v784_v6, %v227_v56 }
  0x4c   : > { %v304_v5 = vmul.f32 %v788_v8, %v228_v57  ;;  %v567_v10 = vsel %vm439_vm12, %v375_v54, %v503_v0  ;;  %v305_v12 = vmul.f32 %v784_v6, %v229_v62  ;;  %v306_v13 = vmul.f32 %v788_v8, %v230_v63  ;;  %v239_v54 = vld [vmem:[%s782_s22 + $0x1e0] sm:$0xff] }
  0x4d   : > { %v568_v11 = vsel %vm440_vm13, %v376_v55, %v504_v1  ;;  %631 = vst [vmem:[%s820_s25 + $0x160] sm:$0xff] %v567_v10  ;;  %vm441_vm14 = vcmp.gt.f32.partialorder %v377_v2, 0.0  ;;  %v505_v16 = vmul.f32 0.2, %v377_v2  ;;  %vm442_vm15 = vcmp.gt.f32.partialorder %v378_v3, 0.0  ;;  %v240_v55 = vld [vmem:[%s782_s22 + $0x1e8] sm:$0xff] }
  0x4e   : > { %632 = vst [vmem:[%s820_s25 + $0x168] sm:$0xff] %v568_v11  ;;  %v506_v17 = vmul.f32 0.2, %v378_v3  ;;  %v379_v18 = vadd.f32 %v786_v7, %v303_v4  ;;  %v380_v19 = vadd.f32 %v790_v9, %v304_v5  ;;  %v381_v20 = vadd.f32 %v786_v7, %v305_v12 }
  0x4f   : > { %v382_v21 = vadd.f32 %v790_v9, %v306_v13  ;;  %v569_v22 = vsel %vm441_vm14, %v377_v2, %v505_v16  ;;  %v307_v24 = vmul.f32 %v784_v6, %v231_v14  ;;  %v308_v25 = vmul.f32 %v788_v8, %v232_v15  ;;  %v241_v2 = vld [vmem:[%s782_s22 + $0x1f0] sm:$0xff] }
  0x50   : > { %v570_v23 = vsel %vm442_vm15, %v378_v3, %v506_v17  ;;  %633 = vst [vmem:[%s820_s25 + $0x170] sm:$0xff] %v569_v22  ;;  %vm443_vm0 = vcmp.gt.f32.partialorder %v379_v18, 0.0  ;;  %v507_v28 = vmul.f32 0.2, %v379_v18  ;;  %vm444_vm1 = vcmp.gt.f32.partialorder %v380_v19, 0.0  ;;  %v242_v3 = vld [vmem:[%s782_s22 + $0x1f8] sm:$0xff] }
  0x51   : > { %634 = vst [vmem:[%s820_s25 + $0x178] sm:$0xff] %v570_v23  ;;  %v508_v29 = vmul.f32 0.2, %v380_v19  ;;  %vm445_vm2 = vcmp.gt.f32.partialorder %v381_v20, 0.0  ;;  %v509_v30 = vmul.f32 0.2, %v381_v20  ;;  %v383_v34 = vadd.f32 %v786_v7, %v307_v24 }
  0x52   : > { %vm446_vm3 = vcmp.gt.f32.partialorder %v382_v21, 0.0  ;;  %v510_v31 = vmul.f32 0.2, %v382_v21  ;;  %v571_v32 = vsel %vm443_vm0, %v379_v18, %v507_v28  ;;  %v384_v35 = vadd.f32 %v790_v9, %v308_v25 }
  0x53   : > { %v572_v33 = vsel %vm444_vm1, %v380_v19, %v508_v29  ;;  %635 = vst [vmem:[%s820_s25 + $0x180] sm:$0xff] %v571_v32  ;;  %v573_v38 = vsel %vm445_vm2, %v381_v20, %v509_v30  ;;  %v309_v40 = vmul.f32 %v784_v6, %v233_v26  ;;  %v310_v41 = vmul.f32 %v788_v8, %v234_v27 }
  0x54   : > { %636 = vst [vmem:[%s820_s25 + $0x188] sm:$0xff] %v572_v33  ;;  %v574_v39 = vsel %vm446_vm3, %v382_v21, %v510_v31  ;;  %637 = vst [vmem:[%s820_s25 + $0x190] sm:$0xff] %v573_v38  ;;  %vm447_vm4 = vcmp.gt.f32.partialorder %v383_v34, 0.0  ;;  %v511_v44 = vmul.f32 0.2, %v383_v34  ;;  %vm448_vm5 = vcmp.gt.f32.partialorder %v384_v35, 0.0 }
  0x55   : > { %638 = vst [vmem:[%s820_s25 + $0x198] sm:$0xff] %v574_v39  ;;  %v512_v45 = vmul.f32 0.2, %v384_v35  ;;  %v385_v46 = vadd.f32 %v786_v7, %v309_v40  ;;  %v386_v47 = vadd.f32 %v790_v9, %v310_v41  ;;  %v311_v48 = vmul.f32 %v784_v6, %v235_v36 }
  0x56   : > { %v312_v49 = vmul.f32 %v788_v8, %v236_v37  ;;  %v575_v50 = vsel %vm447_vm4, %v383_v34, %v511_v44  ;;  %v313_v52 = vmul.f32 %v784_v6, %v237_v42  ;;  %v314_v53 = vmul.f32 %v788_v8, %v238_v43 }
  0x57   : > { %v576_v51 = vsel %vm448_vm5, %v384_v35, %v512_v45  ;;  %639 = vst [vmem:[%s820_s25 + $0x1a0] sm:$0xff] %v575_v50  ;;  %vm449_vm6 = vcmp.gt.f32.partialorder %v385_v46, 0.0  ;;  %v513_v56 = vmul.f32 0.2, %v385_v46  ;;  %vm450_vm7 = vcmp.gt.f32.partialorder %v386_v47, 0.0 }
  0x58   : > { %640 = vst [vmem:[%s820_s25 + $0x1a8] sm:$0xff] %v576_v51  ;;  %v514_v57 = vmul.f32 0.2, %v386_v47  ;;  %v387_v58 = vadd.f32 %v786_v7, %v311_v48  ;;  %v388_v59 = vadd.f32 %v790_v9, %v312_v49  ;;  %v389_v60 = vadd.f32 %v786_v7, %v313_v52 }
  0x59   : > { %v390_v61 = vadd.f32 %v790_v9, %v314_v53  ;;  %v577_v62 = vsel %vm449_vm6, %v385_v46, %v513_v56  ;;  %v315_v0 = vmul.f32 %v784_v6, %v239_v54  ;;  %v316_v1 = vmul.f32 %v788_v8, %v240_v55 }
  0x5a   : > { %v578_v63 = vsel %vm450_vm7, %v386_v47, %v514_v57  ;;  %641 = vst [vmem:[%s820_s25 + $0x1b0] sm:$0xff] %v577_v62  ;;  %vm451_vm8 = vcmp.gt.f32.partialorder %v387_v58, 0.0  ;;  %v515_v4 = vmul.f32 0.2, %v387_v58  ;;  %vm452_vm9 = vcmp.gt.f32.partialorder %v388_v59, 0.0 }
  0x5b   : > { %642 = vst [vmem:[%s820_s25 + $0x1b8] sm:$0xff] %v578_v63  ;;  %v516_v5 = vmul.f32 0.2, %v388_v59  ;;  %vm453_vm10 = vcmp.gt.f32.partialorder %v389_v60, 0.0  ;;  %v517_v10 = vmul.f32 0.2, %v389_v60  ;;  %v391_v14 = vadd.f32 %v786_v7, %v315_v0 }
  0x5c   : > { %vm454_vm11 = vcmp.gt.f32.partialorder %v390_v61, 0.0  ;;  %v518_v11 = vmul.f32 0.2, %v390_v61  ;;  %v579_v12 = vsel %vm451_vm8, %v387_v58, %v515_v4  ;;  %v392_v15 = vadd.f32 %v790_v9, %v316_v1 }
  0x5d   : > { %v580_v13 = vsel %vm452_vm9, %v388_v59, %v516_v5  ;;  %643 = vst [vmem:[%s820_s25 + $0x1c0] sm:$0xff] %v579_v12  ;;  %v581_v16 = vsel %vm453_vm10, %v389_v60, %v517_v10  ;;  %v317_v18 = vmul.f32 %v784_v6, %v241_v2  ;;  %v318_v19 = vmul.f32 %v788_v8, %v242_v3 }
  0x5e   : > { %644 = vst [vmem:[%s820_s25 + $0x1c8] sm:$0xff] %v580_v13  ;;  %v582_v17 = vsel %vm454_vm11, %v390_v61, %v518_v11  ;;  %645 = vst [vmem:[%s820_s25 + $0x1d0] sm:$0xff] %v581_v16  ;;  %vm455_vm12 = vcmp.gt.f32.partialorder %v391_v14, 0.0  ;;  %v519_v20 = vmul.f32 0.2, %v391_v14  ;;  %vm456_vm13 = vcmp.gt.f32.partialorder %v392_v15, 0.0 }
  0x5f   : > { %646 = vst [vmem:[%s820_s25 + $0x1d8] sm:$0xff] %v582_v17  ;;  %v520_v21 = vmul.f32 0.2, %v392_v15  ;;  %v393_v22 = vadd.f32 %v786_v7, %v317_v18  ;;  %v394_v23 = vadd.f32 %v790_v9, %v318_v19 }
  0x60   : > { %v583_v24 = vsel %vm455_vm12, %v391_v14, %v519_v20 }
  0x61   : > { %v584_v25 = vsel %vm456_vm13, %v392_v15, %v520_v21  ;;  %647 = vst [vmem:[%s820_s25 + $0x1e0] sm:$0xff] %v583_v24  ;;  %vm457_vm14 = vcmp.gt.f32.partialorder %v393_v22, 0.0  ;;  %v521_v6 = vmul.f32 0.2, %v393_v22  ;;  %vm458_vm15 = vcmp.gt.f32.partialorder %v394_v23, 0.0 }
  0x62   : > { %648 = vst [vmem:[%s820_s25 + $0x1e8] sm:$0xff] %v584_v25  ;;  %v522_v8 = vmul.f32 0.2, %v394_v23 }
  0x63   : > { %v585_v26 = vsel %vm457_vm14, %v393_v22, %v521_v6 }
  0x64   : > { %v586_v27 = vsel %vm458_vm15, %v394_v23, %v522_v8  ;;  %649 = vst [vmem:[%s820_s25 + $0x1f0] sm:$0xff] %v585_v26 }
  0x65   : > { %650 = vst [vmem:[%s820_s25 + $0x1f8] sm:$0xff] %v586_v27 }
  0x66 PF: > { %s13_s12 = sadd.s32 1, %s738_s12  }
  0x67   : > { %p10_p4 = scmp.ge.s32.totalorder %s13_s12, 4  }
  0x69   :  { %12 = sbr.rel (!%p10_p4) target bundleno = 1 (0x1), region = 62 }

// kernel: discriminator_forward.15
= control target key start
LH: loop header
LB: loop body
LE: loop exit
PB: predicated region body
PF: predicated region fallthrough
CT: control target
= control target key end

     0   :  { %v80_v0 = vlaneseq  ;;  %s1065_s1 = inlined_call_operand.vmem [shape: f32[1,512], index: 1, kind: input, shape index: {}]   ;;  %s1066_s2 = inlined_call_operand.vmem [shape: f32[1,512], index: 2, kind: input, shape index: {}]   ;;  %s1067_s0 = inlined_call_operand.vmem [shape: f32[128,512], index: 0, kind: input, shape index: {}]   ;;  %s1068_s3 = inlined_call_operand.vmem [shape: f32[128,512], index: 3, kind: output, shape index: {}]  }
   0x1   :  { %v78_v2 = vld [vmem:[%s1065_s1] sm:$0xf]  ;;  %v15_v6 = vld [vmem:[%s1067_s0 + $0x8] sm:$0xff]  ;;  %v16_v10 = vld [vmem:[%s1067_s0 + $0x10] sm:$0xff] }
   0x2   :  { %v81_v1 = vshrl.u32 %v80_v0, 7  ;;  %v164_v3 = vld [vmem:[%s1066_s2] sm:$0xf]  ;;  %v19_v12 = vld [vmem:[%s1067_s0 + $0x28] sm:$0xff]  ;;  %v17_v17 = vld [vmem:[%s1067_s0 + $0x18] sm:$0xff] }
   0x3   :  { %v14_v4 = vld [vmem:[%s1067_s0] sm:$0xff]  ;;  %v20_v18 = vld [vmem:[%s1067_s0 + $0x30] sm:$0xff]  ;;  %v21_v19 = vld [vmem:[%s1067_s0 + $0x38] sm:$0xff] }
   0x4   :  { %v82_v5 = vsub.s32 0, %v81_v1  ;;  %v86_v7 = vsub.s32 1, %v81_v1  ;;  %v90_v8 = vsub.s32 2, %v81_v1  ;;  %v94_v9 = vsub.s32 3, %v81_v1  ;;  %v18_v11 = vld [vmem:[%s1067_s0 + $0x20] sm:$0xff]  ;;  %v23_v48 = vld [vmem:[%s1067_s0 + $0x48] sm:$0xff] }
   0x5   :  { %v22_v47 = vld [vmem:[%s1067_s0 + $0x40] sm:$0xff]  ;;  %v24_v52 = vld [vmem:[%s1067_s0 + $0x50] sm:$0xff]  ;;  %v25_v53 = vld [vmem:[%s1067_s0 + $0x58] sm:$0xff] }
   0x6   :  { %v551_v13 = vrot.slane %v78_v2, %v82_v5  ;;  %v553_v14 = vrot.slane %v164_v3, %v82_v5  ;;  %v555_v15 = vrot.slane %v78_v2, %v86_v7  ;;  %v557_v16 = vrot.slane %v164_v3, %v86_v7  ;;  %v26_v54 = vld [vmem:[%s1067_s0 + $0x60] sm:$0xff]  ;;  %v27_v57 = vld [vmem:[%s1067_s0 + $0x68] sm:$0xff]  ;;  %v28_v62 = vld [vmem:[%s1067_s0 + $0x70] sm:$0xff] }
   0x7   :  { %v568_v20 = vrot.slane %v78_v2, %v90_v8  ;;  %v570_v21 = vrot.slane %v164_v3, %v90_v8  ;;  %v572_v22 = vrot.slane %v78_v2, %v94_v9  ;;  %v574_v23 = vrot.slane %v164_v3, %v94_v9 }
   0x8   :  { %v100_v24 = vmul.f32 %v551_v13, %v14_v4  ;;  %v101_v25 = vmul.f32 %v555_v15, %v15_v6  ;;  %v104_v26 = vmul.f32 %v551_v13, %v18_v11  ;;  %v105_v27 = vmul.f32 %v555_v15, %v19_v12  ;;  %v29_v11 = vld [vmem:[%s1067_s0 + $0x78] sm:$0xff]  ;;  %v30_v12 = vld [vmem:[%s1067_s0 + $0x80] sm:$0xff] }
   0x9   :  { %v102_v28 = vmul.f32 %v568_v20, %v16_v10  ;;  %v103_v29 = vmul.f32 %v572_v22, %v17_v17  ;;  %v106_v30 = vmul.f32 %v568_v20, %v20_v18  ;;  %v107_v31 = vmul.f32 %v572_v22, %v21_v19  ;;  %v31_v17 = vld [vmem:[%s1067_s0 + $0x88] sm:$0xff] }
   0xa   :  { %v186_v32 = vadd.f32 %v553_v14, %v100_v24  ;;  %v187_v33 = vadd.f32 %v557_v16, %v101_v25  ;;  %v190_v34 = vadd.f32 %v553_v14, %v104_v26  ;;  %v191_v35 = vadd.f32 %v557_v16, %v105_v27 }
   0xb   :  { %v188_v36 = vadd.f32 %v570_v21, %v102_v28  ;;  %v189_v37 = vadd.f32 %v574_v23, %v103_v29  ;;  %v192_v38 = vadd.f32 %v570_v21, %v106_v30  ;;  %v193_v39 = vadd.f32 %v574_v23, %v107_v31 }
   0xc   :  { %vm250_vm0 = vcmp.gt.f32.partialorder %v186_v32, 0.0  ;;  %v314_v40 = vmul.f32 0.2, %v186_v32  ;;  %vm251_vm1 = vcmp.gt.f32.partialorder %v187_v33, 0.0  ;;  %v315_v41 = vmul.f32 0.2, %v187_v33 }
   0xd   :  { %vm252_vm2 = vcmp.gt.f32.partialorder %v188_v36, 0.0  ;;  %v316_v42 = vmul.f32 0.2, %v188_v36  ;;  %vm253_vm3 = vcmp.gt.f32.partialorder %v189_v37, 0.0  ;;  %v317_v43 = vmul.f32 0.2, %v189_v37 }
   0xe   :  { %v378_v44 = vsel %vm250_vm0, %v186_v32, %v314_v40  ;;  %v379_v45 = vsel %vm251_vm1, %v187_v33, %v315_v41  ;;  %vm254_vm4 = vcmp.gt.f32.partialorder %v190_v34, 0.0  ;;  %v318_v46 = vmul.f32 0.2, %v190_v34  ;;  %v32_v33 = vld [vmem:[%s1067_s0 + $0x90] sm:$0xff] }
   0xf   :  { %442 = vst [vmem:[%s1068_s3] sm:$0xff] %v378_v44  ;;  %443 = vst [vmem:[%s1068_s3 + $0x8] sm:$0xff] %v379_v45  ;;  %v380_v49 = vsel %vm252_vm2, %v188_v36, %v316_v42  ;;  %v381_v50 = vsel %vm253_vm3, %v189_v37, %v317_v43  ;;  %vm255_vm5 = vcmp.gt.f32.partialorder %v191_v35, 0.0  ;;  %v319_v51 = vmul.f32 0.2, %v191_v35 }
  0x10   :  { %444 = vst [vmem:[%s1068_s3 + $0x10] sm:$0xff] %v380_v49  ;;  %445 = vst [vmem:[%s1068_s3 + $0x18] sm:$0xff] %v381_v50  ;;  %v382_v55 = vsel %vm254_vm4, %v190_v34, %v318_v46  ;;  %vm256_vm6 = vcmp.gt.f32.partialorder %v192_v38, 0.0  ;;  %v320_v56 = vmul.f32 0.2, %v192_v38  ;;  %vm257_vm7 = vcmp.gt.f32.partialorder %v193_v39, 0.0 }
  0x11   :  { %446 = vst [vmem:[%s1068_s3 + $0x20] sm:$0xff] %v382_v55  ;;  %v383_v58 = vsel %vm255_vm5, %v191_v35, %v319_v51  ;;  %v321_v59 = vmul.f32 0.2, %v193_v39  ;;  %v108_v60 = vmul.f32 %v551_v13, %v22_v47  ;;  %v109_v61 = vmul.f32 %v555_v15, %v23_v48  ;;  %v35_v50 = vld [vmem:[%s1067_s0 + $0xa8] sm:$0xff] }
  0x12   :  { %447 = vst [vmem:[%s1068_s3 + $0x28] sm:$0xff] %v383_v58  ;;  %v384_v63 = vsel %vm256_vm6, %v192_v38, %v320_v56  ;;  %v110_v0 = vmul.f32 %v568_v20, %v24_v52  ;;  %v111_v1 = vmul.f32 %v572_v22, %v25_v53  ;;  %v112_v2 = vmul.f32 %v551_v13, %v26_v54  ;;  %v33_v38 = vld [vmem:[%s1067_s0 + $0x98] sm:$0xff] }
  0x13   :  { %448 = vst [vmem:[%s1068_s3 + $0x30] sm:$0xff] %v384_v63  ;;  %v385_v3 = vsel %vm257_vm7, %v193_v39, %v321_v59  ;;  %v194_v4 = vadd.f32 %v553_v14, %v108_v60  ;;  %v195_v5 = vadd.f32 %v557_v16, %v109_v61  ;;  %v113_v6 = vmul.f32 %v555_v15, %v27_v57  ;;  %v34_v39 = vld [vmem:[%s1067_s0 + $0xa0] sm:$0xff]  ;;  %v36_v60 = vld [vmem:[%s1067_s0 + $0xb0] sm:$0xff]  ;;  %v37_v61 = vld [vmem:[%s1067_s0 + $0xb8] sm:$0xff] }
  0x14   :  { %449 = vst [vmem:[%s1068_s3 + $0x38] sm:$0xff] %v385_v3  ;;  %v196_v7 = vadd.f32 %v570_v21, %v110_v0  ;;  %v197_v8 = vadd.f32 %v574_v23, %v111_v1  ;;  %v198_v9 = vadd.f32 %v553_v14, %v112_v2  ;;  %v114_v10 = vmul.f32 %v568_v20, %v28_v62  ;;  %v38_v62 = vld [vmem:[%s1067_s0 + $0xc0] sm:$0xff] }
  0x15   :  { %vm258_vm8 = vcmp.gt.f32.partialorder %v194_v4, 0.0  ;;  %v322_v18 = vmul.f32 0.2, %v194_v4  ;;  %vm259_vm9 = vcmp.gt.f32.partialorder %v195_v5, 0.0  ;;  %v323_v19 = vmul.f32 0.2, %v195_v5 }
  0x16   :  { %vm260_vm10 = vcmp.gt.f32.partialorder %v196_v7, 0.0  ;;  %v324_v24 = vmul.f32 0.2, %v196_v7  ;;  %vm261_vm11 = vcmp.gt.f32.partialorder %v197_v8, 0.0  ;;  %v325_v25 = vmul.f32 0.2, %v197_v8 }
  0x17   :  { %v386_v26 = vsel %vm258_vm8, %v194_v4, %v322_v18  ;;  %v387_v27 = vsel %vm259_vm9, %v195_v5, %v323_v19  ;;  %vm262_vm12 = vcmp.gt.f32.partialorder %v198_v9, 0.0  ;;  %v326_v28 = vmul.f32 0.2, %v198_v9  ;;  %v39_v4 = vld [vmem:[%s1067_s0 + $0xc8] sm:$0xff] }
  0x18   :  { %450 = vst [vmem:[%s1068_s3 + $0x40] sm:$0xff] %v386_v26  ;;  %451 = vst [vmem:[%s1068_s3 + $0x48] sm:$0xff] %v387_v27  ;;  %v388_v29 = vsel %vm260_vm10, %v196_v7, %v324_v24  ;;  %v389_v30 = vsel %vm261_vm11, %v197_v8, %v325_v25  ;;  %v199_v31 = vadd.f32 %v557_v16, %v113_v6 }
  0x19   :  { %v200_v32 = vadd.f32 %v570_v21, %v114_v10  ;;  %452 = vst [vmem:[%s1068_s3 + $0x50] sm:$0xff] %v388_v29  ;;  %453 = vst [vmem:[%s1068_s3 + $0x58] sm:$0xff] %v389_v30  ;;  %v390_v34 = vsel %vm262_vm12, %v198_v9, %v326_v28  ;;  %v115_v35 = vmul.f32 %v572_v22, %v29_v11  ;;  %v40_v9 = vld [vmem:[%s1067_s0 + $0xd0] sm:$0xff]  ;;  %v41_v10 = vld [vmem:[%s1067_s0 + $0xd8] sm:$0xff] }
  0x1a   :  { %v116_v36 = vmul.f32 %v551_v13, %v30_v12  ;;  %v117_v37 = vmul.f32 %v555_v15, %v31_v17  ;;  %454 = vst [vmem:[%s1068_s3 + $0x60] sm:$0xff] %v390_v34  ;;  %vm263_vm13 = vcmp.gt.f32.partialorder %v199_v31, 0.0  ;;  %v327_v40 = vmul.f32 0.2, %v199_v31  ;;  %v42_v11 = vld [vmem:[%s1067_s0 + $0xe0] sm:$0xff] }
  0x1b   :  { %vm264_vm14 = vcmp.gt.f32.partialorder %v200_v32, 0.0  ;;  %v328_v41 = vmul.f32 0.2, %v200_v32  ;;  %v201_v42 = vadd.f32 %v574_v23, %v115_v35  ;;  %v118_v45 = vmul.f32 %v568_v20, %v32_v33 }
  0x1c   :  { %v202_v43 = vadd.f32 %v553_v14, %v116_v36  ;;  %v203_v44 = vadd.f32 %v557_v16, %v117_v37  ;;  %v391_v46 = vsel %vm263_vm13, %v199_v31, %v327_v40  ;;  %v119_v48 = vmul.f32 %v572_v22, %v33_v38  ;;  %v43_v40 = vld [vmem:[%s1067_s0 + $0xe8] sm:$0xff] }
  0x1d   :  { %v392_v47 = vsel %vm264_vm14, %v200_v32, %v328_v41  ;;  %v120_v49 = vmul.f32 %v551_v13, %v34_v39  ;;  %455 = vst [vmem:[%s1068_s3 + $0x68] sm:$0xff] %v391_v46  ;;  %vm265_vm15 = vcmp.gt.f32.partialorder %v201_v42, 0.0  ;;  %v329_v51 = vmul.f32 0.2, %v201_v42  ;;  %v44_v41 = vld [vmem:[%s1067_s0 + $0xf0] sm:$0xff]  ;;  %v47_v46 = vld [vmem:[%s1067_s0 + $0x108] sm:$0xff] }
  0x1e   :  { %456 = vst [vmem:[%s1068_s3 + $0x70] sm:$0xff] %v392_v47  ;;  %vm266_vm0 = vcmp.gt.f32.partialorder %v202_v43, 0.0  ;;  %v330_v52 = vmul.f32 0.2, %v202_v43  ;;  %vm267_vm1 = vcmp.gt.f32.partialorder %v203_v44, 0.0  ;;  %v204_v54 = vadd.f32 %v570_v21, %v118_v45  ;;  %v46_v45 = vld [vmem:[%s1067_s0 + $0x100] sm:$0xff] }
  0x1f   :  { %v331_v53 = vmul.f32 0.2, %v203_v44  ;;  %v205_v55 = vadd.f32 %v574_v23, %v119_v48  ;;  %v393_v56 = vsel %vm265_vm15, %v201_v42, %v329_v51  ;;  %v206_v58 = vadd.f32 %v553_v14, %v120_v49  ;;  %v45_v42 = vld [vmem:[%s1067_s0 + $0xf8] sm:$0xff] }
  0x20   :  { %v394_v57 = vsel %vm266_vm0, %v202_v43, %v330_v52  ;;  %v121_v59 = vmul.f32 %v555_v15, %v35_v50  ;;  %457 = vst [vmem:[%s1068_s3 + $0x78] sm:$0xff] %v393_v56  ;;  %vm268_vm2 = vcmp.gt.f32.partialorder %v204_v54, 0.0  ;;  %v332_v0 = vmul.f32 0.2, %v204_v54 }
  0x21   :  { %458 = vst [vmem:[%s1068_s3 + $0x80] sm:$0xff] %v394_v57  ;;  %v395_v63 = vsel %vm267_vm1, %v203_v44, %v331_v53  ;;  %vm269_vm3 = vcmp.gt.f32.partialorder %v205_v55, 0.0  ;;  %v333_v1 = vmul.f32 0.2, %v205_v55  ;;  %vm270_vm4 = vcmp.gt.f32.partialorder %v206_v58, 0.0  ;;  %v48_v53 = vld [vmem:[%s1067_s0 + $0x110] sm:$0xff] }
  0x22   :  { %459 = vst [vmem:[%s1068_s3 + $0x88] sm:$0xff] %v395_v63  ;;  %v334_v2 = vmul.f32 0.2, %v206_v58  ;;  %v207_v3 = vadd.f32 %v557_v16, %v121_v59  ;;  %v396_v5 = vsel %vm268_vm2, %v204_v54, %v332_v0  ;;  %v122_v6 = vmul.f32 %v568_v20, %v36_v60  ;;  %v49_v54 = vld [vmem:[%s1067_s0 + $0x118] sm:$0xff] }
  0x23   :  { %v123_v7 = vmul.f32 %v572_v22, %v37_v61  ;;  %v124_v8 = vmul.f32 %v551_v13, %v38_v62  ;;  %460 = vst [vmem:[%s1068_s3 + $0x90] sm:$0xff] %v396_v5  ;;  %v397_v12 = vsel %vm269_vm3, %v205_v55, %v333_v1  ;;  %v125_v26 = vmul.f32 %v555_v15, %v39_v4 }
  0x24   :  { %v398_v17 = vsel %vm270_vm4, %v206_v58, %v334_v2  ;;  %vm271_vm5 = vcmp.gt.f32.partialorder %v207_v3, 0.0  ;;  %v335_v18 = vmul.f32 0.2, %v207_v3  ;;  %461 = vst [vmem:[%s1068_s3 + $0x98] sm:$0xff] %v397_v12  ;;  %v208_v19 = vadd.f32 %v570_v21, %v122_v6  ;;  %v51_v12 = vld [vmem:[%s1067_s0 + $0x128] sm:$0xff] }
  0x25   :  { %462 = vst [vmem:[%s1068_s3 + $0xa0] sm:$0xff] %v398_v17  ;;  %v209_v24 = vadd.f32 %v574_v23, %v123_v7  ;;  %v210_v25 = vadd.f32 %v553_v14, %v124_v8  ;;  %v126_v28 = vmul.f32 %v568_v20, %v40_v9  ;;  %v127_v29 = vmul.f32 %v572_v22, %v41_v10 }
  0x26   :  { %v399_v27 = vsel %vm271_vm5, %v207_v3, %v335_v18  ;;  %v128_v30 = vmul.f32 %v551_v13, %v42_v11  ;;  %vm272_vm6 = vcmp.gt.f32.partialorder %v208_v19, 0.0  ;;  %v336_v31 = vmul.f32 0.2, %v208_v19  ;;  %v50_v3 = vld [vmem:[%s1067_s0 + $0x120] sm:$0xff] }
  0x27   :  { %463 = vst [vmem:[%s1068_s3 + $0xa8] sm:$0xff] %v399_v27  ;;  %vm273_vm7 = vcmp.gt.f32.partialorder %v209_v24, 0.0  ;;  %v337_v32 = vmul.f32 0.2, %v209_v24  ;;  %vm274_vm8 = vcmp.gt.f32.partialorder %v210_v25, 0.0  ;;  %v211_v34 = vadd.f32 %v557_v16, %v125_v26  ;;  %v53_v26 = vld [vmem:[%s1067_s0 + $0x138] sm:$0xff] }
  0x28   :  { %v338_v33 = vmul.f32 0.2, %v210_v25  ;;  %v212_v35 = vadd.f32 %v570_v21, %v126_v28  ;;  %v400_v36 = vsel %vm272_vm6, %v208_v19, %v336_v31  ;;  %v213_v38 = vadd.f32 %v574_v23, %v127_v29 }
  0x29   :  { %v401_v37 = vsel %vm273_vm7, %v209_v24, %v337_v32  ;;  %v214_v39 = vadd.f32 %v553_v14, %v128_v30  ;;  %464 = vst [vmem:[%s1068_s3 + $0xb0] sm:$0xff] %v400_v36  ;;  %vm275_vm9 = vcmp.gt.f32.partialorder %v211_v34, 0.0  ;;  %v339_v44 = vmul.f32 0.2, %v211_v34  ;;  %v54_v32 = vld [vmem:[%s1067_s0 + $0x140] sm:$0xff] }
  0x2a   :  { %465 = vst [vmem:[%s1068_s3 + $0xb8] sm:$0xff] %v401_v37  ;;  %v402_v43 = vsel %vm274_vm8, %v210_v25, %v338_v33  ;;  %vm276_vm10 = vcmp.gt.f32.partialorder %v212_v35, 0.0  ;;  %v340_v47 = vmul.f32 0.2, %v212_v35  ;;  %vm277_vm11 = vcmp.gt.f32.partialorder %v213_v38, 0.0  ;;  %v52_v25 = vld [vmem:[%s1067_s0 + $0x130] sm:$0xff] }
  0x2b   :  { %466 = vst [vmem:[%s1068_s3 + $0xc0] sm:$0xff] %v402_v43  ;;  %v341_v48 = vmul.f32 0.2, %v213_v38  ;;  %vm278_vm12 = vcmp.gt.f32.partialorder %v214_v39, 0.0  ;;  %v403_v49 = vsel %vm275_vm9, %v211_v34, %v339_v44  ;;  %v342_v50 = vmul.f32 0.2, %v214_v39 }
  0x2c   :  { %v129_v51 = vmul.f32 %v555_v15, %v43_v40  ;;  %v130_v52 = vmul.f32 %v568_v20, %v44_v41  ;;  %467 = vst [vmem:[%s1068_s3 + $0xc8] sm:$0xff] %v403_v49  ;;  %v404_v55 = vsel %vm276_vm10, %v212_v35, %v340_v47  ;;  %v131_v57 = vmul.f32 %v572_v22, %v45_v42  ;;  %v55_v33 = vld [vmem:[%s1067_s0 + $0x148] sm:$0xff]  ;;  %v57_v49 = vld [vmem:[%s1067_s0 + $0x158] sm:$0xff] }
  0x2d   :  { %v405_v56 = vsel %vm277_vm11, %v213_v38, %v341_v48  ;;  %v132_v58 = vmul.f32 %v551_v13, %v46_v45  ;;  %468 = vst [vmem:[%s1068_s3 + $0xd0] sm:$0xff] %v404_v55  ;;  %v406_v59 = vsel %vm278_vm12, %v214_v39, %v342_v50  ;;  %v133_v62 = vmul.f32 %v555_v15, %v47_v46  ;;  %v56_v38 = vld [vmem:[%s1067_s0 + $0x150] sm:$0xff]  ;;  %v58_v50 = vld [vmem:[%s1067_s0 + $0x160] sm:$0xff] }
  0x2e   :  { %469 = vst [vmem:[%s1068_s3 + $0xd8] sm:$0xff] %v405_v56  ;;  %v215_v60 = vadd.f32 %v557_v16, %v129_v51  ;;  %v216_v61 = vadd.f32 %v570_v21, %v130_v52  ;;  %470 = vst [vmem:[%s1068_s3 + $0xe0] sm:$0xff] %v406_v59  ;;  %v217_v63 = vadd.f32 %v574_v23, %v131_v57 }
  0x2f   :  { %v218_v0 = vadd.f32 %v553_v14, %v132_v58  ;;  %v134_v1 = vmul.f32 %v568_v20, %v48_v53  ;;  %v135_v2 = vmul.f32 %v572_v22, %v49_v54  ;;  %v219_v10 = vadd.f32 %v557_v16, %v133_v62  ;;  %v60_v62 = vld [vmem:[%s1067_s0 + $0x170] sm:$0xff] }
  0x30   :  { %vm279_vm13 = vcmp.gt.f32.partialorder %v215_v60, 0.0  ;;  %v343_v4 = vmul.f32 0.2, %v215_v60  ;;  %vm280_vm14 = vcmp.gt.f32.partialorder %v216_v61, 0.0  ;;  %v344_v5 = vmul.f32 0.2, %v216_v61 }
  0x31   :  { %vm281_vm15 = vcmp.gt.f32.partialorder %v217_v63, 0.0  ;;  %v345_v6 = vmul.f32 0.2, %v217_v63  ;;  %vm282_vm0 = vcmp.gt.f32.partialorder %v218_v0, 0.0  ;;  %v346_v7 = vmul.f32 0.2, %v218_v0 }
  0x32   :  { %v407_v8 = vsel %vm279_vm13, %v215_v60, %v343_v4  ;;  %v408_v9 = vsel %vm280_vm14, %v216_v61, %v344_v5  ;;  %v220_v11 = vadd.f32 %v570_v21, %v134_v1  ;;  %v221_v19 = vadd.f32 %v574_v23, %v135_v2  ;;  %v59_v61 = vld [vmem:[%s1067_s0 + $0x168] sm:$0xff]  ;;  %v61_v4 = vld [vmem:[%s1067_s0 + $0x178] sm:$0xff] }
  0x33   :  { %471 = vst [vmem:[%s1068_s3 + $0xe8] sm:$0xff] %v407_v8  ;;  %472 = vst [vmem:[%s1068_s3 + $0xf0] sm:$0xff] %v408_v9  ;;  %v409_v17 = vsel %vm281_vm15, %v217_v63, %v345_v6  ;;  %v410_v18 = vsel %vm282_vm0, %v218_v0, %v346_v7  ;;  %v136_v24 = vmul.f32 %v551_v13, %v50_v3  ;;  %vm283_vm1 = vcmp.gt.f32.partialorder %v219_v10, 0.0  ;;  %v62_v9 = vld [vmem:[%s1067_s0 + $0x180] sm:$0xff] }
  0x34   :  { %473 = vst [vmem:[%s1068_s3 + $0xf8] sm:$0xff] %v409_v17  ;;  %474 = vst [vmem:[%s1068_s3 + $0x100] sm:$0xff] %v410_v18  ;;  %v347_v27 = vmul.f32 0.2, %v219_v10  ;;  %vm284_vm2 = vcmp.gt.f32.partialorder %v220_v11, 0.0  ;;  %vm285_vm3 = vcmp.gt.f32.partialorder %v221_v19, 0.0  ;;  %v137_v31 = vmul.f32 %v555_v15, %v51_v12 }
  0x35   :  { %v348_v28 = vmul.f32 0.2, %v220_v11  ;;  %v349_v29 = vmul.f32 0.2, %v221_v19  ;;  %v222_v30 = vadd.f32 %v553_v14, %v136_v24  ;;  %v138_v36 = vmul.f32 %v568_v20, %v52_v25 }
  0x36   :  { %v411_v34 = vsel %vm283_vm1, %v219_v10, %v347_v27  ;;  %v139_v37 = vmul.f32 %v572_v22, %v53_v26  ;;  %v223_v41 = vadd.f32 %v557_v16, %v137_v31  ;;  %v140_v44 = vmul.f32 %v551_v13, %v54_v32  ;;  %v63_v10 = vld [vmem:[%s1067_s0 + $0x188] sm:$0xff]  ;;  %v66_v31 = vld [vmem:[%s1067_s0 + $0x1a0] sm:$0xff] }
  0x37   :  { %v412_v35 = vsel %vm284_vm2, %v220_v11, %v348_v28  ;;  %475 = vst [vmem:[%s1068_s3 + $0x108] sm:$0xff] %v411_v34  ;;  %v413_v39 = vsel %vm285_vm3, %v221_v19, %v349_v29  ;;  %vm286_vm4 = vcmp.gt.f32.partialorder %v222_v30, 0.0  ;;  %v350_v40 = vmul.f32 0.2, %v222_v30  ;;  %v64_v11 = vld [vmem:[%s1067_s0 + $0x190] sm:$0xff] }
  0x38   :  { %476 = vst [vmem:[%s1068_s3 + $0x110] sm:$0xff] %v412_v35  ;;  %477 = vst [vmem:[%s1068_s3 + $0x118] sm:$0xff] %v413_v39  ;;  %v224_v42 = vadd.f32 %v570_v21, %v138_v36  ;;  %v225_v43 = vadd.f32 %v574_v23, %v139_v37  ;;  %v141_v45 = vmul.f32 %v555_v15, %v55_v33  ;;  %vm287_vm5 = vcmp.gt.f32.partialorder %v223_v41, 0.0 }
  0x39   :  { %v414_v46 = vsel %vm286_vm4, %v222_v30, %v350_v40  ;;  %v351_v47 = vmul.f32 0.2, %v223_v41  ;;  %v142_v48 = vmul.f32 %v568_v20, %v56_v38  ;;  %v226_v54 = vadd.f32 %v553_v14, %v140_v44  ;;  %v65_v30 = vld [vmem:[%s1067_s0 + $0x198] sm:$0xff]  ;;  %v67_v44 = vld [vmem:[%s1067_s0 + $0x1a8] sm:$0xff] }
  0x3a   :  { %478 = vst [vmem:[%s1068_s3 + $0x120] sm:$0xff] %v414_v46  ;;  %vm288_vm6 = vcmp.gt.f32.partialorder %v224_v42, 0.0  ;;  %v352_v51 = vmul.f32 0.2, %v224_v42  ;;  %vm289_vm7 = vcmp.gt.f32.partialorder %v225_v43, 0.0  ;;  %v227_v55 = vadd.f32 %v557_v16, %v141_v45  ;;  %v68_v45 = vld [vmem:[%s1067_s0 + $0x1b0] sm:$0xff] }
  0x3b   :  { %v353_v52 = vmul.f32 0.2, %v225_v43  ;;  %v415_v53 = vsel %vm287_vm5, %v223_v41, %v351_v47  ;;  %v228_v56 = vadd.f32 %v570_v21, %v142_v48  ;;  %v143_v59 = vmul.f32 %v572_v22, %v57_v49 }
  0x3c   :  { %479 = vst [vmem:[%s1068_s3 + $0x128] sm:$0xff] %v415_v53  ;;  %v416_v57 = vsel %vm288_vm6, %v224_v42, %v352_v51  ;;  %v144_v60 = vmul.f32 %v551_v13, %v58_v50  ;;  %vm290_vm8 = vcmp.gt.f32.partialorder %v226_v54, 0.0  ;;  %v354_v63 = vmul.f32 0.2, %v226_v54 }
  0x3d   :  { %v417_v58 = vsel %vm289_vm7, %v225_v43, %v353_v52  ;;  %480 = vst [vmem:[%s1068_s3 + $0x130] sm:$0xff] %v416_v57  ;;  %vm291_vm9 = vcmp.gt.f32.partialorder %v227_v55, 0.0  ;;  %v355_v0 = vmul.f32 0.2, %v227_v55  ;;  %vm292_vm10 = vcmp.gt.f32.partialorder %v228_v56, 0.0  ;;  %v69_v52 = vld [vmem:[%s1067_s0 + $0x1b8] sm:$0xff] }
  0x3e   :  { %481 = vst [vmem:[%s1068_s3 + $0x138] sm:$0xff] %v417_v58  ;;  %v356_v1 = vmul.f32 0.2, %v228_v56  ;;  %v229_v2 = vadd.f32 %v574_v23, %v143_v59  ;;  %v230_v3 = vadd.f32 %v553_v14, %v144_v60  ;;  %v418_v5 = vsel %vm290_vm8, %v226_v54, %v354_v63  ;;  %v70_v57 = vld [vmem:[%s1067_s0 + $0x1c0] sm:$0xff]  ;;  %v71_v58 = vld [vmem:[%s1067_s0 + $0x1c8] sm:$0xff]  ;;  %v72_v59 = vld [vmem:[%s1067_s0 + $0x1d0] sm:$0xff] }
  0x3f   :  { %v419_v6 = vsel %vm291_vm9, %v227_v55, %v355_v0  ;;  %v145_v7 = vmul.f32 %v555_v15, %v59_v61  ;;  %v146_v8 = vmul.f32 %v568_v20, %v60_v62  ;;  %482 = vst [vmem:[%s1068_s3 + $0x140] sm:$0xff] %v418_v5  ;;  %v147_v25 = vmul.f32 %v572_v22, %v61_v4 }
  0x40   :  { %483 = vst [vmem:[%s1068_s3 + $0x148] sm:$0xff] %v419_v6  ;;  %v420_v12 = vsel %vm292_vm10, %v228_v56, %v356_v1  ;;  %vm293_vm11 = vcmp.gt.f32.partialorder %v229_v2, 0.0  ;;  %v357_v17 = vmul.f32 0.2, %v229_v2  ;;  %vm294_vm12 = vcmp.gt.f32.partialorder %v230_v3, 0.0  ;;  %v73_v6 = vld [vmem:[%s1067_s0 + $0x1d8] sm:$0xff] }
  0x41   :  { %484 = vst [vmem:[%s1068_s3 + $0x150] sm:$0xff] %v420_v12  ;;  %v358_v18 = vmul.f32 0.2, %v230_v3  ;;  %v231_v19 = vadd.f32 %v557_v16, %v145_v7  ;;  %v232_v24 = vadd.f32 %v570_v21, %v146_v8  ;;  %v148_v27 = vmul.f32 %v551_v13, %v62_v9  ;;  %v74_v7 = vld [vmem:[%s1067_s0 + $0x1e0] sm:$0xff] }
  0x42   :  { %v421_v26 = vsel %vm293_vm11, %v229_v2, %v357_v17  ;;  %v149_v28 = vmul.f32 %v555_v15, %v63_v10  ;;  %v150_v29 = vmul.f32 %v568_v20, %v64_v11  ;;  %v233_v35 = vadd.f32 %v574_v23, %v147_v25 }
  0x43   :  { %485 = vst [vmem:[%s1068_s3 + $0x158] sm:$0xff] %v421_v26  ;;  %v422_v32 = vsel %vm294_vm12, %v230_v3, %v358_v18  ;;  %vm295_vm13 = vcmp.gt.f32.partialorder %v231_v19, 0.0  ;;  %v359_v33 = vmul.f32 0.2, %v231_v19  ;;  %vm296_vm14 = vcmp.gt.f32.partialorder %v232_v24, 0.0 }
  0x44   :  { %486 = vst [vmem:[%s1068_s3 + $0x160] sm:$0xff] %v422_v32  ;;  %v360_v34 = vmul.f32 0.2, %v232_v24  ;;  %v234_v36 = vadd.f32 %v553_v14, %v148_v27  ;;  %v235_v37 = vadd.f32 %v557_v16, %v149_v28  ;;  %v236_v39 = vadd.f32 %v570_v21, %v150_v29  ;;  %v75_v28 = vld [vmem:[%s1067_s0 + $0x1e8] sm:$0xff]  ;;  %v76_v29 = vld [vmem:[%s1067_s0 + $0x1f0] sm:$0xff] }
  0x45   :  { %v423_v38 = vsel %vm295_vm13, %v231_v19, %v359_v33  ;;  %v151_v40 = vmul.f32 %v572_v22, %v65_v30  ;;  %v152_v41 = vmul.f32 %v551_v13, %v66_v31  ;;  %vm297_vm15 = vcmp.gt.f32.partialorder %v233_v35, 0.0 }
  0x46   :  { %487 = vst [vmem:[%s1068_s3 + $0x168] sm:$0xff] %v423_v38  ;;  %v424_v42 = vsel %vm296_vm14, %v232_v24, %v360_v34  ;;  %v361_v43 = vmul.f32 0.2, %v233_v35  ;;  %vm298_vm0 = vcmp.gt.f32.partialorder %v234_v36, 0.0  ;;  %v362_v46 = vmul.f32 0.2, %v234_v36 }
  0x47   :  { %488 = vst [vmem:[%s1068_s3 + $0x170] sm:$0xff] %v424_v42  ;;  %vm299_vm1 = vcmp.gt.f32.partialorder %v235_v37, 0.0  ;;  %v363_v47 = vmul.f32 0.2, %v235_v37  ;;  %vm300_vm2 = vcmp.gt.f32.partialorder %v236_v39, 0.0  ;;  %v237_v50 = vadd.f32 %v574_v23, %v151_v40 }
  0x48   :  { %v425_v48 = vsel %vm297_vm15, %v233_v35, %v361_v43  ;;  %v364_v49 = vmul.f32 0.2, %v236_v39  ;;  %v238_v51 = vadd.f32 %v553_v14, %v152_v41  ;;  %v426_v53 = vsel %vm298_vm0, %v234_v36, %v362_v46  ;;  %v77_v35 = vld [vmem:[%s1067_s0 + $0x1f8] sm:$0xff] }
  0x49   :  { %489 = vst [vmem:[%s1068_s3 + $0x178] sm:$0xff] %v425_v48  ;;  %v427_v54 = vsel %vm299_vm1, %v235_v37, %v363_v47  ;;  %v153_v55 = vmul.f32 %v555_v15, %v67_v44  ;;  %v154_v56 = vmul.f32 %v568_v20, %v68_v45  ;;  %490 = vst [vmem:[%s1068_s3 + $0x180] sm:$0xff] %v426_v53  ;;  %vm301_vm3 = vcmp.gt.f32.partialorder %v237_v50, 0.0 }
  0x4a   :  { %491 = vst [vmem:[%s1068_s3 + $0x188] sm:$0xff] %v427_v54  ;;  %v428_v60 = vsel %vm300_vm2, %v236_v39, %v364_v49  ;;  %v365_v61 = vmul.f32 0.2, %v237_v50  ;;  %vm302_vm4 = vcmp.gt.f32.partialorder %v238_v51, 0.0  ;;  %v366_v62 = vmul.f32 0.2, %v238_v51 }
  0x4b   :  { %492 = vst [vmem:[%s1068_s3 + $0x190] sm:$0xff] %v428_v60  ;;  %v239_v63 = vadd.f32 %v557_v16, %v153_v55  ;;  %v240_v0 = vadd.f32 %v570_v21, %v154_v56  ;;  %v155_v1 = vmul.f32 %v572_v22, %v69_v52  ;;  %v156_v3 = vmul.f32 %v551_v13, %v70_v57 }
  0x4c   :  { %v429_v2 = vsel %vm301_vm3, %v237_v50, %v365_v61  ;;  %v157_v4 = vmul.f32 %v555_v15, %v71_v58  ;;  %v158_v5 = vmul.f32 %v568_v20, %v72_v59  ;;  %v430_v8 = vsel %vm302_vm4, %v238_v51, %v366_v62 }
  0x4d   :  { %493 = vst [vmem:[%s1068_s3 + $0x198] sm:$0xff] %v429_v2  ;;  %vm303_vm5 = vcmp.gt.f32.partialorder %v239_v63, 0.0  ;;  %v367_v9 = vmul.f32 0.2, %v239_v63  ;;  %vm304_vm6 = vcmp.gt.f32.partialorder %v240_v0, 0.0  ;;  %494 = vst [vmem:[%s1068_s3 + $0x1a0] sm:$0xff] %v430_v8  ;;  %v241_v11 = vadd.f32 %v574_v23, %v155_v1 }
  0x4e   :  { %v368_v10 = vmul.f32 0.2, %v240_v0  ;;  %v242_v12 = vadd.f32 %v553_v14, %v156_v3  ;;  %v243_v17 = vadd.f32 %v557_v16, %v157_v4  ;;  %v244_v19 = vadd.f32 %v570_v21, %v158_v5 }
  0x4f   :  { %v431_v18 = vsel %vm303_vm5, %v239_v63, %v367_v9  ;;  %v159_v24 = vmul.f32 %v572_v22, %v73_v6  ;;  %v160_v25 = vmul.f32 %v551_v13, %v74_v7  ;;  %vm305_vm7 = vcmp.gt.f32.partialorder %v241_v11, 0.0 }
  0x50   :  { %495 = vst [vmem:[%s1068_s3 + $0x1a8] sm:$0xff] %v431_v18  ;;  %v432_v26 = vsel %vm304_vm6, %v240_v0, %v368_v10  ;;  %v369_v27 = vmul.f32 0.2, %v241_v11  ;;  %vm306_vm8 = vcmp.gt.f32.partialorder %v242_v12, 0.0  ;;  %v370_v13 = vmul.f32 0.2, %v242_v12 }
  0x51   :  { %496 = vst [vmem:[%s1068_s3 + $0x1b0] sm:$0xff] %v432_v26  ;;  %vm307_vm9 = vcmp.gt.f32.partialorder %v243_v17, 0.0  ;;  %v371_v30 = vmul.f32 0.2, %v243_v17  ;;  %vm308_vm10 = vcmp.gt.f32.partialorder %v244_v19, 0.0  ;;  %v245_v33 = vadd.f32 %v574_v23, %v159_v24 }
  0x52   :  { %v433_v31 = vsel %vm305_vm7, %v241_v11, %v369_v27  ;;  %v372_v32 = vmul.f32 0.2, %v244_v19  ;;  %v246_v34 = vadd.f32 %v553_v14, %v160_v25  ;;  %v434_v36 = vsel %vm306_vm8, %v242_v12, %v370_v13 }
  0x53   :  { %497 = vst [vmem:[%s1068_s3 + $0x1b8] sm:$0xff] %v433_v31  ;;  %v435_v37 = vsel %vm307_vm9, %v243_v17, %v371_v30  ;;  %v161_v38 = vmul.f32 %v555_v15, %v75_v28  ;;  %v162_v39 = vmul.f32 %v568_v20, %v76_v29  ;;  %498 = vst [vmem:[%s1068_s3 + $0x1c0] sm:$0xff] %v434_v36  ;;  %vm309_vm11 = vcmp.gt.f32.partialorder %v245_v33, 0.0 }
  0x54   :  { %499 = vst [vmem:[%s1068_s3 + $0x1c8] sm:$0xff] %v435_v37  ;;  %v436_v14 = vsel %vm308_vm10, %v244_v19, %v372_v32  ;;  %v373_v40 = vmul.f32 0.2, %v245_v33  ;;  %vm310_vm12 = vcmp.gt.f32.partialorder %v246_v34, 0.0  ;;  %v374_v41 = vmul.f32 0.2, %v246_v34 }
  0x55   :  { %500 = vst [vmem:[%s1068_s3 + $0x1d0] sm:$0xff] %v436_v14  ;;  %v247_v15 = vadd.f32 %v557_v16, %v161_v38  ;;  %v248_v20 = vadd.f32 %v570_v21, %v162_v39  ;;  %v163_v42 = vmul.f32 %v572_v22, %v77_v35 }
  0x56   :  { %v437_v43 = vsel %vm309_vm11, %v245_v33, %v373_v40  ;;  %v438_v44 = vsel %vm310_vm12, %v246_v34, %v374_v41 }
  0x57   :  { %501 = vst [vmem:[%s1068_s3 + $0x1d8] sm:$0xff] %v437_v43  ;;  %vm311_vm13 = vcmp.gt.f32.partialorder %v247_v15, 0.0  ;;  %v375_v45 = vmul.f32 0.2, %v247_v15  ;;  %vm312_vm14 = vcmp.gt.f32.partialorder %v248_v20, 0.0  ;;  %502 = vst [vmem:[%s1068_s3 + $0x1e0] sm:$0xff] %v438_v44  ;;  %v249_v16 = vadd.f32 %v574_v23, %v163_v42 }
  0x58   :  { %v376_v46 = vmul.f32 0.2, %v248_v20 }
  0x59   :  { %v439_v47 = vsel %vm311_vm13, %v247_v15, %v375_v45  ;;  %vm313_vm15 = vcmp.gt.f32.partialorder %v249_v16, 0.0  ;;  %v377_v22 = vmul.f32 0.2, %v249_v16 }
  0x5a   :  { %503 = vst [vmem:[%s1068_s3 + $0x1e8] sm:$0xff] %v439_v47  ;;  %v440_v21 = vsel %vm312_vm14, %v248_v20, %v376_v46 }
  0x5b   :  { %504 = vst [vmem:[%s1068_s3 + $0x1f0] sm:$0xff] %v440_v21  ;;  %v441_v48 = vsel %vm313_vm15, %v249_v16, %v377_v22 }
  0x5c   :  { %505 = vst [vmem:[%s1068_s3 + $0x1f8] sm:$0xff] %v441_v48 }

// kernel: discriminator_forward.14
= control target key start
LH: loop header
LB: loop body
LE: loop exit
PB: predicated region body
PF: predicated region fallthrough
CT: control target
= control target key end

     0   :  { %s3534_s0 = inlined_call_operand.vmem [shape: bf16[128,4096], index: 0, kind: input, shape index: {}]   ;;  %s3535_s1 = inlined_call_operand.vmem [shape: bf16[4096,512], index: 1, kind: input, shape index: {}]   ;;  %s3536_s2 = inlined_call_operand.vmem [shape: f32[1,512], index: 2, kind: input, shape index: {}]   ;;  %s3537_s3 = inlined_call_operand.vmem [shape: f32[128,512], index: 3, kind: output, shape index: {0}]   ;;  %s3538_s4 = inlined_call_operand.vmem [shape: f32[1,1,512], index: 4, kind: output, shape index: {1}]   ;;  %s3539_s5 = inlined_call_operand.vmem [shape: f32[1,1,512], index: 5, kind: output, shape index: {2}]  }
   0x1   :  { %3542 = sst [smem:[#allocation9_spill]] %s3534_s0 }
   0x2   :  { %3543 = sst [smem:[#allocation10_spill]] %s3535_s1 }
   0x3   :  { %s2709_s18 = smov 0   ;;  %s2711_s19 = smov 0  }
   0x4   :  { %s2713_s20 = smov 0   ;;  %s2715_s21 = smov 0  }
   0x5   :  { %s2717_s22 = smov 0   ;;  %s2719_s23 = smov 0  }
   0x6   :  { %s2721_s24 = smov 0   ;;  %s2723_s25 = smov 0  }
   0x7   :  { %s2725_s26 = smov 0   ;;  %s2727_s27 = smov 0  }
   0x8   :  { %s2729_s28 = smov 0  }
   0x9 LB: > { %s2198_s29 = sadd.s32 4294967295, %s2675_s28   ;;  %s28_s30 = sadd.s32 1, %s2667_s26  ;;  %s2675_s28 = sphi %s2729_s28, %s16_s28   ;;  %s2671_s27 = sphi %s2727_s27, %s3564_s27   ;;  %s2667_s26 = sphi %s2725_s26, %s3563_s26   ;;  %s2663_s25 = sphi %s2723_s25, %s3562_s25   ;;  %s2659_s24 = sphi %s2721_s24, %s3561_s24   ;;  %s2655_s23 = sphi %s2719_s23, %s3560_s23   ;;  %s2651_s22 = sphi %s2717_s22, %s3559_s22   ;;  %s2647_s21 = sphi %s2715_s21, %s3558_s21   ;;  %s2643_s20 = sphi %s2713_s20, %s3557_s20   ;;  %s2639_s19 = sphi %s2711_s19, %s3556_s19   ;;  %s2635_s18 = sphi %s2709_s18, %s3555_s18  }
   0xa   : > { %p29_p0 = scmp.ge.s32.totalorder %s28_s30, 8  ;;  %s31_s6 = sadd.s32 1, %s2671_s27 }
   0xb   : > { %s44_s7 = sadd.s32 1, %s2655_s23  ;;  %p51_p1 = scmp.ne.s32.totalorder %s2655_s23, %s2651_s22 }
   0xc   : > { %s3566_s30 = smov (%p29_p0, %s28_s30), 0  ;;  %s3568_s6 = smov (!%p29_p0, %s31_s6), %s2671_s27 }
   0xd   : > { %3544 = sst [smem:[#allocation6_spill]] %s3566_s30  ;;  %s40_s8 = ssub.s32 %s2667_s26, %s3566_s30 }
   0xe   : > { %p52_p2 = scmp.eq.s32.totalorder %s2675_s28, 0  ;;  %p33_p3 = scmp.ge.s32.totalorder %s3568_s6, 2 }
   0xf   : > { %p42_p4 = scmp.eq.s32.totalorder %s40_s8, 0  ;;  %s72_s10 = sadd.s32 1, %s2647_s21 }
  0x10   : > { %p2776_p5 = por %p52_p2, %p51_p1  ;;  %s3570_s6 = smov (%p33_p3, %s3568_s6), 0 }
  0x11   : > { %3546 = sst [smem:[#allocation7_spill]] %s3570_s6  ;;  %s68_s12 = ssub.s32 %s2671_s27, %s3570_s6 }
  0x12   : > { %s2784_s11 = scalar_select %p42_p4, %s2655_s23, %s44_s7  }
  0x13   : > { %p79_p6 = scmp.ne.s32.totalorder %s2647_s21, %s2643_s20  ;;  %s69_s13 = sor.u32 %s68_s12, %s40_s8 }
  0x14   : > { %3547 = sst [smem:[#allocation8_spill]] %s2784_s11  ;;  %p124_p7 = scmp.eq.s32.totalorder %s68_s12, 0 }
  0x15   : > { %p70_p8 = scmp.eq.s32.totalorder %s69_s13, 0  ;;  %p2790_p9 = por %p79_p6, %p52_p2 }
  0x16   : > { %s126_s15 = sadd.s32 1, %s2639_s19  ;;  %p136_p10 = scmp.ne.s32.totalorder %s2639_s19, %s2635_s18 }
  0x17   : > { %s2798_s16 = scalar_select %p70_p8, %s2647_s21, %s72_s10  }
  0x18   : > { %s2801_s17 = scalar_select %p124_p7, %s2639_s19, %s126_s15  }
  0x19   : > { %p137_p11 = scmp.eq.s32.totalorder %s2198_s29, 15  ;;  %p2201_p13 = scmp.ge.s32.totalorder %s2675_s28, 16 }
  0x1b   : > { %p2803_p12 = por %p137_p11, %p136_p10  ;;  %215 = sbr.rel (%p2201_p13) target bundleno = 102 (0x66), region = 16 }
  0x22   : > { %218 = sbr.rel (!%p2776_p5) target bundleno = 60 (0x3c), region = 20  ;;  %s220_s7 = sand.u32 (%p2776_p5), 1, %s2655_s23  }
  0x23   : > { %s2320_s8 = sshll.u32 (%p2776_p5), %s2667_s26, 4  ;;  %s2202_s12 = sshll.u32 (%p2776_p5), %s220_s7, 8 }
  0x24   : > { %s3550_s0 = sld [smem:[#allocation9_spill]] (%p2776_p5)  ;;  %s2820_s29 = scalar_lea.vmem (%p2776_p5), [#allocation3], %s2202_s12 }
  0x2a   : > { %s2815_s15 = scalar_lea.vmem %s3550_s0, %s2320_s8 }
  0x2b   : > { %v241_v0 = vld [vmem:[%s2815_s15] sm:$0xff]  ;;  %v243_v1 = vld [vmem:[%s2815_s15 + $0x8] sm:$0xff] }
  0x2c   : > { %v245_v2 = vld [vmem:[%s2815_s15 + $0x80] sm:$0xff]  ;;  %242 = vst [vmem:[%s2820_s29] sm:$0xff] %v241_v0  ;;  %244 = vst [vmem:[%s2820_s29 + $0x8] sm:$0xff] %v243_v1  ;;  %v247_v3 = vld [vmem:[%s2815_s15 + $0x88] sm:$0xff] }
  0x2d   : > { %246 = vst [vmem:[%s2820_s29 + $0x10] sm:$0xff] %v245_v2  ;;  %v249_v4 = vld [vmem:[%s2815_s15 + $0x100] sm:$0xff]  ;;  %v251_v5 = vld [vmem:[%s2815_s15 + $0x108] sm:$0xff]  ;;  %248 = vst [vmem:[%s2820_s29 + $0x18] sm:$0xff] %v247_v3 }
  0x2e   : > { %250 = vst [vmem:[%s2820_s29 + $0x20] sm:$0xff] %v249_v4  ;;  %252 = vst [vmem:[%s2820_s29 + $0x28] sm:$0xff] %v251_v5  ;;  %v253_v6 = vld [vmem:[%s2815_s15 + $0x180] sm:$0xff]  ;;  %v255_v7 = vld [vmem:[%s2815_s15 + $0x188] sm:$0xff] }
  0x2f   : > { %v257_v8 = vld [vmem:[%s2815_s15 + $0x200] sm:$0xff]  ;;  %254 = vst [vmem:[%s2820_s29 + $0x30] sm:$0xff] %v253_v6  ;;  %256 = vst [vmem:[%s2820_s29 + $0x38] sm:$0xff] %v255_v7  ;;  %v259_v9 = vld [vmem:[%s2815_s15 + $0x208] sm:$0xff] }
  0x30   : > { %258 = vst [vmem:[%s2820_s29 + $0x40] sm:$0xff] %v257_v8  ;;  %v261_v10 = vld [vmem:[%s2815_s15 + $0x280] sm:$0xff]  ;;  %v263_v11 = vld [vmem:[%s2815_s15 + $0x288] sm:$0xff]  ;;  %260 = vst [vmem:[%s2820_s29 + $0x48] sm:$0xff] %v259_v9 }
  0x31   : > { %262 = vst [vmem:[%s2820_s29 + $0x50] sm:$0xff] %v261_v10  ;;  %264 = vst [vmem:[%s2820_s29 + $0x58] sm:$0xff] %v263_v11  ;;  %v265_v12 = vld [vmem:[%s2815_s15 + $0x300] sm:$0xff]  ;;  %v267_v13 = vld [vmem:[%s2815_s15 + $0x308] sm:$0xff] }
  0x32   : > { %v269_v14 = vld [vmem:[%s2815_s15 + $0x380] sm:$0xff]  ;;  %266 = vst [vmem:[%s2820_s29 + $0x60] sm:$0xff] %v265_v12  ;;  %268 = vst [vmem:[%s2820_s29 + $0x68] sm:$0xff] %v267_v13  ;;  %v271_v15 = vld [vmem:[%s2815_s15 + $0x388] sm:$0xff] }
  0x33   : > { %270 = vst [vmem:[%s2820_s29 + $0x70] sm:$0xff] %v269_v14  ;;  %v273_v16 = vld [vmem:[%s2815_s15 + $0x400] sm:$0xff]  ;;  %v275_v17 = vld [vmem:[%s2815_s15 + $0x408] sm:$0xff]  ;;  %272 = vst [vmem:[%s2820_s29 + $0x78] sm:$0xff] %v271_v15 }
  0x34   : > { %274 = vst [vmem:[%s2820_s29 + $0x80] sm:$0xff] %v273_v16  ;;  %276 = vst [vmem:[%s2820_s29 + $0x88] sm:$0xff] %v275_v17  ;;  %v277_v18 = vld [vmem:[%s2815_s15 + $0x480] sm:$0xff]  ;;  %v279_v19 = vld [vmem:[%s2815_s15 + $0x488] sm:$0xff] }
  0x35   : > { %v281_v20 = vld [vmem:[%s2815_s15 + $0x500] sm:$0xff]  ;;  %278 = vst [vmem:[%s2820_s29 + $0x90] sm:$0xff] %v277_v18  ;;  %280 = vst [vmem:[%s2820_s29 + $0x98] sm:$0xff] %v279_v19  ;;  %v283_v21 = vld [vmem:[%s2815_s15 + $0x508] sm:$0xff] }
  0x36   : > { %282 = vst [vmem:[%s2820_s29 + $0xa0] sm:$0xff] %v281_v20  ;;  %v285_v22 = vld [vmem:[%s2815_s15 + $0x580] sm:$0xff]  ;;  %v287_v23 = vld [vmem:[%s2815_s15 + $0x588] sm:$0xff]  ;;  %284 = vst [vmem:[%s2820_s29 + $0xa8] sm:$0xff] %v283_v21 }
  0x37   : > { %286 = vst [vmem:[%s2820_s29 + $0xb0] sm:$0xff] %v285_v22  ;;  %288 = vst [vmem:[%s2820_s29 + $0xb8] sm:$0xff] %v287_v23  ;;  %v289_v24 = vld [vmem:[%s2815_s15 + $0x600] sm:$0xff]  ;;  %v291_v25 = vld [vmem:[%s2815_s15 + $0x608] sm:$0xff] }
  0x38   : > { %v293_v26 = vld [vmem:[%s2815_s15 + $0x680] sm:$0xff]  ;;  %290 = vst [vmem:[%s2820_s29 + $0xc0] sm:$0xff] %v289_v24  ;;  %292 = vst [vmem:[%s2820_s29 + $0xc8] sm:$0xff] %v291_v25  ;;  %v295_v27 = vld [vmem:[%s2815_s15 + $0x688] sm:$0xff] }
  0x39   : > { %294 = vst [vmem:[%s2820_s29 + $0xd0] sm:$0xff] %v293_v26  ;;  %v297_v28 = vld [vmem:[%s2815_s15 + $0x700] sm:$0xff]  ;;  %v299_v29 = vld [vmem:[%s2815_s15 + $0x708] sm:$0xff]  ;;  %296 = vst [vmem:[%s2820_s29 + $0xd8] sm:$0xff] %v295_v27 }
  0x3a   : > { %298 = vst [vmem:[%s2820_s29 + $0xe0] sm:$0xff] %v297_v28  ;;  %300 = vst [vmem:[%s2820_s29 + $0xe8] sm:$0xff] %v299_v29  ;;  %v301_v30 = vld [vmem:[%s2815_s15 + $0x780] sm:$0xff]  ;;  %v303_v31 = vld [vmem:[%s2815_s15 + $0x788] sm:$0xff] }
  0x3b   : > { %302 = vst [vmem:[%s2820_s29 + $0xf0] sm:$0xff] %v301_v30  ;;  %304 = vst [vmem:[%s2820_s29 + $0xf8] sm:$0xff] %v303_v31 }
  0x3c PF: > { %310 = sbr.rel (!%p2790_p9) target bundleno = 102 (0x66), region = 43  ;;  %s312_s9 = sand.u32 (%p2790_p9), 1, %s2647_s21  }
  0x3d   : > { %s2207_s7 = sshll.u32 (%p2790_p9), %s2671_s27, 1  ;;  %s2205_s8 = sshll.u32 (%p2790_p9), %s312_s9, 9 }
  0x3e   : > { %s2321_s12 = sshll.u32 (%p2790_p9), %s2667_s26, 8  ;;  %s3551_s1 = sld [smem:[#allocation10_spill]] (%p2790_p9) }
  0x3f   : > { %s318_s10 = sadd.s32 (%p2790_p9), %s2321_s12, %s2207_s7  ;;  %s2896_s14 = scalar_lea.vmem (%p2790_p9), [#allocation4], %s2205_s8 }
  0x40   : > { %s2209_s13 = sshll.u32 (%p2790_p9), %s318_s10, 2 }
  0x44   : > { %s2891_s11 = scalar_lea.vmem %s3551_s1, %s2209_s13 }
  0x45   : > { %v474_v32 = vld [vmem:[%s2891_s11] sm:$0xff]  ;;  %v476_v33 = vld [vmem:[%s2891_s11 + $0x10] sm:$0xff] }
  0x46   : > { %v478_v34 = vld [vmem:[%s2891_s11 + $0x20] sm:$0xff]  ;;  %475 = vst [vmem:[%s2896_s14] sm:$0xff] %v474_v32  ;;  %477 = vst [vmem:[%s2896_s14 + $0x8] sm:$0xff] %v476_v33  ;;  %v480_v35 = vld [vmem:[%s2891_s11 + $0x30] sm:$0xff] }
  0x47   : > { %479 = vst [vmem:[%s2896_s14 + $0x10] sm:$0xff] %v478_v34  ;;  %v482_v36 = vld [vmem:[%s2891_s11 + $0x40] sm:$0xff]  ;;  %v484_v37 = vld [vmem:[%s2891_s11 + $0x50] sm:$0xff]  ;;  %481 = vst [vmem:[%s2896_s14 + $0x18] sm:$0xff] %v480_v35 }
  0x48   : > { %483 = vst [vmem:[%s2896_s14 + $0x20] sm:$0xff] %v482_v36  ;;  %485 = vst [vmem:[%s2896_s14 + $0x28] sm:$0xff] %v484_v37  ;;  %v486_v38 = vld [vmem:[%s2891_s11 + $0x60] sm:$0xff]  ;;  %v488_v39 = vld [vmem:[%s2891_s11 + $0x70] sm:$0xff] }
  0x49   : > { %v490_v40 = vld [vmem:[%s2891_s11 + $0x80] sm:$0xff]  ;;  %487 = vst [vmem:[%s2896_s14 + $0x30] sm:$0xff] %v486_v38  ;;  %489 = vst [vmem:[%s2896_s14 + $0x38] sm:$0xff] %v488_v39  ;;  %v492_v41 = vld [vmem:[%s2891_s11 + $0x90] sm:$0xff] }
  0x4a   : > { %491 = vst [vmem:[%s2896_s14 + $0x40] sm:$0xff] %v490_v40  ;;  %v494_v42 = vld [vmem:[%s2891_s11 + $0xa0] sm:$0xff]  ;;  %v496_v43 = vld [vmem:[%s2891_s11 + $0xb0] sm:$0xff]  ;;  %493 = vst [vmem:[%s2896_s14 + $0x48] sm:$0xff] %v492_v41 }
  0x4b   : > { %495 = vst [vmem:[%s2896_s14 + $0x50] sm:$0xff] %v494_v42  ;;  %497 = vst [vmem:[%s2896_s14 + $0x58] sm:$0xff] %v496_v43  ;;  %v498_v44 = vld [vmem:[%s2891_s11 + $0xc0] sm:$0xff]  ;;  %v500_v45 = vld [vmem:[%s2891_s11 + $0xd0] sm:$0xff] }
  0x4c   : > { %v502_v46 = vld [vmem:[%s2891_s11 + $0xe0] sm:$0xff]  ;;  %499 = vst [vmem:[%s2896_s14 + $0x60] sm:$0xff] %v498_v44  ;;  %501 = vst [vmem:[%s2896_s14 + $0x68] sm:$0xff] %v500_v45  ;;  %v504_v47 = vld [vmem:[%s2891_s11 + $0xf0] sm:$0xff] }
  0x4d   : > { %503 = vst [vmem:[%s2896_s14 + $0x70] sm:$0xff] %v502_v46  ;;  %v506_v48 = vld [vmem:[%s2891_s11 + $0x100] sm:$0xff]  ;;  %v508_v49 = vld [vmem:[%s2891_s11 + $0x110] sm:$0xff]  ;;  %505 = vst [vmem:[%s2896_s14 + $0x78] sm:$0xff] %v504_v47 }
  0x4e   : > { %507 = vst [vmem:[%s2896_s14 + $0x80] sm:$0xff] %v506_v48  ;;  %509 = vst [vmem:[%s2896_s14 + $0x88] sm:$0xff] %v508_v49  ;;  %v510_v50 = vld [vmem:[%s2891_s11 + $0x120] sm:$0xff]  ;;  %v512_v51 = vld [vmem:[%s2891_s11 + $0x130] sm:$0xff] }
  0x4f   : > { %v514_v52 = vld [vmem:[%s2891_s11 + $0x140] sm:$0xff]  ;;  %511 = vst [vmem:[%s2896_s14 + $0x90] sm:$0xff] %v510_v50  ;;  %513 = vst [vmem:[%s2896_s14 + $0x98] sm:$0xff] %v512_v51  ;;  %v516_v53 = vld [vmem:[%s2891_s11 + $0x150] sm:$0xff] }
  0x50   : > { %515 = vst [vmem:[%s2896_s14 + $0xa0] sm:$0xff] %v514_v52  ;;  %v518_v54 = vld [vmem:[%s2891_s11 + $0x160] sm:$0xff]  ;;  %v520_v55 = vld [vmem:[%s2891_s11 + $0x170] sm:$0xff]  ;;  %517 = vst [vmem:[%s2896_s14 + $0xa8] sm:$0xff] %v516_v53 }
  0x51   : > { %519 = vst [vmem:[%s2896_s14 + $0xb0] sm:$0xff] %v518_v54  ;;  %521 = vst [vmem:[%s2896_s14 + $0xb8] sm:$0xff] %v520_v55  ;;  %v522_v56 = vld [vmem:[%s2891_s11 + $0x180] sm:$0xff]  ;;  %v524_v57 = vld [vmem:[%s2891_s11 + $0x190] sm:$0xff] }
  0x52   : > { %v526_v58 = vld [vmem:[%s2891_s11 + $0x1a0] sm:$0xff]  ;;  %523 = vst [vmem:[%s2896_s14 + $0xc0] sm:$0xff] %v522_v56  ;;  %525 = vst [vmem:[%s2896_s14 + $0xc8] sm:$0xff] %v524_v57  ;;  %v528_v59 = vld [vmem:[%s2891_s11 + $0x1b0] sm:$0xff] }
  0x53   : > { %527 = vst [vmem:[%s2896_s14 + $0xd0] sm:$0xff] %v526_v58  ;;  %v530_v60 = vld [vmem:[%s2891_s11 + $0x1c0] sm:$0xff]  ;;  %v532_v61 = vld [vmem:[%s2891_s11 + $0x1d0] sm:$0xff]  ;;  %529 = vst [vmem:[%s2896_s14 + $0xd8] sm:$0xff] %v528_v59 }
  0x54   : > { %531 = vst [vmem:[%s2896_s14 + $0xe0] sm:$0xff] %v530_v60  ;;  %533 = vst [vmem:[%s2896_s14 + $0xe8] sm:$0xff] %v532_v61  ;;  %v534_v62 = vld [vmem:[%s2891_s11 + $0x1e0] sm:$0xff]  ;;  %v536_v63 = vld [vmem:[%s2891_s11 + $0x1f0] sm:$0xff] }
  0x55   : > { %v538_v0 = vld [vmem:[%s2891_s11 + $0x200] sm:$0xff]  ;;  %535 = vst [vmem:[%s2896_s14 + $0xf0] sm:$0xff] %v534_v62  ;;  %537 = vst [vmem:[%s2896_s14 + $0xf8] sm:$0xff] %v536_v63  ;;  %v540_v1 = vld [vmem:[%s2891_s11 + $0x210] sm:$0xff] }
  0x56   : > { %539 = vst [vmem:[%s2896_s14 + $0x100] sm:$0xff] %v538_v0  ;;  %v542_v2 = vld [vmem:[%s2891_s11 + $0x220] sm:$0xff]  ;;  %v544_v3 = vld [vmem:[%s2891_s11 + $0x230] sm:$0xff]  ;;  %541 = vst [vmem:[%s2896_s14 + $0x108] sm:$0xff] %v540_v1 }
  0x57   : > { %543 = vst [vmem:[%s2896_s14 + $0x110] sm:$0xff] %v542_v2  ;;  %545 = vst [vmem:[%s2896_s14 + $0x118] sm:$0xff] %v544_v3  ;;  %v546_v4 = vld [vmem:[%s2891_s11 + $0x240] sm:$0xff]  ;;  %v548_v5 = vld [vmem:[%s2891_s11 + $0x250] sm:$0xff] }
  0x58   : > { %v550_v6 = vld [vmem:[%s2891_s11 + $0x260] sm:$0xff]  ;;  %547 = vst [vmem:[%s2896_s14 + $0x120] sm:$0xff] %v546_v4  ;;  %549 = vst [vmem:[%s2896_s14 + $0x128] sm:$0xff] %v548_v5  ;;  %v552_v7 = vld [vmem:[%s2891_s11 + $0x270] sm:$0xff] }
  0x59   : > { %551 = vst [vmem:[%s2896_s14 + $0x130] sm:$0xff] %v550_v6  ;;  %v554_v8 = vld [vmem:[%s2891_s11 + $0x280] sm:$0xff]  ;;  %v556_v9 = vld [vmem:[%s2891_s11 + $0x290] sm:$0xff]  ;;  %553 = vst [vmem:[%s2896_s14 + $0x138] sm:$0xff] %v552_v7 }
  0x5a   : > { %555 = vst [vmem:[%s2896_s14 + $0x140] sm:$0xff] %v554_v8  ;;  %557 = vst [vmem:[%s2896_s14 + $0x148] sm:$0xff] %v556_v9  ;;  %v558_v10 = vld [vmem:[%s2891_s11 + $0x2a0] sm:$0xff]  ;;  %v560_v11 = vld [vmem:[%s2891_s11 + $0x2b0] sm:$0xff] }
  0x5b   : > { %v562_v12 = vld [vmem:[%s2891_s11 + $0x2c0] sm:$0xff]  ;;  %559 = vst [vmem:[%s2896_s14 + $0x150] sm:$0xff] %v558_v10  ;;  %561 = vst [vmem:[%s2896_s14 + $0x158] sm:$0xff] %v560_v11  ;;  %v564_v13 = vld [vmem:[%s2891_s11 + $0x2d0] sm:$0xff] }
  0x5c   : > { %563 = vst [vmem:[%s2896_s14 + $0x160] sm:$0xff] %v562_v12  ;;  %v566_v14 = vld [vmem:[%s2891_s11 + $0x2e0] sm:$0xff]  ;;  %v568_v15 = vld [vmem:[%s2891_s11 + $0x2f0] sm:$0xff]  ;;  %565 = vst [vmem:[%s2896_s14 + $0x168] sm:$0xff] %v564_v13 }
  0x5d   : > { %567 = vst [vmem:[%s2896_s14 + $0x170] sm:$0xff] %v566_v14  ;;  %569 = vst [vmem:[%s2896_s14 + $0x178] sm:$0xff] %v568_v15  ;;  %v570_v16 = vld [vmem:[%s2891_s11 + $0x300] sm:$0xff]  ;;  %v572_v17 = vld [vmem:[%s2891_s11 + $0x310] sm:$0xff] }
  0x5e   : > { %v574_v18 = vld [vmem:[%s2891_s11 + $0x320] sm:$0xff]  ;;  %571 = vst [vmem:[%s2896_s14 + $0x180] sm:$0xff] %v570_v16  ;;  %573 = vst [vmem:[%s2896_s14 + $0x188] sm:$0xff] %v572_v17  ;;  %v576_v19 = vld [vmem:[%s2891_s11 + $0x330] sm:$0xff] }
  0x5f   : > { %575 = vst [vmem:[%s2896_s14 + $0x190] sm:$0xff] %v574_v18  ;;  %v578_v20 = vld [vmem:[%s2891_s11 + $0x340] sm:$0xff]  ;;  %v580_v21 = vld [vmem:[%s2891_s11 + $0x350] sm:$0xff]  ;;  %577 = vst [vmem:[%s2896_s14 + $0x198] sm:$0xff] %v576_v19 }
  0x60   : > { %579 = vst [vmem:[%s2896_s14 + $0x1a0] sm:$0xff] %v578_v20  ;;  %581 = vst [vmem:[%s2896_s14 + $0x1a8] sm:$0xff] %v580_v21  ;;  %v582_v22 = vld [vmem:[%s2891_s11 + $0x360] sm:$0xff]  ;;  %v584_v23 = vld [vmem:[%s2891_s11 + $0x370] sm:$0xff] }
  0x61   : > { %v586_v24 = vld [vmem:[%s2891_s11 + $0x380] sm:$0xff]  ;;  %583 = vst [vmem:[%s2896_s14 + $0x1b0] sm:$0xff] %v582_v22  ;;  %585 = vst [vmem:[%s2896_s14 + $0x1b8] sm:$0xff] %v584_v23  ;;  %v588_v25 = vld [vmem:[%s2891_s11 + $0x390] sm:$0xff] }
  0x62   : > { %587 = vst [vmem:[%s2896_s14 + $0x1c0] sm:$0xff] %v586_v24  ;;  %v590_v26 = vld [vmem:[%s2891_s11 + $0x3a0] sm:$0xff]  ;;  %v592_v27 = vld [vmem:[%s2891_s11 + $0x3b0] sm:$0xff]  ;;  %589 = vst [vmem:[%s2896_s14 + $0x1c8] sm:$0xff] %v588_v25 }
  0x63   : > { %591 = vst [vmem:[%s2896_s14 + $0x1d0] sm:$0xff] %v590_v26  ;;  %593 = vst [vmem:[%s2896_s14 + $0x1d8] sm:$0xff] %v592_v27  ;;  %v594_v28 = vld [vmem:[%s2891_s11 + $0x3c0] sm:$0xff]  ;;  %v596_v29 = vld [vmem:[%s2891_s11 + $0x3d0] sm:$0xff] }
  0x64   : > { %v598_v30 = vld [vmem:[%s2891_s11 + $0x3e0] sm:$0xff]  ;;  %595 = vst [vmem:[%s2896_s14 + $0x1e0] sm:$0xff] %v594_v28  ;;  %597 = vst [vmem:[%s2896_s14 + $0x1e8] sm:$0xff] %v596_v29  ;;  %v600_v31 = vld [vmem:[%s2891_s11 + $0x3f0] sm:$0xff] }
  0x65   : > { %599 = vst [vmem:[%s2896_s14 + $0x1f0] sm:$0xff] %v598_v30  ;;  %601 = vst [vmem:[%s2896_s14 + $0x1f8] sm:$0xff] %v600_v31 }
  0x66 PF: > { %p2210_p0 = scmp.ge.s32.totalorder %s2675_s28, 1  ;;  %p614_p1 = scmp.lt.s32.totalorder %s2675_s28, 17 }
  0x68   : > { %p615_p2 = pnand %p2210_p0, %p614_p1 }
  0x69   : > { %s621_s0 = sand.u32 (!%p615_p2), 1, %s2651_s22   ;;  %s628_s6 = sand.u32 (!%p615_p2), 1, %s2643_s20  }
  0x6a   : > { %618 = sbr.rel (%p615_p2) target bundleno = 549 (0x225), region = 85  ;;  %s2211_s15 = sshll.u32 (!%p615_p2), %s621_s0, 8 }
  0x6b   : > { %s2212_s29 = sshll.u32 (!%p615_p2), %s628_s6, 9  ;;  %s655_s9 = sand.u32 (!%p615_p2), 1, %s2635_s18  }
  0x6c   : > { %s2214_s7 = sshll.u32 (!%p615_p2), %s2663_s25, 1  ;;  %s2213_s11 = sshll.u32 (!%p615_p2), %s655_s9, 8 }
  0x6d   : > { %p683_p3 = scmp.lt.s32.totalorder (!%p615_p2), %s2214_s7, 3  ;;  %s3043_s6 = scalar_lea.vmem (!%p615_p2), [#allocation3], %s2211_s15 }
  0x6e   : > { %s3045_s9 = scalar_lea.vmem (!%p615_p2), [#allocation4], %s2212_s29  ;;  %s3047_s1 = scalar_lea.vmem (!%p615_p2), [#allocation5], %s2213_s11 }
  0x6f   : > { %p2217_p4 = scmp.ne.s32.totalorder (!%p615_p2), %s2659_s24, 0 }
  0x71   : > { %s3572_s7 = smov (!%p683_p3, %s2214_s7), 3  ;;  %710 = sbr.rel (%p2217_p4) target bundleno = 131 (0x83), region = 97 }
  0x72   : > { %s685_s10 = scalar_lea.vmem %s3536_s2, %s3572_s7  ;;  %s696_s22 = scalar_lea.vmem %s3538_s4, %s3572_s7  ;;  %v2677_v32 = vmov (!%p2217_p4), 0.0  }
  0x73   : > { %s705_s18 = scalar_lea.vmem %s3539_s5, %s3572_s7  ;;  %711 = vst [vmem:[#allocation2] sm:$0xff] (!%p2217_p4), %v2677_v32  ;;  %712 = vst [vmem:[#allocation2 + $0x8] sm:$0xff] (!%p2217_p4), %v2677_v32 }
  0x74   : > { %713 = vst [vmem:[#allocation2 + $0x10] sm:$0xff] (!%p2217_p4), %v2677_v32  ;;  %714 = vst [vmem:[#allocation2 + $0x18] sm:$0xff] (!%p2217_p4), %v2677_v32 }
  0x75   : > { %715 = vst [vmem:[#allocation2 + $0x20] sm:$0xff] (!%p2217_p4), %v2677_v32  ;;  %716 = vst [vmem:[#allocation2 + $0x28] sm:$0xff] (!%p2217_p4), %v2677_v32 }
  0x76   : > { %717 = vst [vmem:[#allocation2 + $0x30] sm:$0xff] (!%p2217_p4), %v2677_v32  ;;  %718 = vst [vmem:[#allocation2 + $0x38] sm:$0xff] (!%p2217_p4), %v2677_v32 }
  0x77   : > { %719 = vst [vmem:[#allocation2 + $0x40] sm:$0xff] (!%p2217_p4), %v2677_v32  ;;  %720 = vst [vmem:[#allocation2 + $0x48] sm:$0xff] (!%p2217_p4), %v2677_v32 }
  0x78   : > { %721 = vst [vmem:[#allocation2 + $0x50] sm:$0xff] %v2677_v32  ;;  %722 = vst [vmem:[#allocation2 + $0x58] sm:$0xff] %v2677_v32 }
  0x79   : > { %723 = vst [vmem:[#allocation2 + $0x60] sm:$0xff] %v2677_v32  ;;  %724 = vst [vmem:[#allocation2 + $0x68] sm:$0xff] %v2677_v32 }
  0x7a   : > { %725 = vst [vmem:[#allocation2 + $0x70] sm:$0xff] %v2677_v32  ;;  %726 = vst [vmem:[#allocation2 + $0x78] sm:$0xff] %v2677_v32 }
  0x7b   : > { %727 = vst [vmem:[#allocation2 + $0x80] sm:$0xff] %v2677_v32  ;;  %728 = vst [vmem:[#allocation2 + $0x88] sm:$0xff] %v2677_v32 }
  0x7c   : > { %729 = vst [vmem:[#allocation2 + $0x90] sm:$0xff] %v2677_v32  ;;  %730 = vst [vmem:[#allocation2 + $0x98] sm:$0xff] %v2677_v32 }
  0x7d   : > { %731 = vst [vmem:[#allocation2 + $0xa0] sm:$0xff] %v2677_v32  ;;  %732 = vst [vmem:[#allocation2 + $0xa8] sm:$0xff] %v2677_v32 }
  0x7e   : > { %733 = vst [vmem:[#allocation2 + $0xb0] sm:$0xff] %v2677_v32  ;;  %734 = vst [vmem:[#allocation2 + $0xb8] sm:$0xff] %v2677_v32 }
  0x7f   : > { %735 = vst [vmem:[#allocation2 + $0xc0] sm:$0xff] %v2677_v32  ;;  %736 = vst [vmem:[#allocation2 + $0xc8] sm:$0xff] %v2677_v32 }
  0x80   : > { %737 = vst [vmem:[#allocation2 + $0xd0] sm:$0xff] %v2677_v32  ;;  %738 = vst [vmem:[#allocation2 + $0xd8] sm:$0xff] %v2677_v32 }
  0x81   : > { %739 = vst [vmem:[#allocation2 + $0xe0] sm:$0xff] %v2677_v32  ;;  %740 = vst [vmem:[#allocation2 + $0xe8] sm:$0xff] %v2677_v32 }
  0x82   : > { %741 = vst [vmem:[#allocation2 + $0xf0] sm:$0xff] %v2677_v32  ;;  %742 = vst [vmem:[#allocation2 + $0xf8] sm:$0xff] %v2677_v32 }
  0x83 PF: > { %v2445_v33 = vld [vmem:[%s3045_s9 + $0x4] ss:$8 sps:$4 sm:$0xff]   ;;  %v2449_v35 = vld [vmem:[%s3045_s9] ss:$8 sps:$4 sm:$0xff]   ;;  %v2451_v37 = vld [vmem:[%s3045_s9 + $0x14] ss:$8 sps:$4 sm:$0xff]  }
  0x84   : > { %v2447_v34 = vld [vmem:[%s3045_s9 + $0x104] ss:$8 sps:$4 sm:$0xff]   ;;  %1351 = vmatprep.subr.bf16.mxu1 %v2445_v33  ;;  %v2450_v36 = vld [vmem:[%s3045_s9 + $0x100] ss:$8 sps:$4 sm:$0xff]   ;;  %v2453_v38 = vld [vmem:[%s3045_s9 + $0x114] ss:$8 sps:$4 sm:$0xff]  }
  0x85   : > { %1464 = vmatprep.subr.bf16.mxu0 %v2447_v34  ;;  %1352 = vmatpush1.bf16.msra.mxu1 %v2449_v35  ;;  %v2455_v39 = vld [vmem:[%s3045_s9 + $0x10] ss:$8 sps:$4 sm:$0xff]   ;;  %v2457_v41 = vld [vmem:[%s3045_s9 + $0x24] ss:$8 sps:$4 sm:$0xff]   ;;  %v2461_v43 = vld [vmem:[%s3045_s9 + $0x20] ss:$8 sps:$4 sm:$0xff]  }
  0x86   : > { %1465 = vmatpush1.bf16.msra.mxu0 %v2450_v36  ;;  %1353 = vmatprep.subr.bf16.mxu1 %v2451_v37  ;;  %v2456_v40 = vld [vmem:[%s3045_s9 + $0x110] ss:$8 sps:$4 sm:$0xff]   ;;  %v2459_v42 = vld [vmem:[%s3045_s9 + $0x124] ss:$8 sps:$4 sm:$0xff]   ;;  %v2462_v44 = vld [vmem:[%s3045_s9 + $0x120] ss:$8 sps:$4 sm:$0xff]  }
  0x87   : > { %1466 = vmatprep.subr.bf16.mxu0 %v2453_v38  ;;  %v2463_v45 = vld [vmem:[%s3045_s9 + $0x34] ss:$8 sps:$4 sm:$0xff]   ;;  %v2467_v47 = vld [vmem:[%s3045_s9 + $0x30] ss:$8 sps:$4 sm:$0xff]   ;;  %v2469_v49 = vld [vmem:[%s3045_s9 + $0x44] ss:$8 sps:$4 sm:$0xff]  }
  0x88   : > { %v2465_v46 = vld [vmem:[%s3045_s9 + $0x134] ss:$8 sps:$4 sm:$0xff]   ;;  %v2468_v48 = vld [vmem:[%s3045_s9 + $0x130] ss:$8 sps:$4 sm:$0xff]   ;;  %v2471_v50 = vld [vmem:[%s3045_s9 + $0x144] ss:$8 sps:$4 sm:$0xff]  }
  0x89   : > { %1354 = vmatpush1.bf16.msra.mxu1 %v2455_v39  ;;  %v2473_v51 = vld [vmem:[%s3045_s9 + $0x40] ss:$8 sps:$4 sm:$0xff]   ;;  %v2475_v53 = vld [vmem:[%s3045_s9 + $0x54] ss:$8 sps:$4 sm:$0xff]   ;;  %v2479_v55 = vld [vmem:[%s3045_s9 + $0x50] ss:$8 sps:$4 sm:$0xff]  }
  0x8a   : > { %1467 = vmatpush1.bf16.msra.mxu0 %v2456_v40  ;;  %1355 = vmatprep.subr.bf16.mxu1 %v2457_v41  ;;  %v2474_v52 = vld [vmem:[%s3045_s9 + $0x140] ss:$8 sps:$4 sm:$0xff]   ;;  %v2477_v54 = vld [vmem:[%s3045_s9 + $0x154] ss:$8 sps:$4 sm:$0xff]   ;;  %v2480_v56 = vld [vmem:[%s3045_s9 + $0x150] ss:$8 sps:$4 sm:$0xff]  }
  0x8b   : > { %1468 = vmatprep.subr.bf16.mxu0 %v2459_v42  ;;  %v2481_v57 = vld [vmem:[%s3045_s9 + $0x64] ss:$8 sps:$4 sm:$0xff]   ;;  %v2485_v59 = vld [vmem:[%s3045_s9 + $0x60] ss:$8 sps:$4 sm:$0xff]   ;;  %v2487_v61 = vld [vmem:[%s3045_s9 + $0x74] ss:$8 sps:$4 sm:$0xff]  }
  0x8c   : > { %v2483_v58 = vld [vmem:[%s3045_s9 + $0x164] ss:$8 sps:$4 sm:$0xff]   ;;  %v2486_v60 = vld [vmem:[%s3045_s9 + $0x160] ss:$8 sps:$4 sm:$0xff]   ;;  %v2489_v62 = vld [vmem:[%s3045_s9 + $0x174] ss:$8 sps:$4 sm:$0xff]  }
  0x8d   : > { %1356 = vmatpush1.bf16.msra.mxu1 %v2461_v43  ;;  %v2491_v63 = vld [vmem:[%s3045_s9 + $0x70] ss:$8 sps:$4 sm:$0xff]   ;;  %v2493_v1 = vld [vmem:[%s3045_s9 + $0x84] ss:$8 sps:$4 sm:$0xff]   ;;  %v2497_v3 = vld [vmem:[%s3045_s9 + $0x80] ss:$8 sps:$4 sm:$0xff]  }
  0x8e   : > { %1469 = vmatpush1.bf16.msra.mxu0 %v2462_v44  ;;  %1357 = vmatprep.subr.bf16.mxu1 %v2463_v45  ;;  %v2492_v0 = vld [vmem:[%s3045_s9 + $0x170] ss:$8 sps:$4 sm:$0xff]   ;;  %v2495_v2 = vld [vmem:[%s3045_s9 + $0x184] ss:$8 sps:$4 sm:$0xff]   ;;  %v2498_v4 = vld [vmem:[%s3045_s9 + $0x180] ss:$8 sps:$4 sm:$0xff]  }
  0x8f   : > { %1470 = vmatprep.subr.bf16.mxu0 %v2465_v46  ;;  %v2499_v5 = vld [vmem:[%s3045_s9 + $0x94] ss:$8 sps:$4 sm:$0xff]   ;;  %v2503_v7 = vld [vmem:[%s3045_s9 + $0x90] ss:$8 sps:$4 sm:$0xff]   ;;  %v2505_v9 = vld [vmem:[%s3045_s9 + $0xa4] ss:$8 sps:$4 sm:$0xff]  }
  0x90   : > { %v2501_v6 = vld [vmem:[%s3045_s9 + $0x194] ss:$8 sps:$4 sm:$0xff]   ;;  %v2504_v8 = vld [vmem:[%s3045_s9 + $0x190] ss:$8 sps:$4 sm:$0xff]   ;;  %v2507_v10 = vld [vmem:[%s3045_s9 + $0x1a4] ss:$8 sps:$4 sm:$0xff]  }
  0x91   : > { %1358 = vmatpush1.bf16.msra.mxu1 %v2467_v47  ;;  %v2509_v11 = vld [vmem:[%s3045_s9 + $0xa0] ss:$8 sps:$4 sm:$0xff]   ;;  %v2511_v13 = vld [vmem:[%s3045_s9 + $0xb4] ss:$8 sps:$4 sm:$0xff]   ;;  %v2515_v15 = vld [vmem:[%s3045_s9 + $0xb0] ss:$8 sps:$4 sm:$0xff]  }
  0x92   : > { %1471 = vmatpush1.bf16.msra.mxu0 %v2468_v48  ;;  %1359 = vmatprep.subr.bf16.mxu1 %v2469_v49  ;;  %v2510_v12 = vld [vmem:[%s3045_s9 + $0x1a0] ss:$8 sps:$4 sm:$0xff]   ;;  %v2513_v14 = vld [vmem:[%s3045_s9 + $0x1b4] ss:$8 sps:$4 sm:$0xff]   ;;  %v2516_v16 = vld [vmem:[%s3045_s9 + $0x1b0] ss:$8 sps:$4 sm:$0xff]  }
  0x93   : > { %1472 = vmatprep.subr.bf16.mxu0 %v2471_v50  ;;  %v2517_v17 = vld [vmem:[%s3045_s9 + $0xc4] ss:$8 sps:$4 sm:$0xff]   ;;  %v2521_v21 = vld [vmem:[%s3045_s9 + $0xc0] ss:$8 sps:$4 sm:$0xff]   ;;  %v2523_v23 = vld [vmem:[%s3045_s9 + $0xd4] ss:$8 sps:$4 sm:$0xff]  }
  0x94   : > { %v2543_v18 = vld [vmem:[%s3043_s6 + $0x4] ss:$16 sps:$4 sm:$0xff]   ;;  %v2546_v20 = vld [vmem:[%s3043_s6 + $0xc] ss:$16 sps:$4 sm:$0xff]   ;;  %v2522_v22 = vld [vmem:[%s3045_s9 + $0x1c0] ss:$8 sps:$4 sm:$0xff]  }
  0x95   : > { %1360 = vmatpush1.bf16.msra.mxu1 %v2473_v51  ;;  %v2519_v19 = vld [vmem:[%s3045_s9 + $0x1c4] ss:$8 sps:$4 sm:$0xff]   ;;  %1383 = vmatprep.mubr.bf16.mxu1 %v2543_v18  ;;  %v2525_v24 = vld [vmem:[%s3045_s9 + $0x1d4] ss:$8 sps:$4 sm:$0xff]   ;;  %v2527_v25 = vld [vmem:[%s3045_s9 + $0xd0] ss:$8 sps:$4 sm:$0xff]  }
  0x96   : > { %1473 = vmatpush1.bf16.msra.mxu0 %v2474_v52  ;;  %1361 = vmatprep.subr.bf16.mxu1 %v2475_v53  ;;  %v2528_v26 = vld [vmem:[%s3045_s9 + $0x1d0] ss:$8 sps:$4 sm:$0xff]   ;;  %v2529_v27 = vld [vmem:[%s3045_s9 + $0xe4] ss:$8 sps:$4 sm:$0xff]   ;;  %v2533_v29 = vld [vmem:[%s3045_s9 + $0xe0] ss:$8 sps:$4 sm:$0xff]  }
  0x97   : > { %1474 = vmatprep.subr.bf16.mxu0 %v2477_v54  ;;  %1496 = vmatprep.mubr.bf16.mxu0 %v2546_v20  ;;  %v2531_v28 = vld [vmem:[%s3045_s9 + $0x1e4] ss:$8 sps:$4 sm:$0xff]   ;;  %v2534_v30 = vld [vmem:[%s3045_s9 + $0x1e0] ss:$8 sps:$4 sm:$0xff]   ;;  %v2535_v31 = vld [vmem:[%s3045_s9 + $0xf4] ss:$8 sps:$4 sm:$0xff]  }
  0x98   : > { %v2537_v32 = vld [vmem:[%s3045_s9 + $0x1f4] ss:$8 sps:$4 sm:$0xff]   ;;  %v2539_v33 = vld [vmem:[%s3045_s9 + $0xf0] ss:$8 sps:$4 sm:$0xff]   ;;  %p2314_p5 = scmp.ne.s32.totalorder %s2659_s24, 7 }
  0x99   : > { %1362 = vmatpush1.bf16.msra.mxu1 %v2479_v55  ;;  %v2540_v34 = vld [vmem:[%s3045_s9 + $0x1f0] ss:$8 sps:$4 sm:$0xff]   ;;  %v2547_v37 = vld [vmem:[%s3043_s6 + $0x24] ss:$16 sps:$4 sm:$0xff]   ;;  %v2549_v38 = vld [vmem:[%s3043_s6 + $0x2c] ss:$16 sps:$4 sm:$0xff]  }
  0x9a   : > { %1475 = vmatpush1.bf16.msra.mxu0 %v2480_v56  ;;  %1363 = vmatprep.subr.bf16.mxu1 %v2481_v57  ;;  %v2541_v35 = vld [vmem:[%s3043_s6] ss:$16 sps:$4 sm:$0xff]   ;;  %v2544_v36 = vld [vmem:[%s3043_s6 + $0x8] ss:$16 sps:$4 sm:$0xff]   ;;  %v2553_v41 = vld [vmem:[%s3043_s6 + $0x44] ss:$16 sps:$4 sm:$0xff]  }
  0x9b   : > { %1476 = vmatprep.subr.bf16.mxu0 %v2483_v58  ;;  %v2551_v39 = vld [vmem:[%s3043_s6 + $0x20] ss:$16 sps:$4 sm:$0xff]   ;;  %v2552_v40 = vld [vmem:[%s3043_s6 + $0x28] ss:$16 sps:$4 sm:$0xff]   ;;  %v2555_v42 = vld [vmem:[%s3043_s6 + $0x4c] ss:$16 sps:$4 sm:$0xff]  }
  0x9c   : > { %v2557_v43 = vld [vmem:[%s3043_s6 + $0x40] ss:$16 sps:$4 sm:$0xff]   ;;  %v2558_v44 = vld [vmem:[%s3043_s6 + $0x48] ss:$16 sps:$4 sm:$0xff]   ;;  %v2559_v45 = vld [vmem:[%s3043_s6 + $0x64] ss:$16 sps:$4 sm:$0xff]  }
  0x9d   : > { %1364 = vmatpush1.bf16.msra.mxu1 %v2485_v59  ;;  %v2561_v46 = vld [vmem:[%s3043_s6 + $0x6c] ss:$16 sps:$4 sm:$0xff]   ;;  %v2563_v47 = vld [vmem:[%s3043_s6 + $0x60] ss:$16 sps:$4 sm:$0xff]   ;;  %v2564_v48 = vld [vmem:[%s3043_s6 + $0x68] ss:$16 sps:$4 sm:$0xff]  }
  0x9e   : > { %1477 = vmatpush1.bf16.msra.mxu0 %v2486_v60  ;;  %1365 = vmatprep.subr.bf16.mxu1 %v2487_v61  ;;  %v2565_v49 = vld [vmem:[%s3043_s6 + $0x84] ss:$16 sps:$4 sm:$0xff]   ;;  %v2567_v50 = vld [vmem:[%s3043_s6 + $0x8c] ss:$16 sps:$4 sm:$0xff]   ;;  %v2569_v51 = vld [vmem:[%s3043_s6 + $0x80] ss:$16 sps:$4 sm:$0xff]  }
  0x9f   : > { %1478 = vmatprep.subr.bf16.mxu0 %v2489_v62  ;;  %v2570_v52 = vld [vmem:[%s3043_s6 + $0x88] ss:$16 sps:$4 sm:$0xff]   ;;  %v2571_v53 = vld [vmem:[%s3043_s6 + $0xa4] ss:$16 sps:$4 sm:$0xff]   ;;  %v2573_v54 = vld [vmem:[%s3043_s6 + $0xac] ss:$16 sps:$4 sm:$0xff]  }
  0xa0   : > { %v2575_v55 = vld [vmem:[%s3043_s6 + $0xa0] ss:$16 sps:$4 sm:$0xff]   ;;  %v2576_v56 = vld [vmem:[%s3043_s6 + $0xa8] ss:$16 sps:$4 sm:$0xff]   ;;  %v2577_v57 = vld [vmem:[%s3043_s6 + $0xc4] ss:$16 sps:$4 sm:$0xff]  }
  0xa1   : > { %1366 = vmatpush1.bf16.msra.mxu1 %v2491_v63  ;;  %v2579_v58 = vld [vmem:[%s3043_s6 + $0xcc] ss:$16 sps:$4 sm:$0xff]   ;;  %v2581_v59 = vld [vmem:[%s3043_s6 + $0xc0] ss:$16 sps:$4 sm:$0xff]   ;;  %v2582_v60 = vld [vmem:[%s3043_s6 + $0xc8] ss:$16 sps:$4 sm:$0xff]  }
  0xa2   : > { %1479 = vmatpush1.bf16.msra.mxu0 %v2492_v0  ;;  %1367 = vmatprep.subr.bf16.mxu1 %v2493_v1  ;;  %v2583_v61 = vld [vmem:[%s3043_s6 + $0xe4] ss:$16 sps:$4 sm:$0xff]   ;;  %v2585_v62 = vld [vmem:[%s3043_s6 + $0xec] ss:$16 sps:$4 sm:$0xff]   ;;  %v2587_v63 = vld [vmem:[%s3043_s6 + $0xe0] ss:$16 sps:$4 sm:$0xff]  }
  0xa3   : > { %1480 = vmatprep.subr.bf16.mxu0 %v2495_v2  ;;  %v2588_v0 = vld [vmem:[%s3043_s6 + $0xe8] ss:$16 sps:$4 sm:$0xff]   ;;  %v743_v2 = vld [vmem:[#allocation2] sm:$0xff] }
  0xa5   : > { %1368 = vmatpush1.bf16.msra.mxu1 %v2497_v3 }
  0xa6   : > { %1481 = vmatpush1.bf16.msra.mxu0 %v2498_v4  ;;  %1369 = vmatprep.subr.bf16.mxu1 %v2499_v5 }
  0xa7   : > { %1482 = vmatprep.subr.bf16.mxu0 %v2501_v6  ;;  %v744_v6 = vld [vmem:[#allocation2 + $0x8] sm:$0xff] }
  0xa9   : > { %1370 = vmatpush1.bf16.msra.mxu1 %v2503_v7 }
  0xaa   : > { %1483 = vmatpush1.bf16.msra.mxu0 %v2504_v8  ;;  %1371 = vmatprep.subr.bf16.mxu1 %v2505_v9 }
  0xab   : > { %1484 = vmatprep.subr.bf16.mxu0 %v2507_v10  ;;  %v745_v10 = vld [vmem:[#allocation2 + $0x10] sm:$0xff] }
  0xad   : > { %1372 = vmatpush1.bf16.msra.mxu1 %v2509_v11 }
  0xae   : > { %1485 = vmatpush1.bf16.msra.mxu0 %v2510_v12  ;;  %1373 = vmatprep.subr.bf16.mxu1 %v2511_v13 }
  0xaf   : > { %1486 = vmatprep.subr.bf16.mxu0 %v2513_v14 }
  0xb1   : > { %1374 = vmatpush1.bf16.msra.mxu1 %v2515_v15  ;;  %v746_v15 = vld [vmem:[#allocation2 + $0x18] sm:$0xff] }
  0xb2   : > { %1487 = vmatpush1.bf16.msra.mxu0 %v2516_v16  ;;  %1375 = vmatprep.subr.bf16.mxu1 %v2517_v17 }
  0xb3   : > { %1488 = vmatprep.subr.bf16.mxu0 %v2519_v19 }
  0xb5   : > { %1376 = vmatpush1.bf16.msra.mxu1 %v2521_v21 }
  0xb6   : > { %1489 = vmatpush1.bf16.msra.mxu0 %v2522_v22  ;;  %1377 = vmatprep.subr.bf16.mxu1 %v2523_v23  ;;  %v747_v22 = vld [vmem:[#allocation2 + $0x20] sm:$0xff] }
  0xb7   : > { %1490 = vmatprep.subr.bf16.mxu0 %v2525_v24 }
  0xb9   : > { %1378 = vmatpush1.bf16.msra.mxu1 %v2527_v25 }
  0xba   : > { %1491 = vmatpush1.bf16.msra.mxu0 %v2528_v26  ;;  %1379 = vmatprep.subr.bf16.mxu1 %v2529_v27  ;;  %v748_v26 = vld [vmem:[#allocation2 + $0x28] sm:$0xff] }
  0xbb   : > { %1492 = vmatprep.subr.bf16.mxu0 %v2531_v28 }
  0xbd   : > { %1380 = vmatpush1.bf16.msra.mxu1 %v2533_v29 }
  0xbe   : > { %1493 = vmatpush1.bf16.msra.mxu0 %v2534_v30  ;;  %1381 = vmatprep.subr.bf16.mxu1 %v2535_v31  ;;  %v749_v30 = vld [vmem:[#allocation2 + $0x30] sm:$0xff] }
  0xbf   : > { %1494 = vmatprep.subr.bf16.mxu0 %v2537_v32 }
  0xc1   : > { %1382 = vmatpush1.bf16.msra.mxu1 %v2539_v33 }
  0xc2   : > { %1495 = vmatpush1.bf16.msra.mxu0 %v2540_v34 }
  0xc4   : > { %1384 = vmatmul.mubr.bf16.vlgmr.msra.gmra.mrb[0].mxu1 %v2541_v35  ;;  %v750_v35 = vld [vmem:[#allocation2 + $0x38] sm:$0xff] }
  0xc5   : > { %1497 = vmatmul.mubr.bf16.vlgmr.msra.gmra.mrb[0].mxu0 %v2544_v36  ;;  %1393 = vmatprep.mubr.bf16.mxu1 %v2547_v37 }
  0xc6   : > { %1506 = vmatprep.mubr.bf16.mxu0 %v2549_v38 }
  0xcc   : > { %1394 = vmatmul.mubr.bf16.gmra.mrb[4].mxu1 %v2551_v39 }
  0xcd   : > { %1507 = vmatmul.mubr.bf16.gmra.mrb[4].mxu0 %v2552_v40  ;;  %1403 = vmatprep.mubr.bf16.mxu1 %v2553_v41 }
  0xce   : > { %1516 = vmatprep.mubr.bf16.mxu0 %v2555_v42  ;;  %v751_v42 = vld [vmem:[#allocation2 + $0x40] sm:$0xff] }
  0xd4   : > { %1404 = vmatmul.mubr.bf16.gmra.mrb[8].mxu1 %v2557_v43 }
  0xd5   : > { %1517 = vmatmul.mubr.bf16.gmra.mrb[8].mxu0 %v2558_v44  ;;  %1413 = vmatprep.mubr.bf16.mxu1 %v2559_v45 }
  0xd6   : > { %1526 = vmatprep.mubr.bf16.mxu0 %v2561_v46  ;;  %v752_v46 = vld [vmem:[#allocation2 + $0x48] sm:$0xff] }
  0xdc   : > { %1414 = vmatmul.mubr.bf16.gmra.mrb[12].mxu1 %v2563_v47 }
  0xdd   : > { %1527 = vmatmul.mubr.bf16.gmra.mrb[12].mxu0 %v2564_v48  ;;  %1423 = vmatprep.mubr.bf16.mxu1 %v2565_v49 }
  0xde   : > { %1536 = vmatprep.mubr.bf16.mxu0 %v2567_v50  ;;  %v753_v50 = vld [vmem:[#allocation2 + $0x50] sm:$0xff] }
  0xe4   : > { %1424 = vmatmul.mubr.bf16.gmra.mrb[16].mxu1 %v2569_v51 }
  0xe5   : > { %1537 = vmatmul.mubr.bf16.gmra.mrb[16].mxu0 %v2570_v52  ;;  %1433 = vmatprep.mubr.bf16.mxu1 %v2571_v53 }
  0xe6   : > { %1546 = vmatprep.mubr.bf16.mxu0 %v2573_v54 }
  0xec   : > { %1434 = vmatmul.mubr.bf16.gmra.mrb[20].mxu1 %v2575_v55  ;;  %v754_v55 = vld [vmem:[#allocation2 + $0x58] sm:$0xff] }
  0xed   : > { %1547 = vmatmul.mubr.bf16.gmra.mrb[20].mxu0 %v2576_v56  ;;  %1443 = vmatprep.mubr.bf16.mxu1 %v2577_v57 }
  0xee   : > { %1556 = vmatprep.mubr.bf16.mxu0 %v2579_v58 }
  0xf4   : > { %1444 = vmatmul.mubr.bf16.gmra.mrb[24].mxu1 %v2581_v59 }
  0xf5   : > { %1557 = vmatmul.mubr.bf16.gmra.mrb[24].mxu0 %v2582_v60  ;;  %1453 = vmatprep.mubr.bf16.mxu1 %v2583_v61 }
  0xf6   : > { %1566 = vmatprep.mubr.bf16.mxu0 %v2585_v62  ;;  %v755_v62 = vld [vmem:[#allocation2 + $0x60] sm:$0xff] }
  0xfc   : > { %1454 = vmatmul.mubr.bf16.gmra.mrb[28].mxu1 %v2587_v63 }
  0xfd   : > { %1567 = vmatmul.mubr.bf16.gmra.mrb[28].mxu0 %v2588_v0 }
 0x197   : > { %v1385_v1 = vpop.f32.mrb[0].mxu1 }
 0x198   : > { %v1498_v3 = vpop.f32.mrb[0].mxu0  ;;  %v1387_v5 = vpop.f32.mrb[1].mxu1 }
 0x199   : > { %v1499_v4 = vadd.f32 %v1498_v3, %v1385_v1  ;;  %v1500_v7 = vpop.f32.mrb[1].mxu0  ;;  %v1389_v9 = vpop.f32.mrb[2].mxu1 }
 0x19a   : > { %v1501_v8 = vadd.f32 %v1500_v7, %v1387_v5  ;;  %v1502_v11 = vpop.f32.mrb[2].mxu0  ;;  %v1391_v14 = vpop.f32.mrb[3].mxu1 }
 0x19b   : > { %v1577_v12 = vadd.f32 %v1499_v4, %v743_v2  ;;  %v1503_v13 = vadd.f32 %v1502_v11, %v1389_v9  ;;  %v1504_v16 = vpop.f32.mrb[3].mxu0  ;;  %v756_v2 = vld [vmem:[#allocation2 + $0x68] sm:$0xff]  ;;  %v758_v11 = vld [vmem:[#allocation2 + $0x78] sm:$0xff] }
 0x19c   : > { %v1578_v17 = vadd.f32 %v1501_v8, %v744_v6  ;;  %v1505_v18 = vadd.f32 %v1504_v16, %v1391_v14  ;;  %v757_v6 = vld [vmem:[#allocation2 + $0x70] sm:$0xff] }
 0x19d   : > { %1609 = vst [vmem:[#allocation2] sm:$0xff] %v1577_v12  ;;  %v1579_v19 = vadd.f32 %v1503_v13, %v745_v10 }
 0x19e   : > { %1610 = vst [vmem:[#allocation2 + $0x8] sm:$0xff] %v1578_v17  ;;  %v1580_v20 = vadd.f32 %v1505_v18, %v746_v15  ;;  %v759_v18 = vld [vmem:[#allocation2 + $0x80] sm:$0xff] }
 0x19f   : > { %1611 = vst [vmem:[#allocation2 + $0x10] sm:$0xff] %v1579_v19  ;;  %v1395_v21 = vpop.f32.mrb[4].mxu1 }
 0x1a0   : > { %1612 = vst [vmem:[#allocation2 + $0x18] sm:$0xff] %v1580_v20  ;;  %v1508_v23 = vpop.f32.mrb[4].mxu0  ;;  %v1397_v25 = vpop.f32.mrb[5].mxu1 }
 0x1a1   : > { %v1509_v24 = vadd.f32 %v1508_v23, %v1395_v21  ;;  %v1510_v27 = vpop.f32.mrb[5].mxu0  ;;  %v1399_v29 = vpop.f32.mrb[6].mxu1 }
 0x1a2   : > { %v1511_v28 = vadd.f32 %v1510_v27, %v1397_v25  ;;  %v1512_v31 = vpop.f32.mrb[6].mxu0  ;;  %v1401_v34 = vpop.f32.mrb[7].mxu1 }
 0x1a3   : > { %v1581_v32 = vadd.f32 %v1509_v24, %v747_v22  ;;  %v1513_v33 = vadd.f32 %v1512_v31, %v1399_v29  ;;  %v1514_v36 = vpop.f32.mrb[7].mxu0  ;;  %v760_v22 = vld [vmem:[#allocation2 + $0x88] sm:$0xff]  ;;  %v762_v31 = vld [vmem:[#allocation2 + $0x98] sm:$0xff] }
 0x1a4   : > { %v1582_v37 = vadd.f32 %v1511_v28, %v748_v26  ;;  %v1515_v38 = vadd.f32 %v1514_v36, %v1401_v34  ;;  %v761_v26 = vld [vmem:[#allocation2 + $0x90] sm:$0xff] }
 0x1a5   : > { %1613 = vst [vmem:[#allocation2 + $0x20] sm:$0xff] %v1581_v32  ;;  %v1583_v39 = vadd.f32 %v1513_v33, %v749_v30 }
 0x1a6   : > { %1614 = vst [vmem:[#allocation2 + $0x28] sm:$0xff] %v1582_v37  ;;  %v1584_v40 = vadd.f32 %v1515_v38, %v750_v35  ;;  %v763_v38 = vld [vmem:[#allocation2 + $0xa0] sm:$0xff] }
 0x1a7   : > { %1615 = vst [vmem:[#allocation2 + $0x30] sm:$0xff] %v1583_v39  ;;  %v1405_v41 = vpop.f32.mrb[8].mxu1 }
 0x1a8   : > { %1616 = vst [vmem:[#allocation2 + $0x38] sm:$0xff] %v1584_v40  ;;  %v1518_v43 = vpop.f32.mrb[8].mxu0  ;;  %v1407_v45 = vpop.f32.mrb[9].mxu1 }
 0x1a9   : > { %v1519_v44 = vadd.f32 %v1518_v43, %v1405_v41  ;;  %v1520_v47 = vpop.f32.mrb[9].mxu0  ;;  %v1409_v49 = vpop.f32.mrb[10].mxu1 }
 0x1aa   : > { %v1521_v48 = vadd.f32 %v1520_v47, %v1407_v45  ;;  %v1522_v51 = vpop.f32.mrb[10].mxu0  ;;  %v1411_v54 = vpop.f32.mrb[11].mxu1 }
 0x1ab   : > { %v1585_v52 = vadd.f32 %v1519_v44, %v751_v42  ;;  %v1523_v53 = vadd.f32 %v1522_v51, %v1409_v49  ;;  %v1524_v56 = vpop.f32.mrb[11].mxu0  ;;  %v764_v42 = vld [vmem:[#allocation2 + $0xa8] sm:$0xff]  ;;  %v766_v51 = vld [vmem:[#allocation2 + $0xb8] sm:$0xff] }
 0x1ac   : > { %v1586_v57 = vadd.f32 %v1521_v48, %v752_v46  ;;  %v1525_v58 = vadd.f32 %v1524_v56, %v1411_v54  ;;  %v765_v46 = vld [vmem:[#allocation2 + $0xb0] sm:$0xff] }
 0x1ad   : > { %1617 = vst [vmem:[#allocation2 + $0x40] sm:$0xff] %v1585_v52  ;;  %v1587_v59 = vadd.f32 %v1523_v53, %v753_v50 }
 0x1ae   : > { %1618 = vst [vmem:[#allocation2 + $0x48] sm:$0xff] %v1586_v57  ;;  %v1588_v60 = vadd.f32 %v1525_v58, %v754_v55  ;;  %v767_v58 = vld [vmem:[#allocation2 + $0xc0] sm:$0xff] }
 0x1af   : > { %1619 = vst [vmem:[#allocation2 + $0x50] sm:$0xff] %v1587_v59  ;;  %v1415_v61 = vpop.f32.mrb[12].mxu1 }
 0x1b0   : > { %1620 = vst [vmem:[#allocation2 + $0x58] sm:$0xff] %v1588_v60  ;;  %v1528_v63 = vpop.f32.mrb[12].mxu0  ;;  %v1417_v1 = vpop.f32.mrb[13].mxu1 }
 0x1b1   : > { %v1529_v0 = vadd.f32 %v1528_v63, %v1415_v61  ;;  %v1530_v3 = vpop.f32.mrb[13].mxu0  ;;  %v1419_v5 = vpop.f32.mrb[14].mxu1 }
 0x1b2   : > { %v1531_v4 = vadd.f32 %v1530_v3, %v1417_v1  ;;  %v1532_v7 = vpop.f32.mrb[14].mxu0  ;;  %v1421_v10 = vpop.f32.mrb[15].mxu1 }
 0x1b3   : > { %v1589_v8 = vadd.f32 %v1529_v0, %v755_v62  ;;  %v1533_v9 = vadd.f32 %v1532_v7, %v1419_v5  ;;  %v1534_v12 = vpop.f32.mrb[15].mxu0  ;;  %v768_v62 = vld [vmem:[#allocation2 + $0xc8] sm:$0xff]  ;;  %v770_v7 = vld [vmem:[#allocation2 + $0xd8] sm:$0xff] }
 0x1b4   : > { %v1590_v13 = vadd.f32 %v1531_v4, %v756_v2  ;;  %v1535_v14 = vadd.f32 %v1534_v12, %v1421_v10  ;;  %v769_v2 = vld [vmem:[#allocation2 + $0xd0] sm:$0xff] }
 0x1b5   : > { %1621 = vst [vmem:[#allocation2 + $0x60] sm:$0xff] %v1589_v8  ;;  %v1591_v15 = vadd.f32 %v1533_v9, %v757_v6 }
 0x1b6   : > { %1622 = vst [vmem:[#allocation2 + $0x68] sm:$0xff] %v1590_v13  ;;  %v1592_v16 = vadd.f32 %v1535_v14, %v758_v11  ;;  %v771_v14 = vld [vmem:[#allocation2 + $0xe0] sm:$0xff] }
 0x1b7   : > { %1623 = vst [vmem:[#allocation2 + $0x70] sm:$0xff] %v1591_v15  ;;  %v1425_v17 = vpop.f32.mrb[16].mxu1 }
 0x1b8   : > { %1624 = vst [vmem:[#allocation2 + $0x78] sm:$0xff] %v1592_v16  ;;  %v1538_v19 = vpop.f32.mrb[16].mxu0  ;;  %v1427_v21 = vpop.f32.mrb[17].mxu1 }
 0x1b9   : > { %v1539_v20 = vadd.f32 %v1538_v19, %v1425_v17  ;;  %v1540_v23 = vpop.f32.mrb[17].mxu0  ;;  %v1429_v25 = vpop.f32.mrb[18].mxu1 }
 0x1ba   : > { %v1541_v24 = vadd.f32 %v1540_v23, %v1427_v21  ;;  %v1542_v27 = vpop.f32.mrb[18].mxu0  ;;  %v1431_v30 = vpop.f32.mrb[19].mxu1 }
 0x1bb   : > { %v1593_v28 = vadd.f32 %v1539_v20, %v759_v18  ;;  %v1543_v29 = vadd.f32 %v1542_v27, %v1429_v25  ;;  %v1544_v32 = vpop.f32.mrb[19].mxu0  ;;  %v772_v18 = vld [vmem:[#allocation2 + $0xe8] sm:$0xff]  ;;  %v774_v27 = vld [vmem:[#allocation2 + $0xf8] sm:$0xff] }
 0x1bc   : > { %v1594_v33 = vadd.f32 %v1541_v24, %v760_v22  ;;  %v1545_v34 = vadd.f32 %v1544_v32, %v1431_v30  ;;  %v773_v22 = vld [vmem:[#allocation2 + $0xf0] sm:$0xff] }
 0x1bd   : > { %1625 = vst [vmem:[#allocation2 + $0x80] sm:$0xff] %v1593_v28  ;;  %v1595_v35 = vadd.f32 %v1543_v29, %v761_v26 }
 0x1be   : > { %1626 = vst [vmem:[#allocation2 + $0x88] sm:$0xff] %v1594_v33  ;;  %v1596_v36 = vadd.f32 %v1545_v34, %v762_v31  ;;  %v1679_v33 = vlaneseq (!%p2314_p5) }
 0x1bf   : > { %1627 = vst [vmem:[#allocation2 + $0x90] sm:$0xff] %v1595_v35  ;;  %v1435_v37 = vpop.f32.mrb[20].mxu1 }
 0x1c0   : > { %1628 = vst [vmem:[#allocation2 + $0x98] sm:$0xff] %v1596_v36  ;;  %v1548_v39 = vpop.f32.mrb[20].mxu0  ;;  %v1437_v41 = vpop.f32.mrb[21].mxu1  ;;  %v3148_v34 = vshrl.u32 (!%p2314_p5), %v1679_v33, 7  ;;  %vm1783_vm0 = vcmp.lt.s32.totalorder (!%p2314_p5), %v1679_v33, 256 }
 0x1c1   : > { %v1549_v40 = vadd.f32 %v1548_v39, %v1435_v37  ;;  %v1550_v43 = vpop.f32.mrb[21].mxu0  ;;  %v1439_v45 = vpop.f32.mrb[22].mxu1  ;;  %v1645_v37 = vld [vmem:[#allocation2] sm:$0xff] (!%p2314_p5)  ;;  %v1647_v39 = vld [vmem:[#allocation2 + $0x10] sm:$0xff] (!%p2314_p5) }
 0x1c2   : > { %v1551_v44 = vadd.f32 %v1550_v43, %v1437_v41  ;;  %v1552_v47 = vpop.f32.mrb[22].mxu0  ;;  %v1441_v50 = vpop.f32.mrb[23].mxu1  ;;  %v1681_v35 = vsub.s32 (!%p2314_p5), 0, %v3148_v34  ;;  %v1685_v36 = vsub.s32 (!%p2314_p5), 1, %v3148_v34  ;;  %v1649_v41 = vld [vmem:[#allocation2 + $0x20] sm:$0xff] (!%p2314_p5)  ;;  %v1651_v43 = vld [vmem:[#allocation2 + $0x30] sm:$0xff] (!%p2314_p5) }
 0x1c3   : > { %v1597_v48 = vadd.f32 %v1549_v40, %v763_v38  ;;  %v1553_v49 = vadd.f32 %v1552_v47, %v1439_v45  ;;  %v1554_v52 = vpop.f32.mrb[23].mxu0  ;;  %v1646_v38 = vld [vmem:[#allocation2 + $0x8] sm:$0xff] (!%p2314_p5)  ;;  %v1648_v40 = vld [vmem:[#allocation2 + $0x18] sm:$0xff] (!%p2314_p5)  ;;  %v1653_v45 = vld [vmem:[#allocation2 + $0x40] sm:$0xff] (!%p2314_p5) }
 0x1c4   : > { %v1598_v53 = vadd.f32 %v1551_v44, %v764_v42  ;;  %v1555_v54 = vadd.f32 %v1554_v52, %v1441_v50  ;;  %v1650_v42 = vld [vmem:[#allocation2 + $0x28] sm:$0xff] (!%p2314_p5)  ;;  %v1652_v44 = vld [vmem:[#allocation2 + $0x38] sm:$0xff] (!%p2314_p5)  ;;  %v1655_v47 = vld [vmem:[#allocation2 + $0x50] sm:$0xff] (!%p2314_p5) }
 0x1c5   : > { %1629 = vst [vmem:[#allocation2 + $0xa0] sm:$0xff] %v1597_v48  ;;  %v1599_v55 = vadd.f32 %v1553_v49, %v765_v46  ;;  %v1654_v46 = vld [vmem:[#allocation2 + $0x48] sm:$0xff] (!%p2314_p5)  ;;  %v1677_v48 = vld [vmem:[%s685_s10] sm:$0x3] (!%p2314_p5)  ;;  %v1656_v49 = vld [vmem:[#allocation2 + $0x58] sm:$0xff] (!%p2314_p5) }
 0x1c6   : > { %1630 = vst [vmem:[#allocation2 + $0xa8] sm:$0xff] %v1598_v53  ;;  %v1600_v56 = vadd.f32 %v1555_v54, %v766_v51  ;;  %v1657_v50 = vld [vmem:[#allocation2 + $0x60] sm:$0xff] (!%p2314_p5)  ;;  %v1658_v51 = vld [vmem:[#allocation2 + $0x68] sm:$0xff] (!%p2314_p5)  ;;  %v3157_v52 = vrot.slane (!%p2314_p5), %v1677_v48, %v1681_v35  ;;  %v3159_v53 = vrot.slane (!%p2314_p5), %v1677_v48, %v1685_v36  ;;  %v1659_v54 = vld [vmem:[#allocation2 + $0x70] sm:$0xff] (!%p2314_p5) }
 0x1c7   : > { %1631 = vst [vmem:[#allocation2 + $0xb0] sm:$0xff] %v1599_v55  ;;  %v1445_v57 = vpop.f32.mrb[24].mxu1  ;;  %v1660_v55 = vld [vmem:[#allocation2 + $0x78] sm:$0xff] (!%p2314_p5) }
 0x1c8   : > { %1632 = vst [vmem:[#allocation2 + $0xb8] sm:$0xff] %v1600_v56  ;;  %v1558_v59 = vpop.f32.mrb[24].mxu0  ;;  %v1447_v61 = vpop.f32.mrb[25].mxu1  ;;  %v1661_v56 = vld [vmem:[#allocation2 + $0x80] sm:$0xff] (!%p2314_p5) }
 0x1c9   : > { %v1559_v60 = vadd.f32 %v1558_v59, %v1445_v57  ;;  %v1560_v63 = vpop.f32.mrb[25].mxu0  ;;  %v1449_v1 = vpop.f32.mrb[26].mxu1  ;;  %v1662_v57 = vld [vmem:[#allocation2 + $0x88] sm:$0xff] (!%p2314_p5)  ;;  %v1664_v59 = vld [vmem:[#allocation2 + $0x98] sm:$0xff] (!%p2314_p5) }
 0x1ca   : > { %v1561_v0 = vadd.f32 %v1560_v63, %v1447_v61  ;;  %v1562_v3 = vpop.f32.mrb[26].mxu0  ;;  %v1451_v6 = vpop.f32.mrb[27].mxu1  ;;  %v3165_v61 = vadd.f32 (!%p2314_p5), %v3159_v53, %v1646_v38  ;;  %v3171_v63 = vadd.f32 (!%p2314_p5), %v3159_v53, %v1648_v40 }
 0x1cb   : > { %v1601_v4 = vadd.f32 %v1559_v60, %v767_v58  ;;  %v1563_v5 = vadd.f32 %v1562_v3, %v1449_v1  ;;  %v1564_v8 = vpop.f32.mrb[27].mxu0  ;;  %v1663_v58 = vld [vmem:[#allocation2 + $0x90] sm:$0xff] (!%p2314_p5)  ;;  %v3162_v60 = vadd.f32 (!%p2314_p5), %v3157_v52, %v1645_v37  ;;  %v3174_v3 = vadd.f32 (!%p2314_p5), %v3157_v52, %v1649_v41 }
 0x1cc   : > { %v1602_v9 = vadd.f32 %v1561_v0, %v768_v62  ;;  %v1565_v10 = vadd.f32 %v1564_v8, %v1451_v6  ;;  %v3168_v62 = vadd.f32 (!%p2314_p5), %v3157_v52, %v1647_v39  ;;  %v1665_v0 = vld [vmem:[#allocation2 + $0xa0] sm:$0xff] (!%p2314_p5)  ;;  %v3183_v6 = vadd.f32 (!%p2314_p5), %v3159_v53, %v1652_v44  ;;  %1880 = vst [vmem:[%s3047_s1 + $0x8] sm:$0xff] (!%p2314_p5), %v3165_v61 }
 0x1cd   : > { %1633 = vst [vmem:[#allocation2 + $0xc0] sm:$0xff] %v1601_v4  ;;  %v1603_v11 = vadd.f32 %v1563_v5, %v769_v2  ;;  %v1666_v1 = vld [vmem:[#allocation2 + $0xa8] sm:$0xff] (!%p2314_p5)  ;;  %v3177_v4 = vadd.f32 (!%p2314_p5), %v3159_v53, %v1650_v42  ;;  %v3180_v5 = vadd.f32 (!%p2314_p5), %v3157_v52, %v1651_v43  ;;  %1879 = vst [vmem:[%s3047_s1] sm:$0xff] (!%p2314_p5), %v3162_v60 }
 0x1ce   : > { %1634 = vst [vmem:[#allocation2 + $0xc8] sm:$0xff] %v1602_v9  ;;  %v1604_v12 = vadd.f32 %v1565_v10, %v770_v7  ;;  %v1667_v2 = vld [vmem:[#allocation2 + $0xb0] sm:$0xff] (!%p2314_p5)  ;;  %v3186_v10 = vadd.f32 (!%p2314_p5), %v3157_v52, %v1653_v45  ;;  %1881 = vst [vmem:[%s3047_s1 + $0x10] sm:$0xff] (!%p2314_p5), %v3168_v62  ;;  %v1721_v42 = vadd.f32 (!%p2314_p5), %v3168_v62, %v3162_v60 }
 0x1cf   : > { %1635 = vst [vmem:[#allocation2 + $0xd0] sm:$0xff] %v1603_v11  ;;  %v1455_v13 = vpop.f32.mrb[28].mxu1  ;;  %v1668_v7 = vld [vmem:[#allocation2 + $0xb8] sm:$0xff] (!%p2314_p5)  ;;  %v3189_v11 = vadd.f32 (!%p2314_p5), %v3159_v53, %v1654_v46  ;;  %1882 = vst [vmem:[%s3047_s1 + $0x18] sm:$0xff] (!%p2314_p5), %v3171_v63  ;;  %v1742_v43 = vadd.f32 (!%p2314_p5), %v3171_v63, %v3165_v61 }
 0x1d0   : > { %1636 = vst [vmem:[#allocation2 + $0xd8] sm:$0xff] %v1604_v12  ;;  %v1568_v15 = vpop.f32.mrb[28].mxu0  ;;  %v1457_v17 = vpop.f32.mrb[29].mxu1  ;;  %v3192_v12 = vadd.f32 (!%p2314_p5), %v3157_v52, %v1655_v47  ;;  %1883 = vst [vmem:[%s3047_s1 + $0x20] sm:$0xff] (!%p2314_p5), %v3174_v3  ;;  %v1722_v44 = vadd.f32 (!%p2314_p5), %v1721_v42, %v3174_v3 }
 0x1d1   : > { %v1569_v16 = vadd.f32 %v1568_v15, %v1455_v13  ;;  %v1570_v19 = vpop.f32.mrb[29].mxu0  ;;  %v1459_v21 = vpop.f32.mrb[30].mxu1  ;;  %v3195_v13 = vadd.f32 (!%p2314_p5), %v3159_v53, %v1656_v49  ;;  %1884 = vst [vmem:[%s3047_s1 + $0x28] sm:$0xff] (!%p2314_p5), %v3177_v4  ;;  %1885 = vst [vmem:[%s3047_s1 + $0x30] sm:$0xff] (!%p2314_p5), %v3180_v5  ;;  %v1743_v45 = vadd.f32 (!%p2314_p5), %v1742_v43, %v3177_v4 }
 0x1d2   : > { %v1571_v20 = vadd.f32 %v1570_v19, %v1457_v17  ;;  %v1572_v23 = vpop.f32.mrb[30].mxu0  ;;  %v1461_v26 = vpop.f32.mrb[31].mxu1  ;;  %1644 = sbr.rel (%p2314_p5) target bundleno = 531 (0x213), region = 101  ;;  %v3206_v17 = vadd.f32 (!%p2314_p5), %v3157_v52, %v1657_v50  ;;  %v3212_v19 = vadd.f32 (!%p2314_p5), %v3157_v52, %v1659_v54  ;;  %1886 = vst [vmem:[%s3047_s1 + $0x38] sm:$0xff] (!%p2314_p5), %v3183_v6  ;;  %1887 = vst [vmem:[%s3047_s1 + $0x40] sm:$0xff] (!%p2314_p5), %v3186_v10 }
 0x1d3   : > { %v1605_v24 = vadd.f32 %v1569_v16, %v771_v14  ;;  %v1573_v25 = vadd.f32 %v1572_v23, %v1459_v21  ;;  %v1574_v28 = vpop.f32.mrb[31].mxu0  ;;  %1888 = vst [vmem:[%s3047_s1 + $0x48] sm:$0xff] (!%p2314_p5), %v3189_v11  ;;  %1889 = vst [vmem:[%s3047_s1 + $0x50] sm:$0xff] (!%p2314_p5), %v3192_v12  ;;  %v1723_v46 = vadd.f32 (!%p2314_p5), %v1722_v44, %v3180_v5 }
 0x1d4   : > { %v1606_v29 = vadd.f32 %v1571_v20, %v772_v18  ;;  %v1575_v30 = vadd.f32 %v1574_v28, %v1461_v26  ;;  %v1669_v8 = vld [vmem:[#allocation2 + $0xc0] sm:$0xff] (!%p2314_p5)  ;;  %v3209_v18 = vadd.f32 (!%p2314_p5), %v3159_v53, %v1658_v51  ;;  %v3215_v20 = vadd.f32 (!%p2314_p5), %v3159_v53, %v1660_v55  ;;  %1890 = vst [vmem:[%s3047_s1 + $0x58] sm:$0xff] (!%p2314_p5), %v3195_v13 }
 0x1d5   : > { %1637 = vst [vmem:[#allocation2 + $0xe0] sm:$0xff] %v1605_v24  ;;  %v1607_v31 = vadd.f32 %v1573_v25, %v773_v22  ;;  %v1670_v9 = vld [vmem:[#allocation2 + $0xc8] sm:$0xff] (!%p2314_p5)  ;;  %v3226_v24 = vadd.f32 (!%p2314_p5), %v3157_v52, %v1661_v56  ;;  %v3229_v25 = vadd.f32 (!%p2314_p5), %v3159_v53, %v1662_v57  ;;  %v3232_v26 = vadd.f32 (!%p2314_p5), %v3157_v52, %v1663_v58 }
 0x1d6   : > { %1638 = vst [vmem:[#allocation2 + $0xe8] sm:$0xff] %v1606_v29  ;;  %v1608_v32 = vadd.f32 %v1575_v30, %v774_v27  ;;  %v1671_v14 = vld [vmem:[#allocation2 + $0xd0] sm:$0xff] (!%p2314_p5)  ;;  %v3235_v27 = vadd.f32 (!%p2314_p5), %v3159_v53, %v1664_v59  ;;  %v3246_v28 = vadd.f32 (!%p2314_p5), %v3157_v52, %v1665_v0  ;;  %v3249_v29 = vadd.f32 (!%p2314_p5), %v3159_v53, %v1666_v1 }
 0x1d7   : > { %1639 = vst [vmem:[#allocation2 + $0xf0] sm:$0xff] %v1607_v31  ;;  %v1672_v15 = vld [vmem:[#allocation2 + $0xd8] sm:$0xff] (!%p2314_p5)  ;;  %v3252_v30 = vadd.f32 (!%p2314_p5), %v3157_v52, %v1667_v2  ;;  %v3255_v31 = vadd.f32 (!%p2314_p5), %v3159_v53, %v1668_v7  ;;  %1891 = vst [vmem:[%s3047_s1 + $0x60] sm:$0xff] (!%p2314_p5), %v3206_v17  ;;  %v3269_v35 = vadd.f32 (!%p2314_p5), %v3159_v53, %v1670_v9 }
 0x1d8   : > { %1640 = vst [vmem:[#allocation2 + $0xf8] sm:$0xff] %v1608_v32  ;;  %1892 = vst [vmem:[%s3047_s1 + $0x68] sm:$0xff] (!%p2314_p5), %v3209_v18  ;;  %v3266_v32 = vadd.f32 (!%p2314_p5), %v3157_v52, %v1669_v8  ;;  %v3272_v36 = vadd.f32 (!%p2314_p5), %v3157_v52, %v1671_v14  ;;  %v3275_v37 = vadd.f32 (!%p2314_p5), %v3159_v53, %v1672_v15 }
 0x1d9   : > { %1893 = vst [vmem:[%s3047_s1 + $0x70] sm:$0xff] %v3212_v19  ;;  %1894 = vst [vmem:[%s3047_s1 + $0x78] sm:$0xff] %v3215_v20  ;;  %v1744_v47 = vadd.f32 %v1743_v45, %v3183_v6  ;;  %v1724_v48 = vadd.f32 %v1723_v46, %v3186_v10  ;;  %v1786_v50 = vmul.f32 %v3162_v60, %v3162_v60 }
 0x1da   : > { %1895 = vst [vmem:[%s3047_s1 + $0x80] sm:$0xff] %v3226_v24  ;;  %1896 = vst [vmem:[%s3047_s1 + $0x88] sm:$0xff] %v3229_v25  ;;  %v1787_v51 = vmul.f32 %v3165_v61, %v3165_v61  ;;  %v1790_v56 = vmul.f32 %v3174_v3, %v3174_v3  ;;  %v1791_v57 = vmul.f32 %v3177_v4, %v3177_v4 }
 0x1db   : > { %1897 = vst [vmem:[%s3047_s1 + $0x90] sm:$0xff] %v3232_v26  ;;  %1898 = vst [vmem:[%s3047_s1 + $0x98] sm:$0xff] %v3235_v27  ;;  %v1745_v49 = vadd.f32 %v1744_v47, %v3189_v11  ;;  %v1725_v54 = vadd.f32 %v1724_v48, %v3192_v12  ;;  %v1792_v60 = vmul.f32 %v3180_v5, %v3180_v5 }
 0x1dc   : > { %v1673_v16 = vld [vmem:[#allocation2 + $0xe0] sm:$0xff]  ;;  %1899 = vst [vmem:[%s3047_s1 + $0xa0] sm:$0xff] %v3246_v28  ;;  %1900 = vst [vmem:[%s3047_s1 + $0xa8] sm:$0xff] %v3249_v29  ;;  %v1793_v61 = vmul.f32 %v3183_v6, %v3183_v6  ;;  %v1794_v2 = vmul.f32 %v3186_v10, %v3186_v10  ;;  %v1795_v3 = vmul.f32 %v3189_v11, %v3189_v11 }
 0x1dd   : > { %v1674_v21 = vld [vmem:[#allocation2 + $0xe8] sm:$0xff]  ;;  %v3286_v38 = vadd.f32 %v3157_v52, %v1673_v16  ;;  %1901 = vst [vmem:[%s3047_s1 + $0xb0] sm:$0xff] %v3252_v30  ;;  %1902 = vst [vmem:[%s3047_s1 + $0xb8] sm:$0xff] %v3255_v31  ;;  %v1746_v55 = vadd.f32 %v1745_v49, %v3195_v13  ;;  %v1726_v58 = vadd.f32 %v1725_v54, %v3206_v17 }
 0x1de   : > { %v1675_v22 = vld [vmem:[#allocation2 + $0xf0] sm:$0xff]  ;;  %v3289_v39 = vadd.f32 %v3159_v53, %v1674_v21  ;;  %1903 = vst [vmem:[%s3047_s1 + $0xc0] sm:$0xff] %v3266_v32  ;;  %1904 = vst [vmem:[%s3047_s1 + $0xc8] sm:$0xff] %v3269_v35  ;;  %v1796_v6 = vmul.f32 %v3192_v12, %v3192_v12  ;;  %v1797_v9 = vmul.f32 %v3195_v13, %v3195_v13 }
 0x1df   : > { %v1676_v23 = vld [vmem:[#allocation2 + $0xf8] sm:$0xff]  ;;  %v3292_v40 = vadd.f32 %v3157_v52, %v1675_v22  ;;  %1905 = vst [vmem:[%s3047_s1 + $0xd0] sm:$0xff] %v3272_v36  ;;  %1906 = vst [vmem:[%s3047_s1 + $0xd8] sm:$0xff] %v3275_v37  ;;  %v1788_v52 = vmul.f32 %v3168_v62, %v3168_v62  ;;  %v1747_v59 = vadd.f32 %v1746_v55, %v3209_v18 }
 0x1e0   : > { %v3295_v41 = vadd.f32 %v3159_v53, %v1676_v23  ;;  %1907 = vst [vmem:[%s3047_s1 + $0xe0] sm:$0xff] %v3286_v38  ;;  %1908 = vst [vmem:[%s3047_s1 + $0xe8] sm:$0xff] %v3289_v39  ;;  %v1789_v53 = vmul.f32 %v3171_v63, %v3171_v63  ;;  %v1727_v0 = vadd.f32 %v1726_v58, %v3212_v19 }
 0x1e1   : > { %1909 = vst [vmem:[%s3047_s1 + $0xf0] sm:$0xff] %v3292_v40  ;;  %v1818_v62 = vadd.f32 %v1788_v52, %v1786_v50  ;;  %v1748_v1 = vadd.f32 %v1747_v59, %v3215_v20  ;;  %v1798_v11 = vmul.f32 %v3206_v17, %v3206_v17  ;;  %v1799_v21 = vmul.f32 %v3209_v18, %v3209_v18 }
 0x1e2   : > { %1910 = vst [vmem:[%s3047_s1 + $0xf8] sm:$0xff] %v3295_v41  ;;  %v1839_v63 = vadd.f32 %v1789_v53, %v1787_v51  ;;  %v1728_v8 = vadd.f32 %v1727_v0, %v3226_v24  ;;  %v1800_v13 = vmul.f32 %v3212_v19, %v3212_v19  ;;  %v1801_v43 = vmul.f32 %v3215_v20, %v3215_v20 }
 0x1e3   : > { %v1819_v4 = vadd.f32 %v1818_v62, %v1790_v56  ;;  %v1749_v5 = vadd.f32 %v1748_v1, %v3229_v25  ;;  %v1802_v18 = vmul.f32 %v3226_v24, %v3226_v24  ;;  %v1803_v47 = vmul.f32 %v3229_v25, %v3229_v25 }
 0x1e4   : > { %v1840_v7 = vadd.f32 %v1839_v63, %v1791_v57  ;;  %v1729_v16 = vadd.f32 %v1728_v8, %v3232_v26  ;;  %v1804_v20 = vmul.f32 %v3232_v26, %v3232_v26  ;;  %v1805_v51 = vmul.f32 %v3235_v27, %v3235_v27 }
 0x1e5   : > { %v1820_v14 = vadd.f32 %v1819_v4, %v1792_v60  ;;  %v1750_v10 = vadd.f32 %v1749_v5, %v3235_v27  ;;  %v1806_v25 = vmul.f32 %v3246_v28, %v3246_v28  ;;  %v1807_v55 = vmul.f32 %v3249_v29, %v3249_v29 }
 0x1e6   : > { %v1841_v15 = vadd.f32 %v1840_v7, %v1793_v61  ;;  %v1730_v42 = vadd.f32 %v1729_v16, %v3246_v28  ;;  %v1808_v27 = vmul.f32 %v3252_v30, %v3252_v30  ;;  %v1809_v59 = vmul.f32 %v3255_v31, %v3255_v31 }
 0x1e7   : > { %v1821_v22 = vadd.f32 %v1820_v14, %v1794_v2  ;;  %v1751_v12 = vadd.f32 %v1750_v10, %v3249_v29  ;;  %v1810_v29 = vmul.f32 %v3266_v32, %v3266_v32  ;;  %v1811_v63 = vmul.f32 %v3269_v35, %v3269_v35 }
 0x1e8   : > { %v1842_v23 = vadd.f32 %v1841_v15, %v1795_v3  ;;  %v1731_v46 = vadd.f32 %v1730_v42, %v3252_v30  ;;  %v1812_v30 = vmul.f32 %v3272_v36, %v3272_v36 }
 0x1e9   : > { %v1822_v44 = vadd.f32 %v1821_v22, %v1796_v6  ;;  %v1752_v17 = vadd.f32 %v1751_v12, %v3255_v31  ;;  %v1813_v31 = vmul.f32 %v3275_v37, %v3275_v37  ;;  %v2678_v6 = vmov 1966171168  }
 0x1ea   : > { %v1843_v45 = vadd.f32 %v1842_v23, %v1797_v9  ;;  %v1732_v50 = vadd.f32 %v1731_v46, %v3266_v32  ;;  %v1767_v9 = vunpack.c.l.s4 %v2678_v6  ;;  %v1814_v32 = vmul.f32 %v3286_v38, %v3286_v38 }
 0x1eb   : > { %v1823_v48 = vadd.f32 %v1822_v44, %v1798_v11  ;;  %v1753_v19 = vadd.f32 %v1752_v17, %v3269_v35  ;;  %v1815_v35 = vmul.f32 %v3289_v39, %v3289_v39 }
 0x1ec   : > { %v1844_v49 = vadd.f32 %v1843_v45, %v1799_v21  ;;  %v1733_v54 = vadd.f32 %v1732_v50, %v3272_v36  ;;  %v1816_v36 = vmul.f32 %v3292_v40, %v3292_v40  ;;  %v1768_v42 = vunpack.c.0.s8 %v1767_v9 }
 0x1ed   : > { %v1824_v52 = vadd.f32 %v1823_v48, %v1800_v13  ;;  %v1754_v24 = vadd.f32 %v1753_v19, %v3275_v37  ;;  %v1817_v37 = vmul.f32 %v3295_v41, %v3295_v41 }
 0x1ee   : > { %v1845_v53 = vadd.f32 %v1844_v49, %v1801_v43  ;;  %v1734_v58 = vadd.f32 %v1733_v54, %v3286_v38  ;;  %v1771_v17 = vsub.s32 %v1768_v42, %v3148_v34 }
 0x1ef   : > { %v1825_v56 = vadd.f32 %v1824_v52, %v1802_v18  ;;  %v1755_v26 = vadd.f32 %v1754_v24, %v3289_v39 }
 0x1f0   : > { %v1846_v57 = vadd.f32 %v1845_v53, %v1803_v47  ;;  %v1735_v62 = vadd.f32 %v1734_v58, %v3292_v40 }
 0x1f1   : > { %v1826_v60 = vadd.f32 %v1825_v56, %v1804_v20  ;;  %v1756_v28 = vadd.f32 %v1755_v26, %v3295_v41 }
 0x1f2   : > { %v1847_v61 = vadd.f32 %v1846_v57, %v1805_v51  ;;  %v1736_v2 = vrot.slane %v1735_v62, 4 }
 0x1f3   : > { %v1827_v0 = vadd.f32 %v1826_v60, %v1806_v25  ;;  %v1757_v3 = vrot.slane %v1756_v28, 4 }
 0x1f4   : > { %v1848_v1 = vadd.f32 %v1847_v61, %v1807_v55  ;;  %v1737_v8 = vadd.f32 %v1736_v2, %v1735_v62 }
 0x1f5   : > { %v1828_v4 = vadd.f32 %v1827_v0, %v1808_v27  ;;  %v1758_v5 = vadd.f32 %v1757_v3, %v1756_v28 }
 0x1f6   : > { %v1849_v7 = vadd.f32 %v1848_v1, %v1809_v59  ;;  %v1738_v16 = vrot.slane %v1737_v8, 2 }
 0x1f7   : > { %v1829_v14 = vadd.f32 %v1828_v4, %v1810_v29  ;;  %v1759_v10 = vrot.slane %v1758_v5, 2 }
 0x1f8   : > { %v1850_v15 = vadd.f32 %v1849_v7, %v1811_v63  ;;  %v1739_v22 = vadd.f32 %v1738_v16, %v1737_v8 }
 0x1f9   : > { %v1830_v11 = vadd.f32 %v1829_v14, %v1812_v30  ;;  %v1760_v23 = vadd.f32 %v1759_v10, %v1758_v5 }
 0x1fa   : > { %v1851_v21 = vadd.f32 %v1850_v15, %v1813_v31  ;;  %v1740_v13 = vrot.slane %v1739_v22, 1 }
 0x1fb   : > { %v1831_v12 = vadd.f32 %v1830_v11, %v1814_v32  ;;  %v1761_v43 = vrot.slane %v1760_v23, 1 }
 0x1fc   : > { %v1852_v38 = vadd.f32 %v1851_v21, %v1815_v35  ;;  %v1741_v45 = vadd.f32 %v1740_v13, %v1739_v22 }
 0x1fd   : > { %v1832_v39 = vadd.f32 %v1831_v12, %v1816_v36  ;;  %v1762_v46 = vadd.f32 %v1761_v43, %v1760_v23 }
 0x1fe   : > { %v1853_v44 = vadd.f32 %v1852_v38, %v1817_v37 }
 0x1ff   : > { %v1833_v40 = vrot.slane %v1832_v39, 4  ;;  %v1765_v47 = vcombine.low %v1741_v45, %v1762_v46 }
 0x200   : > { %v1854_v18 = vrot.slane %v1853_v44, 4 }
 0x201   : > { %v1834_v41 = vadd.f32 %v1833_v40, %v1832_v39  ;;  %v1772_v49 = vrot.slane %v1765_v47, %v1771_v17 }
 0x202   : > { %v1855_v48 = vadd.f32 %v1854_v18, %v1853_v44 }
 0x203   : > { %v1835_v50 = vrot.slane %v1834_v41, 2  ;;  %v1779_v20 = vrot.slane %v1772_v49, %v1771_v17 }
 0x204   : > { %v1856_v19 = vrot.slane %v1855_v48, 2 }
 0x205   : > { %v1836_v51 = vadd.f32 %v1835_v50, %v1834_v41  ;;  %1785 = vst.msk [vmem:[%s696_s22] sm:$0x3] %vm1783_vm0, %v1779_v20 }
 0x206   : > { %v1857_v52 = vadd.f32 %v1856_v19, %v1855_v48 }
 0x207   : > { %v1837_v34 = vrot.slane %v1836_v51, 1 }
 0x208   : > { %v1858_v53 = vrot.slane %v1857_v52, 1 }
 0x209   : > { %v1838_v54 = vadd.f32 %v1837_v34, %v1836_v51 }
 0x20a   : > { %v1859_v24 = vadd.f32 %v1858_v53, %v1857_v52 }
 0x20c   : > { %v1862_v25 = vcombine.low %v1838_v54, %v1859_v24 }
 0x20e   : > { %v1869_v55 = vrot.slane %v1862_v25, %v1771_v17 }
 0x210   : > { %v1876_v56 = vrot.slane %v1869_v55, %v1771_v17 }
 0x212   : > { %1878 = vst.msk [vmem:[%s705_s18] sm:$0x3] %vm1783_vm0, %v1876_v56 }
 0x213 PF: > { %1933 = sbr.rel (!%p2803_p12) target bundleno = 549 (0x225), region = 105  ;;  %s2322_s10 = sshll.u32 (%p2803_p12), %s2663_s25, 4  ;;  %v1952_v33 = vld [vmem:[%s3047_s1] sm:$0xff] (%p2803_p12)  ;;  %v1954_v57 = vld [vmem:[%s3047_s1 + $0x8] sm:$0xff] (%p2803_p12)  ;;  %v1956_v58 = vld [vmem:[%s3047_s1 + $0x10] sm:$0xff] (%p2803_p12) }
 0x214   : > { %s3438_s14 = scalar_lea.vmem (%p2803_p12), %s3537_s3, %s2322_s10  ;;  %v1958_v26 = vld [vmem:[%s3047_s1 + $0x18] sm:$0xff] (%p2803_p12)  ;;  %v1960_v27 = vld [vmem:[%s3047_s1 + $0x20] sm:$0xff] (%p2803_p12)  ;;  %v1962_v59 = vld [vmem:[%s3047_s1 + $0x28] sm:$0xff] (%p2803_p12) }
 0x215   : > { %1953 = vst [vmem:[%s3438_s14] sm:$0xff] (%p2803_p12), %v1952_v33  ;;  %1955 = vst [vmem:[%s3438_s14 + $0x8] sm:$0xff] (%p2803_p12), %v1954_v57  ;;  %v1964_v60 = vld [vmem:[%s3047_s1 + $0x30] sm:$0xff] (%p2803_p12)  ;;  %v1966_v61 = vld [vmem:[%s3047_s1 + $0x38] sm:$0xff] (%p2803_p12) }
 0x216   : > { %1957 = vst [vmem:[%s3438_s14 + $0x20] sm:$0xff] (%p2803_p12), %v1956_v58  ;;  %1959 = vst [vmem:[%s3438_s14 + $0x28] sm:$0xff] (%p2803_p12), %v1958_v26  ;;  %v1968_v62 = vld [vmem:[%s3047_s1 + $0x40] sm:$0xff] (%p2803_p12)  ;;  %v1970_v28 = vld [vmem:[%s3047_s1 + $0x48] sm:$0xff] (%p2803_p12) }
 0x217   : > { %1961 = vst [vmem:[%s3438_s14 + $0x40] sm:$0xff] (%p2803_p12), %v1960_v27  ;;  %1963 = vst [vmem:[%s3438_s14 + $0x48] sm:$0xff] (%p2803_p12), %v1962_v59  ;;  %v1972_v29 = vld [vmem:[%s3047_s1 + $0x50] sm:$0xff] (%p2803_p12)  ;;  %v1974_v63 = vld [vmem:[%s3047_s1 + $0x58] sm:$0xff] (%p2803_p12) }
 0x218   : > { %1965 = vst [vmem:[%s3438_s14 + $0x60] sm:$0xff] (%p2803_p12), %v1964_v60  ;;  %1967 = vst [vmem:[%s3438_s14 + $0x68] sm:$0xff] (%p2803_p12), %v1966_v61  ;;  %v1976_v0 = vld [vmem:[%s3047_s1 + $0x60] sm:$0xff] (%p2803_p12)  ;;  %v1986_v31 = vld [vmem:[%s3047_s1 + $0x88] sm:$0xff] (%p2803_p12) }
 0x219   : > { %1969 = vst [vmem:[%s3438_s14 + $0x80] sm:$0xff] (%p2803_p12), %v1968_v62  ;;  %1971 = vst [vmem:[%s3438_s14 + $0x88] sm:$0xff] (%p2803_p12), %v1970_v28  ;;  %v1978_v1 = vld [vmem:[%s3047_s1 + $0x68] sm:$0xff] (%p2803_p12)  ;;  %v1984_v30 = vld [vmem:[%s3047_s1 + $0x80] sm:$0xff] (%p2803_p12) }
 0x21a   : > { %1973 = vst [vmem:[%s3438_s14 + $0xa0] sm:$0xff] %v1972_v29  ;;  %1975 = vst [vmem:[%s3438_s14 + $0xa8] sm:$0xff] %v1974_v63  ;;  %v1980_v2 = vld [vmem:[%s3047_s1 + $0x70] sm:$0xff]  ;;  %v1982_v3 = vld [vmem:[%s3047_s1 + $0x78] sm:$0xff] }
 0x21b   : > { %1977 = vst [vmem:[%s3438_s14 + $0xc0] sm:$0xff] %v1976_v0  ;;  %1979 = vst [vmem:[%s3438_s14 + $0xc8] sm:$0xff] %v1978_v1  ;;  %v1988_v4 = vld [vmem:[%s3047_s1 + $0x90] sm:$0xff]  ;;  %v1990_v7 = vld [vmem:[%s3047_s1 + $0x98] sm:$0xff] }
 0x21c   : > { %1981 = vst [vmem:[%s3438_s14 + $0xe0] sm:$0xff] %v1980_v2  ;;  %1983 = vst [vmem:[%s3438_s14 + $0xe8] sm:$0xff] %v1982_v3  ;;  %v1992_v8 = vld [vmem:[%s3047_s1 + $0xa0] sm:$0xff]  ;;  %v1994_v5 = vld [vmem:[%s3047_s1 + $0xa8] sm:$0xff] }
 0x21d   : > { %1985 = vst [vmem:[%s3438_s14 + $0x100] sm:$0xff] %v1984_v30  ;;  %1987 = vst [vmem:[%s3438_s14 + $0x108] sm:$0xff] %v1986_v31  ;;  %v1996_v6 = vld [vmem:[%s3047_s1 + $0xb0] sm:$0xff]  ;;  %v1998_v9 = vld [vmem:[%s3047_s1 + $0xb8] sm:$0xff] }
 0x21e   : > { %1989 = vst [vmem:[%s3438_s14 + $0x120] sm:$0xff] %v1988_v4  ;;  %1991 = vst [vmem:[%s3438_s14 + $0x128] sm:$0xff] %v1990_v7  ;;  %v2000_v32 = vld [vmem:[%s3047_s1 + $0xc0] sm:$0xff]  ;;  %v2002_v35 = vld [vmem:[%s3047_s1 + $0xc8] sm:$0xff] }
 0x21f   : > { %1993 = vst [vmem:[%s3438_s14 + $0x140] sm:$0xff] %v1992_v8  ;;  %1995 = vst [vmem:[%s3438_s14 + $0x148] sm:$0xff] %v1994_v5  ;;  %v2004_v14 = vld [vmem:[%s3047_s1 + $0xd0] sm:$0xff]  ;;  %v2006_v15 = vld [vmem:[%s3047_s1 + $0xd8] sm:$0xff] }
 0x220   : > { %1997 = vst [vmem:[%s3438_s14 + $0x160] sm:$0xff] %v1996_v6  ;;  %1999 = vst [vmem:[%s3438_s14 + $0x168] sm:$0xff] %v1998_v9  ;;  %v2008_v16 = vld [vmem:[%s3047_s1 + $0xe0] sm:$0xff]  ;;  %v2010_v10 = vld [vmem:[%s3047_s1 + $0xe8] sm:$0xff] }
 0x221   : > { %2001 = vst [vmem:[%s3438_s14 + $0x180] sm:$0xff] %v2000_v32  ;;  %2003 = vst [vmem:[%s3438_s14 + $0x188] sm:$0xff] %v2002_v35  ;;  %v2012_v36 = vld [vmem:[%s3047_s1 + $0xf0] sm:$0xff]  ;;  %v2014_v37 = vld [vmem:[%s3047_s1 + $0xf8] sm:$0xff] }
 0x222   : > { %2005 = vst [vmem:[%s3438_s14 + $0x1a0] sm:$0xff] %v2004_v14  ;;  %2007 = vst [vmem:[%s3438_s14 + $0x1a8] sm:$0xff] %v2006_v15 }
 0x223   : > { %2009 = vst [vmem:[%s3438_s14 + $0x1c0] sm:$0xff] %v2008_v16  ;;  %2011 = vst [vmem:[%s3438_s14 + $0x1c8] sm:$0xff] %v2010_v10 }
 0x224   : > { %2013 = vst [vmem:[%s3438_s14 + $0x1e0] sm:$0xff] %v2012_v36  ;;  %2015 = vst [vmem:[%s3438_s14 + $0x1e8] sm:$0xff] %v2014_v37 }
 0x225 PF: > { %s16_s28 = sadd.s32 1, %s2675_s28   ;;  %s3552_s25 = sld [smem:[#allocation8_spill]] }
 0x226   : > { %p13_p6 = scmp.ge.s32.totalorder %s16_s28, 18   ;;  %s3553_s30 = sld [smem:[#allocation6_spill]] }
 0x227   : > { %s3554_s0 = sld [smem:[#allocation7_spill]]  ;;  %s3555_s18 = smov %s2639_s19 }
 0x228   : > { %s3556_s19 = smov %s2801_s17  ;;  %s3557_s20 = smov %s2647_s21 }
 0x229   : > { %s3558_s21 = smov %s2798_s16  ;;  %s3559_s22 = smov %s2655_s23 }
 0x22a   : > { %s3561_s24 = smov %s2667_s26  ;;  %15 = sbr.rel (!%p13_p6) target bundleno = 9 (0x9), region = 194 }
 0x22b   : > { %s3560_s23 = smov %s3552_s25  ;;  %s3562_s25 = smov %s2671_s27 }
 0x22c   : > { %s3563_s26 = smov %s3553_s30 }
 0x22d   : > { %s3564_s27 = smov %s3554_s0 }

// kernel: discriminator_forward.16
= control target key start
LH: loop header
LB: loop body
LE: loop exit
PB: predicated region body
PF: predicated region fallthrough
CT: control target
= control target key end

     0   :  { %s2448_s0 = inlined_call_operand.vmem [shape: bf16[32,8192], index: 0, kind: input, shape index: {}]   ;;  %s2449_s1 = inlined_call_operand.vmem [shape: bf16[8192,1024], index: 1, kind: input, shape index: {}]   ;;  %s2450_s2 = inlined_call_operand.vmem [shape: f32[1,1024], index: 2, kind: input, shape index: {}]   ;;  %s2451_s3 = inlined_call_operand.vmem [shape: f32[32,1024], index: 3, kind: output, shape index: {0}]   ;;  %s2452_s4 = inlined_call_operand.vmem [shape: f32[1,1,1024], index: 4, kind: output, shape index: {1}]   ;;  %s2453_s5 = inlined_call_operand.vmem [shape: f32[1,1,1024], index: 5, kind: output, shape index: {2}]  }
   0x1   :  { %2456 = sst [smem:[#allocation9_spill]] %s2448_s0 }
   0x2   :  { %2457 = sst [smem:[#allocation10_spill]] %s2449_s1 }
   0x3   :  { %s2025_s18 = smov 0   ;;  %s2027_s19 = smov 0  }
   0x4   :  { %s2029_s20 = smov 0   ;;  %s2031_s21 = smov 0  }
   0x5   :  { %s2033_s22 = smov 0   ;;  %s2035_s23 = smov 0  }
   0x6   :  { %s2037_s24 = smov 0   ;;  %s2039_s25 = smov 0  }
   0x7   :  { %s2041_s26 = smov 0   ;;  %s2043_s27 = smov 0  }
   0x8   :  { %s2045_s28 = smov 0  }
   0x9 LB: > { %s1598_s29 = sadd.s32 4294967295, %s1991_s28   ;;  %s28_s30 = sadd.s32 1, %s1983_s26  ;;  %s1991_s28 = sphi %s2045_s28, %s16_s28   ;;  %s1987_s27 = sphi %s2043_s27, %s2478_s27   ;;  %s1983_s26 = sphi %s2041_s26, %s2477_s26   ;;  %s1979_s25 = sphi %s2039_s25, %s2476_s25   ;;  %s1975_s24 = sphi %s2037_s24, %s2475_s24   ;;  %s1971_s23 = sphi %s2035_s23, %s2474_s23   ;;  %s1967_s22 = sphi %s2033_s22, %s2473_s22   ;;  %s1963_s21 = sphi %s2031_s21, %s2472_s21   ;;  %s1959_s20 = sphi %s2029_s20, %s2471_s20   ;;  %s1955_s19 = sphi %s2027_s19, %s2470_s19   ;;  %s1951_s18 = sphi %s2025_s18, %s2469_s18  }
   0xa   : > { %p29_p0 = scmp.ge.s32.totalorder %s28_s30, 16  ;;  %s31_s6 = sadd.s32 1, %s1987_s27 }
   0xb   : > { %s44_s7 = sadd.s32 1, %s1971_s23  ;;  %p51_p1 = scmp.ne.s32.totalorder %s1971_s23, %s1967_s22 }
   0xc   : > { %s2480_s30 = smov (%p29_p0, %s28_s30), 0  ;;  %s2482_s6 = smov (!%p29_p0, %s31_s6), %s1987_s27 }
   0xd   : > { %2458 = sst [smem:[#allocation6_spill]] %s2480_s30  ;;  %s40_s8 = ssub.s32 %s1983_s26, %s2480_s30 }
   0xe   : > { %p52_p2 = scmp.eq.s32.totalorder %s1991_s28, 0  ;;  %p33_p3 = scmp.ge.s32.totalorder %s2482_s6, 4 }
   0xf   : > { %p42_p4 = scmp.eq.s32.totalorder %s40_s8, 0  ;;  %s72_s10 = sadd.s32 1, %s1963_s21 }
  0x10   : > { %p2092_p5 = por %p52_p2, %p51_p1  ;;  %s2484_s6 = smov (%p33_p3, %s2482_s6), 0 }
  0x11   : > { %2460 = sst [smem:[#allocation7_spill]] %s2484_s6  ;;  %s68_s12 = ssub.s32 %s1987_s27, %s2484_s6 }
  0x12   : > { %s2100_s11 = scalar_select %p42_p4, %s1971_s23, %s44_s7  }
  0x13   : > { %p79_p6 = scmp.ne.s32.totalorder %s1963_s21, %s1959_s20  ;;  %s69_s13 = sor.u32 %s68_s12, %s40_s8 }
  0x14   : > { %2461 = sst [smem:[#allocation8_spill]] %s2100_s11  ;;  %p124_p7 = scmp.eq.s32.totalorder %s68_s12, 0 }
  0x15   : > { %p70_p8 = scmp.eq.s32.totalorder %s69_s13, 0  ;;  %p2106_p9 = por %p79_p6, %p52_p2 }
  0x16   : > { %s126_s15 = sadd.s32 1, %s1955_s19  ;;  %p136_p10 = scmp.ne.s32.totalorder %s1955_s19, %s1951_s18 }
  0x17   : > { %s2114_s16 = scalar_select %p70_p8, %s1963_s21, %s72_s10  }
  0x18   : > { %s2117_s17 = scalar_select %p124_p7, %s1955_s19, %s126_s15  }
  0x19   : > { %p137_p11 = scmp.eq.s32.totalorder %s1598_s29, 63  ;;  %p1601_p13 = scmp.ge.s32.totalorder %s1991_s28, 64 }
  0x1b   : > { %p2119_p12 = por %p137_p11, %p136_p10  ;;  %215 = sbr.rel (%p1601_p13) target bundleno = 122 (0x7a), region = 16 }
  0x22   : > { %218 = sbr.rel (!%p2092_p5) target bundleno = 48 (0x30), region = 20  ;;  %s220_s7 = sand.u32 (%p2092_p5), 1, %s1971_s23  }
  0x23   : > { %s1696_s8 = sshll.u32 (%p2092_p5), %s1983_s26, 4  ;;  %s1602_s12 = sshll.u32 (%p2092_p5), %s220_s7, 6 }
  0x24   : > { %s2464_s0 = sld [smem:[#allocation9_spill]] (%p2092_p5)  ;;  %s222_s29 = scalar_lea.vmem (%p2092_p5), [#allocation3], %s1602_s12 }
  0x2a   : > { %s228_s15 = scalar_lea.vmem %s2464_s0, %s1696_s8 }
  0x2b   : > { %v241_v0 = vld [vmem:[%s228_s15] sm:$0xff]  ;;  %v243_v1 = vld [vmem:[%s228_s15 + $0x8] sm:$0xff] }
  0x2c   : > { %v245_v2 = vld [vmem:[%s228_s15 + $0x100] sm:$0xff]  ;;  %242 = vst [vmem:[%s222_s29] sm:$0xff] %v241_v0  ;;  %244 = vst [vmem:[%s222_s29 + $0x8] sm:$0xff] %v243_v1  ;;  %v247_v3 = vld [vmem:[%s228_s15 + $0x108] sm:$0xff] }
  0x2d   : > { %246 = vst [vmem:[%s222_s29 + $0x10] sm:$0xff] %v245_v2  ;;  %v249_v4 = vld [vmem:[%s228_s15 + $0x200] sm:$0xff]  ;;  %v251_v5 = vld [vmem:[%s228_s15 + $0x208] sm:$0xff]  ;;  %248 = vst [vmem:[%s222_s29 + $0x18] sm:$0xff] %v247_v3 }
  0x2e   : > { %250 = vst [vmem:[%s222_s29 + $0x20] sm:$0xff] %v249_v4  ;;  %252 = vst [vmem:[%s222_s29 + $0x28] sm:$0xff] %v251_v5  ;;  %v253_v6 = vld [vmem:[%s228_s15 + $0x300] sm:$0xff]  ;;  %v255_v7 = vld [vmem:[%s228_s15 + $0x308] sm:$0xff] }
  0x2f   : > { %254 = vst [vmem:[%s222_s29 + $0x30] sm:$0xff] %v253_v6  ;;  %256 = vst [vmem:[%s222_s29 + $0x38] sm:$0xff] %v255_v7 }
  0x30 PF: > { %262 = sbr.rel (!%p2106_p9) target bundleno = 122 (0x7a), region = 43  ;;  %s264_s9 = sand.u32 (%p2106_p9), 1, %s1963_s21  }
  0x31   : > { %s1607_s7 = sshll.u32 (%p2106_p9), %s1987_s27, 1  ;;  %s1605_s8 = sshll.u32 (%p2106_p9), %s264_s9, 9 }
  0x32   : > { %s1697_s12 = sshll.u32 (%p2106_p9), %s1983_s26, 9  ;;  %s2465_s1 = sld [smem:[#allocation10_spill]] (%p2106_p9) }
  0x33   : > { %s270_s10 = sadd.s32 (%p2106_p9), %s1697_s12, %s1607_s7  ;;  %s2144_s14 = scalar_lea.vmem (%p2106_p9), [#allocation4], %s1605_s8 }
  0x34   : > { %s1609_s13 = sshll.u32 (%p2106_p9), %s270_s10, 2 }
  0x38   : > { %s2139_s11 = scalar_lea.vmem %s2465_s1, %s1609_s13 }
  0x39   : > { %v426_v8 = vld [vmem:[%s2139_s11] sm:$0xff] }
  0x3a   : > { %v428_v9 = vld [vmem:[%s2139_s11 + $0x20] sm:$0xff]  ;;  %427 = vst [vmem:[%s2144_s14] sm:$0xff] %v426_v8 }
  0x3b   : > { %v430_v10 = vld [vmem:[%s2139_s11 + $0x40] sm:$0xff]  ;;  %429 = vst [vmem:[%s2144_s14 + $0x8] sm:$0xff] %v428_v9 }
  0x3c   : > { %431 = vst [vmem:[%s2144_s14 + $0x10] sm:$0xff] %v430_v10  ;;  %v432_v11 = vld [vmem:[%s2139_s11 + $0x60] sm:$0xff] }
  0x3d   : > { %v434_v12 = vld [vmem:[%s2139_s11 + $0x80] sm:$0xff]  ;;  %433 = vst [vmem:[%s2144_s14 + $0x18] sm:$0xff] %v432_v11 }
  0x3e   : > { %v436_v13 = vld [vmem:[%s2139_s11 + $0xa0] sm:$0xff]  ;;  %435 = vst [vmem:[%s2144_s14 + $0x20] sm:$0xff] %v434_v12 }
  0x3f   : > { %437 = vst [vmem:[%s2144_s14 + $0x28] sm:$0xff] %v436_v13  ;;  %v438_v14 = vld [vmem:[%s2139_s11 + $0xc0] sm:$0xff] }
  0x40   : > { %v440_v15 = vld [vmem:[%s2139_s11 + $0xe0] sm:$0xff]  ;;  %439 = vst [vmem:[%s2144_s14 + $0x30] sm:$0xff] %v438_v14 }
  0x41   : > { %v442_v16 = vld [vmem:[%s2139_s11 + $0x100] sm:$0xff]  ;;  %441 = vst [vmem:[%s2144_s14 + $0x38] sm:$0xff] %v440_v15 }
  0x42   : > { %443 = vst [vmem:[%s2144_s14 + $0x40] sm:$0xff] %v442_v16  ;;  %v444_v17 = vld [vmem:[%s2139_s11 + $0x120] sm:$0xff] }
  0x43   : > { %v446_v18 = vld [vmem:[%s2139_s11 + $0x140] sm:$0xff]  ;;  %445 = vst [vmem:[%s2144_s14 + $0x48] sm:$0xff] %v444_v17 }
  0x44   : > { %v448_v19 = vld [vmem:[%s2139_s11 + $0x160] sm:$0xff]  ;;  %447 = vst [vmem:[%s2144_s14 + $0x50] sm:$0xff] %v446_v18 }
  0x45   : > { %449 = vst [vmem:[%s2144_s14 + $0x58] sm:$0xff] %v448_v19  ;;  %v450_v20 = vld [vmem:[%s2139_s11 + $0x180] sm:$0xff] }
  0x46   : > { %v452_v21 = vld [vmem:[%s2139_s11 + $0x1a0] sm:$0xff]  ;;  %451 = vst [vmem:[%s2144_s14 + $0x60] sm:$0xff] %v450_v20 }
  0x47   : > { %v454_v22 = vld [vmem:[%s2139_s11 + $0x1c0] sm:$0xff]  ;;  %453 = vst [vmem:[%s2144_s14 + $0x68] sm:$0xff] %v452_v21 }
  0x48   : > { %455 = vst [vmem:[%s2144_s14 + $0x70] sm:$0xff] %v454_v22  ;;  %v456_v23 = vld [vmem:[%s2139_s11 + $0x1e0] sm:$0xff] }
  0x49   : > { %v458_v24 = vld [vmem:[%s2139_s11 + $0x200] sm:$0xff]  ;;  %457 = vst [vmem:[%s2144_s14 + $0x78] sm:$0xff] %v456_v23 }
  0x4a   : > { %v460_v25 = vld [vmem:[%s2139_s11 + $0x220] sm:$0xff]  ;;  %459 = vst [vmem:[%s2144_s14 + $0x80] sm:$0xff] %v458_v24 }
  0x4b   : > { %461 = vst [vmem:[%s2144_s14 + $0x88] sm:$0xff] %v460_v25  ;;  %v462_v26 = vld [vmem:[%s2139_s11 + $0x240] sm:$0xff] }
  0x4c   : > { %v464_v27 = vld [vmem:[%s2139_s11 + $0x260] sm:$0xff]  ;;  %463 = vst [vmem:[%s2144_s14 + $0x90] sm:$0xff] %v462_v26 }
  0x4d   : > { %v466_v28 = vld [vmem:[%s2139_s11 + $0x280] sm:$0xff]  ;;  %465 = vst [vmem:[%s2144_s14 + $0x98] sm:$0xff] %v464_v27 }
  0x4e   : > { %467 = vst [vmem:[%s2144_s14 + $0xa0] sm:$0xff] %v466_v28  ;;  %v468_v29 = vld [vmem:[%s2139_s11 + $0x2a0] sm:$0xff] }
  0x4f   : > { %v470_v30 = vld [vmem:[%s2139_s11 + $0x2c0] sm:$0xff]  ;;  %469 = vst [vmem:[%s2144_s14 + $0xa8] sm:$0xff] %v468_v29 }
  0x50   : > { %v472_v31 = vld [vmem:[%s2139_s11 + $0x2e0] sm:$0xff]  ;;  %471 = vst [vmem:[%s2144_s14 + $0xb0] sm:$0xff] %v470_v30 }
  0x51   : > { %473 = vst [vmem:[%s2144_s14 + $0xb8] sm:$0xff] %v472_v31  ;;  %v474_v32 = vld [vmem:[%s2139_s11 + $0x300] sm:$0xff] }
  0x52   : > { %v476_v33 = vld [vmem:[%s2139_s11 + $0x320] sm:$0xff]  ;;  %475 = vst [vmem:[%s2144_s14 + $0xc0] sm:$0xff] %v474_v32 }
  0x53   : > { %v478_v34 = vld [vmem:[%s2139_s11 + $0x340] sm:$0xff]  ;;  %477 = vst [vmem:[%s2144_s14 + $0xc8] sm:$0xff] %v476_v33 }
  0x54   : > { %479 = vst [vmem:[%s2144_s14 + $0xd0] sm:$0xff] %v478_v34  ;;  %v480_v35 = vld [vmem:[%s2139_s11 + $0x360] sm:$0xff] }
  0x55   : > { %v482_v36 = vld [vmem:[%s2139_s11 + $0x380] sm:$0xff]  ;;  %481 = vst [vmem:[%s2144_s14 + $0xd8] sm:$0xff] %v480_v35 }
  0x56   : > { %v484_v37 = vld [vmem:[%s2139_s11 + $0x3a0] sm:$0xff]  ;;  %483 = vst [vmem:[%s2144_s14 + $0xe0] sm:$0xff] %v482_v36 }
  0x57   : > { %485 = vst [vmem:[%s2144_s14 + $0xe8] sm:$0xff] %v484_v37  ;;  %v486_v38 = vld [vmem:[%s2139_s11 + $0x3c0] sm:$0xff] }
  0x58   : > { %v488_v39 = vld [vmem:[%s2139_s11 + $0x3e0] sm:$0xff]  ;;  %487 = vst [vmem:[%s2144_s14 + $0xf0] sm:$0xff] %v486_v38 }
  0x59   : > { %v490_v40 = vld [vmem:[%s2139_s11 + $0x400] sm:$0xff]  ;;  %489 = vst [vmem:[%s2144_s14 + $0xf8] sm:$0xff] %v488_v39 }
  0x5a   : > { %491 = vst [vmem:[%s2144_s14 + $0x100] sm:$0xff] %v490_v40  ;;  %v492_v41 = vld [vmem:[%s2139_s11 + $0x420] sm:$0xff] }
  0x5b   : > { %v494_v42 = vld [vmem:[%s2139_s11 + $0x440] sm:$0xff]  ;;  %493 = vst [vmem:[%s2144_s14 + $0x108] sm:$0xff] %v492_v41 }
  0x5c   : > { %v496_v43 = vld [vmem:[%s2139_s11 + $0x460] sm:$0xff]  ;;  %495 = vst [vmem:[%s2144_s14 + $0x110] sm:$0xff] %v494_v42 }
  0x5d   : > { %497 = vst [vmem:[%s2144_s14 + $0x118] sm:$0xff] %v496_v43  ;;  %v498_v44 = vld [vmem:[%s2139_s11 + $0x480] sm:$0xff] }
  0x5e   : > { %v500_v45 = vld [vmem:[%s2139_s11 + $0x4a0] sm:$0xff]  ;;  %499 = vst [vmem:[%s2144_s14 + $0x120] sm:$0xff] %v498_v44 }
  0x5f   : > { %v502_v46 = vld [vmem:[%s2139_s11 + $0x4c0] sm:$0xff]  ;;  %501 = vst [vmem:[%s2144_s14 + $0x128] sm:$0xff] %v500_v45 }
  0x60   : > { %503 = vst [vmem:[%s2144_s14 + $0x130] sm:$0xff] %v502_v46  ;;  %v504_v47 = vld [vmem:[%s2139_s11 + $0x4e0] sm:$0xff] }
  0x61   : > { %v506_v48 = vld [vmem:[%s2139_s11 + $0x500] sm:$0xff]  ;;  %505 = vst [vmem:[%s2144_s14 + $0x138] sm:$0xff] %v504_v47 }
  0x62   : > { %v508_v49 = vld [vmem:[%s2139_s11 + $0x520] sm:$0xff]  ;;  %507 = vst [vmem:[%s2144_s14 + $0x140] sm:$0xff] %v506_v48 }
  0x63   : > { %509 = vst [vmem:[%s2144_s14 + $0x148] sm:$0xff] %v508_v49  ;;  %v510_v50 = vld [vmem:[%s2139_s11 + $0x540] sm:$0xff] }
  0x64   : > { %v512_v51 = vld [vmem:[%s2139_s11 + $0x560] sm:$0xff]  ;;  %511 = vst [vmem:[%s2144_s14 + $0x150] sm:$0xff] %v510_v50 }
  0x65   : > { %v514_v52 = vld [vmem:[%s2139_s11 + $0x580] sm:$0xff]  ;;  %513 = vst [vmem:[%s2144_s14 + $0x158] sm:$0xff] %v512_v51 }
  0x66   : > { %515 = vst [vmem:[%s2144_s14 + $0x160] sm:$0xff] %v514_v52  ;;  %v516_v53 = vld [vmem:[%s2139_s11 + $0x5a0] sm:$0xff] }
  0x67   : > { %v518_v54 = vld [vmem:[%s2139_s11 + $0x5c0] sm:$0xff]  ;;  %517 = vst [vmem:[%s2144_s14 + $0x168] sm:$0xff] %v516_v53 }
  0x68   : > { %v520_v55 = vld [vmem:[%s2139_s11 + $0x5e0] sm:$0xff]  ;;  %519 = vst [vmem:[%s2144_s14 + $0x170] sm:$0xff] %v518_v54 }
  0x69   : > { %521 = vst [vmem:[%s2144_s14 + $0x178] sm:$0xff] %v520_v55  ;;  %v522_v56 = vld [vmem:[%s2139_s11 + $0x600] sm:$0xff] }
  0x6a   : > { %v524_v57 = vld [vmem:[%s2139_s11 + $0x620] sm:$0xff]  ;;  %523 = vst [vmem:[%s2144_s14 + $0x180] sm:$0xff] %v522_v56 }
  0x6b   : > { %v526_v58 = vld [vmem:[%s2139_s11 + $0x640] sm:$0xff]  ;;  %525 = vst [vmem:[%s2144_s14 + $0x188] sm:$0xff] %v524_v57 }
  0x6c   : > { %527 = vst [vmem:[%s2144_s14 + $0x190] sm:$0xff] %v526_v58  ;;  %v528_v59 = vld [vmem:[%s2139_s11 + $0x660] sm:$0xff] }
  0x6d   : > { %v530_v60 = vld [vmem:[%s2139_s11 + $0x680] sm:$0xff]  ;;  %529 = vst [vmem:[%s2144_s14 + $0x198] sm:$0xff] %v528_v59 }
  0x6e   : > { %v532_v61 = vld [vmem:[%s2139_s11 + $0x6a0] sm:$0xff]  ;;  %531 = vst [vmem:[%s2144_s14 + $0x1a0] sm:$0xff] %v530_v60 }
  0x6f   : > { %533 = vst [vmem:[%s2144_s14 + $0x1a8] sm:$0xff] %v532_v61  ;;  %v534_v62 = vld [vmem:[%s2139_s11 + $0x6c0] sm:$0xff] }
  0x70   : > { %v536_v63 = vld [vmem:[%s2139_s11 + $0x6e0] sm:$0xff]  ;;  %535 = vst [vmem:[%s2144_s14 + $0x1b0] sm:$0xff] %v534_v62 }
  0x71   : > { %v538_v0 = vld [vmem:[%s2139_s11 + $0x700] sm:$0xff]  ;;  %537 = vst [vmem:[%s2144_s14 + $0x1b8] sm:$0xff] %v536_v63 }
  0x72   : > { %539 = vst [vmem:[%s2144_s14 + $0x1c0] sm:$0xff] %v538_v0  ;;  %v540_v1 = vld [vmem:[%s2139_s11 + $0x720] sm:$0xff] }
  0x73   : > { %v542_v2 = vld [vmem:[%s2139_s11 + $0x740] sm:$0xff]  ;;  %541 = vst [vmem:[%s2144_s14 + $0x1c8] sm:$0xff] %v540_v1 }
  0x74   : > { %v544_v3 = vld [vmem:[%s2139_s11 + $0x760] sm:$0xff]  ;;  %543 = vst [vmem:[%s2144_s14 + $0x1d0] sm:$0xff] %v542_v2 }
  0x75   : > { %545 = vst [vmem:[%s2144_s14 + $0x1d8] sm:$0xff] %v544_v3  ;;  %v546_v4 = vld [vmem:[%s2139_s11 + $0x780] sm:$0xff] }
  0x76   : > { %v548_v5 = vld [vmem:[%s2139_s11 + $0x7a0] sm:$0xff]  ;;  %547 = vst [vmem:[%s2144_s14 + $0x1e0] sm:$0xff] %v546_v4 }
  0x77   : > { %v550_v6 = vld [vmem:[%s2139_s11 + $0x7c0] sm:$0xff]  ;;  %549 = vst [vmem:[%s2144_s14 + $0x1e8] sm:$0xff] %v548_v5 }
  0x78   : > { %551 = vst [vmem:[%s2144_s14 + $0x1f0] sm:$0xff] %v550_v6  ;;  %v552_v7 = vld [vmem:[%s2139_s11 + $0x7e0] sm:$0xff] }
  0x79   : > { %553 = vst [vmem:[%s2144_s14 + $0x1f8] sm:$0xff] %v552_v7 }
  0x7a PF: > { %p1610_p0 = scmp.ge.s32.totalorder %s1991_s28, 1  ;;  %p566_p1 = scmp.lt.s32.totalorder %s1991_s28, 65 }
  0x7c   : > { %p567_p2 = pnand %p1610_p0, %p566_p1 }
  0x7d   : > { %s573_s0 = sand.u32 (!%p567_p2), 1, %s1967_s22   ;;  %s580_s6 = sand.u32 (!%p567_p2), 1, %s1959_s20  }
  0x7e   : > { %570 = sbr.rel (%p567_p2) target bundleno = 475 (0x1db), region = 85  ;;  %s1611_s15 = sshll.u32 (!%p567_p2), %s573_s0, 6 }
  0x7f   : > { %s1612_s29 = sshll.u32 (!%p567_p2), %s580_s6, 9  ;;  %s607_s9 = sand.u32 (!%p567_p2), 1, %s1951_s18  }
  0x80   : > { %s1614_s7 = sshll.u32 (!%p567_p2), %s1979_s25, 1  ;;  %s1613_s11 = sshll.u32 (!%p567_p2), %s607_s9, 6 }
  0x81   : > { %p635_p3 = scmp.lt.s32.totalorder (!%p567_p2), %s1614_s7, 7  ;;  %s2291_s6 = scalar_lea.vmem (!%p567_p2), [#allocation3], %s1611_s15 }
  0x82   : > { %s2293_s9 = scalar_lea.vmem (!%p567_p2), [#allocation4], %s1612_s29  ;;  %s2295_s1 = scalar_lea.vmem (!%p567_p2), [#allocation5], %s1613_s11 }
  0x83   : > { %p1617_p4 = scmp.ne.s32.totalorder (!%p567_p2), %s1975_s24, 0 }
  0x85   : > { %s2486_s7 = smov (!%p635_p3, %s1614_s7), 7  ;;  %662 = sbr.rel (%p1617_p4) target bundleno = 140 (0x8c), region = 97 }
  0x86   : > { %s637_s10 = scalar_lea.vmem %s2450_s2, %s2486_s7  ;;  %s648_s22 = scalar_lea.vmem %s2452_s4, %s2486_s7  ;;  %v1993_v8 = vmov (!%p1617_p4), 0.0  }
  0x87   : > { %s657_s18 = scalar_lea.vmem %s2453_s5, %s2486_s7  ;;  %663 = vst [vmem:[#allocation2] sm:$0xff] (!%p1617_p4), %v1993_v8  ;;  %664 = vst [vmem:[#allocation2 + $0x8] sm:$0xff] (!%p1617_p4), %v1993_v8 }
  0x88   : > { %665 = vst [vmem:[#allocation2 + $0x10] sm:$0xff] (!%p1617_p4), %v1993_v8  ;;  %666 = vst [vmem:[#allocation2 + $0x18] sm:$0xff] (!%p1617_p4), %v1993_v8 }
  0x89   : > { %667 = vst [vmem:[#allocation2 + $0x20] sm:$0xff] (!%p1617_p4), %v1993_v8  ;;  %668 = vst [vmem:[#allocation2 + $0x28] sm:$0xff] (!%p1617_p4), %v1993_v8 }
  0x8a   : > { %669 = vst [vmem:[#allocation2 + $0x30] sm:$0xff] (!%p1617_p4), %v1993_v8  ;;  %670 = vst [vmem:[#allocation2 + $0x38] sm:$0xff] (!%p1617_p4), %v1993_v8 }
  0x8c PF: > { %v1797_v9 = vld [vmem:[%s2293_s9 + $0x4] ss:$8 sps:$4 sm:$0xff]   ;;  %v1801_v11 = vld [vmem:[%s2293_s9] ss:$8 sps:$4 sm:$0xff]   ;;  %v1803_v13 = vld [vmem:[%s2293_s9 + $0x14] ss:$8 sps:$4 sm:$0xff]  }
  0x8d   : > { %v1799_v10 = vld [vmem:[%s2293_s9 + $0x104] ss:$8 sps:$4 sm:$0xff]   ;;  %1111 = vmatprep.subr.bf16.mxu1 %v1797_v9  ;;  %v1802_v12 = vld [vmem:[%s2293_s9 + $0x100] ss:$8 sps:$4 sm:$0xff]   ;;  %v1805_v14 = vld [vmem:[%s2293_s9 + $0x114] ss:$8 sps:$4 sm:$0xff]  }
  0x8e   : > { %1164 = vmatprep.subr.bf16.mxu0 %v1799_v10  ;;  %1112 = vmatpush1.bf16.msra.mxu1 %v1801_v11  ;;  %v1807_v15 = vld [vmem:[%s2293_s9 + $0x10] ss:$8 sps:$4 sm:$0xff]   ;;  %v1809_v17 = vld [vmem:[%s2293_s9 + $0x24] ss:$8 sps:$4 sm:$0xff]   ;;  %v1813_v19 = vld [vmem:[%s2293_s9 + $0x20] ss:$8 sps:$4 sm:$0xff]  }
  0x8f   : > { %1165 = vmatpush1.bf16.msra.mxu0 %v1802_v12  ;;  %1113 = vmatprep.subr.bf16.mxu1 %v1803_v13  ;;  %v1808_v16 = vld [vmem:[%s2293_s9 + $0x110] ss:$8 sps:$4 sm:$0xff]   ;;  %v1811_v18 = vld [vmem:[%s2293_s9 + $0x124] ss:$8 sps:$4 sm:$0xff]   ;;  %v1814_v20 = vld [vmem:[%s2293_s9 + $0x120] ss:$8 sps:$4 sm:$0xff]  }
  0x90   : > { %1166 = vmatprep.subr.bf16.mxu0 %v1805_v14  ;;  %v1815_v21 = vld [vmem:[%s2293_s9 + $0x34] ss:$8 sps:$4 sm:$0xff]   ;;  %v1819_v23 = vld [vmem:[%s2293_s9 + $0x30] ss:$8 sps:$4 sm:$0xff]   ;;  %v1821_v25 = vld [vmem:[%s2293_s9 + $0x44] ss:$8 sps:$4 sm:$0xff]  }
  0x91   : > { %v1817_v22 = vld [vmem:[%s2293_s9 + $0x134] ss:$8 sps:$4 sm:$0xff]   ;;  %v1820_v24 = vld [vmem:[%s2293_s9 + $0x130] ss:$8 sps:$4 sm:$0xff]   ;;  %v1823_v26 = vld [vmem:[%s2293_s9 + $0x144] ss:$8 sps:$4 sm:$0xff]  }
  0x92   : > { %1114 = vmatpush1.bf16.msra.mxu1 %v1807_v15  ;;  %v1825_v27 = vld [vmem:[%s2293_s9 + $0x40] ss:$8 sps:$4 sm:$0xff]   ;;  %v1827_v29 = vld [vmem:[%s2293_s9 + $0x54] ss:$8 sps:$4 sm:$0xff]   ;;  %v1831_v31 = vld [vmem:[%s2293_s9 + $0x50] ss:$8 sps:$4 sm:$0xff]  }
  0x93   : > { %1167 = vmatpush1.bf16.msra.mxu0 %v1808_v16  ;;  %1115 = vmatprep.subr.bf16.mxu1 %v1809_v17  ;;  %v1826_v28 = vld [vmem:[%s2293_s9 + $0x140] ss:$8 sps:$4 sm:$0xff]   ;;  %v1829_v30 = vld [vmem:[%s2293_s9 + $0x154] ss:$8 sps:$4 sm:$0xff]   ;;  %v1832_v32 = vld [vmem:[%s2293_s9 + $0x150] ss:$8 sps:$4 sm:$0xff]  }
  0x94   : > { %1168 = vmatprep.subr.bf16.mxu0 %v1811_v18  ;;  %v1833_v33 = vld [vmem:[%s2293_s9 + $0x64] ss:$8 sps:$4 sm:$0xff]   ;;  %v1837_v35 = vld [vmem:[%s2293_s9 + $0x60] ss:$8 sps:$4 sm:$0xff]   ;;  %v1839_v37 = vld [vmem:[%s2293_s9 + $0x74] ss:$8 sps:$4 sm:$0xff]  }
  0x95   : > { %v1835_v34 = vld [vmem:[%s2293_s9 + $0x164] ss:$8 sps:$4 sm:$0xff]   ;;  %v1838_v36 = vld [vmem:[%s2293_s9 + $0x160] ss:$8 sps:$4 sm:$0xff]   ;;  %v1841_v38 = vld [vmem:[%s2293_s9 + $0x174] ss:$8 sps:$4 sm:$0xff]  }
  0x96   : > { %1116 = vmatpush1.bf16.msra.mxu1 %v1813_v19  ;;  %v1843_v39 = vld [vmem:[%s2293_s9 + $0x70] ss:$8 sps:$4 sm:$0xff]   ;;  %v1845_v41 = vld [vmem:[%s2293_s9 + $0x84] ss:$8 sps:$4 sm:$0xff]   ;;  %v1849_v43 = vld [vmem:[%s2293_s9 + $0x80] ss:$8 sps:$4 sm:$0xff]  }
  0x97   : > { %1169 = vmatpush1.bf16.msra.mxu0 %v1814_v20  ;;  %1117 = vmatprep.subr.bf16.mxu1 %v1815_v21  ;;  %v1844_v40 = vld [vmem:[%s2293_s9 + $0x170] ss:$8 sps:$4 sm:$0xff]   ;;  %v1847_v42 = vld [vmem:[%s2293_s9 + $0x184] ss:$8 sps:$4 sm:$0xff]   ;;  %v1850_v44 = vld [vmem:[%s2293_s9 + $0x180] ss:$8 sps:$4 sm:$0xff]  }
  0x98   : > { %1170 = vmatprep.subr.bf16.mxu0 %v1817_v22  ;;  %v1851_v45 = vld [vmem:[%s2293_s9 + $0x94] ss:$8 sps:$4 sm:$0xff]   ;;  %v1855_v47 = vld [vmem:[%s2293_s9 + $0x90] ss:$8 sps:$4 sm:$0xff]   ;;  %v1857_v49 = vld [vmem:[%s2293_s9 + $0xa4] ss:$8 sps:$4 sm:$0xff]  }
  0x99   : > { %v1853_v46 = vld [vmem:[%s2293_s9 + $0x194] ss:$8 sps:$4 sm:$0xff]   ;;  %v1856_v48 = vld [vmem:[%s2293_s9 + $0x190] ss:$8 sps:$4 sm:$0xff]   ;;  %v1859_v50 = vld [vmem:[%s2293_s9 + $0x1a4] ss:$8 sps:$4 sm:$0xff]  }
  0x9a   : > { %1118 = vmatpush1.bf16.msra.mxu1 %v1819_v23  ;;  %v1861_v51 = vld [vmem:[%s2293_s9 + $0xa0] ss:$8 sps:$4 sm:$0xff]   ;;  %v1863_v53 = vld [vmem:[%s2293_s9 + $0xb4] ss:$8 sps:$4 sm:$0xff]   ;;  %v1867_v55 = vld [vmem:[%s2293_s9 + $0xb0] ss:$8 sps:$4 sm:$0xff]  }
  0x9b   : > { %1171 = vmatpush1.bf16.msra.mxu0 %v1820_v24  ;;  %1119 = vmatprep.subr.bf16.mxu1 %v1821_v25  ;;  %v1862_v52 = vld [vmem:[%s2293_s9 + $0x1a0] ss:$8 sps:$4 sm:$0xff]   ;;  %v1865_v54 = vld [vmem:[%s2293_s9 + $0x1b4] ss:$8 sps:$4 sm:$0xff]   ;;  %v1868_v56 = vld [vmem:[%s2293_s9 + $0x1b0] ss:$8 sps:$4 sm:$0xff]  }
  0x9c   : > { %1172 = vmatprep.subr.bf16.mxu0 %v1823_v26  ;;  %v1869_v57 = vld [vmem:[%s2293_s9 + $0xc4] ss:$8 sps:$4 sm:$0xff]   ;;  %v1873_v61 = vld [vmem:[%s2293_s9 + $0xc0] ss:$8 sps:$4 sm:$0xff]   ;;  %v1875_v63 = vld [vmem:[%s2293_s9 + $0xd4] ss:$8 sps:$4 sm:$0xff]  }
  0x9d   : > { %v1895_v58 = vld [vmem:[%s2291_s6 + $0x4] ss:$16 sps:$4 sm:$0xff]   ;;  %v1898_v60 = vld [vmem:[%s2291_s6 + $0xc] ss:$16 sps:$4 sm:$0xff]   ;;  %v1874_v62 = vld [vmem:[%s2293_s9 + $0x1c0] ss:$8 sps:$4 sm:$0xff]  }
  0x9e   : > { %1120 = vmatpush1.bf16.msra.mxu1 %v1825_v27  ;;  %v1871_v59 = vld [vmem:[%s2293_s9 + $0x1c4] ss:$8 sps:$4 sm:$0xff]   ;;  %1143 = vmatprep.mubr.bf16.mxu1 %v1895_v58  ;;  %v1877_v0 = vld [vmem:[%s2293_s9 + $0x1d4] ss:$8 sps:$4 sm:$0xff]   ;;  %v1879_v1 = vld [vmem:[%s2293_s9 + $0xd0] ss:$8 sps:$4 sm:$0xff]  }
  0x9f   : > { %1173 = vmatpush1.bf16.msra.mxu0 %v1826_v28  ;;  %1121 = vmatprep.subr.bf16.mxu1 %v1827_v29  ;;  %v1880_v2 = vld [vmem:[%s2293_s9 + $0x1d0] ss:$8 sps:$4 sm:$0xff]   ;;  %v1881_v3 = vld [vmem:[%s2293_s9 + $0xe4] ss:$8 sps:$4 sm:$0xff]   ;;  %v1885_v5 = vld [vmem:[%s2293_s9 + $0xe0] ss:$8 sps:$4 sm:$0xff]  }
  0xa0   : > { %1174 = vmatprep.subr.bf16.mxu0 %v1829_v30  ;;  %1196 = vmatprep.mubr.bf16.mxu0 %v1898_v60  ;;  %v1883_v4 = vld [vmem:[%s2293_s9 + $0x1e4] ss:$8 sps:$4 sm:$0xff]   ;;  %v1886_v6 = vld [vmem:[%s2293_s9 + $0x1e0] ss:$8 sps:$4 sm:$0xff]   ;;  %v1887_v7 = vld [vmem:[%s2293_s9 + $0xf4] ss:$8 sps:$4 sm:$0xff]  }
  0xa1   : > { %v1889_v8 = vld [vmem:[%s2293_s9 + $0x1f4] ss:$8 sps:$4 sm:$0xff]   ;;  %v1891_v9 = vld [vmem:[%s2293_s9 + $0xf0] ss:$8 sps:$4 sm:$0xff]   ;;  %v671_v18 = vld [vmem:[#allocation2] sm:$0xff]  ;;  %p1690_p5 = scmp.ne.s32.totalorder %s1975_s24, 15 }
  0xa2   : > { %1122 = vmatpush1.bf16.msra.mxu1 %v1831_v31  ;;  %v1892_v10 = vld [vmem:[%s2293_s9 + $0x1f0] ss:$8 sps:$4 sm:$0xff]   ;;  %v1899_v13 = vld [vmem:[%s2291_s6 + $0x24] ss:$16 sps:$4 sm:$0xff]   ;;  %v1901_v14 = vld [vmem:[%s2291_s6 + $0x2c] ss:$16 sps:$4 sm:$0xff]  }
  0xa3   : > { %1175 = vmatpush1.bf16.msra.mxu0 %v1832_v32  ;;  %1123 = vmatprep.subr.bf16.mxu1 %v1833_v33  ;;  %v1893_v11 = vld [vmem:[%s2291_s6] ss:$16 sps:$4 sm:$0xff]   ;;  %v1896_v12 = vld [vmem:[%s2291_s6 + $0x8] ss:$16 sps:$4 sm:$0xff]  }
  0xa4   : > { %1176 = vmatprep.subr.bf16.mxu0 %v1835_v34  ;;  %v1903_v15 = vld [vmem:[%s2291_s6 + $0x20] ss:$16 sps:$4 sm:$0xff]   ;;  %v1904_v16 = vld [vmem:[%s2291_s6 + $0x28] ss:$16 sps:$4 sm:$0xff]  }
  0xa5   : > { %v672_v22 = vld [vmem:[#allocation2 + $0x8] sm:$0xff]  ;;  %v673_v26 = vld [vmem:[#allocation2 + $0x10] sm:$0xff]  ;;  %v674_v31 = vld [vmem:[#allocation2 + $0x18] sm:$0xff] }
  0xa6   : > { %1124 = vmatpush1.bf16.msra.mxu1 %v1837_v35 }
  0xa7   : > { %1177 = vmatpush1.bf16.msra.mxu0 %v1838_v36  ;;  %1125 = vmatprep.subr.bf16.mxu1 %v1839_v37 }
  0xa8   : > { %1178 = vmatprep.subr.bf16.mxu0 %v1841_v38  ;;  %v675_v38 = vld [vmem:[#allocation2 + $0x20] sm:$0xff] }
  0xaa   : > { %1126 = vmatpush1.bf16.msra.mxu1 %v1843_v39 }
  0xab   : > { %1179 = vmatpush1.bf16.msra.mxu0 %v1844_v40  ;;  %1127 = vmatprep.subr.bf16.mxu1 %v1845_v41 }
  0xac   : > { %1180 = vmatprep.subr.bf16.mxu0 %v1847_v42  ;;  %v676_v42 = vld [vmem:[#allocation2 + $0x28] sm:$0xff] }
  0xae   : > { %1128 = vmatpush1.bf16.msra.mxu1 %v1849_v43 }
  0xaf   : > { %1181 = vmatpush1.bf16.msra.mxu0 %v1850_v44  ;;  %1129 = vmatprep.subr.bf16.mxu1 %v1851_v45 }
  0xb0   : > { %1182 = vmatprep.subr.bf16.mxu0 %v1853_v46  ;;  %v677_v46 = vld [vmem:[#allocation2 + $0x30] sm:$0xff] }
  0xb2   : > { %1130 = vmatpush1.bf16.msra.mxu1 %v1855_v47 }
  0xb3   : > { %1183 = vmatpush1.bf16.msra.mxu0 %v1856_v48  ;;  %1131 = vmatprep.subr.bf16.mxu1 %v1857_v49 }
  0xb4   : > { %1184 = vmatprep.subr.bf16.mxu0 %v1859_v50 }
  0xb6   : > { %1132 = vmatpush1.bf16.msra.mxu1 %v1861_v51  ;;  %v678_v51 = vld [vmem:[#allocation2 + $0x38] sm:$0xff] }
  0xb7   : > { %1185 = vmatpush1.bf16.msra.mxu0 %v1862_v52  ;;  %1133 = vmatprep.subr.bf16.mxu1 %v1863_v53 }
  0xb8   : > { %1186 = vmatprep.subr.bf16.mxu0 %v1865_v54 }
  0xba   : > { %1134 = vmatpush1.bf16.msra.mxu1 %v1867_v55 }
  0xbb   : > { %1187 = vmatpush1.bf16.msra.mxu0 %v1868_v56  ;;  %1135 = vmatprep.subr.bf16.mxu1 %v1869_v57  ;;  %v1247_v57 = vlaneseq (!%p1690_p5) }
  0xbc   : > { %1188 = vmatprep.subr.bf16.mxu0 %v1871_v59  ;;  %v1245_v59 = vld [vmem:[%s637_s10] sm:$0x3] (!%p1690_p5) }
  0xbd   : > { %v2372_v58 = vshrl.u32 (!%p1690_p5), %v1247_v57, 7  ;;  %vm1303_vm0 = vcmp.lt.s32.totalorder (!%p1690_p5), %v1247_v57, 256 }
  0xbe   : > { %1136 = vmatpush1.bf16.msra.mxu1 %v1873_v61 }
  0xbf   : > { %1189 = vmatpush1.bf16.msra.mxu0 %v1874_v62  ;;  %1137 = vmatprep.subr.bf16.mxu1 %v1875_v63  ;;  %v1249_v62 = vsub.s32 (!%p1690_p5), 0, %v2372_v58  ;;  %v1253_v63 = vsub.s32 (!%p1690_p5), 1, %v2372_v58 }
  0xc0   : > { %1190 = vmatprep.subr.bf16.mxu0 %v1877_v0 }
  0xc2   : > { %1138 = vmatpush1.bf16.msra.mxu1 %v1879_v1 }
  0xc3   : > { %1191 = vmatpush1.bf16.msra.mxu0 %v1880_v2  ;;  %1139 = vmatprep.subr.bf16.mxu1 %v1881_v3 }
  0xc4   : > { %1192 = vmatprep.subr.bf16.mxu0 %v1883_v4 }
  0xc6   : > { %1140 = vmatpush1.bf16.msra.mxu1 %v1885_v5 }
  0xc7   : > { %1193 = vmatpush1.bf16.msra.mxu0 %v1886_v6  ;;  %1141 = vmatprep.subr.bf16.mxu1 %v1887_v7  ;;  %v1250_v6 = vrot.slane (!%p1690_p5), %v1245_v59, %v1249_v62  ;;  %v1254_v7 = vrot.slane (!%p1690_p5), %v1245_v59, %v1253_v63 }
  0xc8   : > { %1194 = vmatprep.subr.bf16.mxu0 %v1889_v8 }
  0xca   : > { %1142 = vmatpush1.bf16.msra.mxu1 %v1891_v9 }
  0xcb   : > { %1195 = vmatpush1.bf16.msra.mxu0 %v1892_v10 }
  0xcd   : > { %1144 = vmatmul.mubr.bf16.vlgmr.msra.gmra.mrb[0].mxu1 %v1893_v11 }
  0xce   : > { %1197 = vmatmul.mubr.bf16.vlgmr.msra.gmra.mrb[0].mxu0 %v1896_v12  ;;  %1153 = vmatprep.mubr.bf16.mxu1 %v1899_v13 }
  0xcf   : > { %1206 = vmatprep.mubr.bf16.mxu0 %v1901_v14 }
  0xd5   : > { %1154 = vmatmul.mubr.bf16.gmra.mrb[4].mxu1 %v1903_v15 }
  0xd6   : > { %1207 = vmatmul.mubr.bf16.gmra.mrb[4].mxu0 %v1904_v16 }
 0x1a0   : > { %v1145_v17 = vpop.f32.mrb[0].mxu1 }
 0x1a1   : > { %v1198_v19 = vpop.f32.mrb[0].mxu0  ;;  %v1147_v21 = vpop.f32.mrb[1].mxu1 }
 0x1a2   : > { %v1199_v20 = vadd.f32 %v1198_v19, %v1145_v17  ;;  %v1200_v23 = vpop.f32.mrb[1].mxu0  ;;  %v1149_v25 = vpop.f32.mrb[2].mxu1 }
 0x1a3   : > { %v1201_v24 = vadd.f32 %v1200_v23, %v1147_v21  ;;  %v1202_v27 = vpop.f32.mrb[2].mxu0  ;;  %v1151_v30 = vpop.f32.mrb[3].mxu1 }
 0x1a4   : > { %v1217_v28 = vadd.f32 %v1199_v20, %v671_v18  ;;  %v1203_v29 = vadd.f32 %v1202_v27, %v1149_v25  ;;  %v1204_v32 = vpop.f32.mrb[3].mxu0 }
 0x1a5   : > { %v1218_v33 = vadd.f32 %v1201_v24, %v672_v22  ;;  %v1205_v34 = vadd.f32 %v1204_v32, %v1151_v30 }
 0x1a6   : > { %1225 = vst [vmem:[#allocation2] sm:$0xff] %v1217_v28  ;;  %v1219_v35 = vadd.f32 %v1203_v29, %v673_v26 }
 0x1a7   : > { %1226 = vst [vmem:[#allocation2 + $0x8] sm:$0xff] %v1218_v33  ;;  %v1220_v36 = vadd.f32 %v1205_v34, %v674_v31 }
 0x1a8   : > { %1227 = vst [vmem:[#allocation2 + $0x10] sm:$0xff] %v1219_v35  ;;  %v1155_v37 = vpop.f32.mrb[4].mxu1 }
 0x1a9   : > { %1228 = vst [vmem:[#allocation2 + $0x18] sm:$0xff] %v1220_v36  ;;  %v1208_v39 = vpop.f32.mrb[4].mxu0  ;;  %v1157_v41 = vpop.f32.mrb[5].mxu1 }
 0x1aa   : > { %v1209_v40 = vadd.f32 %v1208_v39, %v1155_v37  ;;  %v1210_v43 = vpop.f32.mrb[5].mxu0  ;;  %v1159_v45 = vpop.f32.mrb[6].mxu1 }
 0x1ab   : > { %v1211_v44 = vadd.f32 %v1210_v43, %v1157_v41  ;;  %v1212_v47 = vpop.f32.mrb[6].mxu0  ;;  %v1161_v50 = vpop.f32.mrb[7].mxu1  ;;  %1236 = sbr.rel (%p1690_p5) target bundleno = 466 (0x1d2), region = 101 }
 0x1ac   : > { %v1221_v48 = vadd.f32 %v1209_v40, %v675_v38  ;;  %v1213_v49 = vadd.f32 %v1212_v47, %v1159_v45  ;;  %v1214_v52 = vpop.f32.mrb[7].mxu0  ;;  %v1994_v40 = vmov (!%p1690_p5), 1966171168  }
 0x1ad   : > { %v1222_v53 = vadd.f32 %v1211_v44, %v676_v42  ;;  %v1215_v54 = vadd.f32 %v1214_v52, %v1161_v50  ;;  %v1237_v60 = vld [vmem:[#allocation2] sm:$0xff] (!%p1690_p5)  ;;  %v1287_v41 = vunpack.c.l.s4 (!%p1690_p5), %v1994_v40 }
 0x1ae   : > { %1229 = vst [vmem:[#allocation2 + $0x20] sm:$0xff] %v1221_v48  ;;  %v1223_v55 = vadd.f32 %v1213_v49, %v677_v46  ;;  %v1238_v61 = vld [vmem:[#allocation2 + $0x8] sm:$0xff] (!%p1690_p5)  ;;  %v1257_v8 = vadd.f32 (!%p1690_p5), %v1250_v6, %v1237_v60 }
 0x1af   : > { %1230 = vst [vmem:[#allocation2 + $0x28] sm:$0xff] %v1222_v53  ;;  %v1224_v56 = vadd.f32 %v1215_v54, %v678_v51  ;;  %v1239_v0 = vld [vmem:[#allocation2 + $0x10] sm:$0xff] (!%p1690_p5)  ;;  %v1258_v9 = vadd.f32 (!%p1690_p5), %v1254_v7, %v1238_v61  ;;  %v1288_v50 = vunpack.c.0.s8 (!%p1690_p5), %v1287_v41 }
 0x1b0   : > { %1231 = vst [vmem:[#allocation2 + $0x30] sm:$0xff] %v1223_v55  ;;  %v1240_v1 = vld [vmem:[#allocation2 + $0x18] sm:$0xff] (!%p1690_p5)  ;;  %v1259_v10 = vadd.f32 (!%p1690_p5), %v1250_v6, %v1239_v0  ;;  %1351 = vst [vmem:[%s2295_s1] sm:$0xff] (!%p1690_p5), %v1257_v8  ;;  %v1306_v18 = vmul.f32 (!%p1690_p5), %v1257_v8, %v1257_v8 }
 0x1b1   : > { %1232 = vst [vmem:[#allocation2 + $0x38] sm:$0xff] %v1224_v56  ;;  %v1260_v11 = vadd.f32 (!%p1690_p5), %v1254_v7, %v1240_v1  ;;  %1352 = vst [vmem:[%s2295_s1 + $0x8] sm:$0xff] (!%p1690_p5), %v1258_v9  ;;  %v1307_v19 = vmul.f32 (!%p1690_p5), %v1258_v9, %v1258_v9  ;;  %v1291_v61 = vsub.s32 (!%p1690_p5), %v1288_v50, %v2372_v58 }
 0x1b2   : > { %v1265_v16 = vadd.f32 %v1259_v10, %v1257_v8  ;;  %1353 = vst [vmem:[%s2295_s1 + $0x10] sm:$0xff] %v1259_v10  ;;  %v1308_v20 = vmul.f32 %v1259_v10, %v1259_v10 }
 0x1b3   : > { %v1274_v17 = vadd.f32 %v1260_v11, %v1258_v9  ;;  %1354 = vst [vmem:[%s2295_s1 + $0x18] sm:$0xff] %v1260_v11  ;;  %v1309_v21 = vmul.f32 %v1260_v11, %v1260_v11 }
 0x1b4   : > { %v1314_v28 = vadd.f32 %v1308_v20, %v1306_v18 }
 0x1b5   : > { %v1241_v2 = vld [vmem:[#allocation2 + $0x20] sm:$0xff]  ;;  %v1323_v29 = vadd.f32 %v1309_v21, %v1307_v19 }
 0x1b6   : > { %v1242_v3 = vld [vmem:[#allocation2 + $0x28] sm:$0xff]  ;;  %v1261_v12 = vadd.f32 %v1250_v6, %v1241_v2 }
 0x1b7   : > { %v1243_v4 = vld [vmem:[#allocation2 + $0x30] sm:$0xff]  ;;  %v1262_v13 = vadd.f32 %v1254_v7, %v1242_v3 }
 0x1b8   : > { %v1244_v5 = vld [vmem:[#allocation2 + $0x38] sm:$0xff]  ;;  %v1263_v14 = vadd.f32 %v1250_v6, %v1243_v4  ;;  %1355 = vst [vmem:[%s2295_s1 + $0x20] sm:$0xff] %v1261_v12  ;;  %v1310_v22 = vmul.f32 %v1261_v12, %v1261_v12  ;;  %v1266_v24 = vadd.f32 %v1265_v16, %v1261_v12 }
 0x1b9   : > { %v1264_v15 = vadd.f32 %v1254_v7, %v1244_v5  ;;  %1356 = vst [vmem:[%s2295_s1 + $0x28] sm:$0xff] %v1262_v13  ;;  %v1311_v23 = vmul.f32 %v1262_v13, %v1262_v13  ;;  %v1275_v25 = vadd.f32 %v1274_v17, %v1262_v13 }
 0x1ba   : > { %1357 = vst [vmem:[%s2295_s1 + $0x30] sm:$0xff] %v1263_v14  ;;  %v1312_v26 = vmul.f32 %v1263_v14, %v1263_v14  ;;  %v1267_v30 = vadd.f32 %v1266_v24, %v1263_v14  ;;  %v1315_v32 = vadd.f32 %v1314_v28, %v1310_v22 }
 0x1bb   : > { %1358 = vst [vmem:[%s2295_s1 + $0x38] sm:$0xff] %v1264_v15  ;;  %v1313_v27 = vmul.f32 %v1264_v15, %v1264_v15  ;;  %v1276_v31 = vadd.f32 %v1275_v25, %v1264_v15  ;;  %v1324_v33 = vadd.f32 %v1323_v29, %v1311_v23 }
 0x1bc   : > { %v1268_v34 = vrot.slane %v1267_v30, 4  ;;  %v1316_v36 = vadd.f32 %v1315_v32, %v1312_v26 }
 0x1bd   : > { %v1277_v35 = vrot.slane %v1276_v31, 4  ;;  %v1325_v37 = vadd.f32 %v1324_v33, %v1313_v27 }
 0x1be   : > { %v1269_v38 = vadd.f32 %v1268_v34, %v1267_v30  ;;  %v1317_v42 = vrot.slane %v1316_v36, 4 }
 0x1bf   : > { %v1278_v39 = vadd.f32 %v1277_v35, %v1276_v31  ;;  %v1326_v43 = vrot.slane %v1325_v37, 4 }
 0x1c0   : > { %v1270_v44 = vrot.slane %v1269_v38, 2  ;;  %v1318_v46 = vadd.f32 %v1317_v42, %v1316_v36 }
 0x1c1   : > { %v1279_v45 = vrot.slane %v1278_v39, 2  ;;  %v1327_v47 = vadd.f32 %v1326_v43, %v1325_v37 }
 0x1c2   : > { %v1271_v48 = vadd.f32 %v1270_v44, %v1269_v38  ;;  %v1319_v51 = vrot.slane %v1318_v46, 2 }
 0x1c3   : > { %v1280_v49 = vadd.f32 %v1279_v45, %v1278_v39  ;;  %v1328_v52 = vrot.slane %v1327_v47, 2 }
 0x1c4   : > { %v1272_v53 = vrot.slane %v1271_v48, 1  ;;  %v1320_v55 = vadd.f32 %v1319_v51, %v1318_v46 }
 0x1c5   : > { %v1281_v54 = vrot.slane %v1280_v49, 1  ;;  %v1329_v56 = vadd.f32 %v1328_v52, %v1327_v47 }
 0x1c6   : > { %v1273_v59 = vadd.f32 %v1272_v53, %v1271_v48  ;;  %v1321_v62 = vrot.slane %v1320_v55, 1 }
 0x1c7   : > { %v1282_v60 = vadd.f32 %v1281_v54, %v1280_v49  ;;  %v1330_v63 = vrot.slane %v1329_v56, 1 }
 0x1c8   : > { %v1322_v1 = vadd.f32 %v1321_v62, %v1320_v55 }
 0x1c9   : > { %v1285_v0 = vcombine.low %v1273_v59, %v1282_v60  ;;  %v1331_v2 = vadd.f32 %v1330_v63, %v1329_v56 }
 0x1cb   : > { %v1292_v3 = vrot.slane %v1285_v0, %v1291_v61  ;;  %v1334_v4 = vcombine.low %v1322_v1, %v1331_v2 }
 0x1cd   : > { %v1299_v5 = vrot.slane %v1292_v3, %v1291_v61  ;;  %v1341_v6 = vrot.slane %v1334_v4, %v1291_v61 }
 0x1cf   : > { %1305 = vst.msk [vmem:[%s648_s22] sm:$0x3] %vm1303_vm0, %v1299_v5  ;;  %v1348_v7 = vrot.slane %v1341_v6, %v1291_v61 }
 0x1d1   : > { %1350 = vst.msk [vmem:[%s657_s18] sm:$0x3] %vm1303_vm0, %v1348_v7 }
 0x1d2 PF: > { %1381 = sbr.rel (!%p2119_p12) target bundleno = 475 (0x1db), region = 105  ;;  %s1698_s10 = sshll.u32 (%p2119_p12), %s1979_s25, 4  ;;  %v1406_v9 = vld [vmem:[%s2295_s1 + $0x18] sm:$0xff] (%p2119_p12)  ;;  %v1408_v10 = vld [vmem:[%s2295_s1 + $0x20] sm:$0xff] (%p2119_p12)  ;;  %v1410_v11 = vld [vmem:[%s2295_s1 + $0x28] sm:$0xff] (%p2119_p12) }
 0x1d3   : > { %s1387_s14 = scalar_lea.vmem (%p2119_p12), %s2451_s3, %s1698_s10  ;;  %v1412_v12 = vld [vmem:[%s2295_s1 + $0x30] sm:$0xff] (%p2119_p12)  ;;  %v1414_v13 = vld [vmem:[%s2295_s1 + $0x38] sm:$0xff] (%p2119_p12) }
 0x1d4   : > { %1407 = vst [vmem:[%s1387_s14 + $0x48] sm:$0xff] (%p2119_p12), %v1406_v9  ;;  %1409 = vst [vmem:[%s1387_s14 + $0x80] sm:$0xff] (%p2119_p12), %v1408_v10 }
 0x1d5   : > { %1411 = vst [vmem:[%s1387_s14 + $0x88] sm:$0xff] (%p2119_p12), %v1410_v11  ;;  %1413 = vst [vmem:[%s1387_s14 + $0xc0] sm:$0xff] (%p2119_p12), %v1412_v12 }
 0x1d6   : > { %1415 = vst [vmem:[%s1387_s14 + $0xc8] sm:$0xff] (%p2119_p12), %v1414_v13 }
 0x1d7   : > { %v1400_v57 = vld [vmem:[%s2295_s1] sm:$0xff] (%p2119_p12) }
 0x1d8   : > { %v1402_v58 = vld [vmem:[%s2295_s1 + $0x8] sm:$0xff] (%p2119_p12)  ;;  %1401 = vst [vmem:[%s1387_s14] sm:$0xff] (%p2119_p12), %v1400_v57 }
 0x1d9   : > { %v1404_v8 = vld [vmem:[%s2295_s1 + $0x10] sm:$0xff]  ;;  %1403 = vst [vmem:[%s1387_s14 + $0x8] sm:$0xff] %v1402_v58 }
 0x1da   : > { %1405 = vst [vmem:[%s1387_s14 + $0x40] sm:$0xff] %v1404_v8 }
 0x1db PF: > { %s16_s28 = sadd.s32 1, %s1991_s28   ;;  %s2466_s25 = sld [smem:[#allocation8_spill]] }
 0x1dc   : > { %p13_p6 = scmp.ge.s32.totalorder %s16_s28, 66   ;;  %s2467_s30 = sld [smem:[#allocation6_spill]] }
 0x1dd   : > { %s2468_s0 = sld [smem:[#allocation7_spill]]  ;;  %s2469_s18 = smov %s1955_s19 }
 0x1de   : > { %s2470_s19 = smov %s2117_s17  ;;  %s2471_s20 = smov %s1963_s21 }
 0x1df   : > { %s2472_s21 = smov %s2114_s16  ;;  %s2473_s22 = smov %s1971_s23 }
 0x1e0   : > { %s2475_s24 = smov %s1983_s26  ;;  %15 = sbr.rel (!%p13_p6) target bundleno = 9 (0x9), region = 194 }
 0x1e1   : > { %s2474_s23 = smov %s2466_s25  ;;  %s2476_s25 = smov %s1987_s27 }
 0x1e2   : > { %s2477_s26 = smov %s2467_s30 }
 0x1e3   : > { %s2478_s27 = smov %s2468_s0 }

// kernel: discriminator_forward.17
= control target key start
LH: loop header
LB: loop body
LE: loop exit
PB: predicated region body
PF: predicated region fallthrough
CT: control target
= control target key end

     0   :  { %v48_v0 = vlaneseq  ;;  %s662_s1 = inlined_call_operand.vmem [shape: f32[1,1024], index: 1, kind: input, shape index: {}]   ;;  %s663_s2 = inlined_call_operand.vmem [shape: f32[1,1024], index: 2, kind: input, shape index: {}]   ;;  %s664_s0 = inlined_call_operand.vmem [shape: f32[32,1024], index: 0, kind: input, shape index: {}]   ;;  %s665_s3 = inlined_call_operand.vmem [shape: f32[32,1024], index: 3, kind: output, shape index: {}]  }
   0x1   :  { %v46_v2 = vld [vmem:[%s662_s1] sm:$0xff]  ;;  %v15_v9 = vld [vmem:[%s664_s0 + $0x8] sm:$0xff]  ;;  %v16_v18 = vld [vmem:[%s664_s0 + $0x10] sm:$0xff] }
   0x2   :  { %v346_v1 = vshrl.u32 %v48_v0, 7  ;;  %v354_v3 = vld [vmem:[%s663_s2] sm:$0xff]  ;;  %v17_v19 = vld [vmem:[%s664_s0 + $0x18] sm:$0xff]  ;;  %v19_v29 = vld [vmem:[%s664_s0 + $0x28] sm:$0xff] }
   0x3   :  { %v14_v8 = vld [vmem:[%s664_s0] sm:$0xff]  ;;  %v20_v41 = vld [vmem:[%s664_s0 + $0x30] sm:$0xff]  ;;  %v21_v51 = vld [vmem:[%s664_s0 + $0x38] sm:$0xff] }
   0x4   :  { %v50_v4 = vsub.s32 0, %v346_v1  ;;  %v54_v5 = vsub.s32 1, %v346_v1  ;;  %v58_v6 = vsub.s32 2, %v346_v1  ;;  %v62_v7 = vsub.s32 3, %v346_v1  ;;  %v18_v24 = vld [vmem:[%s664_s0 + $0x20] sm:$0xff]  ;;  %v23_v57 = vld [vmem:[%s664_s0 + $0x48] sm:$0xff] }
   0x5   :  { %v66_v10 = vsub.s32 4, %v346_v1  ;;  %v70_v11 = vsub.s32 5, %v346_v1  ;;  %v74_v12 = vsub.s32 6, %v346_v1  ;;  %v78_v13 = vsub.s32 7, %v346_v1  ;;  %v22_v52 = vld [vmem:[%s664_s0 + $0x40] sm:$0xff]  ;;  %v24_v58 = vld [vmem:[%s664_s0 + $0x50] sm:$0xff] }
   0x6   :  { %v370_v14 = vrot.slane %v46_v2, %v50_v4  ;;  %v373_v15 = vrot.slane %v354_v3, %v50_v4  ;;  %v375_v16 = vrot.slane %v46_v2, %v54_v5  ;;  %v378_v17 = vrot.slane %v354_v3, %v54_v5  ;;  %v25_v1 = vld [vmem:[%s664_s0 + $0x58] sm:$0xff] }
   0x7   :  { %v386_v20 = vrot.slane %v46_v2, %v58_v6  ;;  %v389_v21 = vrot.slane %v354_v3, %v58_v6  ;;  %v391_v22 = vrot.slane %v46_v2, %v62_v7  ;;  %v394_v23 = vrot.slane %v354_v3, %v62_v7 }
   0x8   :  { %v88_v25 = vmul.f32 %v370_v14, %v14_v8  ;;  %v89_v26 = vmul.f32 %v375_v16, %v15_v9  ;;  %v401_v27 = vrot.slane %v46_v2, %v66_v10  ;;  %v404_v28 = vrot.slane %v354_v3, %v66_v10 }
   0x9   :  { %v90_v30 = vmul.f32 %v386_v20, %v16_v18  ;;  %v91_v31 = vmul.f32 %v391_v22, %v17_v19  ;;  %v411_v32 = vrot.slane %v46_v2, %v70_v11  ;;  %v414_v33 = vrot.slane %v354_v3, %v70_v11 }
   0xa   :  { %v162_v34 = vadd.f32 %v373_v15, %v88_v25  ;;  %v163_v35 = vadd.f32 %v378_v17, %v89_v26  ;;  %v92_v36 = vmul.f32 %v401_v27, %v18_v24  ;;  %v419_v37 = vrot.slane %v46_v2, %v74_v12  ;;  %v27_v24 = vld [vmem:[%s664_s0 + $0x68] sm:$0xff]  ;;  %v28_v25 = vld [vmem:[%s664_s0 + $0x70] sm:$0xff] }
   0xb   :  { %v164_v38 = vadd.f32 %v389_v21, %v90_v30  ;;  %v165_v39 = vadd.f32 %v394_v23, %v91_v31  ;;  %v93_v40 = vmul.f32 %v411_v32, %v19_v29  ;;  %v428_v42 = vrot.slane %v354_v3, %v74_v12 }
   0xc   :  { %vm194_vm0 = vcmp.gt.f32.partialorder %v162_v34, 0.0  ;;  %v226_v43 = vmul.f32 0.2, %v162_v34  ;;  %vm195_vm1 = vcmp.gt.f32.partialorder %v163_v35, 0.0  ;;  %v227_v44 = vmul.f32 0.2, %v163_v35 }
   0xd   :  { %vm196_vm2 = vcmp.gt.f32.partialorder %v164_v38, 0.0  ;;  %v228_v45 = vmul.f32 0.2, %v164_v38  ;;  %vm197_vm3 = vcmp.gt.f32.partialorder %v165_v39, 0.0  ;;  %v229_v46 = vmul.f32 0.2, %v165_v39 }
   0xe   :  { %v258_v47 = vsel %vm194_vm0, %v162_v34, %v226_v43  ;;  %v259_v48 = vsel %vm195_vm1, %v163_v35, %v227_v44  ;;  %v166_v49 = vadd.f32 %v404_v28, %v92_v36  ;;  %v167_v50 = vadd.f32 %v414_v33, %v93_v40  ;;  %v29_v36 = vld [vmem:[%s664_s0 + $0x78] sm:$0xff]  ;;  %v30_v43 = vld [vmem:[%s664_s0 + $0x80] sm:$0xff]  ;;  %v31_v44 = vld [vmem:[%s664_s0 + $0x88] sm:$0xff] }
   0xf   :  { %290 = vst [vmem:[%s665_s3] sm:$0xff] %v258_v47  ;;  %291 = vst [vmem:[%s665_s3 + $0x8] sm:$0xff] %v259_v48  ;;  %v260_v53 = vsel %vm196_vm2, %v164_v38, %v228_v45  ;;  %v261_v54 = vsel %vm197_vm3, %v165_v39, %v229_v46  ;;  %v94_v55 = vmul.f32 %v419_v37, %v20_v41  ;;  %v32_v45 = vld [vmem:[%s664_s0 + $0x90] sm:$0xff] }
  0x10   :  { %v445_v56 = vrot.slane %v46_v2, %v78_v13  ;;  %292 = vst [vmem:[%s665_s3 + $0x10] sm:$0xff] %v260_v53  ;;  %293 = vst [vmem:[%s665_s3 + $0x18] sm:$0xff] %v261_v54  ;;  %vm198_vm4 = vcmp.gt.f32.partialorder %v166_v49, 0.0  ;;  %v230_v59 = vmul.f32 0.2, %v166_v49  ;;  %vm199_vm5 = vcmp.gt.f32.partialorder %v167_v50, 0.0 }
  0x11   :  { %v231_v60 = vmul.f32 0.2, %v167_v50  ;;  %v168_v61 = vadd.f32 %v428_v42, %v94_v55  ;;  %v462_v63 = vrot.slane %v354_v3, %v78_v13  ;;  %v96_v0 = vmul.f32 %v370_v14, %v22_v52  ;;  %v26_v2 = vld [vmem:[%s664_s0 + $0x60] sm:$0xff] }
  0x12   :  { %v95_v62 = vmul.f32 %v445_v56, %v21_v51  ;;  %v262_v4 = vsel %vm198_vm4, %v166_v49, %v230_v59  ;;  %v97_v6 = vmul.f32 %v375_v16, %v23_v57  ;;  %v98_v7 = vmul.f32 %v386_v20, %v24_v58  ;;  %v33_v57 = vld [vmem:[%s664_s0 + $0x98] sm:$0xff]  ;;  %v34_v58 = vld [vmem:[%s664_s0 + $0xa0] sm:$0xff] }
  0x13   :  { %v263_v5 = vsel %vm199_vm5, %v167_v50, %v231_v60  ;;  %294 = vst [vmem:[%s665_s3 + $0x20] sm:$0xff] %v262_v4  ;;  %vm200_vm6 = vcmp.gt.f32.partialorder %v168_v61, 0.0  ;;  %v232_v3 = vmul.f32 0.2, %v168_v61  ;;  %v170_v9 = vadd.f32 %v373_v15, %v96_v0 }
  0x14   :  { %295 = vst [vmem:[%s665_s3 + $0x28] sm:$0xff] %v263_v5  ;;  %v169_v8 = vadd.f32 %v462_v63, %v95_v62  ;;  %v171_v10 = vadd.f32 %v378_v17, %v97_v6  ;;  %v172_v11 = vadd.f32 %v389_v21, %v98_v7  ;;  %v99_v12 = vmul.f32 %v391_v22, %v25_v1 }
  0x15   :  { %v100_v13 = vmul.f32 %v401_v27, %v26_v2  ;;  %v264_v18 = vsel %vm200_vm6, %v168_v61, %v232_v3  ;;  %vm202_vm8 = vcmp.gt.f32.partialorder %v170_v9, 0.0  ;;  %v234_v26 = vmul.f32 0.2, %v170_v9 }
  0x16   :  { %vm201_vm7 = vcmp.gt.f32.partialorder %v169_v8, 0.0  ;;  %v233_v19 = vmul.f32 0.2, %v169_v8  ;;  %296 = vst [vmem:[%s665_s3 + $0x30] sm:$0xff] %v264_v18  ;;  %vm203_vm9 = vcmp.gt.f32.partialorder %v171_v10, 0.0  ;;  %vm204_vm10 = vcmp.gt.f32.partialorder %v172_v11, 0.0 }
  0x17   :  { %v235_v29 = vmul.f32 0.2, %v171_v10  ;;  %v236_v31 = vmul.f32 0.2, %v172_v11  ;;  %v173_v34 = vadd.f32 %v394_v23, %v99_v12  ;;  %v174_v35 = vadd.f32 %v404_v28, %v100_v13 }
  0x18   :  { %v265_v30 = vsel %vm201_vm7, %v169_v8, %v233_v19  ;;  %v266_v38 = vsel %vm202_vm8, %v170_v9, %v234_v26  ;;  %v101_v40 = vmul.f32 %v411_v32, %v27_v24  ;;  %v102_v41 = vmul.f32 %v419_v37, %v28_v25  ;;  %v35_v8 = vld [vmem:[%s664_s0 + $0xa8] sm:$0xff]  ;;  %v36_v9 = vld [vmem:[%s664_s0 + $0xb0] sm:$0xff]  ;;  %v37_v24 = vld [vmem:[%s664_s0 + $0xb8] sm:$0xff] }
  0x19   :  { %297 = vst [vmem:[%s665_s3 + $0x38] sm:$0xff] %v265_v30  ;;  %v267_v39 = vsel %vm203_vm9, %v171_v10, %v235_v29  ;;  %298 = vst [vmem:[%s665_s3 + $0x40] sm:$0xff] %v266_v38  ;;  %v268_v46 = vsel %vm204_vm10, %v172_v11, %v236_v31  ;;  %vm205_vm11 = vcmp.gt.f32.partialorder %v173_v34, 0.0  ;;  %v237_v47 = vmul.f32 0.2, %v173_v34  ;;  %v38_v31 = vld [vmem:[%s664_s0 + $0xc0] sm:$0xff] }
  0x1a   :  { %299 = vst [vmem:[%s665_s3 + $0x48] sm:$0xff] %v267_v39  ;;  %vm206_vm12 = vcmp.gt.f32.partialorder %v174_v35, 0.0  ;;  %300 = vst [vmem:[%s665_s3 + $0x50] sm:$0xff] %v268_v46  ;;  %v238_v48 = vmul.f32 0.2, %v174_v35  ;;  %v175_v49 = vadd.f32 %v414_v33, %v101_v40  ;;  %v176_v50 = vadd.f32 %v428_v42, %v102_v41 }
  0x1b   :  { %v103_v51 = vmul.f32 %v445_v56, %v29_v36  ;;  %v269_v52 = vsel %vm205_vm11, %v173_v34, %v237_v47  ;;  %v104_v53 = vmul.f32 %v370_v14, %v30_v43  ;;  %v105_v54 = vmul.f32 %v375_v16, %v31_v44  ;;  %v39_v34 = vld [vmem:[%s664_s0 + $0xc8] sm:$0xff] }
  0x1c   :  { %v106_v55 = vmul.f32 %v386_v20, %v32_v45  ;;  %301 = vst [vmem:[%s665_s3 + $0x58] sm:$0xff] %v269_v52  ;;  %v270_v59 = vsel %vm206_vm12, %v174_v35, %v238_v48  ;;  %vm207_vm13 = vcmp.gt.f32.partialorder %v175_v49, 0.0  ;;  %v239_v60 = vmul.f32 0.2, %v175_v49  ;;  %v40_v35 = vld [vmem:[%s664_s0 + $0xd0] sm:$0xff]  ;;  %v41_v48 = vld [vmem:[%s664_s0 + $0xd8] sm:$0xff] }
  0x1d   :  { %vm208_vm14 = vcmp.gt.f32.partialorder %v176_v50, 0.0  ;;  %302 = vst [vmem:[%s665_s3 + $0x60] sm:$0xff] %v270_v59  ;;  %v240_v61 = vmul.f32 0.2, %v176_v50  ;;  %v177_v62 = vadd.f32 %v462_v63, %v103_v51  ;;  %v178_v0 = vadd.f32 %v373_v15, %v104_v53 }
  0x1e   :  { %v179_v1 = vadd.f32 %v378_v17, %v105_v54  ;;  %v271_v2 = vsel %vm207_vm13, %v175_v49, %v239_v60  ;;  %v180_v4 = vadd.f32 %v389_v21, %v106_v55  ;;  %v107_v5 = vmul.f32 %v391_v22, %v33_v57  ;;  %v42_v49 = vld [vmem:[%s664_s0 + $0xe0] sm:$0xff] }
  0x1f   :  { %v108_v6 = vmul.f32 %v401_v27, %v34_v58  ;;  %303 = vst [vmem:[%s665_s3 + $0x68] sm:$0xff] %v271_v2  ;;  %v272_v7 = vsel %vm208_vm14, %v176_v50, %v240_v61  ;;  %vm209_vm15 = vcmp.gt.f32.partialorder %v177_v62, 0.0  ;;  %v241_v3 = vmul.f32 0.2, %v177_v62 }
  0x20   :  { %vm210_vm0 = vcmp.gt.f32.partialorder %v178_v0, 0.0  ;;  %304 = vst [vmem:[%s665_s3 + $0x70] sm:$0xff] %v272_v7  ;;  %v242_v10 = vmul.f32 0.2, %v178_v0  ;;  %vm211_vm1 = vcmp.gt.f32.partialorder %v179_v1, 0.0  ;;  %vm212_vm2 = vcmp.gt.f32.partialorder %v180_v4, 0.0 }
  0x21   :  { %v243_v11 = vmul.f32 0.2, %v179_v1  ;;  %v273_v12 = vsel %vm209_vm15, %v177_v62, %v241_v3  ;;  %v244_v13 = vmul.f32 0.2, %v180_v4  ;;  %v181_v18 = vadd.f32 %v394_v23, %v107_v5 }
  0x22   :  { %v182_v19 = vadd.f32 %v404_v28, %v108_v6  ;;  %305 = vst [vmem:[%s665_s3 + $0x78] sm:$0xff] %v273_v12  ;;  %v274_v25 = vsel %vm210_vm0, %v178_v0, %v242_v10  ;;  %v109_v29 = vmul.f32 %v411_v32, %v35_v8  ;;  %v110_v30 = vmul.f32 %v419_v37, %v36_v9  ;;  %v45_v0 = vld [vmem:[%s664_s0 + $0xf8] sm:$0xff] }
  0x23   :  { %v275_v26 = vsel %vm211_vm1, %v179_v1, %v243_v11  ;;  %306 = vst [vmem:[%s665_s3 + $0x80] sm:$0xff] %v274_v25  ;;  %v276_v36 = vsel %vm212_vm2, %v180_v4, %v244_v13  ;;  %vm213_vm3 = vcmp.gt.f32.partialorder %v181_v18, 0.0  ;;  %v245_v38 = vmul.f32 0.2, %v181_v18 }
  0x24   :  { %307 = vst [vmem:[%s665_s3 + $0x88] sm:$0xff] %v275_v26  ;;  %vm214_vm4 = vcmp.gt.f32.partialorder %v182_v19, 0.0  ;;  %308 = vst [vmem:[%s665_s3 + $0x90] sm:$0xff] %v276_v36  ;;  %v246_v39 = vmul.f32 0.2, %v182_v19  ;;  %v183_v40 = vadd.f32 %v414_v33, %v109_v29  ;;  %v184_v41 = vadd.f32 %v428_v42, %v110_v30 }
  0x25   :  { %v111_v43 = vmul.f32 %v445_v56, %v37_v24  ;;  %v277_v44 = vsel %vm213_vm3, %v181_v18, %v245_v38  ;;  %v112_v45 = vmul.f32 %v370_v14, %v38_v31  ;;  %v113_v46 = vmul.f32 %v375_v16, %v39_v34 }
  0x26   :  { %v114_v47 = vmul.f32 %v386_v20, %v40_v35  ;;  %309 = vst [vmem:[%s665_s3 + $0x98] sm:$0xff] %v277_v44  ;;  %v278_v50 = vsel %vm214_vm4, %v182_v19, %v246_v39  ;;  %vm215_vm5 = vcmp.gt.f32.partialorder %v183_v40, 0.0  ;;  %v247_v51 = vmul.f32 0.2, %v183_v40 }
  0x27   :  { %vm216_vm6 = vcmp.gt.f32.partialorder %v184_v41, 0.0  ;;  %310 = vst [vmem:[%s665_s3 + $0xa0] sm:$0xff] %v278_v50  ;;  %v248_v14 = vmul.f32 0.2, %v184_v41  ;;  %v185_v16 = vadd.f32 %v462_v63, %v111_v43  ;;  %v186_v20 = vadd.f32 %v373_v15, %v112_v45  ;;  %v43_v15 = vld [vmem:[%s664_s0 + $0xe8] sm:$0xff] }
  0x28   :  { %v187_v52 = vadd.f32 %v378_v17, %v113_v46  ;;  %v279_v53 = vsel %vm215_vm5, %v183_v40, %v247_v51  ;;  %v188_v54 = vadd.f32 %v389_v21, %v114_v47  ;;  %v115_v55 = vmul.f32 %v391_v22, %v41_v48  ;;  %v44_v17 = vld [vmem:[%s664_s0 + $0xf0] sm:$0xff] }
  0x29   :  { %v116_v57 = vmul.f32 %v401_v27, %v42_v49  ;;  %311 = vst [vmem:[%s665_s3 + $0xa8] sm:$0xff] %v279_v53  ;;  %v280_v58 = vsel %vm216_vm6, %v184_v41, %v248_v14  ;;  %vm217_vm7 = vcmp.gt.f32.partialorder %v185_v16, 0.0  ;;  %v249_v59 = vmul.f32 0.2, %v185_v16 }
  0x2a   :  { %vm218_vm8 = vcmp.gt.f32.partialorder %v186_v20, 0.0  ;;  %312 = vst [vmem:[%s665_s3 + $0xb0] sm:$0xff] %v280_v58  ;;  %v250_v21 = vmul.f32 0.2, %v186_v20  ;;  %vm219_vm9 = vcmp.gt.f32.partialorder %v187_v52, 0.0  ;;  %vm220_vm10 = vcmp.gt.f32.partialorder %v188_v54, 0.0 }
  0x2b   :  { %v251_v22 = vmul.f32 0.2, %v187_v52  ;;  %v281_v27 = vsel %vm217_vm7, %v185_v16, %v249_v59  ;;  %v252_v60 = vmul.f32 0.2, %v188_v54  ;;  %v189_v61 = vadd.f32 %v394_v23, %v115_v55 }
  0x2c   :  { %v190_v62 = vadd.f32 %v404_v28, %v116_v57  ;;  %313 = vst [vmem:[%s665_s3 + $0xb8] sm:$0xff] %v281_v27  ;;  %v282_v1 = vsel %vm218_vm8, %v186_v20, %v250_v21  ;;  %v117_v4 = vmul.f32 %v411_v32, %v43_v15  ;;  %v118_v5 = vmul.f32 %v419_v37, %v44_v17 }
  0x2d   :  { %v283_v2 = vsel %vm219_vm9, %v187_v52, %v251_v22  ;;  %314 = vst [vmem:[%s665_s3 + $0xc0] sm:$0xff] %v282_v1  ;;  %v284_v23 = vsel %vm220_vm10, %v188_v54, %v252_v60  ;;  %vm221_vm11 = vcmp.gt.f32.partialorder %v189_v61, 0.0  ;;  %v253_v28 = vmul.f32 0.2, %v189_v61 }
  0x2e   :  { %315 = vst [vmem:[%s665_s3 + $0xc8] sm:$0xff] %v283_v2  ;;  %vm222_vm12 = vcmp.gt.f32.partialorder %v190_v62, 0.0  ;;  %316 = vst [vmem:[%s665_s3 + $0xd0] sm:$0xff] %v284_v23  ;;  %v254_v6 = vmul.f32 0.2, %v190_v62  ;;  %v191_v32 = vadd.f32 %v414_v33, %v117_v4  ;;  %v192_v37 = vadd.f32 %v428_v42, %v118_v5 }
  0x2f   :  { %v119_v7 = vmul.f32 %v445_v56, %v45_v0  ;;  %v285_v3 = vsel %vm221_vm11, %v189_v61, %v253_v28 }
  0x30   :  { %317 = vst [vmem:[%s665_s3 + $0xd8] sm:$0xff] %v285_v3  ;;  %v286_v8 = vsel %vm222_vm12, %v190_v62, %v254_v6  ;;  %vm223_vm13 = vcmp.gt.f32.partialorder %v191_v32, 0.0  ;;  %v255_v9 = vmul.f32 0.2, %v191_v32  ;;  %vm224_vm14 = vcmp.gt.f32.partialorder %v192_v37, 0.0 }
  0x31   :  { %318 = vst [vmem:[%s665_s3 + $0xe0] sm:$0xff] %v286_v8  ;;  %v256_v10 = vmul.f32 0.2, %v192_v37  ;;  %v193_v33 = vadd.f32 %v462_v63, %v119_v7 }
  0x32   :  { %v287_v11 = vsel %vm223_vm13, %v191_v32, %v255_v9 }
  0x33   :  { %319 = vst [vmem:[%s665_s3 + $0xe8] sm:$0xff] %v287_v11  ;;  %v288_v42 = vsel %vm224_vm14, %v192_v37, %v256_v10  ;;  %vm225_vm15 = vcmp.gt.f32.partialorder %v193_v33, 0.0  ;;  %v257_v56 = vmul.f32 0.2, %v193_v33 }
  0x34   :  { %320 = vst [vmem:[%s665_s3 + $0xf0] sm:$0xff] %v288_v42 }
  0x35   :  { %v289_v12 = vsel %vm225_vm15, %v193_v33, %v257_v56 }
  0x36   :  { %321 = vst [vmem:[%s665_s3 + $0xf8] sm:$0xff] %v289_v12 }

// kernel: discriminator_forward.18
= control target key start
LH: loop header
LB: loop body
LE: loop exit
PB: predicated region body
PF: predicated region fallthrough
CT: control target
= control target key end

     0   :  { %s1043_s12 = smov 0   ;;  %s1045_s13 = smov 0   ;;  %s1159_s0 = inlined_call_operand.vmem [shape: bf16[16,16384], index: 0, kind: input, shape index: {}]   ;;  %s1160_s1 = inlined_call_operand.vmem [shape: bf16[16384,128], index: 1, kind: input, shape index: {}]   ;;  %s1161_s2 = inlined_call_operand.vmem [shape: f32[1,128], index: 2, kind: input, shape index: {}]   ;;  %s1162_s3 = inlined_call_operand.vmem [shape: f32[16,128], index: 3, kind: output, shape index: {}]  }
   0x1   :  { %s1047_s14 = smov 0   ;;  %s1049_s15 = smov 0  }
   0x2   :  { %s1051_s16 = smov 0  }
   0x3 LB: > { %s25_s17 = sadd.s32 1, %s1016_s15  ;;  %p48_p1 = scmp.ne.s32.totalorder %s1008_s13, %s1004_s12  ;;  %s1020_s16 = sphi %s1051_s16, %s13_s16   ;;  %s1016_s15 = sphi %s1049_s15, %s1166_s15   ;;  %s1012_s14 = sphi %s1047_s14, %s1165_s14   ;;  %s1008_s13 = sphi %s1045_s13, %s1164_s13   ;;  %s1004_s12 = sphi %s1043_s12, %s1163_s12  }
   0x4   : > { %p26_p0 = scmp.ge.s32.totalorder %s25_s17, 32  ;;  %p49_p2 = scmp.eq.s32.totalorder %s1020_s16, 0 }
   0x5   : > { %s41_s19 = sadd.s32 1, %s1008_s13  ;;  %p797_p5 = scmp.ge.s32.totalorder %s1020_s16, 32 }
   0x6   : > { %s1168_s17 = smov (%p26_p0, %s25_s17), 0  ;;  %p50_p3 = por %p49_p2, %p48_p1 }
   0x7   : > { %s37_s18 = ssub.s32 %s1016_s15, %s1168_s17  ;;  %162 = sbr.rel (%p797_p5) target bundleno = 21 (0x15), region = 20 }
   0x8   : > { %p39_p4 = scmp.eq.s32.totalorder %s37_s18, 0 }
   0xa   : > { %s1078_s20 = scalar_select %p39_p4, %s1008_s13, %s41_s19  }
   0xe   : > { %165 = sbr.rel (!%p50_p3) target bundleno = 21 (0x15), region = 24  ;;  %s167_s21 = sand.u32 (%p50_p3), 1, %s1008_s13  }
   0xf   : > { %s850_s22 = sshll.u32 (%p50_p3), %s1016_s15, 4  ;;  %s798_s23 = sshll.u32 (%p50_p3), %s167_s21, 5 }
  0x10   : > { %s175_s26 = scalar_lea.vmem (%p50_p3), %s1159_s0, %s850_s22  ;;  %s169_s27 = scalar_lea.vmem (%p50_p3), [#allocation3], %s798_s23 }
  0x11   : > { %v188_v0 = vld [vmem:[%s175_s26] sm:$0xff] (%p50_p3)  ;;  %v190_v1 = vld [vmem:[%s175_s26 + $0x8] sm:$0xff] (%p50_p3) }
  0x12   : > { %v192_v2 = vld [vmem:[%s175_s26 + $0x200] sm:$0xff] (%p50_p3)  ;;  %189 = vst [vmem:[%s169_s27] sm:$0xff] (%p50_p3), %v188_v0  ;;  %191 = vst [vmem:[%s169_s27 + $0x8] sm:$0xff] (%p50_p3), %v190_v1  ;;  %v194_v3 = vld [vmem:[%s175_s26 + $0x208] sm:$0xff] (%p50_p3) }
  0x13   : > { %193 = vst [vmem:[%s169_s27 + $0x10] sm:$0xff] (%p50_p3), %v192_v2  ;;  %195 = vst [vmem:[%s169_s27 + $0x18] sm:$0xff] (%p50_p3), %v194_v3 }
  0x15 PF: > { %p801_p6 = scmp.ge.s32.totalorder %s1020_s16, 1  ;;  %p212_p7 = scmp.lt.s32.totalorder %s1020_s16, 33 }
  0x17   : > { %p213_p8 = pnand %p801_p6, %p212_p7 }
  0x18   : > { %s219_s28 = sand.u32 (!%p213_p8), 1, %s1004_s12   ;;  %s803_s29 = sshll.u32 (!%p213_p8), %s1012_s14, 6 }
  0x19   : > { %216 = sbr.rel (%p213_p8) target bundleno = 332 (0x14c), region = 51  ;;  %s802_s30 = sshll.u32 (!%p213_p8), %s219_s28, 5 }
  0x1a   : > { %p259_p9 = scmp.lt.s32.totalorder (!%p213_p8), %s803_s29, 2047  ;;  %s1095_s8 = scalar_lea.vmem (!%p213_p8), [#allocation3], %s802_s30 }
  0x1b   : > { %p805_p10 = scmp.ne.s32.totalorder (!%p213_p8), %s1012_s14, 0 }
  0x20   : > { %s1170_s29 = smov (!%p259_p9, %s803_s29), 2047  ;;  %283 = sbr.rel (%p805_p10) target bundleno = 39 (0x27), region = 59 }
  0x21   : > { %s804_s4 = sshll.u32 %s1170_s29, 2  ;;  %v1022_v4 = vmov (!%p805_p10), 0.0  }
  0x22   : > { %s1093_s7 = scalar_lea.vmem %s1160_s1, %s804_s4  ;;  %284 = vst [vmem:[#allocation2] sm:$0xff] (!%p805_p10), %v1022_v4  ;;  %285 = vst [vmem:[#allocation2 + $0x8] sm:$0xff] (!%p805_p10), %v1022_v4 }
  0x27 PF: > { %v936_v5 = vld [vmem:[%s1093_s7 + $0x40] sm:$0xff]   ;;  %v940_v9 = vld [vmem:[%s1093_s7 + $0x48] sm:$0xff]   ;;  %v944_v13 = vld [vmem:[%s1093_s7 + $0x50] sm:$0xff]   ;;  %p842_p11 = scmp.ne.s32.totalorder %s1012_s14, 31 }
  0x28   : > { %v937_v6 = vld [vmem:[%s1093_s7 + $0xc0] sm:$0xff]   ;;  %851 = vmatprep.subr.bf16.mxu0 %v936_v5  ;;  %v941_v10 = vld [vmem:[%s1093_s7 + $0xc8] sm:$0xff]   ;;  %v945_v14 = vld [vmem:[%s1093_s7 + $0xd0] sm:$0xff]  }
  0x29   : > { %v938_v7 = vld [vmem:[%s1093_s7] sm:$0xff]   ;;  %873 = vmatprep.subr.bf16.mxu1 %v937_v6  ;;  %v942_v11 = vld [vmem:[%s1093_s7 + $0x8] sm:$0xff]   ;;  %v946_v15 = vld [vmem:[%s1093_s7 + $0x10] sm:$0xff]  }
  0x2a   : > { %v939_v8 = vld [vmem:[%s1093_s7 + $0x80] sm:$0xff]   ;;  %852 = vmatpush3.bf16.msra.mxu0 %v938_v7  ;;  %v943_v12 = vld [vmem:[%s1093_s7 + $0x88] sm:$0xff]   ;;  %v947_v16 = vld [vmem:[%s1093_s7 + $0x90] sm:$0xff]  }
  0x2b   : > { %874 = vmatpush3.bf16.msra.mxu1 %v939_v8  ;;  %853 = vmatprep.subr.bf16.mxu0 %v940_v9  ;;  %v948_v17 = vld [vmem:[%s1093_s7 + $0x58] sm:$0xff]   ;;  %v952_v21 = vld [vmem:[%s1093_s7 + $0x60] sm:$0xff]   ;;  %v956_v25 = vld [vmem:[%s1093_s7 + $0x68] sm:$0xff]  }
  0x2c   : > { %875 = vmatprep.subr.bf16.mxu1 %v941_v10  ;;  %v949_v18 = vld [vmem:[%s1093_s7 + $0xd8] sm:$0xff]   ;;  %v953_v22 = vld [vmem:[%s1093_s7 + $0xe0] sm:$0xff]   ;;  %v957_v26 = vld [vmem:[%s1093_s7 + $0xe8] sm:$0xff]  }
  0x2d   : > { %v950_v19 = vld [vmem:[%s1093_s7 + $0x18] sm:$0xff]   ;;  %v954_v23 = vld [vmem:[%s1093_s7 + $0x20] sm:$0xff]   ;;  %v958_v27 = vld [vmem:[%s1093_s7 + $0x28] sm:$0xff]  }
  0x2e   : > { %854 = vmatpush3.bf16.msra.mxu0 %v942_v11  ;;  %v951_v20 = vld [vmem:[%s1093_s7 + $0x98] sm:$0xff]   ;;  %v955_v24 = vld [vmem:[%s1093_s7 + $0xa0] sm:$0xff]   ;;  %v959_v28 = vld [vmem:[%s1093_s7 + $0xa8] sm:$0xff]  }
  0x2f   : > { %876 = vmatpush3.bf16.msra.mxu1 %v943_v12  ;;  %855 = vmatprep.subr.bf16.mxu0 %v944_v13  ;;  %v960_v29 = vld [vmem:[%s1093_s7 + $0x70] sm:$0xff]   ;;  %v964_v33 = vld [vmem:[%s1093_s7 + $0x78] sm:$0xff]   ;;  %v286_v50 = vld [vmem:[#allocation2] sm:$0xff] }
  0x30   : > { %877 = vmatprep.subr.bf16.mxu1 %v945_v14  ;;  %v961_v30 = vld [vmem:[%s1093_s7 + $0xf0] sm:$0xff]   ;;  %v965_v34 = vld [vmem:[%s1093_s7 + $0xf8] sm:$0xff]   ;;  %v287_v55 = vld [vmem:[#allocation2 + $0x8] sm:$0xff] }
  0x31   : > { %v962_v31 = vld [vmem:[%s1093_s7 + $0x30] sm:$0xff]   ;;  %v966_v35 = vld [vmem:[%s1093_s7 + $0x38] sm:$0xff]   ;;  %v843_v60 = vld [vmem:[%s1161_s2] ss:$0 sm:$0xff] (!%p842_p11) }
  0x32   : > { %856 = vmatpush3.bf16.msra.mxu0 %v946_v15  ;;  %v963_v32 = vld [vmem:[%s1093_s7 + $0xb0] sm:$0xff]   ;;  %v967_v36 = vld [vmem:[%s1093_s7 + $0xb8] sm:$0xff]  }
  0x33   : > { %878 = vmatpush3.bf16.msra.mxu1 %v947_v16  ;;  %857 = vmatprep.subr.bf16.mxu0 %v948_v17  ;;  %v968_v37 = vld [vmem:[%s1095_s8] ss:$16 sps:$4 sm:$0xff]   ;;  %v970_v38 = vld [vmem:[%s1095_s8 + $0x4] ss:$16 sps:$4 sm:$0xff]   ;;  %v971_v39 = vld [vmem:[%s1095_s8 + $0x8] ss:$16 sps:$4 sm:$0xff]  }
  0x34   : > { %879 = vmatprep.subr.bf16.mxu1 %v949_v18  ;;  %v973_v40 = vld [vmem:[%s1095_s8 + $0xc] ss:$16 sps:$4 sm:$0xff]   ;;  %600 = vmatprep.mubr.bf16.mxu0 %v970_v38 }
  0x35   : > { %641 = vmatprep.mubr.bf16.mxu1 %v973_v40 }
  0x36   : > { %858 = vmatpush3.bf16.msra.mxu0 %v950_v19 }
  0x37   : > { %880 = vmatpush3.bf16.msra.mxu1 %v951_v20  ;;  %859 = vmatprep.subr.bf16.mxu0 %v952_v21 }
  0x38   : > { %881 = vmatprep.subr.bf16.mxu1 %v953_v22 }
  0x3a   : > { %860 = vmatpush3.bf16.msra.mxu0 %v954_v23 }
  0x3b   : > { %882 = vmatpush3.bf16.msra.mxu1 %v955_v24  ;;  %861 = vmatprep.subr.bf16.mxu0 %v956_v25 }
  0x3c   : > { %883 = vmatprep.subr.bf16.mxu1 %v957_v26 }
  0x3e   : > { %862 = vmatpush3.bf16.msra.mxu0 %v958_v27 }
  0x3f   : > { %884 = vmatpush3.bf16.msra.mxu1 %v959_v28  ;;  %863 = vmatprep.subr.bf16.mxu0 %v960_v29 }
  0x40   : > { %885 = vmatprep.subr.bf16.mxu1 %v961_v30 }
  0x42   : > { %864 = vmatpush3.bf16.msra.mxu0 %v962_v31 }
  0x43   : > { %886 = vmatpush3.bf16.msra.mxu1 %v963_v32  ;;  %865 = vmatprep.subr.bf16.mxu0 %v964_v33 }
  0x44   : > { %887 = vmatprep.subr.bf16.mxu1 %v965_v34 }
  0x46   : > { %866 = vmatpush3.bf16.msra.mxu0 %v966_v35 }
  0x47   : > { %888 = vmatpush3.bf16.msra.mxu1 %v967_v36 }
  0x49   : > { %601 = vmatmul.mubr.bf16.vlgmr.msra.gmra.mrb[0].mxu0 %v968_v37 }
  0x4a   : > { %642 = vmatmul.mubr.bf16.vlgmr.msra.gmra.mrb[0].mxu1 %v971_v39 }
 0x11c   : > { %v867_v41 = vpop.f32.mrb[0].mxu0 }
 0x11d   : > { %v889_v42 = vpop.f32.mrb[0].mxu1  ;;  %v868_v43 = vpop.f32.mrb[1].mxu0 }
 0x11e   : > { %v869_v44 = vadd.f32 %v868_v43, %v867_v41  ;;  %v890_v45 = vpop.f32.mrb[1].mxu1  ;;  %v870_v46 = vpop.f32.mrb[2].mxu0 }
 0x11f   : > { %v891_v47 = vadd.f32 %v890_v45, %v889_v42  ;;  %v892_v48 = vpop.f32.mrb[2].mxu1  ;;  %v871_v49 = vpop.f32.mrb[3].mxu0 }
 0x120   : > { %v872_v51 = vadd.f32 %v871_v49, %v870_v46  ;;  %v893_v52 = vpop.f32.mrb[3].mxu1 }
 0x121   : > { %v644_v53 = vadd.f32 %v891_v47, %v869_v44  ;;  %v894_v54 = vadd.f32 %v893_v52, %v892_v48  ;;  %657 = sbr.rel (%p842_p11) target bundleno = 332 (0x14c), region = 63 }
 0x123   : > { %v650_v56 = vadd.f32 %v644_v53, %v286_v50  ;;  %v647_v57 = vadd.f32 %v894_v54, %v872_v51 }
 0x125   : > { %652 = vst [vmem:[#allocation2] sm:$0xff] %v650_v56  ;;  %v651_v58 = vadd.f32 %v647_v57, %v287_v55 }
 0x127   : > { %653 = vst [vmem:[#allocation2 + $0x8] sm:$0xff] %v651_v58 }
 0x12c   : > { %v658_v59 = vld [vmem:[#allocation2] sm:$0xff] }
 0x12d   : > { %v667_v62 = vadd.f32 %v843_v60, %v658_v59 }
 0x12e   : > { %v659_v61 = vld [vmem:[#allocation2 + $0x8] sm:$0xff] }
 0x12f   : > { %v668_v63 = vadd.f32 %v843_v60, %v659_v61  ;;  %v844_v0 = vmul.f32 -1.442695, %v667_v62 }
 0x131   : > { %v845_v1 = vmul.f32 -1.442695, %v668_v63  ;;  %974 = vpow2.f32 %v844_v0 }
 0x133   : > { %976 = vpow2.f32 %v845_v1 }
 0x13b   : > { %v975_v2 = vpop.eup %974 }
 0x13c   : > { %v675_v4 = vadd.f32 1.0, %v975_v2 }
 0x13d   : > { %v977_v3 = vpop.eup %976 }
 0x13e   : > { %v676_v5 = vadd.f32 1.0, %v977_v3  ;;  %978 = vrcp.f32 %v675_v4 }
 0x140   : > { %980 = vrcp.f32 %v676_v5 }
 0x148   : > { %v979_v6 = vpop.eup %978 }
 0x149   : > { %681 = vst [vmem:[%s1162_s3] sm:$0xff] %v979_v6 }
 0x14a   : > { %v981_v7 = vpop.eup %980 }
 0x14b   : > { %682 = vst [vmem:[%s1162_s3 + $0x8] sm:$0xff] %v981_v7 }
 0x14c PF: > { %s13_s16 = sadd.s32 1, %s1020_s16   ;;  %s1163_s12 = smov %s1008_s13 }
 0x14d   : > { %p10_p12 = scmp.ge.s32.totalorder %s13_s16, 34   ;;  %s1164_s13 = smov %s1078_s20 }
 0x14e   : > { %s1165_s14 = smov %s1016_s15  ;;  %s1166_s15 = smov %s1168_s17 }
 0x14f   :  { %12 = sbr.rel (!%p10_p12) target bundleno = 3 (0x3), region = 104 }

// kernel: discriminator_forward.20
= control target key start
LH: loop header
LB: loop body
LE: loop exit
PB: predicated region body
PF: predicated region fallthrough
CT: control target
= control target key end

     0   :  { %v24_v0 = vlaneseq  ;;  %s192_s1 = inlined_call_operand.vmem [shape: f32[1,512], index: 1, kind: input, shape index: {}]   ;;  %s193_s2 = inlined_call_operand.vmem [shape: f32[1,512], index: 2, kind: input, shape index: {}]   ;;  %s194_s0 = inlined_call_operand.vmem [shape: f32[16,512], index: 0, kind: input, shape index: {}]   ;;  %s195_s3 = inlined_call_operand.vmem [shape: f32[16,512], index: 3, kind: output, shape index: {}]  }
   0x1   :  { %v22_v2 = vld [vmem:[%s192_s1] sm:$0xf]  ;;  %v15_v6 = vld [vmem:[%s194_s0 + $0x8] sm:$0xff]  ;;  %v16_v10 = vld [vmem:[%s194_s0 + $0x10] sm:$0xff] }
   0x2   :  { %v25_v1 = vshrl.u32 %v24_v0, 7  ;;  %v52_v3 = vld [vmem:[%s193_s2] sm:$0xf]  ;;  %v19_v12 = vld [vmem:[%s194_s0 + $0x28] sm:$0xff]  ;;  %v17_v17 = vld [vmem:[%s194_s0 + $0x18] sm:$0xff] }
   0x3   :  { %v14_v4 = vld [vmem:[%s194_s0] sm:$0xff]  ;;  %v20_v18 = vld [vmem:[%s194_s0 + $0x30] sm:$0xff]  ;;  %v21_v19 = vld [vmem:[%s194_s0 + $0x38] sm:$0xff] }
   0x4   :  { %v26_v5 = vsub.s32 0, %v25_v1  ;;  %v30_v7 = vsub.s32 1, %v25_v1  ;;  %v34_v8 = vsub.s32 2, %v25_v1  ;;  %v38_v9 = vsub.s32 3, %v25_v1  ;;  %v18_v11 = vld [vmem:[%s194_s0 + $0x20] sm:$0xff] }
   0x6   :  { %v27_v13 = vrot.slane %v22_v2, %v26_v5  ;;  %v57_v14 = vrot.slane %v52_v3, %v26_v5  ;;  %v31_v15 = vrot.slane %v22_v2, %v30_v7  ;;  %v61_v16 = vrot.slane %v52_v3, %v30_v7 }
   0x7   :  { %v35_v20 = vrot.slane %v22_v2, %v34_v8  ;;  %v65_v21 = vrot.slane %v52_v3, %v34_v8  ;;  %v39_v22 = vrot.slane %v22_v2, %v38_v9  ;;  %v69_v23 = vrot.slane %v52_v3, %v38_v9 }
   0x8   :  { %v44_v24 = vmul.f32 %v27_v13, %v14_v4  ;;  %v45_v25 = vmul.f32 %v31_v15, %v15_v6  ;;  %v48_v26 = vmul.f32 %v27_v13, %v18_v11  ;;  %v49_v27 = vmul.f32 %v31_v15, %v19_v12 }
   0x9   :  { %v46_v28 = vmul.f32 %v35_v20, %v16_v10  ;;  %v47_v29 = vmul.f32 %v39_v22, %v17_v17  ;;  %v50_v30 = vmul.f32 %v35_v20, %v20_v18  ;;  %v51_v31 = vmul.f32 %v39_v22, %v21_v19 }
   0xa   :  { %v74_v32 = vadd.f32 %v57_v14, %v44_v24  ;;  %v75_v33 = vadd.f32 %v61_v16, %v45_v25  ;;  %v78_v34 = vadd.f32 %v57_v14, %v48_v26  ;;  %v79_v35 = vadd.f32 %v61_v16, %v49_v27 }
   0xb   :  { %v76_v36 = vadd.f32 %v65_v21, %v46_v28  ;;  %v77_v37 = vadd.f32 %v69_v23, %v47_v29  ;;  %v80_v38 = vadd.f32 %v65_v21, %v50_v30  ;;  %v81_v39 = vadd.f32 %v69_v23, %v51_v31 }
   0xc   :  { %vm82_vm0 = vcmp.gt.f32.partialorder %v74_v32, 0.0  ;;  %v90_v40 = vmul.f32 0.2, %v74_v32  ;;  %vm83_vm1 = vcmp.gt.f32.partialorder %v75_v33, 0.0  ;;  %v91_v41 = vmul.f32 0.2, %v75_v33 }
   0xd   :  { %vm84_vm2 = vcmp.gt.f32.partialorder %v76_v36, 0.0  ;;  %v92_v42 = vmul.f32 0.2, %v76_v36  ;;  %vm85_vm3 = vcmp.gt.f32.partialorder %v77_v37, 0.0  ;;  %v93_v43 = vmul.f32 0.2, %v77_v37 }
   0xe   :  { %v98_v44 = vsel %vm82_vm0, %v74_v32, %v90_v40  ;;  %v99_v45 = vsel %vm83_vm1, %v75_v33, %v91_v41  ;;  %vm86_vm4 = vcmp.gt.f32.partialorder %v78_v34, 0.0  ;;  %v94_v46 = vmul.f32 0.2, %v78_v34 }
   0xf   :  { %106 = vst [vmem:[%s195_s3] sm:$0xff] %v98_v44  ;;  %107 = vst [vmem:[%s195_s3 + $0x8] sm:$0xff] %v99_v45  ;;  %v100_v47 = vsel %vm84_vm2, %v76_v36, %v92_v42  ;;  %v101_v48 = vsel %vm85_vm3, %v77_v37, %v93_v43  ;;  %vm87_vm5 = vcmp.gt.f32.partialorder %v79_v35, 0.0  ;;  %v95_v49 = vmul.f32 0.2, %v79_v35 }
  0x10   :  { %108 = vst [vmem:[%s195_s3 + $0x10] sm:$0xff] %v100_v47  ;;  %109 = vst [vmem:[%s195_s3 + $0x18] sm:$0xff] %v101_v48  ;;  %v102_v50 = vsel %vm86_vm4, %v78_v34, %v94_v46  ;;  %vm88_vm6 = vcmp.gt.f32.partialorder %v80_v38, 0.0  ;;  %v96_v51 = vmul.f32 0.2, %v80_v38  ;;  %vm89_vm7 = vcmp.gt.f32.partialorder %v81_v39, 0.0 }
  0x11   :  { %110 = vst [vmem:[%s195_s3 + $0x20] sm:$0xff] %v102_v50  ;;  %v103_v52 = vsel %vm87_vm5, %v79_v35, %v95_v49  ;;  %v97_v53 = vmul.f32 0.2, %v81_v39 }
  0x12   :  { %111 = vst [vmem:[%s195_s3 + $0x28] sm:$0xff] %v103_v52  ;;  %v104_v54 = vsel %vm88_vm6, %v80_v38, %v96_v51 }
  0x13   :  { %112 = vst [vmem:[%s195_s3 + $0x30] sm:$0xff] %v104_v54  ;;  %v105_v55 = vsel %vm89_vm7, %v81_v39, %v97_v53 }
  0x14   :  { %113 = vst [vmem:[%s195_s3 + $0x38] sm:$0xff] %v105_v55 }

// kernel: discriminator_forward.19
= control target key start
LH: loop header
LB: loop body
LE: loop exit
PB: predicated region body
PF: predicated region fallthrough
CT: control target
= control target key end

     0   :  { %s2315_s0 = inlined_call_operand.vmem [shape: bf16[16,16384], index: 0, kind: input, shape index: {}]   ;;  %s2316_s1 = inlined_call_operand.vmem [shape: bf16[16384,512], index: 1, kind: input, shape index: {}]   ;;  %s2317_s2 = inlined_call_operand.vmem [shape: f32[1,512], index: 2, kind: input, shape index: {}]   ;;  %s2318_s3 = inlined_call_operand.vmem [shape: f32[16,512], index: 3, kind: output, shape index: {0}]   ;;  %s2319_s4 = inlined_call_operand.vmem [shape: f32[1,1,512], index: 4, kind: output, shape index: {1}]   ;;  %s2320_s5 = inlined_call_operand.vmem [shape: f32[1,1,512], index: 5, kind: output, shape index: {2}]  }
   0x1   :  { %2323 = sst [smem:[#allocation9_spill]] %s2315_s0 }
   0x2   :  { %2324 = sst [smem:[#allocation10_spill]] %s2316_s1 }
   0x3   :  { %s1911_s18 = smov 0   ;;  %s1913_s19 = smov 0  }
   0x4   :  { %s1915_s20 = smov 0   ;;  %s1917_s21 = smov 0  }
   0x5   :  { %s1919_s22 = smov 0   ;;  %s1921_s23 = smov 0  }
   0x6   :  { %s1923_s24 = smov 0   ;;  %s1925_s25 = smov 0  }
   0x7   :  { %s1927_s26 = smov 0   ;;  %s1929_s27 = smov 0  }
   0x8   :  { %s1931_s28 = smov 0  }
   0x9 LB: > { %s1498_s29 = sadd.s32 4294967295, %s1877_s28   ;;  %s28_s30 = sadd.s32 1, %s1869_s26  ;;  %s1877_s28 = sphi %s1931_s28, %s16_s28   ;;  %s1873_s27 = sphi %s1929_s27, %s2345_s27   ;;  %s1869_s26 = sphi %s1927_s26, %s2344_s26   ;;  %s1865_s25 = sphi %s1925_s25, %s2343_s25   ;;  %s1861_s24 = sphi %s1923_s24, %s2342_s24   ;;  %s1857_s23 = sphi %s1921_s23, %s2341_s23   ;;  %s1853_s22 = sphi %s1919_s22, %s2340_s22   ;;  %s1849_s21 = sphi %s1917_s21, %s2339_s21   ;;  %s1845_s20 = sphi %s1915_s20, %s2338_s20   ;;  %s1841_s19 = sphi %s1913_s19, %s2337_s19   ;;  %s1837_s18 = sphi %s1911_s18, %s2336_s18  }
   0xa   : > { %p29_p0 = scmp.ge.s32.totalorder %s28_s30, 32  ;;  %s31_s6 = sadd.s32 1, %s1873_s27 }
   0xb   : > { %s44_s7 = sadd.s32 1, %s1857_s23  ;;  %p51_p1 = scmp.ne.s32.totalorder %s1857_s23, %s1853_s22 }
   0xc   : > { %s2347_s30 = smov (%p29_p0, %s28_s30), 0  ;;  %s2349_s6 = smov (!%p29_p0, %s31_s6), %s1873_s27 }
   0xd   : > { %2325 = sst [smem:[#allocation6_spill]] %s2347_s30  ;;  %s40_s8 = ssub.s32 %s1869_s26, %s2347_s30 }
   0xe   : > { %p52_p2 = scmp.eq.s32.totalorder %s1877_s28, 0  ;;  %p33_p3 = scmp.ge.s32.totalorder %s2349_s6, 2 }
   0xf   : > { %p42_p4 = scmp.eq.s32.totalorder %s40_s8, 0  ;;  %s72_s10 = sadd.s32 1, %s1849_s21 }
  0x10   : > { %p1978_p5 = por %p52_p2, %p51_p1  ;;  %s2351_s6 = smov (%p33_p3, %s2349_s6), 0 }
  0x11   : > { %2327 = sst [smem:[#allocation7_spill]] %s2351_s6  ;;  %s68_s12 = ssub.s32 %s1873_s27, %s2351_s6 }
  0x12   : > { %s1986_s11 = scalar_select %p42_p4, %s1857_s23, %s44_s7  }
  0x13   : > { %p79_p6 = scmp.ne.s32.totalorder %s1849_s21, %s1845_s20  ;;  %s69_s13 = sor.u32 %s68_s12, %s40_s8 }
  0x14   : > { %2328 = sst [smem:[#allocation8_spill]] %s1986_s11  ;;  %p124_p7 = scmp.eq.s32.totalorder %s68_s12, 0 }
  0x15   : > { %p70_p8 = scmp.eq.s32.totalorder %s69_s13, 0  ;;  %p1992_p9 = por %p79_p6, %p52_p2 }
  0x16   : > { %s126_s15 = sadd.s32 1, %s1841_s19  ;;  %p136_p10 = scmp.ne.s32.totalorder %s1841_s19, %s1837_s18 }
  0x17   : > { %s2000_s16 = scalar_select %p70_p8, %s1849_s21, %s72_s10  }
  0x18   : > { %s2003_s17 = scalar_select %p124_p7, %s1841_s19, %s126_s15  }
  0x19   : > { %p137_p11 = scmp.eq.s32.totalorder %s1498_s29, 63  ;;  %p1501_p13 = scmp.ge.s32.totalorder %s1877_s28, 64 }
  0x1b   : > { %p2005_p12 = por %p137_p11, %p136_p10  ;;  %215 = sbr.rel (%p1501_p13) target bundleno = 88 (0x58), region = 16 }
  0x22   : > { %218 = sbr.rel (!%p1978_p5) target bundleno = 46 (0x2e), region = 20  ;;  %s220_s7 = sand.u32 (%p1978_p5), 1, %s1857_s23  }
  0x23   : > { %s1592_s8 = sshll.u32 (%p1978_p5), %s1869_s26, 4  ;;  %s1502_s12 = sshll.u32 (%p1978_p5), %s220_s7, 5 }
  0x24   : > { %s2331_s0 = sld [smem:[#allocation9_spill]] (%p1978_p5)  ;;  %s222_s29 = scalar_lea.vmem (%p1978_p5), [#allocation3], %s1502_s12 }
  0x2a   : > { %s228_s15 = scalar_lea.vmem %s2331_s0, %s1592_s8 }
  0x2b   : > { %v241_v0 = vld [vmem:[%s228_s15] sm:$0xff]  ;;  %v243_v1 = vld [vmem:[%s228_s15 + $0x8] sm:$0xff] }
  0x2c   : > { %v245_v2 = vld [vmem:[%s228_s15 + $0x200] sm:$0xff]  ;;  %242 = vst [vmem:[%s222_s29] sm:$0xff] %v241_v0  ;;  %244 = vst [vmem:[%s222_s29 + $0x8] sm:$0xff] %v243_v1  ;;  %v247_v3 = vld [vmem:[%s228_s15 + $0x208] sm:$0xff] }
  0x2d   : > { %246 = vst [vmem:[%s222_s29 + $0x10] sm:$0xff] %v245_v2  ;;  %248 = vst [vmem:[%s222_s29 + $0x18] sm:$0xff] %v247_v3 }
  0x2e PF: > { %254 = sbr.rel (!%p1992_p9) target bundleno = 88 (0x58), region = 43  ;;  %s256_s9 = sand.u32 (%p1992_p9), 1, %s1849_s21  }
  0x2f   : > { %s1507_s7 = sshll.u32 (%p1992_p9), %s1873_s27, 1  ;;  %s1505_s10 = sshll.u32 (%p1992_p9), %s256_s9, 9 }
  0x30   : > { %s1593_s8 = sshll.u32 (%p1992_p9), %s1869_s26, 8  ;;  %s2332_s1 = sld [smem:[#allocation10_spill]] (%p1992_p9) }
  0x31   : > { %s262_s13 = sadd.s32 (%p1992_p9), %s1593_s8, %s1507_s7  ;;  %s2030_s14 = scalar_lea.vmem (%p1992_p9), [#allocation4], %s1505_s10 }
  0x32   : > { %s1509_s0 = sshll.u32 (%p1992_p9), %s262_s13, 2 }
  0x36   : > { %s2025_s11 = scalar_lea.vmem %s2332_s1, %s1509_s0 }
  0x37   : > { %v418_v4 = vld [vmem:[%s2025_s11] sm:$0xff]  ;;  %v420_v5 = vld [vmem:[%s2025_s11 + $0x10] sm:$0xff] }
  0x38   : > { %v422_v6 = vld [vmem:[%s2025_s11 + $0x20] sm:$0xff]  ;;  %419 = vst [vmem:[%s2030_s14] sm:$0xff] %v418_v4  ;;  %421 = vst [vmem:[%s2030_s14 + $0x8] sm:$0xff] %v420_v5  ;;  %v424_v7 = vld [vmem:[%s2025_s11 + $0x30] sm:$0xff] }
  0x39   : > { %423 = vst [vmem:[%s2030_s14 + $0x10] sm:$0xff] %v422_v6  ;;  %v426_v8 = vld [vmem:[%s2025_s11 + $0x40] sm:$0xff]  ;;  %v428_v9 = vld [vmem:[%s2025_s11 + $0x50] sm:$0xff]  ;;  %425 = vst [vmem:[%s2030_s14 + $0x18] sm:$0xff] %v424_v7 }
  0x3a   : > { %427 = vst [vmem:[%s2030_s14 + $0x20] sm:$0xff] %v426_v8  ;;  %429 = vst [vmem:[%s2030_s14 + $0x28] sm:$0xff] %v428_v9  ;;  %v430_v10 = vld [vmem:[%s2025_s11 + $0x60] sm:$0xff]  ;;  %v432_v11 = vld [vmem:[%s2025_s11 + $0x70] sm:$0xff] }
  0x3b   : > { %v434_v12 = vld [vmem:[%s2025_s11 + $0x80] sm:$0xff]  ;;  %431 = vst [vmem:[%s2030_s14 + $0x30] sm:$0xff] %v430_v10  ;;  %433 = vst [vmem:[%s2030_s14 + $0x38] sm:$0xff] %v432_v11  ;;  %v436_v13 = vld [vmem:[%s2025_s11 + $0x90] sm:$0xff] }
  0x3c   : > { %435 = vst [vmem:[%s2030_s14 + $0x40] sm:$0xff] %v434_v12  ;;  %v438_v14 = vld [vmem:[%s2025_s11 + $0xa0] sm:$0xff]  ;;  %v440_v15 = vld [vmem:[%s2025_s11 + $0xb0] sm:$0xff]  ;;  %437 = vst [vmem:[%s2030_s14 + $0x48] sm:$0xff] %v436_v13 }
  0x3d   : > { %439 = vst [vmem:[%s2030_s14 + $0x50] sm:$0xff] %v438_v14  ;;  %441 = vst [vmem:[%s2030_s14 + $0x58] sm:$0xff] %v440_v15  ;;  %v442_v16 = vld [vmem:[%s2025_s11 + $0xc0] sm:$0xff]  ;;  %v444_v17 = vld [vmem:[%s2025_s11 + $0xd0] sm:$0xff] }
  0x3e   : > { %v446_v18 = vld [vmem:[%s2025_s11 + $0xe0] sm:$0xff]  ;;  %443 = vst [vmem:[%s2030_s14 + $0x60] sm:$0xff] %v442_v16  ;;  %445 = vst [vmem:[%s2030_s14 + $0x68] sm:$0xff] %v444_v17  ;;  %v448_v19 = vld [vmem:[%s2025_s11 + $0xf0] sm:$0xff] }
  0x3f   : > { %447 = vst [vmem:[%s2030_s14 + $0x70] sm:$0xff] %v446_v18  ;;  %v450_v20 = vld [vmem:[%s2025_s11 + $0x100] sm:$0xff]  ;;  %v452_v21 = vld [vmem:[%s2025_s11 + $0x110] sm:$0xff]  ;;  %449 = vst [vmem:[%s2030_s14 + $0x78] sm:$0xff] %v448_v19 }
  0x40   : > { %451 = vst [vmem:[%s2030_s14 + $0x80] sm:$0xff] %v450_v20  ;;  %453 = vst [vmem:[%s2030_s14 + $0x88] sm:$0xff] %v452_v21  ;;  %v454_v22 = vld [vmem:[%s2025_s11 + $0x120] sm:$0xff]  ;;  %v456_v23 = vld [vmem:[%s2025_s11 + $0x130] sm:$0xff] }
  0x41   : > { %v458_v24 = vld [vmem:[%s2025_s11 + $0x140] sm:$0xff]  ;;  %455 = vst [vmem:[%s2030_s14 + $0x90] sm:$0xff] %v454_v22  ;;  %457 = vst [vmem:[%s2030_s14 + $0x98] sm:$0xff] %v456_v23  ;;  %v460_v25 = vld [vmem:[%s2025_s11 + $0x150] sm:$0xff] }
  0x42   : > { %459 = vst [vmem:[%s2030_s14 + $0xa0] sm:$0xff] %v458_v24  ;;  %v462_v26 = vld [vmem:[%s2025_s11 + $0x160] sm:$0xff]  ;;  %v464_v27 = vld [vmem:[%s2025_s11 + $0x170] sm:$0xff]  ;;  %461 = vst [vmem:[%s2030_s14 + $0xa8] sm:$0xff] %v460_v25 }
  0x43   : > { %463 = vst [vmem:[%s2030_s14 + $0xb0] sm:$0xff] %v462_v26  ;;  %465 = vst [vmem:[%s2030_s14 + $0xb8] sm:$0xff] %v464_v27  ;;  %v466_v28 = vld [vmem:[%s2025_s11 + $0x180] sm:$0xff]  ;;  %v468_v29 = vld [vmem:[%s2025_s11 + $0x190] sm:$0xff] }
  0x44   : > { %v470_v30 = vld [vmem:[%s2025_s11 + $0x1a0] sm:$0xff]  ;;  %467 = vst [vmem:[%s2030_s14 + $0xc0] sm:$0xff] %v466_v28  ;;  %469 = vst [vmem:[%s2030_s14 + $0xc8] sm:$0xff] %v468_v29  ;;  %v472_v31 = vld [vmem:[%s2025_s11 + $0x1b0] sm:$0xff] }
  0x45   : > { %471 = vst [vmem:[%s2030_s14 + $0xd0] sm:$0xff] %v470_v30  ;;  %v474_v32 = vld [vmem:[%s2025_s11 + $0x1c0] sm:$0xff]  ;;  %v476_v33 = vld [vmem:[%s2025_s11 + $0x1d0] sm:$0xff]  ;;  %473 = vst [vmem:[%s2030_s14 + $0xd8] sm:$0xff] %v472_v31 }
  0x46   : > { %475 = vst [vmem:[%s2030_s14 + $0xe0] sm:$0xff] %v474_v32  ;;  %477 = vst [vmem:[%s2030_s14 + $0xe8] sm:$0xff] %v476_v33  ;;  %v478_v34 = vld [vmem:[%s2025_s11 + $0x1e0] sm:$0xff]  ;;  %v480_v35 = vld [vmem:[%s2025_s11 + $0x1f0] sm:$0xff] }
  0x47   : > { %v482_v36 = vld [vmem:[%s2025_s11 + $0x200] sm:$0xff]  ;;  %479 = vst [vmem:[%s2030_s14 + $0xf0] sm:$0xff] %v478_v34  ;;  %481 = vst [vmem:[%s2030_s14 + $0xf8] sm:$0xff] %v480_v35  ;;  %v484_v37 = vld [vmem:[%s2025_s11 + $0x210] sm:$0xff] }
  0x48   : > { %483 = vst [vmem:[%s2030_s14 + $0x100] sm:$0xff] %v482_v36  ;;  %v486_v38 = vld [vmem:[%s2025_s11 + $0x220] sm:$0xff]  ;;  %v488_v39 = vld [vmem:[%s2025_s11 + $0x230] sm:$0xff]  ;;  %485 = vst [vmem:[%s2030_s14 + $0x108] sm:$0xff] %v484_v37 }
  0x49   : > { %487 = vst [vmem:[%s2030_s14 + $0x110] sm:$0xff] %v486_v38  ;;  %489 = vst [vmem:[%s2030_s14 + $0x118] sm:$0xff] %v488_v39  ;;  %v490_v40 = vld [vmem:[%s2025_s11 + $0x240] sm:$0xff]  ;;  %v492_v41 = vld [vmem:[%s2025_s11 + $0x250] sm:$0xff] }
  0x4a   : > { %v494_v42 = vld [vmem:[%s2025_s11 + $0x260] sm:$0xff]  ;;  %491 = vst [vmem:[%s2030_s14 + $0x120] sm:$0xff] %v490_v40  ;;  %493 = vst [vmem:[%s2030_s14 + $0x128] sm:$0xff] %v492_v41  ;;  %v496_v43 = vld [vmem:[%s2025_s11 + $0x270] sm:$0xff] }
  0x4b   : > { %495 = vst [vmem:[%s2030_s14 + $0x130] sm:$0xff] %v494_v42  ;;  %v498_v44 = vld [vmem:[%s2025_s11 + $0x280] sm:$0xff]  ;;  %v500_v45 = vld [vmem:[%s2025_s11 + $0x290] sm:$0xff]  ;;  %497 = vst [vmem:[%s2030_s14 + $0x138] sm:$0xff] %v496_v43 }
  0x4c   : > { %499 = vst [vmem:[%s2030_s14 + $0x140] sm:$0xff] %v498_v44  ;;  %501 = vst [vmem:[%s2030_s14 + $0x148] sm:$0xff] %v500_v45  ;;  %v502_v46 = vld [vmem:[%s2025_s11 + $0x2a0] sm:$0xff]  ;;  %v504_v47 = vld [vmem:[%s2025_s11 + $0x2b0] sm:$0xff] }
  0x4d   : > { %v506_v48 = vld [vmem:[%s2025_s11 + $0x2c0] sm:$0xff]  ;;  %503 = vst [vmem:[%s2030_s14 + $0x150] sm:$0xff] %v502_v46  ;;  %505 = vst [vmem:[%s2030_s14 + $0x158] sm:$0xff] %v504_v47  ;;  %v508_v49 = vld [vmem:[%s2025_s11 + $0x2d0] sm:$0xff] }
  0x4e   : > { %507 = vst [vmem:[%s2030_s14 + $0x160] sm:$0xff] %v506_v48  ;;  %v510_v50 = vld [vmem:[%s2025_s11 + $0x2e0] sm:$0xff]  ;;  %v512_v51 = vld [vmem:[%s2025_s11 + $0x2f0] sm:$0xff]  ;;  %509 = vst [vmem:[%s2030_s14 + $0x168] sm:$0xff] %v508_v49 }
  0x4f   : > { %511 = vst [vmem:[%s2030_s14 + $0x170] sm:$0xff] %v510_v50  ;;  %513 = vst [vmem:[%s2030_s14 + $0x178] sm:$0xff] %v512_v51  ;;  %v514_v52 = vld [vmem:[%s2025_s11 + $0x300] sm:$0xff]  ;;  %v516_v53 = vld [vmem:[%s2025_s11 + $0x310] sm:$0xff] }
  0x50   : > { %v518_v54 = vld [vmem:[%s2025_s11 + $0x320] sm:$0xff]  ;;  %515 = vst [vmem:[%s2030_s14 + $0x180] sm:$0xff] %v514_v52  ;;  %517 = vst [vmem:[%s2030_s14 + $0x188] sm:$0xff] %v516_v53  ;;  %v520_v55 = vld [vmem:[%s2025_s11 + $0x330] sm:$0xff] }
  0x51   : > { %519 = vst [vmem:[%s2030_s14 + $0x190] sm:$0xff] %v518_v54  ;;  %v522_v56 = vld [vmem:[%s2025_s11 + $0x340] sm:$0xff]  ;;  %v524_v57 = vld [vmem:[%s2025_s11 + $0x350] sm:$0xff]  ;;  %521 = vst [vmem:[%s2030_s14 + $0x198] sm:$0xff] %v520_v55 }
  0x52   : > { %523 = vst [vmem:[%s2030_s14 + $0x1a0] sm:$0xff] %v522_v56  ;;  %525 = vst [vmem:[%s2030_s14 + $0x1a8] sm:$0xff] %v524_v57  ;;  %v526_v58 = vld [vmem:[%s2025_s11 + $0x360] sm:$0xff]  ;;  %v528_v59 = vld [vmem:[%s2025_s11 + $0x370] sm:$0xff] }
  0x53   : > { %v530_v60 = vld [vmem:[%s2025_s11 + $0x380] sm:$0xff]  ;;  %527 = vst [vmem:[%s2030_s14 + $0x1b0] sm:$0xff] %v526_v58  ;;  %529 = vst [vmem:[%s2030_s14 + $0x1b8] sm:$0xff] %v528_v59  ;;  %v532_v61 = vld [vmem:[%s2025_s11 + $0x390] sm:$0xff] }
  0x54   : > { %531 = vst [vmem:[%s2030_s14 + $0x1c0] sm:$0xff] %v530_v60  ;;  %v534_v62 = vld [vmem:[%s2025_s11 + $0x3a0] sm:$0xff]  ;;  %v536_v63 = vld [vmem:[%s2025_s11 + $0x3b0] sm:$0xff]  ;;  %533 = vst [vmem:[%s2030_s14 + $0x1c8] sm:$0xff] %v532_v61 }
  0x55   : > { %535 = vst [vmem:[%s2030_s14 + $0x1d0] sm:$0xff] %v534_v62  ;;  %537 = vst [vmem:[%s2030_s14 + $0x1d8] sm:$0xff] %v536_v63  ;;  %v538_v0 = vld [vmem:[%s2025_s11 + $0x3c0] sm:$0xff]  ;;  %v540_v1 = vld [vmem:[%s2025_s11 + $0x3d0] sm:$0xff] }
  0x56   : > { %v542_v2 = vld [vmem:[%s2025_s11 + $0x3e0] sm:$0xff]  ;;  %539 = vst [vmem:[%s2030_s14 + $0x1e0] sm:$0xff] %v538_v0  ;;  %541 = vst [vmem:[%s2030_s14 + $0x1e8] sm:$0xff] %v540_v1  ;;  %v544_v3 = vld [vmem:[%s2025_s11 + $0x3f0] sm:$0xff] }
  0x57   : > { %543 = vst [vmem:[%s2030_s14 + $0x1f0] sm:$0xff] %v542_v2  ;;  %545 = vst [vmem:[%s2030_s14 + $0x1f8] sm:$0xff] %v544_v3 }
  0x58 PF: > { %p1510_p0 = scmp.ge.s32.totalorder %s1877_s28, 1  ;;  %p558_p1 = scmp.lt.s32.totalorder %s1877_s28, 65 }
  0x5a   : > { %p559_p2 = pnand %p1510_p0, %p558_p1 }
  0x5b   : > { %s565_s0 = sand.u32 (!%p559_p2), 1, %s1853_s22   ;;  %s572_s6 = sand.u32 (!%p559_p2), 1, %s1845_s20  }
  0x5c   : > { %562 = sbr.rel (%p559_p2) target bundleno = 431 (0x1af), region = 85  ;;  %s1511_s15 = sshll.u32 (!%p559_p2), %s565_s0, 5 }
  0x5d   : > { %s1512_s29 = sshll.u32 (!%p559_p2), %s572_s6, 9  ;;  %s599_s9 = sand.u32 (!%p559_p2), 1, %s1837_s18  }
  0x5e   : > { %s1514_s7 = sshll.u32 (!%p559_p2), %s1865_s25, 1  ;;  %s1513_s11 = sshll.u32 (!%p559_p2), %s599_s9, 5 }
  0x5f   : > { %p627_p3 = scmp.lt.s32.totalorder (!%p559_p2), %s1514_s7, 3  ;;  %s2177_s6 = scalar_lea.vmem (!%p559_p2), [#allocation3], %s1511_s15 }
  0x60   : > { %s2179_s9 = scalar_lea.vmem (!%p559_p2), [#allocation4], %s1512_s29  ;;  %s2181_s1 = scalar_lea.vmem (!%p559_p2), [#allocation5], %s1513_s11 }
  0x61   : > { %p1517_p4 = scmp.ne.s32.totalorder (!%p559_p2), %s1861_s24, 0 }
  0x63   : > { %s2353_s7 = smov (!%p627_p3, %s1514_s7), 3  ;;  %654 = sbr.rel (%p1517_p4) target bundleno = 106 (0x6a), region = 97 }
  0x64   : > { %s629_s13 = scalar_lea.vmem %s2317_s2, %s2353_s7  ;;  %s640_s22 = scalar_lea.vmem %s2319_s4, %s2353_s7  ;;  %v1879_v4 = vmov (!%p1517_p4), 0.0  }
  0x65   : > { %s649_s18 = scalar_lea.vmem %s2320_s5, %s2353_s7  ;;  %655 = vst [vmem:[#allocation2] sm:$0xff] (!%p1517_p4), %v1879_v4  ;;  %656 = vst [vmem:[#allocation2 + $0x8] sm:$0xff] (!%p1517_p4), %v1879_v4 }
  0x66   : > { %657 = vst [vmem:[#allocation2 + $0x10] sm:$0xff] (!%p1517_p4), %v1879_v4  ;;  %658 = vst [vmem:[#allocation2 + $0x18] sm:$0xff] (!%p1517_p4), %v1879_v4 }
  0x6a PF: > { %v1689_v5 = vld [vmem:[%s2179_s9 + $0x4] ss:$8 sps:$4 sm:$0xff]   ;;  %v1693_v7 = vld [vmem:[%s2179_s9] ss:$8 sps:$4 sm:$0xff]   ;;  %v1695_v9 = vld [vmem:[%s2179_s9 + $0x14] ss:$8 sps:$4 sm:$0xff]  }
  0x6b   : > { %v1691_v6 = vld [vmem:[%s2179_s9 + $0x104] ss:$8 sps:$4 sm:$0xff]   ;;  %1071 = vmatprep.subr.bf16.mxu1 %v1689_v5  ;;  %v1694_v8 = vld [vmem:[%s2179_s9 + $0x100] ss:$8 sps:$4 sm:$0xff]   ;;  %v1697_v10 = vld [vmem:[%s2179_s9 + $0x114] ss:$8 sps:$4 sm:$0xff]  }
  0x6c   : > { %1114 = vmatprep.subr.bf16.mxu0 %v1691_v6  ;;  %1072 = vmatpush1.bf16.msra.mxu1 %v1693_v7  ;;  %v1699_v11 = vld [vmem:[%s2179_s9 + $0x10] ss:$8 sps:$4 sm:$0xff]   ;;  %v1701_v13 = vld [vmem:[%s2179_s9 + $0x24] ss:$8 sps:$4 sm:$0xff]   ;;  %v1705_v15 = vld [vmem:[%s2179_s9 + $0x20] ss:$8 sps:$4 sm:$0xff]  }
  0x6d   : > { %1115 = vmatpush1.bf16.msra.mxu0 %v1694_v8  ;;  %1073 = vmatprep.subr.bf16.mxu1 %v1695_v9  ;;  %v1700_v12 = vld [vmem:[%s2179_s9 + $0x110] ss:$8 sps:$4 sm:$0xff]   ;;  %v1703_v14 = vld [vmem:[%s2179_s9 + $0x124] ss:$8 sps:$4 sm:$0xff]   ;;  %v1706_v16 = vld [vmem:[%s2179_s9 + $0x120] ss:$8 sps:$4 sm:$0xff]  }
  0x6e   : > { %1116 = vmatprep.subr.bf16.mxu0 %v1697_v10  ;;  %v1707_v17 = vld [vmem:[%s2179_s9 + $0x34] ss:$8 sps:$4 sm:$0xff]   ;;  %v1711_v19 = vld [vmem:[%s2179_s9 + $0x30] ss:$8 sps:$4 sm:$0xff]   ;;  %v1713_v21 = vld [vmem:[%s2179_s9 + $0x44] ss:$8 sps:$4 sm:$0xff]  }
  0x6f   : > { %v1709_v18 = vld [vmem:[%s2179_s9 + $0x134] ss:$8 sps:$4 sm:$0xff]   ;;  %v1712_v20 = vld [vmem:[%s2179_s9 + $0x130] ss:$8 sps:$4 sm:$0xff]   ;;  %v1715_v22 = vld [vmem:[%s2179_s9 + $0x144] ss:$8 sps:$4 sm:$0xff]  }
  0x70   : > { %1074 = vmatpush1.bf16.msra.mxu1 %v1699_v11  ;;  %v1717_v23 = vld [vmem:[%s2179_s9 + $0x40] ss:$8 sps:$4 sm:$0xff]   ;;  %v1719_v25 = vld [vmem:[%s2179_s9 + $0x54] ss:$8 sps:$4 sm:$0xff]   ;;  %v1723_v27 = vld [vmem:[%s2179_s9 + $0x50] ss:$8 sps:$4 sm:$0xff]  }
  0x71   : > { %1117 = vmatpush1.bf16.msra.mxu0 %v1700_v12  ;;  %1075 = vmatprep.subr.bf16.mxu1 %v1701_v13  ;;  %v1718_v24 = vld [vmem:[%s2179_s9 + $0x140] ss:$8 sps:$4 sm:$0xff]   ;;  %v1721_v26 = vld [vmem:[%s2179_s9 + $0x154] ss:$8 sps:$4 sm:$0xff]   ;;  %v1724_v28 = vld [vmem:[%s2179_s9 + $0x150] ss:$8 sps:$4 sm:$0xff]  }
  0x72   : > { %1118 = vmatprep.subr.bf16.mxu0 %v1703_v14  ;;  %v1725_v29 = vld [vmem:[%s2179_s9 + $0x64] ss:$8 sps:$4 sm:$0xff]   ;;  %v1729_v31 = vld [vmem:[%s2179_s9 + $0x60] ss:$8 sps:$4 sm:$0xff]   ;;  %v1731_v33 = vld [vmem:[%s2179_s9 + $0x74] ss:$8 sps:$4 sm:$0xff]  }
  0x73   : > { %v1727_v30 = vld [vmem:[%s2179_s9 + $0x164] ss:$8 sps:$4 sm:$0xff]   ;;  %v1730_v32 = vld [vmem:[%s2179_s9 + $0x160] ss:$8 sps:$4 sm:$0xff]   ;;  %v1733_v34 = vld [vmem:[%s2179_s9 + $0x174] ss:$8 sps:$4 sm:$0xff]  }
  0x74   : > { %1076 = vmatpush1.bf16.msra.mxu1 %v1705_v15  ;;  %v1735_v35 = vld [vmem:[%s2179_s9 + $0x70] ss:$8 sps:$4 sm:$0xff]   ;;  %v1737_v37 = vld [vmem:[%s2179_s9 + $0x84] ss:$8 sps:$4 sm:$0xff]   ;;  %v1741_v39 = vld [vmem:[%s2179_s9 + $0x80] ss:$8 sps:$4 sm:$0xff]  }
  0x75   : > { %1119 = vmatpush1.bf16.msra.mxu0 %v1706_v16  ;;  %1077 = vmatprep.subr.bf16.mxu1 %v1707_v17  ;;  %v1736_v36 = vld [vmem:[%s2179_s9 + $0x170] ss:$8 sps:$4 sm:$0xff]   ;;  %v1739_v38 = vld [vmem:[%s2179_s9 + $0x184] ss:$8 sps:$4 sm:$0xff]   ;;  %v1742_v40 = vld [vmem:[%s2179_s9 + $0x180] ss:$8 sps:$4 sm:$0xff]  }
  0x76   : > { %1120 = vmatprep.subr.bf16.mxu0 %v1709_v18  ;;  %v1743_v41 = vld [vmem:[%s2179_s9 + $0x94] ss:$8 sps:$4 sm:$0xff]   ;;  %v1747_v43 = vld [vmem:[%s2179_s9 + $0x90] ss:$8 sps:$4 sm:$0xff]   ;;  %v1749_v45 = vld [vmem:[%s2179_s9 + $0xa4] ss:$8 sps:$4 sm:$0xff]  }
  0x77   : > { %v1745_v42 = vld [vmem:[%s2179_s9 + $0x194] ss:$8 sps:$4 sm:$0xff]   ;;  %v1748_v44 = vld [vmem:[%s2179_s9 + $0x190] ss:$8 sps:$4 sm:$0xff]   ;;  %v1751_v46 = vld [vmem:[%s2179_s9 + $0x1a4] ss:$8 sps:$4 sm:$0xff]  }
  0x78   : > { %1078 = vmatpush1.bf16.msra.mxu1 %v1711_v19  ;;  %v1753_v47 = vld [vmem:[%s2179_s9 + $0xa0] ss:$8 sps:$4 sm:$0xff]   ;;  %v1755_v49 = vld [vmem:[%s2179_s9 + $0xb4] ss:$8 sps:$4 sm:$0xff]   ;;  %v1759_v51 = vld [vmem:[%s2179_s9 + $0xb0] ss:$8 sps:$4 sm:$0xff]  }
  0x79   : > { %1121 = vmatpush1.bf16.msra.mxu0 %v1712_v20  ;;  %1079 = vmatprep.subr.bf16.mxu1 %v1713_v21  ;;  %v1754_v48 = vld [vmem:[%s2179_s9 + $0x1a0] ss:$8 sps:$4 sm:$0xff]   ;;  %v1757_v50 = vld [vmem:[%s2179_s9 + $0x1b4] ss:$8 sps:$4 sm:$0xff]   ;;  %v1760_v53 = vld [vmem:[%s2179_s9 + $0x1b0] ss:$8 sps:$4 sm:$0xff]  }
  0x7a   : > { %1122 = vmatprep.subr.bf16.mxu0 %v1715_v22  ;;  %v1787_v52 = vld [vmem:[%s2177_s6 + $0x4] ss:$16 sps:$4 sm:$0xff]   ;;  %v1790_v56 = vld [vmem:[%s2177_s6 + $0xc] ss:$16 sps:$4 sm:$0xff]   ;;  %v1765_v57 = vld [vmem:[%s2179_s9 + $0xc0] ss:$8 sps:$4 sm:$0xff]  }
  0x7b   : > { %v1761_v54 = vld [vmem:[%s2179_s9 + $0xc4] ss:$8 sps:$4 sm:$0xff]   ;;  %1103 = vmatprep.mubr.bf16.mxu1 %v1787_v52  ;;  %1146 = vmatprep.mubr.bf16.mxu0 %v1790_v56  ;;  %v1766_v58 = vld [vmem:[%s2179_s9 + $0x1c0] ss:$8 sps:$4 sm:$0xff]   ;;  %v1767_v59 = vld [vmem:[%s2179_s9 + $0xd4] ss:$8 sps:$4 sm:$0xff]  }
  0x7c   : > { %1080 = vmatpush1.bf16.msra.mxu1 %v1717_v23  ;;  %v1763_v55 = vld [vmem:[%s2179_s9 + $0x1c4] ss:$8 sps:$4 sm:$0xff]   ;;  %v1769_v60 = vld [vmem:[%s2179_s9 + $0x1d4] ss:$8 sps:$4 sm:$0xff]   ;;  %v1771_v61 = vld [vmem:[%s2179_s9 + $0xd0] ss:$8 sps:$4 sm:$0xff]  }
  0x7d   : > { %1123 = vmatpush1.bf16.msra.mxu0 %v1718_v24  ;;  %1081 = vmatprep.subr.bf16.mxu1 %v1719_v25  ;;  %v1772_v62 = vld [vmem:[%s2179_s9 + $0x1d0] ss:$8 sps:$4 sm:$0xff]   ;;  %v1773_v63 = vld [vmem:[%s2179_s9 + $0xe4] ss:$8 sps:$4 sm:$0xff]   ;;  %v1777_v1 = vld [vmem:[%s2179_s9 + $0xe0] ss:$8 sps:$4 sm:$0xff]  }
  0x7e   : > { %1124 = vmatprep.subr.bf16.mxu0 %v1721_v26  ;;  %v1775_v0 = vld [vmem:[%s2179_s9 + $0x1e4] ss:$8 sps:$4 sm:$0xff]   ;;  %v1778_v2 = vld [vmem:[%s2179_s9 + $0x1e0] ss:$8 sps:$4 sm:$0xff]   ;;  %v1779_v3 = vld [vmem:[%s2179_s9 + $0xf4] ss:$8 sps:$4 sm:$0xff]  }
  0x7f   : > { %v1781_v4 = vld [vmem:[%s2179_s9 + $0x1f4] ss:$8 sps:$4 sm:$0xff]   ;;  %v1783_v5 = vld [vmem:[%s2179_s9 + $0xf0] ss:$8 sps:$4 sm:$0xff]   ;;  %v659_v10 = vld [vmem:[#allocation2] sm:$0xff]  ;;  %p1586_p5 = scmp.ne.s32.totalorder %s1861_s24, 31 }
  0x80   : > { %1082 = vmatpush1.bf16.msra.mxu1 %v1723_v27  ;;  %v1784_v6 = vld [vmem:[%s2179_s9 + $0x1f0] ss:$8 sps:$4 sm:$0xff]   ;;  %v660_v14 = vld [vmem:[#allocation2 + $0x8] sm:$0xff]  ;;  %v1880_v56 = vmov (!%p1586_p5), 1966171168  }
  0x81   : > { %1125 = vmatpush1.bf16.msra.mxu0 %v1724_v28  ;;  %1083 = vmatprep.subr.bf16.mxu1 %v1725_v29  ;;  %v1785_v7 = vld [vmem:[%s2177_s6] ss:$16 sps:$4 sm:$0xff]   ;;  %v1788_v8 = vld [vmem:[%s2177_s6 + $0x8] ss:$16 sps:$4 sm:$0xff]   ;;  %v1175_v29 = vlaneseq (!%p1586_p5) }
  0x82   : > { %1126 = vmatprep.subr.bf16.mxu0 %v1727_v30  ;;  %v661_v18 = vld [vmem:[#allocation2 + $0x10] sm:$0xff]  ;;  %v662_v23 = vld [vmem:[#allocation2 + $0x18] sm:$0xff] }
  0x83   : > { %v1176_v30 = vshrl.u32 (!%p1586_p5), %v1175_v29, 7  ;;  %vm1223_vm0 = vcmp.lt.s32.totalorder (!%p1586_p5), %v1175_v29, 256 }
  0x84   : > { %1084 = vmatpush1.bf16.msra.mxu1 %v1729_v31  ;;  %v1173_v31 = vld [vmem:[%s629_s13] sm:$0x3] (!%p1586_p5) }
  0x85   : > { %1127 = vmatpush1.bf16.msra.mxu0 %v1730_v32  ;;  %1085 = vmatprep.subr.bf16.mxu1 %v1731_v33  ;;  %v1177_v33 = vsub.s32 (!%p1586_p5), 0, %v1176_v30 }
  0x86   : > { %1128 = vmatprep.subr.bf16.mxu0 %v1733_v34  ;;  %v1181_v34 = vsub.s32 (!%p1586_p5), 1, %v1176_v30 }
  0x88   : > { %1086 = vmatpush1.bf16.msra.mxu1 %v1735_v35 }
  0x89   : > { %1129 = vmatpush1.bf16.msra.mxu0 %v1736_v36  ;;  %1087 = vmatprep.subr.bf16.mxu1 %v1737_v37 }
  0x8a   : > { %1130 = vmatprep.subr.bf16.mxu0 %v1739_v38  ;;  %v1178_v38 = vrot.slane (!%p1586_p5), %v1173_v31, %v1177_v33 }
  0x8c   : > { %1088 = vmatpush1.bf16.msra.mxu1 %v1741_v39  ;;  %v1182_v39 = vrot.slane (!%p1586_p5), %v1173_v31, %v1181_v34 }
  0x8d   : > { %1131 = vmatpush1.bf16.msra.mxu0 %v1742_v40  ;;  %1089 = vmatprep.subr.bf16.mxu1 %v1743_v41 }
  0x8e   : > { %1132 = vmatprep.subr.bf16.mxu0 %v1745_v42 }
  0x90   : > { %1090 = vmatpush1.bf16.msra.mxu1 %v1747_v43 }
  0x91   : > { %1133 = vmatpush1.bf16.msra.mxu0 %v1748_v44  ;;  %1091 = vmatprep.subr.bf16.mxu1 %v1749_v45 }
  0x92   : > { %1134 = vmatprep.subr.bf16.mxu0 %v1751_v46 }
  0x94   : > { %1092 = vmatpush1.bf16.msra.mxu1 %v1753_v47 }
  0x95   : > { %1135 = vmatpush1.bf16.msra.mxu0 %v1754_v48  ;;  %1093 = vmatprep.subr.bf16.mxu1 %v1755_v49 }
  0x96   : > { %1136 = vmatprep.subr.bf16.mxu0 %v1757_v50 }
  0x98   : > { %1094 = vmatpush1.bf16.msra.mxu1 %v1759_v51 }
  0x99   : > { %1137 = vmatpush1.bf16.msra.mxu0 %v1760_v53  ;;  %1095 = vmatprep.subr.bf16.mxu1 %v1761_v54 }
  0x9a   : > { %1138 = vmatprep.subr.bf16.mxu0 %v1763_v55 }
  0x9c   : > { %1096 = vmatpush1.bf16.msra.mxu1 %v1765_v57  ;;  %v1207_v57 = vunpack.c.l.s4 (!%p1586_p5), %v1880_v56 }
  0x9d   : > { %1139 = vmatpush1.bf16.msra.mxu0 %v1766_v58  ;;  %1097 = vmatprep.subr.bf16.mxu1 %v1767_v59 }
  0x9e   : > { %1140 = vmatprep.subr.bf16.mxu0 %v1769_v60 }
  0xa0   : > { %1098 = vmatpush1.bf16.msra.mxu1 %v1771_v61 }
  0xa1   : > { %1141 = vmatpush1.bf16.msra.mxu0 %v1772_v62  ;;  %1099 = vmatprep.subr.bf16.mxu1 %v1773_v63 }
  0xa2   : > { %1142 = vmatprep.subr.bf16.mxu0 %v1775_v0 }
  0xa4   : > { %1100 = vmatpush1.bf16.msra.mxu1 %v1777_v1 }
  0xa5   : > { %1143 = vmatpush1.bf16.msra.mxu0 %v1778_v2  ;;  %1101 = vmatprep.subr.bf16.mxu1 %v1779_v3  ;;  %v1208_v2 = vunpack.c.0.s8 (!%p1586_p5), %v1207_v57 }
  0xa6   : > { %1144 = vmatprep.subr.bf16.mxu0 %v1781_v4 }
  0xa8   : > { %1102 = vmatpush1.bf16.msra.mxu1 %v1783_v5 }
  0xa9   : > { %1145 = vmatpush1.bf16.msra.mxu0 %v1784_v6 }
  0xab   : > { %1104 = vmatmul.mubr.bf16.vlgmr.msra.gmra.mrb[0].mxu1 %v1785_v7 }
  0xac   : > { %1147 = vmatmul.mubr.bf16.vlgmr.msra.gmra.mrb[0].mxu0 %v1788_v8 }
 0x17e   : > { %v1105_v9 = vpop.f32.mrb[0].mxu1 }
 0x17f   : > { %v1148_v11 = vpop.f32.mrb[0].mxu0  ;;  %v1107_v13 = vpop.f32.mrb[1].mxu1 }
 0x180   : > { %v1149_v12 = vadd.f32 %v1148_v11, %v1105_v9  ;;  %v1150_v15 = vpop.f32.mrb[1].mxu0  ;;  %v1109_v17 = vpop.f32.mrb[2].mxu1  ;;  %v1211_v11 = vsub.s32 (!%p1586_p5), %v1208_v2, %v1176_v30 }
 0x181   : > { %v1151_v16 = vadd.f32 %v1150_v15, %v1107_v13  ;;  %v1152_v19 = vpop.f32.mrb[2].mxu0  ;;  %v1111_v22 = vpop.f32.mrb[3].mxu1  ;;  %1168 = sbr.rel (%p1586_p5) target bundleno = 424 (0x1a8), region = 101 }
 0x182   : > { %v1157_v20 = vadd.f32 %v1149_v12, %v659_v10  ;;  %v1153_v21 = vadd.f32 %v1152_v19, %v1109_v17  ;;  %v1154_v24 = vpop.f32.mrb[3].mxu0 }
 0x183   : > { %v1158_v25 = vadd.f32 %v1151_v16, %v660_v14  ;;  %v1155_v26 = vadd.f32 %v1154_v24, %v1111_v22 }
 0x184   : > { %1161 = vst [vmem:[#allocation2] sm:$0xff] %v1157_v20  ;;  %v1159_v27 = vadd.f32 %v1153_v21, %v661_v18 }
 0x185   : > { %1162 = vst [vmem:[#allocation2 + $0x8] sm:$0xff] %v1158_v25  ;;  %v1160_v28 = vadd.f32 %v1155_v26, %v662_v23 }
 0x186   : > { %1163 = vst [vmem:[#allocation2 + $0x10] sm:$0xff] %v1159_v27 }
 0x187   : > { %1164 = vst [vmem:[#allocation2 + $0x18] sm:$0xff] %v1160_v28 }
 0x18b   : > { %v1169_v32 = vld [vmem:[#allocation2] sm:$0xff] }
 0x18c   : > { %v1170_v35 = vld [vmem:[#allocation2 + $0x8] sm:$0xff]  ;;  %v1185_v40 = vadd.f32 %v1178_v38, %v1169_v32 }
 0x18d   : > { %v1171_v36 = vld [vmem:[#allocation2 + $0x10] sm:$0xff]  ;;  %v1186_v41 = vadd.f32 %v1182_v39, %v1170_v35 }
 0x18e   : > { %v1172_v37 = vld [vmem:[#allocation2 + $0x18] sm:$0xff]  ;;  %v1187_v42 = vadd.f32 %v1178_v38, %v1171_v36  ;;  %1263 = vst [vmem:[%s2181_s1] sm:$0xff] %v1185_v40  ;;  %v1226_v46 = vmul.f32 %v1185_v40, %v1185_v40 }
 0x18f   : > { %v1188_v43 = vadd.f32 %v1182_v39, %v1172_v37  ;;  %1264 = vst [vmem:[%s2181_s1 + $0x8] sm:$0xff] %v1186_v41  ;;  %v1227_v47 = vmul.f32 %v1186_v41, %v1186_v41 }
 0x190   : > { %v1189_v44 = vadd.f32 %v1187_v42, %v1185_v40  ;;  %1265 = vst [vmem:[%s2181_s1 + $0x10] sm:$0xff] %v1187_v42  ;;  %v1228_v48 = vmul.f32 %v1187_v42, %v1187_v42 }
 0x191   : > { %v1196_v45 = vadd.f32 %v1188_v43, %v1186_v41  ;;  %1266 = vst [vmem:[%s2181_s1 + $0x18] sm:$0xff] %v1188_v43  ;;  %v1229_v49 = vmul.f32 %v1188_v43, %v1188_v43 }
 0x192   : > { %v1190_v50 = vrot.slane %v1189_v44, 4  ;;  %v1230_v52 = vadd.f32 %v1228_v48, %v1226_v46 }
 0x193   : > { %v1197_v51 = vrot.slane %v1196_v45, 4  ;;  %v1237_v53 = vadd.f32 %v1229_v49, %v1227_v47 }
 0x194   : > { %v1191_v54 = vadd.f32 %v1190_v50, %v1189_v44  ;;  %v1231_v58 = vrot.slane %v1230_v52, 4 }
 0x195   : > { %v1198_v55 = vadd.f32 %v1197_v51, %v1196_v45  ;;  %v1238_v59 = vrot.slane %v1237_v53, 4 }
 0x196   : > { %v1192_v60 = vrot.slane %v1191_v54, 2  ;;  %v1232_v62 = vadd.f32 %v1231_v58, %v1230_v52 }
 0x197   : > { %v1199_v61 = vrot.slane %v1198_v55, 2  ;;  %v1239_v63 = vadd.f32 %v1238_v59, %v1237_v53 }
 0x198   : > { %v1193_v0 = vadd.f32 %v1192_v60, %v1191_v54  ;;  %v1233_v3 = vrot.slane %v1232_v62, 2 }
 0x199   : > { %v1200_v1 = vadd.f32 %v1199_v61, %v1198_v55  ;;  %v1240_v4 = vrot.slane %v1239_v63, 2 }
 0x19a   : > { %v1194_v5 = vrot.slane %v1193_v0, 1  ;;  %v1234_v7 = vadd.f32 %v1233_v3, %v1232_v62 }
 0x19b   : > { %v1201_v6 = vrot.slane %v1200_v1, 1  ;;  %v1241_v8 = vadd.f32 %v1240_v4, %v1239_v63 }
 0x19c   : > { %v1195_v9 = vadd.f32 %v1194_v5, %v1193_v0  ;;  %v1235_v12 = vrot.slane %v1234_v7, 1 }
 0x19d   : > { %v1202_v10 = vadd.f32 %v1201_v6, %v1200_v1  ;;  %v1242_v13 = vrot.slane %v1241_v8, 1 }
 0x19e   : > { %v1236_v15 = vadd.f32 %v1235_v12, %v1234_v7 }
 0x19f   : > { %v1205_v14 = vcombine.low %v1195_v9, %v1202_v10  ;;  %v1243_v16 = vadd.f32 %v1242_v13, %v1241_v8 }
 0x1a1   : > { %v1212_v17 = vrot.slane %v1205_v14, %v1211_v11  ;;  %v1246_v18 = vcombine.low %v1236_v15, %v1243_v16 }
 0x1a3   : > { %v1219_v19 = vrot.slane %v1212_v17, %v1211_v11  ;;  %v1253_v20 = vrot.slane %v1246_v18, %v1211_v11 }
 0x1a5   : > { %1225 = vst.msk [vmem:[%s640_s22] sm:$0x3] %vm1223_vm0, %v1219_v19  ;;  %v1260_v21 = vrot.slane %v1253_v20, %v1211_v11 }
 0x1a7   : > { %1262 = vst.msk [vmem:[%s649_s18] sm:$0x3] %vm1223_vm0, %v1260_v21 }
 0x1a8 PF: > { %1289 = sbr.rel (!%p2005_p12) target bundleno = 431 (0x1af), region = 105  ;;  %s1594_s13 = sshll.u32 (%p2005_p12), %s1865_s25, 4  ;;  %v1308_v22 = vld [vmem:[%s2181_s1] sm:$0xff] (%p2005_p12)  ;;  %v1310_v23 = vld [vmem:[%s2181_s1 + $0x8] sm:$0xff] (%p2005_p12)  ;;  %v1312_v24 = vld [vmem:[%s2181_s1 + $0x10] sm:$0xff] (%p2005_p12) }
 0x1a9   : > { %s1295_s22 = scalar_lea.vmem (%p2005_p12), %s2318_s3, %s1594_s13  ;;  %v1314_v25 = vld [vmem:[%s2181_s1 + $0x18] sm:$0xff] (%p2005_p12) }
 0x1aa   : > { %1309 = vst [vmem:[%s1295_s22] sm:$0xff] (%p2005_p12), %v1308_v22  ;;  %1311 = vst [vmem:[%s1295_s22 + $0x8] sm:$0xff] (%p2005_p12), %v1310_v23 }
 0x1ab   : > { %1313 = vst [vmem:[%s1295_s22 + $0x20] sm:$0xff] (%p2005_p12), %v1312_v24  ;;  %1315 = vst [vmem:[%s1295_s22 + $0x28] sm:$0xff] (%p2005_p12), %v1314_v25 }
 0x1af PF: > { %s16_s28 = sadd.s32 1, %s1877_s28   ;;  %s2333_s25 = sld [smem:[#allocation8_spill]] }
 0x1b0   : > { %p13_p6 = scmp.ge.s32.totalorder %s16_s28, 66   ;;  %s2334_s30 = sld [smem:[#allocation6_spill]] }
 0x1b1   : > { %s2335_s7 = sld [smem:[#allocation7_spill]]  ;;  %s2336_s18 = smov %s1841_s19 }
 0x1b2   : > { %s2337_s19 = smov %s2003_s17  ;;  %s2338_s20 = smov %s1849_s21 }
 0x1b3   : > { %s2339_s21 = smov %s2000_s16  ;;  %s2340_s22 = smov %s1857_s23 }
 0x1b4   : > { %s2342_s24 = smov %s1869_s26  ;;  %15 = sbr.rel (!%p13_p6) target bundleno = 9 (0x9), region = 194 }
 0x1b5   : > { %s2341_s23 = smov %s2333_s25  ;;  %s2343_s25 = smov %s1873_s27 }
 0x1b6   : > { %s2344_s26 = smov %s2334_s30 }
 0x1b7   : > { %s2345_s27 = smov %s2335_s7 }

// kernel: discriminator_forward.21
= control target key start
LH: loop header
LB: loop body
LE: loop exit
PB: predicated region body
PF: predicated region fallthrough
CT: control target
= control target key end

     0   :  { %s687_s1 = inlined_call_operand.vmem [shape: bf16[512,128], index: 1, kind: input, shape index: {}]   ;;  %s688_s0 = inlined_call_operand.vmem [shape: bf16[16,512], index: 0, kind: input, shape index: {}]   ;;  %s689_s2 = inlined_call_operand.vmem [shape: f32[1,128], index: 2, kind: input, shape index: {}]   ;;  %s690_s3 = inlined_call_operand.vmem [shape: f32[16,128], index: 3, kind: output, shape index: {}]  }
   0x1   :  { %v504_v0 = vld [vmem:[%s687_s1 + $0x40] sm:$0xff]   ;;  %v508_v4 = vld [vmem:[%s687_s1 + $0x48] sm:$0xff]   ;;  %v512_v8 = vld [vmem:[%s687_s1 + $0x50] sm:$0xff]  }
   0x2   :  { %v505_v1 = vld [vmem:[%s687_s1 + $0xc0] sm:$0xff]   ;;  %460 = vmatprep.subr.bf16.mxu0 %v504_v0  ;;  %v509_v5 = vld [vmem:[%s687_s1 + $0xc8] sm:$0xff]   ;;  %v513_v9 = vld [vmem:[%s687_s1 + $0xd0] sm:$0xff]  }
   0x3   :  { %v506_v2 = vld [vmem:[%s687_s1] sm:$0xff]   ;;  %482 = vmatprep.subr.bf16.mxu1 %v505_v1  ;;  %v510_v6 = vld [vmem:[%s687_s1 + $0x8] sm:$0xff]   ;;  %v514_v10 = vld [vmem:[%s687_s1 + $0x10] sm:$0xff]  }
   0x4   :  { %v507_v3 = vld [vmem:[%s687_s1 + $0x80] sm:$0xff]   ;;  %461 = vmatpush3.bf16.msra.mxu0 %v506_v2  ;;  %v511_v7 = vld [vmem:[%s687_s1 + $0x88] sm:$0xff]   ;;  %v515_v11 = vld [vmem:[%s687_s1 + $0x90] sm:$0xff]  }
   0x5   :  { %483 = vmatpush3.bf16.msra.mxu1 %v507_v3  ;;  %462 = vmatprep.subr.bf16.mxu0 %v508_v4  ;;  %v516_v12 = vld [vmem:[%s687_s1 + $0x58] sm:$0xff]   ;;  %v520_v16 = vld [vmem:[%s687_s1 + $0x60] sm:$0xff]   ;;  %v524_v20 = vld [vmem:[%s687_s1 + $0x68] sm:$0xff]  }
   0x6   :  { %484 = vmatprep.subr.bf16.mxu1 %v509_v5  ;;  %v517_v13 = vld [vmem:[%s687_s1 + $0xd8] sm:$0xff]   ;;  %v521_v17 = vld [vmem:[%s687_s1 + $0xe0] sm:$0xff]   ;;  %v525_v21 = vld [vmem:[%s687_s1 + $0xe8] sm:$0xff]  }
   0x7   :  { %v518_v14 = vld [vmem:[%s687_s1 + $0x18] sm:$0xff]   ;;  %v522_v18 = vld [vmem:[%s687_s1 + $0x20] sm:$0xff]   ;;  %v526_v22 = vld [vmem:[%s687_s1 + $0x28] sm:$0xff]  }
   0x8   :  { %463 = vmatpush3.bf16.msra.mxu0 %v510_v6  ;;  %v519_v15 = vld [vmem:[%s687_s1 + $0x98] sm:$0xff]   ;;  %v523_v19 = vld [vmem:[%s687_s1 + $0xa0] sm:$0xff]   ;;  %v527_v23 = vld [vmem:[%s687_s1 + $0xa8] sm:$0xff]  }
   0x9   :  { %485 = vmatpush3.bf16.msra.mxu1 %v511_v7  ;;  %464 = vmatprep.subr.bf16.mxu0 %v512_v8  ;;  %v528_v24 = vld [vmem:[%s687_s1 + $0x70] sm:$0xff]   ;;  %v532_v28 = vld [vmem:[%s687_s1 + $0x78] sm:$0xff]   ;;  %v457_v45 = vld [vmem:[%s689_s2] ss:$0 sm:$0xff] }
   0xa   :  { %486 = vmatprep.subr.bf16.mxu1 %v513_v9  ;;  %v529_v25 = vld [vmem:[%s687_s1 + $0xf0] sm:$0xff]   ;;  %v533_v29 = vld [vmem:[%s687_s1 + $0xf8] sm:$0xff]  }
   0xb   :  { %v530_v26 = vld [vmem:[%s687_s1 + $0x30] sm:$0xff]   ;;  %v534_v30 = vld [vmem:[%s687_s1 + $0x38] sm:$0xff]  }
   0xc   :  { %465 = vmatpush3.bf16.msra.mxu0 %v514_v10  ;;  %v531_v27 = vld [vmem:[%s687_s1 + $0xb0] sm:$0xff]   ;;  %v535_v31 = vld [vmem:[%s687_s1 + $0xb8] sm:$0xff]  }
   0xd   :  { %487 = vmatpush3.bf16.msra.mxu1 %v515_v11  ;;  %466 = vmatprep.subr.bf16.mxu0 %v516_v12  ;;  %v536_v32 = vld [vmem:[%s688_s0] ss:$16 sps:$4 sm:$0xff]   ;;  %v538_v33 = vld [vmem:[%s688_s0 + $0x4] ss:$16 sps:$4 sm:$0xff]   ;;  %v539_v34 = vld [vmem:[%s688_s0 + $0x8] ss:$16 sps:$4 sm:$0xff]  }
   0xe   :  { %488 = vmatprep.subr.bf16.mxu1 %v517_v13  ;;  %v541_v35 = vld [vmem:[%s688_s0 + $0xc] ss:$16 sps:$4 sm:$0xff]   ;;  %335 = vmatprep.mubr.bf16.mxu0 %v538_v33 }
   0xf   :  { %376 = vmatprep.mubr.bf16.mxu1 %v541_v35 }
  0x10   :  { %467 = vmatpush3.bf16.msra.mxu0 %v518_v14 }
  0x11   :  { %489 = vmatpush3.bf16.msra.mxu1 %v519_v15  ;;  %468 = vmatprep.subr.bf16.mxu0 %v520_v16 }
  0x12   :  { %490 = vmatprep.subr.bf16.mxu1 %v521_v17 }
  0x14   :  { %469 = vmatpush3.bf16.msra.mxu0 %v522_v18 }
  0x15   :  { %491 = vmatpush3.bf16.msra.mxu1 %v523_v19  ;;  %470 = vmatprep.subr.bf16.mxu0 %v524_v20 }
  0x16   :  { %492 = vmatprep.subr.bf16.mxu1 %v525_v21 }
  0x18   :  { %471 = vmatpush3.bf16.msra.mxu0 %v526_v22 }
  0x19   :  { %493 = vmatpush3.bf16.msra.mxu1 %v527_v23  ;;  %472 = vmatprep.subr.bf16.mxu0 %v528_v24 }
  0x1a   :  { %494 = vmatprep.subr.bf16.mxu1 %v529_v25 }
  0x1c   :  { %473 = vmatpush3.bf16.msra.mxu0 %v530_v26 }
  0x1d   :  { %495 = vmatpush3.bf16.msra.mxu1 %v531_v27  ;;  %474 = vmatprep.subr.bf16.mxu0 %v532_v28 }
  0x1e   :  { %496 = vmatprep.subr.bf16.mxu1 %v533_v29 }
  0x20   :  { %475 = vmatpush3.bf16.msra.mxu0 %v534_v30 }
  0x21   :  { %497 = vmatpush3.bf16.msra.mxu1 %v535_v31 }
  0x23   :  { %336 = vmatmul.mubr.bf16.vlgmr.msra.gmra.mrb[0].mxu0 %v536_v32 }
  0x24   :  { %377 = vmatmul.mubr.bf16.vlgmr.msra.gmra.mrb[0].mxu1 %v539_v34 }
  0xf6   :  { %v476_v36 = vpop.f32.mrb[0].mxu0 }
  0xf7   :  { %v498_v37 = vpop.f32.mrb[0].mxu1  ;;  %v477_v38 = vpop.f32.mrb[1].mxu0 }
  0xf8   :  { %v478_v39 = vadd.f32 %v477_v38, %v476_v36  ;;  %v499_v40 = vpop.f32.mrb[1].mxu1  ;;  %v479_v41 = vpop.f32.mrb[2].mxu0 }
  0xf9   :  { %v500_v42 = vadd.f32 %v499_v40, %v498_v37  ;;  %v501_v43 = vpop.f32.mrb[2].mxu1  ;;  %v480_v44 = vpop.f32.mrb[3].mxu0 }
  0xfa   :  { %v481_v46 = vadd.f32 %v480_v44, %v479_v41  ;;  %v502_v47 = vpop.f32.mrb[3].mxu1 }
  0xfb   :  { %v379_v48 = vadd.f32 %v500_v42, %v478_v39  ;;  %v503_v49 = vadd.f32 %v502_v47, %v501_v43 }
  0xfd   :  { %v401_v50 = vadd.f32 %v457_v45, %v379_v48  ;;  %v382_v51 = vadd.f32 %v503_v49, %v481_v46 }
  0xff   :  { %v458_v52 = vmul.f32 -1.442695, %v401_v50  ;;  %v402_v53 = vadd.f32 %v457_v45, %v382_v51 }
 0x101   :  { %542 = vpow2.f32 %v458_v52  ;;  %v459_v54 = vmul.f32 -1.442695, %v402_v53 }
 0x103   :  { %544 = vpow2.f32 %v459_v54 }
 0x10b   :  { %v543_v55 = vpop.eup %542 }
 0x10c   :  { %v409_v56 = vadd.f32 1.0, %v543_v55 }
 0x10d   :  { %v545_v57 = vpop.eup %544 }
 0x10e   :  { %546 = vrcp.f32 %v409_v56  ;;  %v410_v58 = vadd.f32 1.0, %v545_v57 }
 0x110   :  { %548 = vrcp.f32 %v410_v58 }
 0x118   :  { %v547_v59 = vpop.eup %546 }
 0x119   :  { %415 = vst [vmem:[%s690_s3] sm:$0xff] %v547_v59 }
 0x11a   :  { %v549_v60 = vpop.eup %548 }
 0x11b   :  { %416 = vst [vmem:[%s690_s3 + $0x8] sm:$0xff] %v549_v60 }

</bundles_post_ra>
